<compile_context>
chip_gen: v7x
topology: tpu7x:2x2x1
jax: 0.10.0
libtpu: 0.0.40
codegen_flags: <defaults>
</compile_context>

<pallas_src>
import functools

import jax
import jax.numpy as jnp
from jax.experimental import pallas as pl
from jax.experimental.pallas import tpu as pltpu


# ----------------------------------------------------------------------------
# The single fused kernel (one grid step = one batch element, all Np priors)
# ----------------------------------------------------------------------------
def _roigather_kernel(*refs, num_levels, caw, dim, eps=1e-5):
    L = num_levels
    idx = 0
    x_refs = refs[idx:idx + L]; idx += L      # (Np, Ns*Cin) bf16 per refine level
    wc_refs = refs[idx:idx + L]; idx += L     # (Ns*Cin, Ns*mid) bf16 banded conv weights
    bc_refs = refs[idx:idx + L]; idx += L     # (1, Ns*mid) f32 folded BN shifts
    (wcat_ref, bcat_ref, wfc_ref, bfc_ref, lng_ref, lnb_ref,
     fm_ref, tt_ref, mask_ref,
     wq_ref, bq_ref, wtqkv_ref, btqkv_ref, wkv_ref, bkv_ref,
     ww_ref, bw_ref, out_ref) = refs[idx:]

    f32 = jnp.float32
    bf16 = jnp.bfloat16

    # ---- roi_fea: per-level (9,1) conv + BN + ReLU as one banded dense matmul each
    zs = []
    for i in range(L):
        z = jnp.dot(x_refs[i][...], wc_refs[i][...], preferred_element_type=f32)
        z = jnp.maximum(z + bc_refs[i][...], 0.0)
        zs.append(z.astype(bf16))                       # (Np, Ns*mid)

    # ---- channel concat + catconv + BN + ReLU  (sum of per-level dots == concat @ Wcat)
    csz = zs[0].shape[1]                                # Ns * mid
    flat = jnp.dot(zs[0], wcat_ref[0:csz, :], preferred_element_type=f32)
    for i in range(1, L):
        flat = flat + jnp.dot(zs[i], wcat_ref[i * csz:(i + 1) * csz, :],
                              preferred_element_type=f32)
    flat = jnp.maximum(flat + bcat_ref[...], 0.0)       # (Np, Ns*Cin) == fc-ready layout

    # ---- fc + LayerNorm + ReLU (f32 epilogue)
    h = jnp.dot(flat.astype(bf16), wfc_ref[...], preferred_element_type=f32) + bfc_ref[...]
    mu = jnp.mean(h, axis=-1, keepdims=True)
    var = jnp.mean((h - mu) ** 2, axis=-1, keepdims=True)
    roi = (h - mu) * jax.lax.rsqrt(var + eps) * lng_ref[...] + lnb_ref[...]
    roi = jnp.maximum(roi, 0.0)                         # (Np, Hd=C) f32

    # ---- AnchorVecFeatureMapAttention ----
    C = dim
    tt = tt_ref[0]                                      # (1, C) bf16
    tqkv = jnp.dot(tt, wtqkv_ref[...], preferred_element_type=f32) + btqkv_ref[...]
    tqkv = jnp.maximum(tqkv, 0.0)                       # (1, 3C): [t_query|t_key|t_value]
    t_q = tqkv[:, 0:C]
    t_k = tqkv[:, C:2 * C]
    t_v = tqkv[:, 2 * C:3 * C]

    # f_query: per-prior (grouped) scale + bias + ReLU; fold the dim**-0.5 into Q
    query = jnp.maximum(roi * wq_ref[...] + bq_ref[...], 0.0) + t_q
    query = query * (float(dim) ** -0.5)                # (Np, C)

    # f_key (1x1 conv + folded BN + ReLU) and f_value (1x1 conv + bias) in one matmul
    fm = fm_ref[0]                                      # (S_pad, C) bf16 resized fmap
    kv = jnp.dot(fm, wkv_ref[...], preferred_element_type=f32) + bkv_ref[...]
    key = jnp.maximum(kv[:, 0:C], 0.0) + t_k            # (S_pad, C)
    value = kv[:, C:2 * C] + t_v                        # (S_pad, C)

    # sim = Q @ K^T, mask padded columns, softmax over positions
    sim = jax.lax.dot_general(query.astype(bf16), key.astype(bf16),
                              (((1,), (1,)), ((), ())),
                              preferred_element_type=f32)    # (Np, S_pad)
    sim = sim + mask_ref[...]                                # -1e30 on the 6 padded cols
    sim = sim - jnp.max(sim, axis=-1, keepdims=True)
    p = jnp.exp(sim)
    denom = jnp.sum(p, axis=-1, keepdims=True)
    ctx = jnp.dot(p.astype(bf16), value.astype(bf16), preferred_element_type=f32)
    ctx = ctx * pl.reciprocal(denom, approx=True)            # normalize after PV matmul
    ctx = ctx * ww_ref[...] + bw_ref[...]                    # W: per-prior scale + bias

    out_ref[...] = (roi + caw * ctx).astype(out_ref.dtype)


# ----------------------------------------------------------------------------
# JAX glue (layout plumbing only)
# ----------------------------------------------------------------------------
def nearest_resize_pad(fmap, size=(10, 25), s_pad=256):
    """F.interpolate(x, (10,25), 'nearest') + flatten(2), as (B, S_pad, C) with zero pad."""
    B, C, H, W = fmap.shape
    iy = (jnp.arange(size[0]) * H) // size[0]
    ix = (jnp.arange(size[1]) * W) // size[1]
    x = fmap[:, :, iy, :][:, :, :, ix]                  # (B, C, 10, 25)
    x = x.reshape(B, C, size[0] * size[1])
    x = jnp.transpose(x, (0, 2, 1))                     # (B, S, C)
    S = size[0] * size[1]
    return jnp.pad(x, ((0, 0), (0, s_pad - S), (0, 0)))


def roi_gather_forward(params, roi_features, fmap_pyramid, layer_index, time_token,
                       *, num_priors, in_channels, cross_attention_weight):
    fmap = fmap_pyramid[layer_index]
    B, C, Np = fmap.shape[0], in_channels, num_priors
    L = len(roi_features)
    assert L == layer_index + 1
    Ns = roi_features[0].shape[2]
    Hd = params["fc_w"].shape[1]
    assert Hd == C, "attention requires fc_hidden_dim == in_channels"
    N = B * Np
    S_pad = params["mask"].shape[1]
    bf16 = jnp.bfloat16

    # (B*Np, Cin, Ns, 1) -> lane-dense rows (B*Np, Ns*Cin), bf16 MXU operands (halved DMA)
    xs = [jnp.transpose(f[:, :, :, 0], (0, 2, 1)).reshape(N, Ns * C).astype(bf16)
          for f in roi_features]
    fmap_rs = nearest_resize_pad(fmap, s_pad=S_pad).astype(bf16)     # (B, S_pad, C)
    tt = time_token.reshape(B, 1, C).astype(bf16)

    cm = lambda b: (0, 0)       # shared weights / biases
    row = lambda b: (b, 0)      # per-batch row block of priors
    b3 = lambda b: (b, 0, 0)

    in_specs = (
        [pl.BlockSpec((Np, Ns * C), row) for _ in range(L)]
        + [pl.BlockSpec(w.shape, cm) for w in params["conv_w"][:L]]
        + [pl.BlockSpec(b.shape, cm) for b in params["conv_b"][:L]]
        + [pl.BlockSpec(params["cat_w"][layer_index].shape, cm),
           pl.BlockSpec(params["cat_b"][layer_index].shape, cm),
           pl.BlockSpec(params["fc_w"].shape, cm),
           pl.BlockSpec(params["fc_b"].shape, cm),
           pl.BlockSpec(params["ln_g"].shape, cm),
           pl.BlockSpec(params["ln_b"].shape, cm),
           pl.BlockSpec((1, S_pad, C), b3),
           pl.BlockSpec((1, 1, C), b3),
           pl.BlockSpec((1, S_pad), cm),
           pl.BlockSpec((Np, 1), cm),
           pl.BlockSpec((Np, 1), cm),
           pl.BlockSpec(params["attn_wtqkv"].shape, cm),
           pl.BlockSpec(params["attn_btqkv"].shape, cm),
           pl.BlockSpec(params["attn_wkv"].shape, cm),
           pl.BlockSpec(params["attn_bkv"].shape, cm),
           pl.BlockSpec((Np, 1), cm),
           pl.BlockSpec((Np, 1), cm)]
    )
    operands = (
        xs
        + list(params["conv_w"][:L]) + list(params["conv_b"][:L])
        + [params["cat_w"][layer_index], params["cat_b"][layer_index],
           params["fc_w"], params["fc_b"], params["ln_g"], params["ln_b"],
           fmap_rs, tt, params["mask"],
           params["attn_wq"], params["attn_bq"],
           params["attn_wtqkv"], params["attn_btqkv"],
           params["attn_wkv"], params["attn_bkv"],
           params["attn_ww"], params["attn_bw"]]
    )

    kernel = functools.partial(_roigather_kernel, num_levels=L,
                               caw=float(cross_attention_weight), dim=int(C))
    out = pl.pallas_call(
        kernel,
        out_shape=jax.ShapeDtypeStruct((N, Hd), jnp.float32),
        grid=(B,),
        in_specs=in_specs,
        out_specs=pl.BlockSpec((Np, Hd), row),
        compiler_params=pltpu.CompilerParams(dimension_semantics=("parallel",)),
    )(*operands)
    return out.reshape(B, Np, Hd)


# ----------------------------------------------------------------------------
# Deterministic parameter init (torch layouts -> kernel-ready packed layouts)
# ----------------------------------------------------------------------------
def init_params(key, *, in_channels, num_priors, sample_points, fc_hidden_dim,
                refine_layers, mid_channels, s_valid=250, s_pad=256):
    C, Np, Ns = in_channels, num_priors, sample_points
    Hd, L, mid = fc_hidden_dim, refine_layers, mid_channels
    keys = iter(jax.random.split(key, 64))

    def nrm(shape, s=0.1):
        return jax.random.normal(next(keys), shape, jnp.float32) * s

    eps = 1e-5

    def bn_fold(n):  # eval-mode BatchNorm folded into (scale, shift)
        gamma = 1.0 + nrm((n,), 0.05)
        beta = nrm((n,), 0.05)
        mean = nrm((n,), 0.05)
        var = 1.0 + jnp.abs(nrm((n,), 0.05))
        scale = gamma / jnp.sqrt(var + eps)
        return scale, beta - mean * scale

    def conv9_as_dense(w, scale):
        # w: (M, Cin, 9)  == torch Conv2d weight (M, Cin, 9, 1) squeezed.
        # Returns (Ns*Cin, Ns*M): the (9,1) conv with padding (4,0) over the Ns axis as
        # one dense (block-banded) matmul on the (s*Cin + c) flattened row layout, with
        # the eval-mode BN scale folded into the output columns.
        M, Cin, K = w.shape
        s = jnp.arange(Ns)[:, None]            # input sample position
        sp = jnp.arange(Ns)[None, :]           # output sample position
        k = s - sp + (K // 2)                  # cross-correlation tap index
        valid = (k >= 0) & (k < K)
        kc = jnp.clip(k, 0, K - 1)
        w_t = jnp.transpose(w, (2, 1, 0))                          # (K, Cin, M)
        band = w_t[kc] * valid[:, :, None, None].astype(w.dtype)   # (Ns, Ns, Cin, M)
        band = band * scale[None, None, None, :]
        return jnp.transpose(band, (0, 2, 1, 3)).reshape(Ns * Cin, Ns * M)

    bf16 = jnp.bfloat16
    conv_w, conv_b = [], []
    for _ in range(L):
        wt = nrm((mid, C, 9))
        scale, shift = bn_fold(mid)
        conv_w.append(conv9_as_dense(wt, scale).astype(bf16))
        conv_b.append(jnp.tile(shift, Ns).reshape(1, Ns * mid))

    cat_w, cat_b = [], []
    for i in range(L):
        cmid = mid * (i + 1)
        wt = nrm((C, cmid, 9))
        scale, shift = bn_fold(C)
        dense = conv9_as_dense(wt, scale)          # rows ordered (s, level*mid + m)
        # reorder rows to (level, s, m) so they line up with the per-level z blocks
        dense = dense.reshape(Ns, i + 1, mid, Ns * C).transpose(1, 0, 2, 3)
        cat_w.append(dense.reshape(cmid * Ns, Ns * C).astype(bf16))
        cat_b.append(jnp.tile(shift, Ns).reshape(1, Ns * C))

    # fc: torch Linear(Ns*C -> Hd) acts on the (c*Ns + s) flattening; permute its input
    # dimension to the kernel's (s*C + c) layout (zero-cost, done once here).
    fc_t = nrm((Hd, Ns * C))
    fc_w = fc_t.reshape(Hd, C, Ns).transpose(2, 1, 0).reshape(Ns * C, Hd).astype(bf16)
    fc_b = nrm((Hd,)).reshape(1, Hd)
    ln_g = (1.0 + nrm((Hd,), 0.05)).reshape(1, Hd)
    ln_b = nrm((Hd,), 0.05).reshape(1, Hd)

    # attention: pack t_query|t_key|t_value -> (C, 3C), f_key(BN folded)|f_value -> (C, 2C)
    wtq, wtk, wtv = nrm((C, C)), nrm((C, C)), nrm((C, C))
    btq, btk, btv = nrm((C,)), nrm((C,)), nrm((C,))
    attn_wtqkv = jnp.concatenate([wtq.T, wtk.T, wtv.T], axis=1).astype(bf16)
    attn_btqkv = jnp.concatenate([btq, btk, btv]).reshape(1, 3 * C)

    wk, wv = nrm((C, C)), nrm((C, C))
    kscale, kshift = bn_fold(C)
    bv = nrm((C,))
    attn_wkv = jnp.concatenate([wk.T * kscale[None, :], wv.T], axis=1).astype(bf16)
    attn_bkv = jnp.concatenate([kshift, bv]).reshape(1, 2 * C)

    mask = jnp.where(jnp.arange(s_pad) < s_valid, 0.0, -1e30)
    mask = mask.astype(jnp.float32).reshape(1, s_pad)

    return dict(
        conv_w=conv_w, conv_b=conv_b, cat_w=cat_w, cat_b=cat_b,
        fc_w=fc_w, fc_b=fc_b, ln_g=ln_g, ln_b=ln_b,
        attn_wq=nrm((Np, 1)), attn_bq=nrm((Np, 1)),
        attn_wtqkv=attn_wtqkv, attn_btqkv=attn_btqkv,
        attn_wkv=attn_wkv, attn_bkv=attn_bkv,
        # PyTorch zero-inits W; small random values here so the path is exercised.
        attn_ww=nrm((Np, 1), 0.05), attn_bw=nrm((Np, 1), 0.05),
        mask=mask,
    )


# ----------------------------------------------------------------------------
if __name__ == "__main__":
    # AnchorVecFeatureMapAttention hard-codes 192 priors, 250 resized pixels and 64
    # channels, so in_channels = fc_hidden_dim = 64 and num_priors = 192.
    B, Cin, Np, Ns, Hd, L, mid = 2, 64, 192, 8, 64, 2, 16
    layer_index = 1

    key = jax.random.PRNGKey(0)
    kp, k1, k2, k3, k4, kt = jax.random.split(key, 6)
    params = init_params(kp, in_channels=Cin, num_priors=Np, sample_points=Ns,
                         fc_hidden_dim=Hd, refine_layers=L, mid_channels=mid)

    roi_features = [
        jax.random.normal(k1, (B * Np, Cin, Ns, 1), jnp.float32),
        jax.random.normal(k2, (B * Np, Cin, Ns, 1), jnp.float32),
    ]
    fmap_pyramid = [
        jax.random.normal(k3, (B, Cin, 16, 24), jnp.float32),
        jax.random.normal(k4, (B, Cin, 8, 12), jnp.float32),
    ]
    time_token = jax.random.normal(kt, (B, Cin), jnp.float32)

    fwd = jax.jit(lambda p, rf, fp, tt: roi_gather_forward(
        p, rf, fp, layer_index, tt,
        num_priors=Np, in_channels=Cin, cross_attention_weight=1.0))

    out = jax.block_until_ready(fwd(params, roi_features, fmap_pyramid, time_token))
    assert out.shape == (B, Np, Hd), out.shape
    assert bool(jnp.all(jnp.isfinite(out)))
    print("KERNEL_OK")
</pallas_src>

<mosaic_0001>
module attributes {stable_mosaic.version = 11 : i64} {
  func.func @_roigather_kernel(%arg0: i32, %arg1: memref<192x512xbf16, #tpu.memory_space<vmem>>, %arg2: memref<192x512xbf16, #tpu.memory_space<vmem>>, %arg3: memref<512x128xbf16, #tpu.memory_space<vmem>>, %arg4: memref<512x128xbf16, #tpu.memory_space<vmem>>, %arg5: memref<1x128xf32, #tpu.memory_space<vmem>>, %arg6: memref<1x128xf32, #tpu.memory_space<vmem>>, %arg7: memref<256x512xbf16, #tpu.memory_space<vmem>>, %arg8: memref<1x512xf32, #tpu.memory_space<vmem>>, %arg9: memref<512x64xbf16, #tpu.memory_space<vmem>>, %arg10: memref<1x64xf32, #tpu.memory_space<vmem>>, %arg11: memref<1x64xf32, #tpu.memory_space<vmem>>, %arg12: memref<1x64xf32, #tpu.memory_space<vmem>>, %arg13: memref<1x256x64xbf16, #tpu.memory_space<vmem>>, %arg14: memref<1x1x64xbf16, #tpu.memory_space<vmem>>, %arg15: memref<1x256xf32, #tpu.memory_space<vmem>>, %arg16: memref<192x1xf32, #tpu.memory_space<vmem>>, %arg17: memref<192x1xf32, #tpu.memory_space<vmem>>, %arg18: memref<64x192xbf16, #tpu.memory_space<vmem>>, %arg19: memref<1x192xf32, #tpu.memory_space<vmem>>, %arg20: memref<64x128xbf16, #tpu.memory_space<vmem>>, %arg21: memref<1x128xf32, #tpu.memory_space<vmem>>, %arg22: memref<192x1xf32, #tpu.memory_space<vmem>>, %arg23: memref<192x1xf32, #tpu.memory_space<vmem>>, %arg24: memref<192x64xf32, #tpu.memory_space<vmem>>) attributes {dimension_semantics = [#tpu.dimension_semantics<parallel>], iteration_bounds = array<i64: 2>, scalar_prefetch = 0 : i64, scratch_operands = 0 : i64, tpu.core_type = #tpu.core_type<tc>, window_params = [{transform_indices = @transform_0, window_bounds = array<i64: 192, 512>}, {transform_indices = @transform_1, window_bounds = array<i64: 192, 512>}, {pipeline_mode = #tpu.pipeline_mode<synchronous>, transform_indices = @transform_2, window_bounds = array<i64: 512, 128>}, {pipeline_mode = #tpu.pipeline_mode<synchronous>, transform_indices = @transform_3, window_bounds = array<i64: 512, 128>}, {pipeline_mode = #tpu.pipeline_mode<synchronous>, transform_indices = @transform_4, window_bounds = array<i64: 1, 128>}, {pipeline_mode = #tpu.pipeline_mode<synchronous>, transform_indices = @transform_5, window_bounds = array<i64: 1, 128>}, {pipeline_mode = #tpu.pipeline_mode<synchronous>, transform_indices = @transform_6, window_bounds = array<i64: 256, 512>}, {pipeline_mode = #tpu.pipeline_mode<synchronous>, transform_indices = @transform_7, window_bounds = array<i64: 1, 512>}, {pipeline_mode = #tpu.pipeline_mode<synchronous>, transform_indices = @transform_8, window_bounds = array<i64: 512, 64>}, {pipeline_mode = #tpu.pipeline_mode<synchronous>, transform_indices = @transform_9, window_bounds = array<i64: 1, 64>}, {pipeline_mode = #tpu.pipeline_mode<synchronous>, transform_indices = @transform_10, window_bounds = array<i64: 1, 64>}, {pipeline_mode = #tpu.pipeline_mode<synchronous>, transform_indices = @transform_11, window_bounds = array<i64: 1, 64>}, {transform_indices = @transform_12, window_bounds = array<i64: 1, 256, 64>}, {transform_indices = @transform_13, window_bounds = array<i64: 1, 1, 64>}, {pipeline_mode = #tpu.pipeline_mode<synchronous>, transform_indices = @transform_14, window_bounds = array<i64: 1, 256>}, {pipeline_mode = #tpu.pipeline_mode<synchronous>, transform_indices = @transform_15, window_bounds = array<i64: 192, 1>}, {pipeline_mode = #tpu.pipeline_mode<synchronous>, transform_indices = @transform_16, window_bounds = array<i64: 192, 1>}, {pipeline_mode = #tpu.pipeline_mode<synchronous>, transform_indices = @transform_17, window_bounds = array<i64: 64, 192>}, {pipeline_mode = #tpu.pipeline_mode<synchronous>, transform_indices = @transform_18, window_bounds = array<i64: 1, 192>}, {pipeline_mode = #tpu.pipeline_mode<synchronous>, transform_indices = @transform_19, window_bounds = array<i64: 64, 128>}, {pipeline_mode = #tpu.pipeline_mode<synchronous>, transform_indices = @transform_20, window_bounds = array<i64: 1, 128>}, {pipeline_mode = #tpu.pipeline_mode<synchronous>, transform_indices = @transform_21, window_bounds = array<i64: 192, 1>}, {pipeline_mode = #tpu.pipeline_mode<synchronous>, transform_indices = @transform_22, window_bounds = array<i64: 192, 1>}, {transform_indices = @transform_23, window_bounds = array<i64: 192, 64>}]} {
    %c0 = arith.constant 0 : index
    %c0_0 = arith.constant 0 : index
    %0 = vector.load %arg1[%c0, %c0_0] : memref<192x512xbf16, #tpu.memory_space<vmem>>, vector<192x512xbf16>
    %c0_1 = arith.constant 0 : index
    %c0_2 = arith.constant 0 : index
    %1 = vector.load %arg3[%c0_1, %c0_2] : memref<512x128xbf16, #tpu.memory_space<vmem>>, vector<512x128xbf16>
    %cst = arith.constant dense<0.000000e+00> : vector<192x128xf32>
    %2 = tpu.matmul %0, %1, %cst {dimension_numbers = #tpu.dot_dimension_numbers<[1], [0], [0], [1], [0, 0, 1, 1], [], []>} : vector<192x512xbf16>, vector<512x128xbf16>, vector<192x128xf32> -> vector<192x128xf32>
    %c0_3 = arith.constant 0 : index
    %c0_4 = arith.constant 0 : index
    %3 = vector.load %arg5[%c0_3, %c0_4] : memref<1x128xf32, #tpu.memory_space<vmem>>, vector<1x128xf32>
    %4 = vector.broadcast %3 : vector<1x128xf32> to vector<192x128xf32>
    %5 = arith.addf %2, %4 : vector<192x128xf32>
    %cst_5 = arith.constant 0.000000e+00 : f32
    %6 = vector.broadcast %cst_5 : f32 to vector<192x128xf32>
    %7 = arith.maximumf %5, %6 : vector<192x128xf32>
    %8 = arith.truncf %7 : vector<192x128xf32> to vector<192x128xbf16>
    %c0_6 = arith.constant 0 : index
    %c0_7 = arith.constant 0 : index
    %9 = vector.load %arg2[%c0_6, %c0_7] : memref<192x512xbf16, #tpu.memory_space<vmem>>, vector<192x512xbf16>
    %c0_8 = arith.constant 0 : index
    %c0_9 = arith.constant 0 : index
    %10 = vector.load %arg4[%c0_8, %c0_9] : memref<512x128xbf16, #tpu.memory_space<vmem>>, vector<512x128xbf16>
    %cst_10 = arith.constant dense<0.000000e+00> : vector<192x128xf32>
    %11 = tpu.matmul %9, %10, %cst_10 {dimension_numbers = #tpu.dot_dimension_numbers<[1], [0], [0], [1], [0, 0, 1, 1], [], []>} : vector<192x512xbf16>, vector<512x128xbf16>, vector<192x128xf32> -> vector<192x128xf32>
    %c0_11 = arith.constant 0 : index
    %c0_12 = arith.constant 0 : index
    %12 = vector.load %arg6[%c0_11, %c0_12] : memref<1x128xf32, #tpu.memory_space<vmem>>, vector<1x128xf32>
    %13 = vector.broadcast %12 : vector<1x128xf32> to vector<192x128xf32>
    %14 = arith.addf %11, %13 : vector<192x128xf32>
    %cst_13 = arith.constant 0.000000e+00 : f32
    %15 = vector.broadcast %cst_13 : f32 to vector<192x128xf32>
    %16 = arith.maximumf %14, %15 : vector<192x128xf32>
    %17 = arith.truncf %16 : vector<192x128xf32> to vector<192x128xbf16>
    %c0_14 = arith.constant 0 : index
    %c0_15 = arith.constant 0 : index
    %18 = vector.load %arg7[%c0_14, %c0_15] : memref<256x512xbf16, #tpu.memory_space<vmem>>, vector<128x512xbf16>
    %cst_16 = arith.constant dense<0.000000e+00> : vector<192x512xf32>
    %19 = tpu.matmul %8, %18, %cst_16 {dimension_numbers = #tpu.dot_dimension_numbers<[1], [0], [0], [1], [0, 0, 1, 1], [], []>} : vector<192x128xbf16>, vector<128x512xbf16>, vector<192x512xf32> -> vector<192x512xf32>
    %c128 = arith.constant 128 : index
    %c0_17 = arith.constant 0 : index
    %20 = vector.load %arg7[%c128, %c0_17] : memref<256x512xbf16, #tpu.memory_space<vmem>>, vector<128x512xbf16>
    %cst_18 = arith.constant dense<0.000000e+00> : vector<192x512xf32>
    %21 = tpu.matmul %17, %20, %cst_18 {dimension_numbers = #tpu.dot_dimension_numbers<[1], [0], [0], [1], [0, 0, 1, 1], [], []>} : vector<192x128xbf16>, vector<128x512xbf16>, vector<192x512xf32> -> vector<192x512xf32>
    %22 = arith.addf %19, %21 : vector<192x512xf32>
    %c0_19 = arith.constant 0 : index
    %c0_20 = arith.constant 0 : index
    %23 = vector.load %arg8[%c0_19, %c0_20] : memref<1x512xf32, #tpu.memory_space<vmem>>, vector<1x512xf32>
    %24 = vector.broadcast %23 : vector<1x512xf32> to vector<192x512xf32>
    %25 = arith.addf %22, %24 : vector<192x512xf32>
    %cst_21 = arith.constant 0.000000e+00 : f32
    %26 = vector.broadcast %cst_21 : f32 to vector<192x512xf32>
    %27 = arith.maximumf %25, %26 : vector<192x512xf32>
    %28 = arith.truncf %27 : vector<192x512xf32> to vector<192x512xbf16>
    %c0_22 = arith.constant 0 : index
    %c0_23 = arith.constant 0 : index
    %29 = vector.load %arg9[%c0_22, %c0_23] : memref<512x64xbf16, #tpu.memory_space<vmem>>, vector<512x64xbf16>
    %cst_24 = arith.constant dense<0.000000e+00> : vector<192x64xf32>
    %30 = tpu.matmul %28, %29, %cst_24 {dimension_numbers = #tpu.dot_dimension_numbers<[1], [0], [0], [1], [0, 0, 1, 1], [], []>} : vector<192x512xbf16>, vector<512x64xbf16>, vector<192x64xf32> -> vector<192x64xf32>
    %c0_25 = arith.constant 0 : index
    %c0_26 = arith.constant 0 : index
    %31 = vector.load %arg10[%c0_25, %c0_26] : memref<1x64xf32, #tpu.memory_space<vmem>>, vector<1x64xf32>
    %32 = vector.broadcast %31 : vector<1x64xf32> to vector<192x64xf32>
    %33 = arith.addf %30, %32 : vector<192x64xf32>
    %cst_27 = arith.constant dense<0.000000e+00> : vector<192xf32>
    %34 = vector.multi_reduction <add>, %33, %cst_27 [1] : vector<192x64xf32> to vector<192xf32>
    %35 = vector.shape_cast %34 : vector<192xf32> to vector<192x1xf32>
    %cst_28 = arith.constant 6.400000e+01 : f32
    %36 = vector.broadcast %cst_28 : f32 to vector<192x1xf32>
    %37 = arith.divf %35, %36 : vector<192x1xf32>
    %38 = vector.broadcast %37 : vector<192x1xf32> to vector<192x64xf32>
    %39 = arith.subf %33, %38 : vector<192x64xf32>
    %40 = arith.mulf %39, %39 : vector<192x64xf32>
    %cst_29 = arith.constant dense<0.000000e+00> : vector<192xf32>
    %41 = vector.multi_reduction <add>, %40, %cst_29 [1] : vector<192x64xf32> to vector<192xf32>
    %42 = vector.shape_cast %41 : vector<192xf32> to vector<192x1xf32>
    %cst_30 = arith.constant 6.400000e+01 : f32
    %43 = vector.broadcast %cst_30 : f32 to vector<192x1xf32>
    %44 = arith.divf %42, %43 : vector<192x1xf32>
    %45 = vector.broadcast %37 : vector<192x1xf32> to vector<192x64xf32>
    %46 = arith.subf %33, %45 : vector<192x64xf32>
    %cst_31 = arith.constant 9.99999974E-6 : f32
    %47 = vector.broadcast %cst_31 : f32 to vector<192x1xf32>
    %48 = arith.addf %44, %47 : vector<192x1xf32>
    %49 = math.rsqrt %48 : vector<192x1xf32>
    %50 = vector.broadcast %49 : vector<192x1xf32> to vector<192x64xf32>
    %51 = arith.mulf %46, %50 : vector<192x64xf32>
    %c0_32 = arith.constant 0 : index
    %c0_33 = arith.constant 0 : index
    %52 = vector.load %arg11[%c0_32, %c0_33] : memref<1x64xf32, #tpu.memory_space<vmem>>, vector<1x64xf32>
    %53 = vector.broadcast %52 : vector<1x64xf32> to vector<192x64xf32>
    %54 = arith.mulf %51, %53 : vector<192x64xf32>
    %c0_34 = arith.constant 0 : index
    %c0_35 = arith.constant 0 : index
    %55 = vector.load %arg12[%c0_34, %c0_35] : memref<1x64xf32, #tpu.memory_space<vmem>>, vector<1x64xf32>
    %56 = vector.broadcast %55 : vector<1x64xf32> to vector<192x64xf32>
    %57 = arith.addf %54, %56 : vector<192x64xf32>
    %cst_36 = arith.constant 0.000000e+00 : f32
    %58 = vector.broadcast %cst_36 : f32 to vector<192x64xf32>
    %59 = arith.maximumf %57, %58 : vector<192x64xf32>
    %c0_37 = arith.constant 0 : index
    %c0_38 = arith.constant 0 : index
    %c0_39 = arith.constant 0 : index
    %60 = vector.load %arg14[%c0_37, %c0_38, %c0_39] : memref<1x1x64xbf16, #tpu.memory_space<vmem>>, vector<1x1x64xbf16>
    %61 = vector.shape_cast %60 : vector<1x1x64xbf16> to vector<1x64xbf16>
    %c0_40 = arith.constant 0 : index
    %c0_41 = arith.constant 0 : index
    %62 = vector.load %arg18[%c0_40, %c0_41] : memref<64x192xbf16, #tpu.memory_space<vmem>>, vector<64x192xbf16>
    %cst_42 = arith.constant dense<0.000000e+00> : vector<1x192xf32>
    %63 = tpu.matmul %61, %62, %cst_42 {dimension_numbers = #tpu.dot_dimension_numbers<[1], [0], [0], [1], [0, 0, 1, 1], [], []>} : vector<1x64xbf16>, vector<64x192xbf16>, vector<1x192xf32> -> vector<1x192xf32>
    %c0_43 = arith.constant 0 : index
    %c0_44 = arith.constant 0 : index
    %64 = vector.load %arg19[%c0_43, %c0_44] : memref<1x192xf32, #tpu.memory_space<vmem>>, vector<1x192xf32>
    %65 = arith.addf %63, %64 : vector<1x192xf32>
    %cst_45 = arith.constant 0.000000e+00 : f32
    %66 = vector.broadcast %cst_45 : f32 to vector<1x192xf32>
    %67 = arith.maximumf %65, %66 : vector<1x192xf32>
    %68 = vector.extract_strided_slice %67 {offsets = [0, 0], sizes = [1, 64], strides = [1, 1]} : vector<1x192xf32> to vector<1x64xf32>
    %69 = vector.extract_strided_slice %67 {offsets = [0, 64], sizes = [1, 64], strides = [1, 1]} : vector<1x192xf32> to vector<1x64xf32>
    %70 = vector.extract_strided_slice %67 {offsets = [0, 128], sizes = [1, 64], strides = [1, 1]} : vector<1x192xf32> to vector<1x64xf32>
    %c0_46 = arith.constant 0 : index
    %c0_47 = arith.constant 0 : index
    %71 = vector.load %arg16[%c0_46, %c0_47] : memref<192x1xf32, #tpu.memory_space<vmem>>, vector<192x1xf32>
    %72 = vector.broadcast %71 : vector<192x1xf32> to vector<192x64xf32>
    %73 = arith.mulf %59, %72 : vector<192x64xf32>
    %c0_48 = arith.constant 0 : index
    %c0_49 = arith.constant 0 : index
    %74 = vector.load %arg17[%c0_48, %c0_49] : memref<192x1xf32, #tpu.memory_space<vmem>>, vector<192x1xf32>
    %75 = vector.broadcast %74 : vector<192x1xf32> to vector<192x64xf32>
    %76 = arith.addf %73, %75 : vector<192x64xf32>
    %cst_50 = arith.constant 0.000000e+00 : f32
    %77 = vector.broadcast %cst_50 : f32 to vector<192x64xf32>
    %78 = arith.maximumf %76, %77 : vector<192x64xf32>
    %79 = vector.broadcast %68 : vector<1x64xf32> to vector<192x64xf32>
    %80 = arith.addf %78, %79 : vector<192x64xf32>
    %cst_51 = arith.constant 1.250000e-01 : f32
    %81 = vector.broadcast %cst_51 : f32 to vector<192x64xf32>
    %82 = arith.mulf %80, %81 : vector<192x64xf32>
    %c0_52 = arith.constant 0 : index
    %c0_53 = arith.constant 0 : index
    %c0_54 = arith.constant 0 : index
    %83 = vector.load %arg13[%c0_52, %c0_53, %c0_54] : memref<1x256x64xbf16, #tpu.memory_space<vmem>>, vector<1x256x64xbf16>
    %84 = vector.shape_cast %83 : vector<1x256x64xbf16> to vector<256x64xbf16>
    %c0_55 = arith.constant 0 : index
    %c0_56 = arith.constant 0 : index
    %85 = vector.load %arg20[%c0_55, %c0_56] : memref<64x128xbf16, #tpu.memory_space<vmem>>, vector<64x128xbf16>
    %cst_57 = arith.constant dense<0.000000e+00> : vector<256x128xf32>
    %86 = tpu.matmul %84, %85, %cst_57 {dimension_numbers = #tpu.dot_dimension_numbers<[1], [0], [0], [1], [0, 0, 1, 1], [], []>} : vector<256x64xbf16>, vector<64x128xbf16>, vector<256x128xf32> -> vector<256x128xf32>
    %c0_58 = arith.constant 0 : index
    %c0_59 = arith.constant 0 : index
    %87 = vector.load %arg21[%c0_58, %c0_59] : memref<1x128xf32, #tpu.memory_space<vmem>>, vector<1x128xf32>
    %88 = vector.broadcast %87 : vector<1x128xf32> to vector<256x128xf32>
    %89 = arith.addf %86, %88 : vector<256x128xf32>
    %90 = vector.extract_strided_slice %89 {offsets = [0, 0], sizes = [256, 64], strides = [1, 1]} : vector<256x128xf32> to vector<256x64xf32>
    %cst_60 = arith.constant 0.000000e+00 : f32
    %91 = vector.broadcast %cst_60 : f32 to vector<256x64xf32>
    %92 = arith.maximumf %90, %91 : vector<256x64xf32>
    %93 = vector.broadcast %69 : vector<1x64xf32> to vector<256x64xf32>
    %94 = arith.addf %92, %93 : vector<256x64xf32>
    %95 = vector.extract_strided_slice %89 {offsets = [0, 64], sizes = [256, 64], strides = [1, 1]} : vector<256x128xf32> to vector<256x64xf32>
    %96 = vector.broadcast %70 : vector<1x64xf32> to vector<256x64xf32>
    %97 = arith.addf %95, %96 : vector<256x64xf32>
    %98 = arith.truncf %82 : vector<192x64xf32> to vector<192x64xbf16>
    %99 = arith.truncf %94 : vector<256x64xf32> to vector<256x64xbf16>
    %cst_61 = arith.constant dense<0.000000e+00> : vector<192x256xf32>
    %100 = tpu.matmul %98, %99, %cst_61 {dimension_numbers = #tpu.dot_dimension_numbers<[1], [1], [0], [0], [0, 0, 1, 0], [], []>} : vector<192x64xbf16>, vector<256x64xbf16>, vector<192x256xf32> -> vector<192x256xf32>
    %c0_62 = arith.constant 0 : index
    %c0_63 = arith.constant 0 : index
    %101 = vector.load %arg15[%c0_62, %c0_63] : memref<1x256xf32, #tpu.memory_space<vmem>>, vector<1x256xf32>
    %102 = vector.broadcast %101 : vector<1x256xf32> to vector<192x256xf32>
    %103 = arith.addf %100, %102 : vector<192x256xf32>
    %cst_64 = arith.constant dense<0xFF800000> : vector<192xf32>
    %104 = vector.multi_reduction <maximumf>, %103, %cst_64 [1] : vector<192x256xf32> to vector<192xf32>
    %105 = vector.shape_cast %104 : vector<192xf32> to vector<192x1xf32>
    %106 = vector.broadcast %105 : vector<192x1xf32> to vector<192x256xf32>
    %107 = arith.subf %103, %106 : vector<192x256xf32>
    %108 = math.exp %107 : vector<192x256xf32>
    %cst_65 = arith.constant dense<0.000000e+00> : vector<192xf32>
    %109 = vector.multi_reduction <add>, %108, %cst_65 [1] : vector<192x256xf32> to vector<192xf32>
    %110 = vector.shape_cast %109 : vector<192xf32> to vector<192x1xf32>
    %111 = arith.truncf %108 : vector<192x256xf32> to vector<192x256xbf16>
    %112 = arith.truncf %97 : vector<256x64xf32> to vector<256x64xbf16>
    %cst_66 = arith.constant dense<0.000000e+00> : vector<192x64xf32>
    %113 = tpu.matmul %111, %112, %cst_66 {dimension_numbers = #tpu.dot_dimension_numbers<[1], [0], [0], [1], [0, 0, 1, 1], [], []>} : vector<192x256xbf16>, vector<256x64xbf16>, vector<192x64xf32> -> vector<192x64xf32>
    %114 = tpu.reciprocal %110 {approx = true} : vector<192x1xf32> -> vector<192x1xf32>
    %115 = vector.broadcast %114 : vector<192x1xf32> to vector<192x64xf32>
    %116 = arith.mulf %113, %115 : vector<192x64xf32>
    %c0_67 = arith.constant 0 : index
    %c0_68 = arith.constant 0 : index
    %117 = vector.load %arg22[%c0_67, %c0_68] : memref<192x1xf32, #tpu.memory_space<vmem>>, vector<192x1xf32>
    %118 = vector.broadcast %117 : vector<192x1xf32> to vector<192x64xf32>
    %119 = arith.mulf %116, %118 : vector<192x64xf32>
    %c0_69 = arith.constant 0 : index
    %c0_70 = arith.constant 0 : index
    %120 = vector.load %arg23[%c0_69, %c0_70] : memref<192x1xf32, #tpu.memory_space<vmem>>, vector<192x1xf32>
    %121 = vector.broadcast %120 : vector<192x1xf32> to vector<192x64xf32>
    %122 = arith.addf %119, %121 : vector<192x64xf32>
    %cst_71 = arith.constant 1.000000e+00 : f32
    %123 = vector.broadcast %cst_71 : f32 to vector<192x64xf32>
    %124 = arith.mulf %123, %122 : vector<192x64xf32>
    %125 = arith.addf %59, %124 : vector<192x64xf32>
    %c0_72 = arith.constant 0 : index
    %c0_73 = arith.constant 0 : index
    %126 = vector.load %arg24[%c0_72, %c0_73] : memref<192x64xf32, #tpu.memory_space<vmem>>, vector<192x64xf32>
    tpu.vector_store %arg24[%c0_72, %c0_73], %125 {strides = array<i32>} : memref<192x64xf32, #tpu.memory_space<vmem>>, vector<192x64xf32>,
    return
  }
  func.func @transform_0(%arg0: i32) -> (i32, i32) {
    %c0_i32 = arith.constant 0 : i32
    %c0_i32_0 = arith.constant 0 : i32
    return %arg0, %c0_i32 : i32, i32
  }
  func.func @transform_1(%arg0: i32) -> (i32, i32) {
    %c0_i32 = arith.constant 0 : i32
    %c0_i32_0 = arith.constant 0 : i32
    return %arg0, %c0_i32 : i32, i32
  }
  func.func @transform_2(%arg0: i32) -> (i32, i32) {
    %c0_i32 = arith.constant 0 : i32
    %c0_i32_0 = arith.constant 0 : i32
    %c0_i32_1 = arith.constant 0 : i32
    return %c0_i32, %c0_i32_0 : i32, i32
  }
  func.func @transform_3(%arg0: i32) -> (i32, i32) {
    %c0_i32 = arith.constant 0 : i32
    %c0_i32_0 = arith.constant 0 : i32
    %c0_i32_1 = arith.constant 0 : i32
    return %c0_i32, %c0_i32_0 : i32, i32
  }
  func.func @transform_4(%arg0: i32) -> (i32, i32) {
    %c0_i32 = arith.constant 0 : i32
    %c0_i32_0 = arith.constant 0 : i32
    %c0_i32_1 = arith.constant 0 : i32
    return %c0_i32, %c0_i32_0 : i32, i32
  }
  func.func @transform_5(%arg0: i32) -> (i32, i32) {
    %c0_i32 = arith.constant 0 : i32
    %c0_i32_0 = arith.constant 0 : i32
    %c0_i32_1 = arith.constant 0 : i32
    return %c0_i32, %c0_i32_0 : i32, i32
  }
  func.func @transform_6(%arg0: i32) -> (i32, i32) {
    %c0_i32 = arith.constant 0 : i32
    %c0_i32_0 = arith.constant 0 : i32
    %c0_i32_1 = arith.constant 0 : i32
    return %c0_i32, %c0_i32_0 : i32, i32
  }
  func.func @transform_7(%arg0: i32) -> (i32, i32) {
    %c0_i32 = arith.constant 0 : i32
    %c0_i32_0 = arith.constant 0 : i32
    %c0_i32_1 = arith.constant 0 : i32
    return %c0_i32, %c0_i32_0 : i32, i32
  }
  func.func @transform_8(%arg0: i32) -> (i32, i32) {
    %c0_i32 = arith.constant 0 : i32
    %c0_i32_0 = arith.constant 0 : i32
    %c0_i32_1 = arith.constant 0 : i32
    return %c0_i32, %c0_i32_0 : i32, i32
  }
  func.func @transform_9(%arg0: i32) -> (i32, i32) {
    %c0_i32 = arith.constant 0 : i32
    %c0_i32_0 = arith.constant 0 : i32
    %c0_i32_1 = arith.constant 0 : i32
    return %c0_i32, %c0_i32_0 : i32, i32
  }
  func.func @transform_10(%arg0: i32) -> (i32, i32) {
    %c0_i32 = arith.constant 0 : i32
    %c0_i32_0 = arith.constant 0 : i32
    %c0_i32_1 = arith.constant 0 : i32
    return %c0_i32, %c0_i32_0 : i32, i32
  }
  func.func @transform_11(%arg0: i32) -> (i32, i32) {
    %c0_i32 = arith.constant 0 : i32
    %c0_i32_0 = arith.constant 0 : i32
    %c0_i32_1 = arith.constant 0 : i32
    return %c0_i32, %c0_i32_0 : i32, i32
  }
  func.func @transform_12(%arg0: i32) -> (i32, i32, i32) {
    %c0_i32 = arith.constant 0 : i32
    %c0_i32_0 = arith.constant 0 : i32
    %c0_i32_1 = arith.constant 0 : i32
    return %arg0, %c0_i32, %c0_i32_0 : i32, i32, i32
  }
  func.func @transform_13(%arg0: i32) -> (i32, i32, i32) {
    %c0_i32 = arith.constant 0 : i32
    %c0_i32_0 = arith.constant 0 : i32
    %c0_i32_1 = arith.constant 0 : i32
    return %arg0, %c0_i32, %c0_i32_0 : i32, i32, i32
  }
  func.func @transform_14(%arg0: i32) -> (i32, i32) {
    %c0_i32 = arith.constant 0 : i32
    %c0_i32_0 = arith.constant 0 : i32
    %c0_i32_1 = arith.constant 0 : i32
    return %c0_i32, %c0_i32_0 : i32, i32
  }
  func.func @transform_15(%arg0: i32) -> (i32, i32) {
    %c0_i32 = arith.constant 0 : i32
    %c0_i32_0 = arith.constant 0 : i32
    %c0_i32_1 = arith.constant 0 : i32
    return %c0_i32, %c0_i32_0 : i32, i32
  }
  func.func @transform_16(%arg0: i32) -> (i32, i32) {
    %c0_i32 = arith.constant 0 : i32
    %c0_i32_0 = arith.constant 0 : i32
    %c0_i32_1 = arith.constant 0 : i32
    return %c0_i32, %c0_i32_0 : i32, i32
  }
  func.func @transform_17(%arg0: i32) -> (i32, i32) {
    %c0_i32 = arith.constant 0 : i32
    %c0_i32_0 = arith.constant 0 : i32
    %c0_i32_1 = arith.constant 0 : i32
    return %c0_i32, %c0_i32_0 : i32, i32
  }
  func.func @transform_18(%arg0: i32) -> (i32, i32) {
    %c0_i32 = arith.constant 0 : i32
    %c0_i32_0 = arith.constant 0 : i32
    %c0_i32_1 = arith.constant 0 : i32
    return %c0_i32, %c0_i32_0 : i32, i32
  }
  func.func @transform_19(%arg0: i32) -> (i32, i32) {
    %c0_i32 = arith.constant 0 : i32
    %c0_i32_0 = arith.constant 0 : i32
    %c0_i32_1 = arith.constant 0 : i32
    return %c0_i32, %c0_i32_0 : i32, i32
  }
  func.func @transform_20(%arg0: i32) -> (i32, i32) {
    %c0_i32 = arith.constant 0 : i32
    %c0_i32_0 = arith.constant 0 : i32
    %c0_i32_1 = arith.constant 0 : i32
    return %c0_i32, %c0_i32_0 : i32, i32
  }
  func.func @transform_21(%arg0: i32) -> (i32, i32) {
    %c0_i32 = arith.constant 0 : i32
    %c0_i32_0 = arith.constant 0 : i32
    %c0_i32_1 = arith.constant 0 : i32
    return %c0_i32, %c0_i32_0 : i32, i32
  }
  func.func @transform_22(%arg0: i32) -> (i32, i32) {
    %c0_i32 = arith.constant 0 : i32
    %c0_i32_0 = arith.constant 0 : i32
    %c0_i32_1 = arith.constant 0 : i32
    return %c0_i32, %c0_i32_0 : i32, i32
  }
  func.func @transform_23(%arg0: i32) -> (i32, i32) {
    %c0_i32 = arith.constant 0 : i32
    %c0_i32_0 = arith.constant 0 : i32
    return %arg0, %c0_i32 : i32, i32
  }
}

</mosaic_0001>

<bundles_post_ra>
// kernel: _lambda_.1
= control target key start
LH: loop header
LB: loop body
LE: loop exit
PB: predicated region body
PF: predicated region fallthrough
CT: control target
= control target key end

     0   :  { %s11721_s0 = inlined_call_operand.vmem [shape: bf16[384,512], index: 0, kind: input, shape index: {}]   ;;  %s11722_s1 = inlined_call_operand.vmem [shape: bf16[384,512], index: 1, kind: input, shape index: {}]   ;;  %s11723_s2 = inlined_call_operand.vmem [shape: bf16[512,128], index: 2, kind: input, shape index: {}]   ;;  %s11724_s3 = inlined_call_operand.vmem [shape: bf16[512,128], index: 3, kind: input, shape index: {}]   ;;  %s11725_s4 = inlined_call_operand.vmem [shape: f32[1,128], index: 4, kind: input, shape index: {}]   ;;  %s11726_s5 = inlined_call_operand.vmem [shape: f32[1,128], index: 5, kind: input, shape index: {}]   ;;  %s11727_s6 = inlined_call_operand.vmem [shape: bf16[256,512], index: 6, kind: input, shape index: {}]   ;;  %s11728_s7 = inlined_call_operand.vmem [shape: f32[1,512], index: 7, kind: input, shape index: {}]   ;;  %s11729_s8 = inlined_call_operand.vmem [shape: bf16[512,64], index: 8, kind: input, shape index: {}]   ;;  %s11730_s9 = inlined_call_operand.vmem [shape: f32[1,64], index: 9, kind: input, shape index: {}]   ;;  %s11731_s10 = inlined_call_operand.vmem [shape: f32[1,64], index: 10, kind: input, shape index: {}]   ;;  %s11732_s11 = inlined_call_operand.vmem [shape: f32[1,64], index: 11, kind: input, shape index: {}]   ;;  %s11733_s12 = inlined_call_operand.vmem [shape: bf16[2,256,64], index: 12, kind: input, shape index: {}]   ;;  %s11734_s13 = inlined_call_operand.vmem [shape: bf16[2,1,64], index: 13, kind: input, shape index: {}]   ;;  %s11735_s14 = inlined_call_operand.vmem [shape: f32[1,256], index: 14, kind: input, shape index: {}]   ;;  %s11736_s15 = inlined_call_operand.vmem [shape: f32[192,1], index: 15, kind: input, shape index: {}]   ;;  %s11737_s16 = inlined_call_operand.vmem [shape: f32[192,1], index: 16, kind: input, shape index: {}]   ;;  %s11738_s17 = inlined_call_operand.vmem [shape: bf16[64,192], index: 17, kind: input, shape index: {}]   ;;  %s11739_s18 = inlined_call_operand.vmem [shape: f32[1,192], index: 18, kind: input, shape index: {}]   ;;  %s11740_s19 = inlined_call_operand.vmem [shape: bf16[64,128], index: 19, kind: input, shape index: {}]   ;;  %s11741_s20 = inlined_call_operand.vmem [shape: f32[1,128], index: 20, kind: input, shape index: {}]   ;;  %s11742_s21 = inlined_call_operand.vmem [shape: f32[192,1], index: 21, kind: input, shape index: {}]   ;;  %s11743_s22 = inlined_call_operand.vmem [shape: f32[192,1], index: 22, kind: input, shape index: {}]   ;;  %s11744_s23 = inlined_call_operand.vmem [shape: f32[384,64], index: 23, kind: output, shape index: {}]  }
   0x1   :  { %11823 = sst [smem:[#allocation69_spill]] %s11721_s0 }
   0x2   :  { %11824 = sst [smem:[#allocation70_spill]] %s11722_s1 }
   0x3   :  { %11825 = sst [smem:[#allocation71_spill]] %s11723_s2 }
   0x4   :  { %11826 = sst [smem:[#allocation72_spill]] %s11724_s3 }
   0x5   :  { %11827 = sst [smem:[#allocation73_spill]] %s11725_s4  ;;  %s8810_s4 = smov 0  }
   0x6   :  { %11828 = sst [smem:[#allocation74_spill]] %s11726_s5 }
   0x7   :  { %11829 = sst [smem:[#allocation75_spill]] %s11727_s6 }
   0x8   :  { %11830 = sst [smem:[#allocation76_spill]] %s11728_s7 }
   0x9 LB: > { %s8816_s30 = sadd.s32 4294967295, %s8686_s4   ;;  %p6956_p0 = scmp.ge.s32.totalorder %s8686_s4, 1  ;;  %s8686_s4 = sphi %s8810_s4, %s33_s4  }
   0xa   : > { %p669_p1 = scmp.lt.s32.totalorder %s8686_s4, 3 }
   0xc   : > { %p670_p2 = pnand %p6956_p0, %p669_p1 }
   0xe   : > { %673 = sbr.rel (%p670_p2) target bundleno = 2032 (0x7f0), region = 112 }
  0x15   : > { %s11831_s5 = sld [smem:[#allocation71_spill]]  ;;  %s748_s27 = smul.u32 24, %s8816_s30  ;;  %vm4246_vm0 = vcmask 523264  }
  0x16   : > { %s11832_s7 = sld [smem:[#allocation69_spill]]  ;;  %s11833_s2 = sld [smem:[#allocation72_spill]] }
  0x17   : > { %p749_p3 = scmp.lt.s32.totalorder %s748_s27, 47  ;;  %s11834_s1 = sld [smem:[#allocation70_spill]] }
  0x18   : > { %s11835_s3 = sld [smem:[#allocation75_spill]]  ;;  %p762_p4 = scmp.lt.s32.totalorder %s8816_s30, 1 }
  0x19   : > { %s12052_s27 = smov (!%p749_p3, %s748_s27), 47 }
  0x1a   : > { %s7285_s29 = sshll.u32 %s12052_s27, 4  ;;  %s12054_s30 = smov (!%p762_p4, %s8816_s30), 1 }
  0x1b   : > { %v8120_v0 = vld [vmem:[%s11831_s5 + $0x40] sm:$0xff]   ;;  %v8124_v4 = vld [vmem:[%s11831_s5 + $0x48] sm:$0xff]   ;;  %v8128_v8 = vld [vmem:[%s11831_s5 + $0x50] sm:$0xff]   ;;  %s7287_s25 = sshll.u32 %s12054_s30, 7 }
  0x1c   : > { %v8121_v1 = vld [vmem:[%s11831_s5 + $0xc0] sm:$0xff]   ;;  %7288 = vmatprep.subr.bf16.mxu0 %v8120_v0  ;;  %v8125_v5 = vld [vmem:[%s11831_s5 + $0xc8] sm:$0xff]   ;;  %v8129_v9 = vld [vmem:[%s11831_s5 + $0xd0] sm:$0xff]   ;;  %s8919_s28 = scalar_lea.vmem %s11832_s7, %s7285_s29 }
  0x1d   : > { %v8122_v2 = vld [vmem:[%s11831_s5] sm:$0xff]   ;;  %7376 = vmatprep.subr.bf16.mxu1 %v8121_v1  ;;  %v8126_v6 = vld [vmem:[%s11831_s5 + $0x8] sm:$0xff]   ;;  %v8130_v10 = vld [vmem:[%s11831_s5 + $0x10] sm:$0xff]   ;;  %s9059_s26 = scalar_lea.vmem %s11834_s1, %s7285_s29  ;;  %s11836_s1 = sld [smem:[#allocation73_spill]] }
  0x1e   : > { %v8123_v3 = vld [vmem:[%s11831_s5 + $0x80] sm:$0xff]   ;;  %7289 = vmatpush3.bf16.msra.mxu0 %v8122_v2  ;;  %v8127_v7 = vld [vmem:[%s11831_s5 + $0x88] sm:$0xff]   ;;  %v8131_v11 = vld [vmem:[%s11831_s5 + $0x90] sm:$0xff]  }
  0x1f   : > { %7377 = vmatpush3.bf16.msra.mxu1 %v8123_v3  ;;  %7290 = vmatprep.subr.bf16.mxu0 %v8124_v4  ;;  %v8132_v12 = vld [vmem:[%s11831_s5 + $0x58] sm:$0xff]   ;;  %v8136_v16 = vld [vmem:[%s11831_s5 + $0x60] sm:$0xff]   ;;  %v8140_v20 = vld [vmem:[%s11831_s5 + $0x68] sm:$0xff]  }
  0x20   : > { %7378 = vmatprep.subr.bf16.mxu1 %v8125_v5  ;;  %v8133_v13 = vld [vmem:[%s11831_s5 + $0xd8] sm:$0xff]   ;;  %v8137_v17 = vld [vmem:[%s11831_s5 + $0xe0] sm:$0xff]   ;;  %v8141_v21 = vld [vmem:[%s11831_s5 + $0xe8] sm:$0xff]  }
  0x21   : > { %v8134_v14 = vld [vmem:[%s11831_s5 + $0x18] sm:$0xff]   ;;  %v8138_v18 = vld [vmem:[%s11831_s5 + $0x20] sm:$0xff]   ;;  %v8142_v22 = vld [vmem:[%s11831_s5 + $0x28] sm:$0xff]  }
  0x22   : > { %7291 = vmatpush3.bf16.msra.mxu0 %v8126_v6  ;;  %v8135_v15 = vld [vmem:[%s11831_s5 + $0x98] sm:$0xff]   ;;  %v8139_v19 = vld [vmem:[%s11831_s5 + $0xa0] sm:$0xff]   ;;  %v8143_v23 = vld [vmem:[%s11831_s5 + $0xa8] sm:$0xff]  }
  0x23   : > { %7379 = vmatpush3.bf16.msra.mxu1 %v8127_v7  ;;  %7292 = vmatprep.subr.bf16.mxu0 %v8128_v8  ;;  %v8144_v24 = vld [vmem:[%s11831_s5 + $0x70] sm:$0xff]   ;;  %v8148_v28 = vld [vmem:[%s11831_s5 + $0x78] sm:$0xff]   ;;  %v8158_v36 = vld [vmem:[%s11833_s2 + $0x40] sm:$0xff]  }
  0x24   : > { %7380 = vmatprep.subr.bf16.mxu1 %v8129_v9  ;;  %v8145_v25 = vld [vmem:[%s11831_s5 + $0xf0] sm:$0xff]   ;;  %v8149_v29 = vld [vmem:[%s11831_s5 + $0xf8] sm:$0xff]   ;;  %v8159_v37 = vld [vmem:[%s11833_s2] sm:$0xff]  }
  0x25   : > { %v8146_v26 = vld [vmem:[%s11831_s5 + $0x30] sm:$0xff]   ;;  %v8150_v30 = vld [vmem:[%s11831_s5 + $0x38] sm:$0xff]   ;;  %v8160_v38 = vld [vmem:[%s11833_s2 + $0xc0] sm:$0xff]  }
  0x26   : > { %7293 = vmatpush3.bf16.msra.mxu0 %v8130_v10  ;;  %v8147_v27 = vld [vmem:[%s11831_s5 + $0xb0] sm:$0xff]   ;;  %v8151_v31 = vld [vmem:[%s11831_s5 + $0xb8] sm:$0xff]   ;;  %v8161_v39 = vld [vmem:[%s11833_s2 + $0x80] sm:$0xff]  }
  0x27   : > { %7381 = vmatpush3.bf16.msra.mxu1 %v8131_v11  ;;  %7294 = vmatprep.subr.bf16.mxu0 %v8132_v12  ;;  %v8152_v32 = vld [vmem:[%s8919_s28] ss:$16 sps:$4 sm:$0xff]   ;;  %v8154_v33 = vld [vmem:[%s8919_s28 + $0x4] ss:$16 sps:$4 sm:$0xff]   ;;  %v8155_v34 = vld [vmem:[%s8919_s28 + $0x8] ss:$16 sps:$4 sm:$0xff]  }
  0x28   : > { %7382 = vmatprep.subr.bf16.mxu1 %v8133_v13  ;;  %v8157_v35 = vld [vmem:[%s8919_s28 + $0xc] ss:$16 sps:$4 sm:$0xff]   ;;  %1360 = vmatprep.mubr.bf16.mxu0 %v8154_v33  ;;  %v8162_v40 = vld [vmem:[%s8919_s28 + $0x24] ss:$16 sps:$4 sm:$0xff]   ;;  %v8166_v42 = vld [vmem:[%s8919_s28 + $0x20] ss:$16 sps:$4 sm:$0xff]  }
  0x29   : > { %1489 = vmatprep.mubr.bf16.mxu1 %v8157_v35  ;;  %v8164_v41 = vld [vmem:[%s8919_s28 + $0x2c] ss:$16 sps:$4 sm:$0xff]   ;;  %v8167_v43 = vld [vmem:[%s8919_s28 + $0x28] ss:$16 sps:$4 sm:$0xff]   ;;  %v8171_v47 = vld [vmem:[%s8919_s28 + $0x44] ss:$16 sps:$4 sm:$0xff]  }
  0x2a   : > { %7295 = vmatpush3.bf16.msra.mxu0 %v8134_v14  ;;  %v8168_v44 = vld [vmem:[%s11833_s2 + $0x48] sm:$0xff]   ;;  %v8176_v50 = vld [vmem:[%s8919_s28 + $0x40] ss:$16 sps:$4 sm:$0xff]   ;;  %v8178_v52 = vld [vmem:[%s8919_s28 + $0x64] ss:$16 sps:$4 sm:$0xff]  }
  0x2b   : > { %7383 = vmatpush3.bf16.msra.mxu1 %v8135_v15  ;;  %7296 = vmatprep.subr.bf16.mxu0 %v8136_v16  ;;  %v8169_v45 = vld [vmem:[%s11833_s2 + $0x8] sm:$0xff]   ;;  %v8184_v54 = vld [vmem:[%s11833_s2 + $0x50] sm:$0xff]   ;;  %v8194_v62 = vld [vmem:[%s11833_s2 + $0x58] sm:$0xff]  }
  0x2c   : > { %7384 = vmatprep.subr.bf16.mxu1 %v8137_v17  ;;  %v8170_v46 = vld [vmem:[%s11833_s2 + $0xc8] sm:$0xff]   ;;  %v8185_v55 = vld [vmem:[%s11833_s2 + $0x10] sm:$0xff]   ;;  %v8195_v63 = vld [vmem:[%s11833_s2 + $0x18] sm:$0xff]  }
  0x2d   : > { %v8173_v48 = vld [vmem:[%s8919_s28 + $0x4c] ss:$16 sps:$4 sm:$0xff]   ;;  %v8177_v51 = vld [vmem:[%s8919_s28 + $0x48] ss:$16 sps:$4 sm:$0xff]   ;;  %v8186_v56 = vld [vmem:[%s11833_s2 + $0xd0] sm:$0xff]  }
  0x2e   : > { %7297 = vmatpush3.bf16.msra.mxu0 %v8138_v18  ;;  %v8175_v49 = vld [vmem:[%s11833_s2 + $0x88] sm:$0xff]   ;;  %v8187_v57 = vld [vmem:[%s11833_s2 + $0x90] sm:$0xff]   ;;  %v8196_v0 = vld [vmem:[%s11833_s2 + $0xd8] sm:$0xff]  }
  0x2f   : > { %7385 = vmatpush3.bf16.msra.mxu1 %v8139_v19  ;;  %7298 = vmatprep.subr.bf16.mxu0 %v8140_v20  ;;  %v8180_v53 = vld [vmem:[%s8919_s28 + $0x6c] ss:$16 sps:$4 sm:$0xff]   ;;  %v8182_v58 = vld [vmem:[%s8919_s28 + $0x60] ss:$16 sps:$4 sm:$0xff]   ;;  %v8183_v59 = vld [vmem:[%s8919_s28 + $0x68] ss:$16 sps:$4 sm:$0xff]  }
  0x30   : > { %7386 = vmatprep.subr.bf16.mxu1 %v8141_v21  ;;  %v8188_v60 = vld [vmem:[%s8919_s28 + $0x84] ss:$16 sps:$4 sm:$0xff]   ;;  %v8190_v61 = vld [vmem:[%s8919_s28 + $0x8c] ss:$16 sps:$4 sm:$0xff]   ;;  %v8192_v1 = vld [vmem:[%s8919_s28 + $0x80] ss:$16 sps:$4 sm:$0xff]  }
  0x31   : > { %v8201_v2 = vld [vmem:[%s11833_s2 + $0x98] sm:$0xff]   ;;  %v8197_v4 = vld [vmem:[%s8919_s28 + $0xa4] ss:$16 sps:$4 sm:$0xff]   ;;  %v8202_v10 = vld [vmem:[%s8919_s28 + $0xa0] ss:$16 sps:$4 sm:$0xff]  }
  0x32   : > { %7299 = vmatpush3.bf16.msra.mxu0 %v8142_v22  ;;  %v8193_v3 = vld [vmem:[%s8919_s28 + $0x88] ss:$16 sps:$4 sm:$0xff]   ;;  %v8199_v5 = vld [vmem:[%s8919_s28 + $0xac] ss:$16 sps:$4 sm:$0xff]   ;;  %v8210_v6 = vld [vmem:[%s11833_s2 + $0x60] sm:$0xff]  }
  0x33   : > { %7387 = vmatpush3.bf16.msra.mxu1 %v8143_v23  ;;  %7300 = vmatprep.subr.bf16.mxu0 %v8144_v24  ;;  %v8211_v7 = vld [vmem:[%s11833_s2 + $0x20] sm:$0xff]   ;;  %v8203_v11 = vld [vmem:[%s8919_s28 + $0xa8] ss:$16 sps:$4 sm:$0xff]   ;;  %v8206_v13 = vld [vmem:[%s8919_s28 + $0xcc] ss:$16 sps:$4 sm:$0xff]  }
  0x34   : > { %7388 = vmatprep.subr.bf16.mxu1 %v8145_v25  ;;  %v8212_v8 = vld [vmem:[%s11833_s2 + $0xe0] sm:$0xff]   ;;  %v8220_v14 = vld [vmem:[%s11833_s2 + $0x68] sm:$0xff]   ;;  %v8236_v22 = vld [vmem:[%s11833_s2 + $0x70] sm:$0xff]  }
  0x35   : > { %v8213_v9 = vld [vmem:[%s11833_s2 + $0xa0] sm:$0xff]   ;;  %v8221_v15 = vld [vmem:[%s11833_s2 + $0x28] sm:$0xff]   ;;  %v8237_v23 = vld [vmem:[%s11833_s2 + $0x30] sm:$0xff]  }
  0x36   : > { %7301 = vmatpush3.bf16.msra.mxu0 %v8146_v26  ;;  %v8204_v12 = vld [vmem:[%s8919_s28 + $0xc4] ss:$16 sps:$4 sm:$0xff]   ;;  %v8222_v16 = vld [vmem:[%s11833_s2 + $0xe8] sm:$0xff]   ;;  %v8208_v17 = vld [vmem:[%s8919_s28 + $0xc0] ss:$16 sps:$4 sm:$0xff]  }
  0x37   : > { %7389 = vmatpush3.bf16.msra.mxu1 %v8147_v27  ;;  %7302 = vmatprep.subr.bf16.mxu0 %v8148_v28  ;;  %v8227_v18 = vld [vmem:[%s11833_s2 + $0xa8] sm:$0xff]   ;;  %v8214_v20 = vld [vmem:[%s8919_s28 + $0xe4] ss:$16 sps:$4 sm:$0xff]   ;;  %v8218_v26 = vld [vmem:[%s8919_s28 + $0xe0] ss:$16 sps:$4 sm:$0xff]  }
  0x38   : > { %7390 = vmatprep.subr.bf16.mxu1 %v8149_v29  ;;  %v8209_v19 = vld [vmem:[%s8919_s28 + $0xc8] ss:$16 sps:$4 sm:$0xff]   ;;  %v8216_v21 = vld [vmem:[%s8919_s28 + $0xec] ss:$16 sps:$4 sm:$0xff]   ;;  %v8238_v24 = vld [vmem:[%s11833_s2 + $0xf0] sm:$0xff]  }
  0x39   : > { %v8239_v25 = vld [vmem:[%s11833_s2 + $0xb0] sm:$0xff]   ;;  %v8219_v27 = vld [vmem:[%s8919_s28 + $0xe8] ss:$16 sps:$4 sm:$0xff]   ;;  %v8225_v29 = vld [vmem:[%s8919_s28 + $0x10c] ss:$16 sps:$4 sm:$0xff]  }
  0x3a   : > { %7303 = vmatpush3.bf16.msra.mxu0 %v8150_v30  ;;  %v8223_v28 = vld [vmem:[%s8919_s28 + $0x104] ss:$16 sps:$4 sm:$0xff]   ;;  %v8246_v30 = vld [vmem:[%s11833_s2 + $0x78] sm:$0xff]   ;;  %v8228_v33 = vld [vmem:[%s8919_s28 + $0x100] ss:$16 sps:$4 sm:$0xff]  }
  0x3b   : > { %7391 = vmatpush3.bf16.msra.mxu1 %v8151_v31  ;;  %7464 = vmatprep.subr.bf16.mxu0 %v8158_v36  ;;  %v8247_v31 = vld [vmem:[%s11833_s2 + $0x38] sm:$0xff]   ;;  %v8230_v36 = vld [vmem:[%s8919_s28 + $0x124] ss:$16 sps:$4 sm:$0xff]  }
  0x3c   : > { %7552 = vmatprep.subr.bf16.mxu1 %v8160_v38  ;;  %v8229_v35 = vld [vmem:[%s8919_s28 + $0x108] ss:$16 sps:$4 sm:$0xff]   ;;  %v8234_v38 = vld [vmem:[%s8919_s28 + $0x120] ss:$16 sps:$4 sm:$0xff]  }
  0x3d   : > { %1361 = vmatmul.mubr.bf16.vlgmr.msra.gmra.mrb[0].mxu0 %v8152_v32  ;;  %v8248_v32 = vld [vmem:[%s11833_s2 + $0xf8] sm:$0xff]  }
  0x3e   : > { %1490 = vmatmul.mubr.bf16.vlgmr.msra.gmra.mrb[0].mxu1 %v8155_v34  ;;  %7465 = vmatpush3.bf16.msra.mxu0 %v8159_v37  ;;  %v8253_v34 = vld [vmem:[%s11833_s2 + $0xb8] sm:$0xff]  }
  0x3f   : > { %7553 = vmatpush3.bf16.msra.mxu1 %v8161_v39  ;;  %1368 = vmatprep.mubr.bf16.mxu0 %v8162_v40  ;;  %v8232_v37 = vld [vmem:[%s8919_s28 + $0x12c] ss:$16 sps:$4 sm:$0xff]   ;;  %v8235_v39 = vld [vmem:[%s8919_s28 + $0x128] ss:$16 sps:$4 sm:$0xff]   ;;  %v8240_v40 = vld [vmem:[%s8919_s28 + $0x144] ss:$16 sps:$4 sm:$0xff]  }
  0x40   : > { %1497 = vmatprep.mubr.bf16.mxu1 %v8164_v41  ;;  %7466 = vmatprep.subr.bf16.mxu0 %v8168_v44  ;;  %v8242_v41 = vld [vmem:[%s8919_s28 + $0x14c] ss:$16 sps:$4 sm:$0xff]   ;;  %v8249_v44 = vld [vmem:[%s8919_s28 + $0x164] ss:$16 sps:$4 sm:$0xff]  }
  0x41   : > { %7554 = vmatprep.subr.bf16.mxu1 %v8170_v46  ;;  %v8254_v46 = vld [vmem:[%s8919_s28 + $0x160] ss:$16 sps:$4 sm:$0xff]  }
  0x42   : > { %7467 = vmatpush3.bf16.msra.mxu0 %v8169_v45  ;;  %v8251_v45 = vld [vmem:[%s8919_s28 + $0x16c] ss:$16 sps:$4 sm:$0xff]  }
  0x43   : > { %7555 = vmatpush3.bf16.msra.mxu1 %v8175_v49  ;;  %7468 = vmatprep.subr.bf16.mxu0 %v8184_v54  ;;  %v8261_v49 = vld [vmem:[%s9059_s26 + $0xc] ss:$16 sps:$4 sm:$0xff]   ;;  %v8266_v54 = vld [vmem:[%s9059_s26 + $0x20] ss:$16 sps:$4 sm:$0xff]  }
  0x44   : > { %7556 = vmatprep.subr.bf16.mxu1 %v8186_v56  ;;  %v8268_v56 = vld [vmem:[%s9059_s26 + $0x44] ss:$16 sps:$4 sm:$0xff]  }
  0x45   : > { %1369 = vmatmul.mubr.bf16.gmra.mrb[4].mxu0 %v8166_v42  ;;  %v8244_v42 = vld [vmem:[%s8919_s28 + $0x140] ss:$16 sps:$4 sm:$0xff]  }
  0x46   : > { %1498 = vmatmul.mubr.bf16.gmra.mrb[4].mxu1 %v8167_v43  ;;  %1376 = vmatprep.mubr.bf16.mxu0 %v8171_v47  ;;  %v8245_v43 = vld [vmem:[%s8919_s28 + $0x148] ss:$16 sps:$4 sm:$0xff]  }
  0x47   : > { %1505 = vmatprep.mubr.bf16.mxu1 %v8173_v48  ;;  %7469 = vmatpush3.bf16.msra.mxu0 %v8185_v55  ;;  %v8255_v47 = vld [vmem:[%s8919_s28 + $0x168] ss:$16 sps:$4 sm:$0xff]   ;;  %v8258_v48 = vld [vmem:[%s9059_s26 + $0x4] ss:$16 sps:$4 sm:$0xff]   ;;  %s9664_s28 = scalar_lea.vmem %s11733_s12, %s7287_s25 }
  0x48   : > { %7557 = vmatpush3.bf16.msra.mxu1 %v8187_v57  ;;  %7470 = vmatprep.subr.bf16.mxu0 %v8194_v62  ;;  %v8267_v55 = vld [vmem:[%s9059_s26 + $0x28] ss:$16 sps:$4 sm:$0xff]   ;;  %v8328_v57 = vld [vmem:[%s11835_s3 + $0x100] ss:$16 sps:$4 sm:$0xff]  }
  0x49   : > { %7558 = vmatprep.subr.bf16.mxu1 %v8196_v0  ;;  %v8272_v62 = vld [vmem:[%s9059_s26 + $0x40] ss:$16 sps:$4 sm:$0xff]   ;;  %v8274_v0 = vld [vmem:[%s9059_s26 + $0x64] ss:$16 sps:$4 sm:$0xff]  }
  0x4b   : > { %7471 = vmatpush3.bf16.msra.mxu0 %v8195_v63  ;;  %v8273_v63 = vld [vmem:[%s9059_s26 + $0x48] ss:$16 sps:$4 sm:$0xff]  }
  0x4c   : > { %7559 = vmatpush3.bf16.msra.mxu1 %v8201_v2  ;;  %7472 = vmatprep.subr.bf16.mxu0 %v8210_v6  ;;  %v8334_v2 = vld [vmem:[%s11835_s3 + $0x120] ss:$16 sps:$4 sm:$0xff]   ;;  %v8280_v6 = vld [vmem:[%s9059_s26 + $0x84] ss:$16 sps:$4 sm:$0xff]  }
  0x4d   : > { %1377 = vmatmul.mubr.bf16.gmra.mrb[8].mxu0 %v8176_v50  ;;  %7560 = vmatprep.subr.bf16.mxu1 %v8212_v8  ;;  %v8256_v50 = vld [vmem:[%s9059_s26] ss:$16 sps:$4 sm:$0xff]   ;;  %v8339_v8 = vld [vmem:[%s11835_s3 + $0x12c] ss:$16 sps:$4 sm:$0xff]  }
  0x4e   : > { %1506 = vmatmul.mubr.bf16.gmra.mrb[8].mxu1 %v8177_v51  ;;  %1384 = vmatprep.mubr.bf16.mxu0 %v8178_v52  ;;  %v8259_v51 = vld [vmem:[%s9059_s26 + $0x8] ss:$16 sps:$4 sm:$0xff]   ;;  %v8262_v52 = vld [vmem:[%s9059_s26 + $0x24] ss:$16 sps:$4 sm:$0xff]  }
  0x4f   : > { %1513 = vmatprep.mubr.bf16.mxu1 %v8180_v53  ;;  %7473 = vmatpush3.bf16.msra.mxu0 %v8211_v7  ;;  %v8264_v53 = vld [vmem:[%s9059_s26 + $0x2c] ss:$16 sps:$4 sm:$0xff]   ;;  %v8337_v7 = vld [vmem:[%s11835_s3 + $0x128] ss:$16 sps:$4 sm:$0xff]  }
  0x50   : > { %7561 = vmatpush3.bf16.msra.mxu1 %v8213_v9  ;;  %7474 = vmatprep.subr.bf16.mxu0 %v8220_v14  ;;  %v8282_v9 = vld [vmem:[%s9059_s26 + $0x8c] ss:$16 sps:$4 sm:$0xff]   ;;  %v8340_v14 = vld [vmem:[%s11835_s3 + $0x140] ss:$16 sps:$4 sm:$0xff]  }
  0x51   : > { %7562 = vmatprep.subr.bf16.mxu1 %v8222_v16  ;;  %v8343_v16 = vld [vmem:[%s11835_s3 + $0x148] ss:$16 sps:$4 sm:$0xff]  }
  0x53   : > { %7475 = vmatpush3.bf16.msra.mxu0 %v8221_v15  ;;  %v8342_v15 = vld [vmem:[%s11835_s3 + $0x144] ss:$16 sps:$4 sm:$0xff]  }
  0x54   : > { %7563 = vmatpush3.bf16.msra.mxu1 %v8227_v18  ;;  %7476 = vmatprep.subr.bf16.mxu0 %v8236_v22  ;;  %v8290_v18 = vld [vmem:[%s9059_s26 + $0xa0] ss:$16 sps:$4 sm:$0xff]  }
  0x55   : > { %1385 = vmatmul.mubr.bf16.gmra.mrb[12].mxu0 %v8182_v58  ;;  %7564 = vmatprep.subr.bf16.mxu1 %v8238_v24  ;;  %v8330_v58 = vld [vmem:[%s11835_s3 + $0x104] ss:$16 sps:$4 sm:$0xff]   ;;  %v8296_v22 = vld [vmem:[%s9059_s26 + $0xc0] ss:$16 sps:$4 sm:$0xff]  }
  0x56   : > { %1514 = vmatmul.mubr.bf16.gmra.mrb[12].mxu1 %v8183_v59  ;;  %1392 = vmatprep.mubr.bf16.mxu0 %v8188_v60  ;;  %v8270_v59 = vld [vmem:[%s9059_s26 + $0x4c] ss:$16 sps:$4 sm:$0xff]   ;;  %v8331_v60 = vld [vmem:[%s11835_s3 + $0x108] ss:$16 sps:$4 sm:$0xff]   ;;  %v8298_v24 = vld [vmem:[%s9059_s26 + $0xe4] ss:$16 sps:$4 sm:$0xff]  }
  0x57   : > { %1521 = vmatprep.mubr.bf16.mxu1 %v8190_v61  ;;  %7477 = vmatpush3.bf16.msra.mxu0 %v8237_v23  ;;  %v8333_v61 = vld [vmem:[%s11835_s3 + $0x10c] ss:$16 sps:$4 sm:$0xff]   ;;  %v8297_v23 = vld [vmem:[%s9059_s26 + $0xc8] ss:$16 sps:$4 sm:$0xff]  }
  0x58   : > { %7565 = vmatpush3.bf16.msra.mxu1 %v8239_v25  ;;  %7478 = vmatprep.subr.bf16.mxu0 %v8246_v30  ;;  %v8346_v25 = vld [vmem:[%s11835_s3 + $0x160] ss:$16 sps:$4 sm:$0xff]  }
  0x59   : > { %7566 = vmatprep.subr.bf16.mxu1 %v8248_v32  ;;  %v8302_v30 = vld [vmem:[%s9059_s26 + $0xe0] ss:$16 sps:$4 sm:$0xff]   ;;  %v8304_v32 = vld [vmem:[%s9059_s26 + $0x104] ss:$16 sps:$4 sm:$0xff]  }
  0x5b   : > { %7479 = vmatpush3.bf16.msra.mxu0 %v8247_v31  ;;  %v8303_v31 = vld [vmem:[%s9059_s26 + $0xe8] ss:$16 sps:$4 sm:$0xff]  }
  0x5c   : > { %7567 = vmatpush3.bf16.msra.mxu1 %v8253_v34  ;;  %2691 = vmatprep.subr.bf16.mxu0 %v8330_v58  ;;  %v8306_v34 = vld [vmem:[%s9059_s26 + $0x10c] ss:$16 sps:$4 sm:$0xff]   ;;  %v8326_v58 = vld [vmem:[%s9059_s26 + $0x160] ss:$16 sps:$4 sm:$0xff]  }
  0x5d   : > { %1393 = vmatmul.mubr.bf16.gmra.mrb[16].mxu0 %v8192_v1  ;;  %2844 = vmatprep.subr.bf16.mxu1 %v8333_v61  ;;  %v8276_v1 = vld [vmem:[%s9059_s26 + $0x6c] ss:$16 sps:$4 sm:$0xff]   ;;  %v8372_v61 = vld [vmem:[%s11835_s3 + $0x1e4] ss:$16 sps:$4 sm:$0xff]  }
  0x5e   : > { %1522 = vmatmul.mubr.bf16.gmra.mrb[16].mxu1 %v8193_v3  ;;  %1400 = vmatprep.mubr.bf16.mxu0 %v8197_v4  ;;  %v8336_v3 = vld [vmem:[%s11835_s3 + $0x124] ss:$16 sps:$4 sm:$0xff]   ;;  %v8278_v4 = vld [vmem:[%s9059_s26 + $0x60] ss:$16 sps:$4 sm:$0xff]  }
  0x5f   : > { %1529 = vmatprep.mubr.bf16.mxu1 %v8199_v5  ;;  %v8279_v5 = vld [vmem:[%s9059_s26 + $0x68] ss:$16 sps:$4 sm:$0xff]  }
  0x65   : > { %1401 = vmatmul.mubr.bf16.gmra.mrb[20].mxu0 %v8202_v10  ;;  %v8284_v10 = vld [vmem:[%s9059_s26 + $0x80] ss:$16 sps:$4 sm:$0xff]  }
  0x66   : > { %1530 = vmatmul.mubr.bf16.gmra.mrb[20].mxu1 %v8203_v11  ;;  %1408 = vmatprep.mubr.bf16.mxu0 %v8204_v12  ;;  %v8285_v11 = vld [vmem:[%s9059_s26 + $0x88] ss:$16 sps:$4 sm:$0xff]   ;;  %v8286_v12 = vld [vmem:[%s9059_s26 + $0xa4] ss:$16 sps:$4 sm:$0xff]  }
  0x67   : > { %1537 = vmatprep.mubr.bf16.mxu1 %v8206_v13  ;;  %v8288_v13 = vld [vmem:[%s9059_s26 + $0xac] ss:$16 sps:$4 sm:$0xff]  }
  0x6d   : > { %1409 = vmatmul.mubr.bf16.gmra.mrb[24].mxu0 %v8208_v17  ;;  %v8345_v17 = vld [vmem:[%s11835_s3 + $0x14c] ss:$16 sps:$4 sm:$0xff]  }
  0x6e   : > { %1538 = vmatmul.mubr.bf16.gmra.mrb[24].mxu1 %v8209_v19  ;;  %1416 = vmatprep.mubr.bf16.mxu0 %v8214_v20  ;;  %v8291_v19 = vld [vmem:[%s9059_s26 + $0xa8] ss:$16 sps:$4 sm:$0xff]   ;;  %v8292_v20 = vld [vmem:[%s9059_s26 + $0xc4] ss:$16 sps:$4 sm:$0xff]  }
  0x6f   : > { %1545 = vmatprep.mubr.bf16.mxu1 %v8216_v21  ;;  %v8294_v21 = vld [vmem:[%s9059_s26 + $0xcc] ss:$16 sps:$4 sm:$0xff]  }
  0x75   : > { %1417 = vmatmul.mubr.bf16.gmra.mrb[28].mxu0 %v8218_v26  ;;  %v8348_v26 = vld [vmem:[%s11835_s3 + $0x164] ss:$16 sps:$4 sm:$0xff]  }
  0x76   : > { %1546 = vmatmul.mubr.bf16.gmra.mrb[28].mxu1 %v8219_v27  ;;  %1424 = vmatprep.mubr.bf16.mxu0 %v8223_v28  ;;  %v8300_v27 = vld [vmem:[%s9059_s26 + $0xec] ss:$16 sps:$4 sm:$0xff]   ;;  %v8349_v28 = vld [vmem:[%s11835_s3 + $0x168] ss:$16 sps:$4 sm:$0xff]  }
  0x77   : > { %1553 = vmatprep.mubr.bf16.mxu1 %v8225_v29  ;;  %v8351_v29 = vld [vmem:[%s11835_s3 + $0x16c] ss:$16 sps:$4 sm:$0xff]  }
  0x7d   : > { %1425 = vmatmul.mubr.bf16.gmra.mrb[32].mxu0 %v8228_v33  ;;  %v8354_v33 = vld [vmem:[%s11835_s3 + $0x184] ss:$16 sps:$4 sm:$0xff]  }
  0x7e   : > { %1554 = vmatmul.mubr.bf16.gmra.mrb[32].mxu1 %v8229_v35  ;;  %1432 = vmatprep.mubr.bf16.mxu0 %v8230_v36  ;;  %v8352_v35 = vld [vmem:[%s11835_s3 + $0x180] ss:$16 sps:$4 sm:$0xff]   ;;  %v8357_v36 = vld [vmem:[%s11835_s3 + $0x18c] ss:$16 sps:$4 sm:$0xff]  }
  0x7f   : > { %1561 = vmatprep.mubr.bf16.mxu1 %v8232_v37  ;;  %v8355_v37 = vld [vmem:[%s11835_s3 + $0x188] ss:$16 sps:$4 sm:$0xff]  }
  0x85   : > { %1433 = vmatmul.mubr.bf16.gmra.mrb[36].mxu0 %v8234_v38  ;;  %v8308_v38 = vld [vmem:[%s9059_s26 + $0x100] ss:$16 sps:$4 sm:$0xff]  }
  0x86   : > { %1562 = vmatmul.mubr.bf16.gmra.mrb[36].mxu1 %v8235_v39  ;;  %1440 = vmatprep.mubr.bf16.mxu0 %v8240_v40  ;;  %v8309_v39 = vld [vmem:[%s9059_s26 + $0x108] ss:$16 sps:$4 sm:$0xff]   ;;  %v8310_v40 = vld [vmem:[%s9059_s26 + $0x124] ss:$16 sps:$4 sm:$0xff]  }
  0x87   : > { %1569 = vmatprep.mubr.bf16.mxu1 %v8242_v41  ;;  %v8312_v41 = vld [vmem:[%s9059_s26 + $0x12c] ss:$16 sps:$4 sm:$0xff]  }
  0x8d   : > { %1441 = vmatmul.mubr.bf16.gmra.mrb[40].mxu0 %v8244_v42  ;;  %v8358_v42 = vld [vmem:[%s11835_s3 + $0x1a0] ss:$16 sps:$4 sm:$0xff]  }
  0x8e   : > { %1570 = vmatmul.mubr.bf16.gmra.mrb[40].mxu1 %v8245_v43  ;;  %1448 = vmatprep.mubr.bf16.mxu0 %v8249_v44  ;;  %v8360_v43 = vld [vmem:[%s11835_s3 + $0x1a4] ss:$16 sps:$4 sm:$0xff]   ;;  %v8314_v44 = vld [vmem:[%s9059_s26 + $0x120] ss:$16 sps:$4 sm:$0xff]  }
  0x8f   : > { %1577 = vmatprep.mubr.bf16.mxu1 %v8251_v45  ;;  %v8315_v45 = vld [vmem:[%s9059_s26 + $0x128] ss:$16 sps:$4 sm:$0xff]  }
  0x95   : > { %1449 = vmatmul.mubr.bf16.gmra.mrb[44].mxu0 %v8254_v46  ;;  %v8316_v46 = vld [vmem:[%s9059_s26 + $0x144] ss:$16 sps:$4 sm:$0xff]  }
  0x96   : > { %1578 = vmatmul.mubr.bf16.gmra.mrb[44].mxu1 %v8255_v47  ;;  %2205 = vmatprep.mubr.bf16.mxu0 %v8258_v48  ;;  %v8361_v47 = vld [vmem:[%s11835_s3 + $0x1a8] ss:$16 sps:$4 sm:$0xff]   ;;  %v8363_v48 = vld [vmem:[%s11835_s3 + $0x1ac] ss:$16 sps:$4 sm:$0xff]  }
  0x97   : > { %2334 = vmatprep.mubr.bf16.mxu1 %v8261_v49  ;;  %v8318_v49 = vld [vmem:[%s9059_s26 + $0x14c] ss:$16 sps:$4 sm:$0xff]  }
  0x9d   : > { %2206 = vmatmul.mubr.bf16.vlgmr.msra.gmra.mrb[48].mxu0 %v8256_v50  ;;  %v8320_v50 = vld [vmem:[%s9059_s26 + $0x140] ss:$16 sps:$4 sm:$0xff]  }
  0x9e   : > { %2335 = vmatmul.mubr.bf16.vlgmr.msra.gmra.mrb[48].mxu1 %v8259_v51  ;;  %2213 = vmatprep.mubr.bf16.mxu0 %v8262_v52  ;;  %v8321_v51 = vld [vmem:[%s9059_s26 + $0x148] ss:$16 sps:$4 sm:$0xff]   ;;  %v8322_v52 = vld [vmem:[%s9059_s26 + $0x164] ss:$16 sps:$4 sm:$0xff]  }
  0x9f   : > { %2342 = vmatprep.mubr.bf16.mxu1 %v8264_v53  ;;  %2692 = vmatpush1.bf16.msra.mxu0 %v8328_v57  ;;  %v8366_v53 = vld [vmem:[%s11835_s3 + $0x1c4] ss:$16 sps:$4 sm:$0xff]   ;;  %v8367_v57 = vld [vmem:[%s11835_s3 + $0x1c8] ss:$16 sps:$4 sm:$0xff]  }
  0xa0   : > { %2845 = vmatpush1.bf16.msra.mxu1 %v8331_v60  ;;  %2693 = vmatprep.subr.bf16.mxu0 %v8336_v3  ;;  %v8370_v60 = vld [vmem:[%s11835_s3 + $0x1e0] ss:$16 sps:$4 sm:$0xff]  }
  0xa1   : > { %2846 = vmatprep.subr.bf16.mxu1 %v8339_v8 }
  0xa3   : > { %2694 = vmatpush1.bf16.msra.mxu0 %v8334_v2  ;;  %v8381_v2 = vld [vmem:[%s11835_s3 + $0xc] ss:$16 sps:$4 sm:$0xff]  }
  0xa4   : > { %2847 = vmatpush1.bf16.msra.mxu1 %v8337_v7  ;;  %2695 = vmatprep.subr.bf16.mxu0 %v8342_v15 }
  0xa5   : > { %2214 = vmatmul.mubr.bf16.gmra.mrb[52].mxu0 %v8266_v54  ;;  %2848 = vmatprep.subr.bf16.mxu1 %v8345_v17  ;;  %v8324_v54 = vld [vmem:[%s9059_s26 + $0x16c] ss:$16 sps:$4 sm:$0xff]  }
  0xa6   : > { %2343 = vmatmul.mubr.bf16.gmra.mrb[52].mxu1 %v8267_v55  ;;  %2221 = vmatprep.mubr.bf16.mxu0 %v8268_v56  ;;  %v8364_v55 = vld [vmem:[%s11835_s3 + $0x1c0] ss:$16 sps:$4 sm:$0xff]   ;;  %v8369_v56 = vld [vmem:[%s11835_s3 + $0x1cc] ss:$16 sps:$4 sm:$0xff]  }
  0xa7   : > { %2350 = vmatprep.mubr.bf16.mxu1 %v8270_v59  ;;  %2696 = vmatpush1.bf16.msra.mxu0 %v8340_v14  ;;  %v8327_v59 = vld [vmem:[%s9059_s26 + $0x168] ss:$16 sps:$4 sm:$0xff]   ;;  %s11837_s26 = sld [smem:[#allocation74_spill]] }
  0xa8   : > { %2849 = vmatpush1.bf16.msra.mxu1 %v8343_v16  ;;  %2697 = vmatprep.subr.bf16.mxu0 %v8348_v26 }
  0xa9   : > { %2850 = vmatprep.subr.bf16.mxu1 %v8351_v29 }
  0xab   : > { %2698 = vmatpush1.bf16.msra.mxu0 %v8346_v25 }
  0xac   : > { %2851 = vmatpush1.bf16.msra.mxu1 %v8349_v28  ;;  %2699 = vmatprep.subr.bf16.mxu0 %v8354_v33 }
  0xad   : > { %2222 = vmatmul.mubr.bf16.gmra.mrb[56].mxu0 %v8272_v62  ;;  %2852 = vmatprep.subr.bf16.mxu1 %v8357_v36  ;;  %v8375_v62 = vld [vmem:[%s11835_s3 + $0x1ec] ss:$16 sps:$4 sm:$0xff]  }
  0xae   : > { %2351 = vmatmul.mubr.bf16.gmra.mrb[56].mxu1 %v8273_v63  ;;  %2229 = vmatprep.mubr.bf16.mxu0 %v8274_v0  ;;  %v8373_v63 = vld [vmem:[%s11835_s3 + $0x1e8] ss:$16 sps:$4 sm:$0xff]   ;;  %v8688_v0 = vmov 0  }
  0xaf   : > { %2358 = vmatprep.mubr.bf16.mxu1 %v8276_v1  ;;  %2700 = vmatpush1.bf16.msra.mxu0 %v8352_v35  ;;  %v8378_v1 = vld [vmem:[%s11835_s3 + $0x4] ss:$16 sps:$4 sm:$0xff]  }
  0xb0   : > { %2853 = vmatpush1.bf16.msra.mxu1 %v8355_v37  ;;  %2701 = vmatprep.subr.bf16.mxu0 %v8360_v43 }
  0xb1   : > { %2854 = vmatprep.subr.bf16.mxu1 %v8363_v48  ;;  %8118 = vset.pattern.permute.xlu1 %v8688_v0 }
  0xb2   : > { %8119 = vset.pattern.permute.xlu0 %v8688_v0 }
  0xb3   : > { %2702 = vmatpush1.bf16.msra.mxu0 %v8358_v42 }
  0xb4   : > { %2855 = vmatpush1.bf16.msra.mxu1 %v8361_v47  ;;  %2703 = vmatprep.subr.bf16.mxu0 %v8366_v53 }
  0xb5   : > { %2230 = vmatmul.mubr.bf16.gmra.mrb[60].mxu0 %v8278_v4  ;;  %2856 = vmatprep.subr.bf16.mxu1 %v8369_v56 }
  0xb6   : > { %2359 = vmatmul.mubr.bf16.gmra.mrb[60].mxu1 %v8279_v5  ;;  %2237 = vmatprep.mubr.bf16.mxu0 %v8280_v6  ;;  %v9235_v5 = vld [vmem:[%s11836_s1] ss:$0 sm:$0xff]  ;;  %s11839_s1 = sld [smem:[#allocation76_spill]] }
  0xb7   : > { %2366 = vmatprep.mubr.bf16.mxu1 %v8282_v9  ;;  %2704 = vmatpush1.bf16.msra.mxu0 %v8364_v55 }
  0xb8   : > { %2857 = vmatpush1.bf16.msra.mxu1 %v8367_v57  ;;  %2705 = vmatprep.subr.bf16.mxu0 %v8372_v61 }
  0xb9   : > { %2858 = vmatprep.subr.bf16.mxu1 %v8375_v62 }
  0xbb   : > { %2706 = vmatpush1.bf16.msra.mxu0 %v8370_v60 }
  0xbc   : > { %2859 = vmatpush1.bf16.msra.mxu1 %v8373_v63  ;;  %3157 = vmatprep.subr.bf16.mxu0 %v8378_v1 }
  0xbd   : > { %2238 = vmatmul.mubr.bf16.gmra.mrb[64].mxu0 %v8284_v10  ;;  %3310 = vmatprep.subr.bf16.mxu1 %v8381_v2 }
  0xbe   : > { %2367 = vmatmul.mubr.bf16.gmra.mrb[64].mxu1 %v8285_v11  ;;  %2245 = vmatprep.mubr.bf16.mxu0 %v8286_v12 }
  0xbf   : > { %2374 = vmatprep.mubr.bf16.mxu1 %v8288_v13 }
  0xc5   : > { %2246 = vmatmul.mubr.bf16.gmra.mrb[68].mxu0 %v8290_v18 }
  0xc6   : > { %2375 = vmatmul.mubr.bf16.gmra.mrb[68].mxu1 %v8291_v19  ;;  %2253 = vmatprep.mubr.bf16.mxu0 %v8292_v20 }
  0xc7   : > { %2382 = vmatprep.mubr.bf16.mxu1 %v8294_v21 }
  0xcd   : > { %2254 = vmatmul.mubr.bf16.gmra.mrb[72].mxu0 %v8296_v22 }
  0xce   : > { %2383 = vmatmul.mubr.bf16.gmra.mrb[72].mxu1 %v8297_v23  ;;  %2261 = vmatprep.mubr.bf16.mxu0 %v8298_v24 }
  0xcf   : > { %2390 = vmatprep.mubr.bf16.mxu1 %v8300_v27 }
  0xd5   : > { %2262 = vmatmul.mubr.bf16.gmra.mrb[76].mxu0 %v8302_v30 }
  0xd6   : > { %2391 = vmatmul.mubr.bf16.gmra.mrb[76].mxu1 %v8303_v31  ;;  %2269 = vmatprep.mubr.bf16.mxu0 %v8304_v32 }
  0xd7   : > { %2398 = vmatprep.mubr.bf16.mxu1 %v8306_v34 }
  0xdd   : > { %2270 = vmatmul.mubr.bf16.gmra.mrb[80].mxu0 %v8308_v38 }
  0xde   : > { %2399 = vmatmul.mubr.bf16.gmra.mrb[80].mxu1 %v8309_v39  ;;  %2277 = vmatprep.mubr.bf16.mxu0 %v8310_v40 }
  0xdf   : > { %2406 = vmatprep.mubr.bf16.mxu1 %v8312_v41 }
  0xe5   : > { %2278 = vmatmul.mubr.bf16.gmra.mrb[84].mxu0 %v8314_v44 }
  0xe6   : > { %2407 = vmatmul.mubr.bf16.gmra.mrb[84].mxu1 %v8315_v45  ;;  %2285 = vmatprep.mubr.bf16.mxu0 %v8316_v46 }
  0xe7   : > { %2414 = vmatprep.mubr.bf16.mxu1 %v8318_v49 }
  0xed   : > { %2286 = vmatmul.mubr.bf16.gmra.mrb[88].mxu0 %v8320_v50 }
  0xee   : > { %2415 = vmatmul.mubr.bf16.gmra.mrb[88].mxu1 %v8321_v51  ;;  %2293 = vmatprep.mubr.bf16.mxu0 %v8322_v52 }
  0xef   : > { %2422 = vmatprep.mubr.bf16.mxu1 %v8324_v54 }
  0xf5   : > { %2294 = vmatmul.mubr.bf16.gmra.mrb[92].mxu0 %v8326_v58 }
  0xf6   : > { %2423 = vmatmul.mubr.bf16.gmra.mrb[92].mxu1 %v8327_v59  ;;  %2723 = vmatprep.mubr.bf16.mxu0 %v8688_v0 }
  0xf7   : > { %2876 = vmatprep.mubr.bf16.mxu1 %v8688_v0 }
 0x110   : > { %v7304_v3 = vpop.f32.mrb[0].mxu0 }
 0x111   : > { %v7392_v4 = vpop.f32.mrb[0].mxu1  ;;  %v7305_v6 = vpop.f32.mrb[1].mxu0 }
 0x112   : > { %v7306_v7 = vadd.f32 %v7305_v6, %v7304_v3  ;;  %v7393_v8 = vpop.f32.mrb[1].mxu1  ;;  %v7307_v9 = vpop.f32.mrb[2].mxu0 }
 0x113   : > { %v7394_v10 = vadd.f32 %v7393_v8, %v7392_v4  ;;  %v7395_v11 = vpop.f32.mrb[2].mxu1  ;;  %v7308_v12 = vpop.f32.mrb[3].mxu0 }
 0x114   : > { %v1363_v13 = vadd.f32 %v7306_v7, %v9235_v5  ;;  %v7309_v14 = vadd.f32 %v7308_v12, %v7307_v9  ;;  %v7396_v15 = vpop.f32.mrb[3].mxu1 }
 0x115   : > { %v7397_v16 = vadd.f32 %v7396_v15, %v7395_v11 }
 0x116   : > { %v1492_v17 = vadd.f32 %v7394_v10, %v1363_v13  ;;  %v1366_v18 = vadd.f32 %v7309_v14, %v9235_v5 }
 0x118   : > { %v1495_v19 = vadd.f32 %v7397_v16, %v1366_v18  ;;  %v7310_v20 = vpop.f32.mrb[4].mxu0  ;;  %v1586_v23 = vmax.f32 %v1492_v17, 0.0 }
 0x119   : > { %v7398_v21 = vpop.f32.mrb[4].mxu1  ;;  %v7311_v22 = vpop.f32.mrb[5].mxu0 }
 0x11a   : > { %v1587_v24 = vmax.f32 %v1495_v19, 0.0  ;;  %v7312_v25 = vadd.f32 %v7311_v22, %v7310_v20  ;;  %v7399_v26 = vpop.f32.mrb[5].mxu1  ;;  %v7313_v27 = vpop.f32.mrb[6].mxu0 }
 0x11b   : > { %v7400_v28 = vadd.f32 %v7399_v26, %v7398_v21  ;;  %v7401_v29 = vpop.f32.mrb[6].mxu1  ;;  %v7314_v30 = vpop.f32.mrb[7].mxu0 }
 0x11c   : > { %v9239_v31 = vpack.c.bf16 %v1587_v24, %v1586_v23  ;;  %v1371_v32 = vadd.f32 %v7312_v25, %v9235_v5  ;;  %v7315_v33 = vadd.f32 %v7314_v30, %v7313_v27  ;;  %v7402_v34 = vpop.f32.mrb[7].mxu1 }
 0x11d   : > { %v7403_v35 = vadd.f32 %v7402_v34, %v7401_v29 }
 0x11e   : > { %v1500_v36 = vadd.f32 %v7400_v28, %v1371_v32  ;;  %v1374_v37 = vadd.f32 %v7315_v33, %v9235_v5 }
 0x120   : > { %v1503_v38 = vadd.f32 %v7403_v35, %v1374_v37  ;;  %v7316_v39 = vpop.f32.mrb[8].mxu0  ;;  %v1588_v45 = vmax.f32 %v1500_v36, 0.0 }
 0x121   : > { %v7404_v40 = vpop.f32.mrb[8].mxu1  ;;  %v7317_v41 = vpop.f32.mrb[9].mxu0 }
 0x122   : > { %v7318_v42 = vadd.f32 %v7317_v41, %v7316_v39  ;;  %v7405_v43 = vpop.f32.mrb[9].mxu1  ;;  %v7319_v44 = vpop.f32.mrb[10].mxu0  ;;  %v1589_v46 = vmax.f32 %v1503_v38, 0.0 }
 0x123   : > { %v7406_v47 = vadd.f32 %v7405_v43, %v7404_v40  ;;  %v7407_v48 = vpop.f32.mrb[10].mxu1  ;;  %v7320_v49 = vpop.f32.mrb[11].mxu0 }
 0x124   : > { %v1379_v50 = vadd.f32 %v7318_v42, %v9235_v5  ;;  %v7321_v51 = vadd.f32 %v7320_v49, %v7319_v44  ;;  %v7408_v52 = vpop.f32.mrb[11].mxu1  ;;  %v9244_v53 = vpack.c.bf16 %v1589_v46, %v1588_v45 }
 0x125   : > { %v7409_v54 = vadd.f32 %v7408_v52, %v7407_v48 }
 0x126   : > { %v1508_v55 = vadd.f32 %v7406_v47, %v1379_v50  ;;  %v1382_v56 = vadd.f32 %v7321_v51, %v9235_v5 }
 0x128   : > { %v1511_v57 = vadd.f32 %v7409_v54, %v1382_v56  ;;  %v7322_v58 = vpop.f32.mrb[12].mxu0  ;;  %v1590_v4 = vmax.f32 %v1508_v55, 0.0 }
 0x129   : > { %v7410_v59 = vpop.f32.mrb[12].mxu1  ;;  %v7323_v60 = vpop.f32.mrb[13].mxu0 }
 0x12a   : > { %v7324_v61 = vadd.f32 %v7323_v60, %v7322_v58  ;;  %v7411_v62 = vpop.f32.mrb[13].mxu1  ;;  %v7325_v63 = vpop.f32.mrb[14].mxu0  ;;  %v1591_v6 = vmax.f32 %v1511_v57, 0.0 }
 0x12b   : > { %v7412_v1 = vadd.f32 %v7411_v62, %v7410_v59  ;;  %v7413_v2 = vpop.f32.mrb[14].mxu1  ;;  %v7326_v3 = vpop.f32.mrb[15].mxu0 }
 0x12c   : > { %v1387_v7 = vadd.f32 %v7324_v61, %v9235_v5  ;;  %v7327_v8 = vadd.f32 %v7326_v3, %v7325_v63  ;;  %v7414_v9 = vpop.f32.mrb[15].mxu1  ;;  %v9248_v11 = vpack.c.bf16 %v1591_v6, %v1590_v4 }
 0x12d   : > { %v7415_v10 = vadd.f32 %v7414_v9, %v7413_v2 }
 0x12e   : > { %v1516_v12 = vadd.f32 %v7412_v1, %v1387_v7  ;;  %v1390_v13 = vadd.f32 %v7327_v8, %v9235_v5 }
 0x130   : > { %v1519_v14 = vadd.f32 %v7415_v10, %v1390_v13  ;;  %v7328_v15 = vpop.f32.mrb[16].mxu0  ;;  %v1592_v27 = vmax.f32 %v1516_v12, 0.0 }
 0x131   : > { %v7416_v16 = vpop.f32.mrb[16].mxu1  ;;  %v7329_v17 = vpop.f32.mrb[17].mxu0 }
 0x132   : > { %v7330_v18 = vadd.f32 %v7329_v17, %v7328_v15  ;;  %v7417_v19 = vpop.f32.mrb[17].mxu1  ;;  %v7331_v20 = vpop.f32.mrb[18].mxu0  ;;  %v1593_v28 = vmax.f32 %v1519_v14, 0.0 }
 0x133   : > { %v7418_v21 = vadd.f32 %v7417_v19, %v7416_v16  ;;  %v7419_v22 = vpop.f32.mrb[18].mxu1  ;;  %v7332_v23 = vpop.f32.mrb[19].mxu0 }
 0x134   : > { %v1395_v24 = vadd.f32 %v7330_v18, %v9235_v5  ;;  %v7333_v25 = vadd.f32 %v7332_v23, %v7331_v20  ;;  %v7420_v26 = vpop.f32.mrb[19].mxu1  ;;  %v9253_v33 = vpack.c.bf16 %v1593_v28, %v1592_v27 }
 0x135   : > { %v7421_v29 = vadd.f32 %v7420_v26, %v7419_v22 }
 0x136   : > { %v1524_v30 = vadd.f32 %v7418_v21, %v1395_v24  ;;  %v1398_v32 = vadd.f32 %v7333_v25, %v9235_v5 }
 0x138   : > { %v1527_v34 = vadd.f32 %v7421_v29, %v1398_v32  ;;  %v7334_v35 = vpop.f32.mrb[20].mxu0  ;;  %v1594_v38 = vmax.f32 %v1524_v30, 0.0 }
 0x139   : > { %v7422_v36 = vpop.f32.mrb[20].mxu1  ;;  %v7335_v37 = vpop.f32.mrb[21].mxu0 }
 0x13a   : > { %v1595_v39 = vmax.f32 %v1527_v34, 0.0  ;;  %v7336_v40 = vadd.f32 %v7335_v37, %v7334_v35  ;;  %v7423_v41 = vpop.f32.mrb[21].mxu1  ;;  %v7337_v42 = vpop.f32.mrb[22].mxu0 }
 0x13b   : > { %v7424_v43 = vadd.f32 %v7423_v41, %v7422_v36  ;;  %v7425_v44 = vpop.f32.mrb[22].mxu1  ;;  %v7338_v45 = vpop.f32.mrb[23].mxu0 }
 0x13c   : > { %v1403_v46 = vadd.f32 %v7336_v40, %v9235_v5  ;;  %v7339_v47 = vadd.f32 %v7338_v45, %v7337_v42  ;;  %v7426_v48 = vpop.f32.mrb[23].mxu1  ;;  %v9256_v49 = vpack.c.bf16 %v1595_v39, %v1594_v38 }
 0x13d   : > { %v7427_v50 = vadd.f32 %v7426_v48, %v7425_v44 }
 0x13e   : > { %v1532_v51 = vadd.f32 %v7424_v43, %v1403_v46  ;;  %v1406_v52 = vadd.f32 %v7339_v47, %v9235_v5 }
 0x140   : > { %v1535_v54 = vadd.f32 %v7427_v50, %v1406_v52  ;;  %v7340_v55 = vpop.f32.mrb[24].mxu0  ;;  %v1596_v58 = vmax.f32 %v1532_v51, 0.0 }
 0x141   : > { %v7428_v56 = vpop.f32.mrb[24].mxu1  ;;  %v7341_v57 = vpop.f32.mrb[25].mxu0 }
 0x142   : > { %v1597_v59 = vmax.f32 %v1535_v54, 0.0  ;;  %v7342_v60 = vadd.f32 %v7341_v57, %v7340_v55  ;;  %v7429_v61 = vpop.f32.mrb[25].mxu1  ;;  %v7343_v62 = vpop.f32.mrb[26].mxu0 }
 0x143   : > { %v7430_v63 = vadd.f32 %v7429_v61, %v7428_v56  ;;  %v7431_v1 = vpop.f32.mrb[26].mxu1  ;;  %v7344_v2 = vpop.f32.mrb[27].mxu0 }
 0x144   : > { %v1411_v3 = vadd.f32 %v7342_v60, %v9235_v5  ;;  %v7345_v4 = vadd.f32 %v7344_v2, %v7343_v62  ;;  %v7432_v6 = vpop.f32.mrb[27].mxu1  ;;  %v9260_v7 = vpack.c.bf16 %v1597_v59, %v1596_v58 }
 0x145   : > { %v7433_v8 = vadd.f32 %v7432_v6, %v7431_v1 }
 0x146   : > { %v1540_v9 = vadd.f32 %v7430_v63, %v1411_v3  ;;  %v1414_v10 = vadd.f32 %v7345_v4, %v9235_v5 }
 0x148   : > { %v1543_v12 = vadd.f32 %v7433_v8, %v1414_v10  ;;  %v7346_v13 = vpop.f32.mrb[28].mxu0  ;;  %v1598_v16 = vmax.f32 %v1540_v9, 0.0 }
 0x149   : > { %v7434_v14 = vpop.f32.mrb[28].mxu1  ;;  %v7347_v15 = vpop.f32.mrb[29].mxu0 }
 0x14a   : > { %v1599_v17 = vmax.f32 %v1543_v12, 0.0  ;;  %v7348_v18 = vadd.f32 %v7347_v15, %v7346_v13  ;;  %v7435_v19 = vpop.f32.mrb[29].mxu1  ;;  %v7349_v20 = vpop.f32.mrb[30].mxu0 }
 0x14b   : > { %v7436_v21 = vadd.f32 %v7435_v19, %v7434_v14  ;;  %v7437_v22 = vpop.f32.mrb[30].mxu1  ;;  %v7350_v23 = vpop.f32.mrb[31].mxu0 }
 0x14c   : > { %v1419_v24 = vadd.f32 %v7348_v18, %v9235_v5  ;;  %v7351_v25 = vadd.f32 %v7350_v23, %v7349_v20  ;;  %v7438_v26 = vpop.f32.mrb[31].mxu1  ;;  %v9264_v27 = vpack.c.bf16 %v1599_v17, %v1598_v16 }
 0x14d   : > { %v7439_v28 = vadd.f32 %v7438_v26, %v7437_v22 }
 0x14e   : > { %v1548_v29 = vadd.f32 %v7436_v21, %v1419_v24  ;;  %v1422_v30 = vadd.f32 %v7351_v25, %v9235_v5 }
 0x150   : > { %v1551_v32 = vadd.f32 %v7439_v28, %v1422_v30  ;;  %v7352_v34 = vpop.f32.mrb[32].mxu0  ;;  %v1600_v37 = vmax.f32 %v1548_v29, 0.0 }
 0x151   : > { %v7440_v35 = vpop.f32.mrb[32].mxu1  ;;  %v7353_v36 = vpop.f32.mrb[33].mxu0 }
 0x152   : > { %v1601_v38 = vmax.f32 %v1551_v32, 0.0  ;;  %v7354_v39 = vadd.f32 %v7353_v36, %v7352_v34  ;;  %v7441_v40 = vpop.f32.mrb[33].mxu1  ;;  %v7355_v41 = vpop.f32.mrb[34].mxu0 }
 0x153   : > { %v7442_v42 = vadd.f32 %v7441_v40, %v7440_v35  ;;  %v7443_v43 = vpop.f32.mrb[34].mxu1  ;;  %v7356_v44 = vpop.f32.mrb[35].mxu0 }
 0x154   : > { %v1427_v45 = vadd.f32 %v7354_v39, %v9235_v5  ;;  %v7357_v46 = vadd.f32 %v7356_v44, %v7355_v41  ;;  %v7444_v47 = vpop.f32.mrb[35].mxu1  ;;  %v9268_v48 = vpack.c.bf16 %v1601_v38, %v1600_v37 }
 0x155   : > { %v7445_v50 = vadd.f32 %v7444_v47, %v7443_v43 }
 0x156   : > { %v1556_v51 = vadd.f32 %v7442_v42, %v1427_v45  ;;  %v1430_v52 = vadd.f32 %v7357_v46, %v9235_v5 }
 0x158   : > { %v1559_v54 = vadd.f32 %v7445_v50, %v1430_v52  ;;  %v7358_v55 = vpop.f32.mrb[36].mxu0  ;;  %v1602_v58 = vmax.f32 %v1556_v51, 0.0 }
 0x159   : > { %v7446_v56 = vpop.f32.mrb[36].mxu1  ;;  %v7359_v57 = vpop.f32.mrb[37].mxu0 }
 0x15a   : > { %v1603_v59 = vmax.f32 %v1559_v54, 0.0  ;;  %v7360_v60 = vadd.f32 %v7359_v57, %v7358_v55  ;;  %v7447_v61 = vpop.f32.mrb[37].mxu1  ;;  %v7361_v62 = vpop.f32.mrb[38].mxu0 }
 0x15b   : > { %v7448_v63 = vadd.f32 %v7447_v61, %v7446_v56  ;;  %v7449_v1 = vpop.f32.mrb[38].mxu1  ;;  %v7362_v2 = vpop.f32.mrb[39].mxu0 }
 0x15c   : > { %v1435_v3 = vadd.f32 %v7360_v60, %v9235_v5  ;;  %v7363_v4 = vadd.f32 %v7362_v2, %v7361_v62  ;;  %v7450_v6 = vpop.f32.mrb[39].mxu1  ;;  %v9272_v8 = vpack.c.bf16 %v1603_v59, %v1602_v58  ;;  %v9286_v60 = vld [vmem:[%s11837_s26] ss:$0 sm:$0xff] }
 0x15d   : > { %v7451_v9 = vadd.f32 %v7450_v6, %v7449_v1 }
 0x15e   : > { %v1564_v10 = vadd.f32 %v7448_v63, %v1435_v3  ;;  %v1438_v12 = vadd.f32 %v7363_v4, %v9235_v5 }
 0x160   : > { %v1567_v13 = vadd.f32 %v7451_v9, %v1438_v12  ;;  %v7364_v14 = vpop.f32.mrb[40].mxu0  ;;  %v1604_v17 = vmax.f32 %v1564_v10, 0.0 }
 0x161   : > { %v7452_v15 = vpop.f32.mrb[40].mxu1  ;;  %v7365_v16 = vpop.f32.mrb[41].mxu0 }
 0x162   : > { %v1605_v18 = vmax.f32 %v1567_v13, 0.0  ;;  %v7366_v19 = vadd.f32 %v7365_v16, %v7364_v14  ;;  %v7453_v20 = vpop.f32.mrb[41].mxu1  ;;  %v7367_v21 = vpop.f32.mrb[42].mxu0 }
 0x163   : > { %v7454_v22 = vadd.f32 %v7453_v20, %v7452_v15  ;;  %v7455_v23 = vpop.f32.mrb[42].mxu1  ;;  %v7368_v24 = vpop.f32.mrb[43].mxu0 }
 0x164   : > { %v1443_v25 = vadd.f32 %v7366_v19, %v9235_v5  ;;  %v7369_v26 = vadd.f32 %v7368_v24, %v7367_v21  ;;  %v7456_v28 = vpop.f32.mrb[43].mxu1  ;;  %v9276_v29 = vpack.c.bf16 %v1605_v18, %v1604_v17 }
 0x165   : > { %v7457_v30 = vadd.f32 %v7456_v28, %v7455_v23 }
 0x166   : > { %v1572_v32 = vadd.f32 %v7454_v22, %v1443_v25  ;;  %v1446_v34 = vadd.f32 %v7369_v26, %v9235_v5 }
 0x168   : > { %v1575_v35 = vadd.f32 %v7457_v30, %v1446_v34  ;;  %v7370_v36 = vpop.f32.mrb[44].mxu0  ;;  %v1606_v39 = vmax.f32 %v1572_v32, 0.0  ;;  %v8376_v32 = vld [vmem:[%s11835_s3] ss:$16 sps:$4 sm:$0xff]   ;;  %v8379_v34 = vld [vmem:[%s11835_s3 + $0x8] ss:$16 sps:$4 sm:$0xff]  }
 0x169   : > { %v7458_v37 = vpop.f32.mrb[44].mxu1  ;;  %v7371_v38 = vpop.f32.mrb[45].mxu0 }
 0x16a   : > { %v1607_v40 = vmax.f32 %v1575_v35, 0.0  ;;  %v7372_v41 = vadd.f32 %v7371_v38, %v7370_v36  ;;  %v7459_v42 = vpop.f32.mrb[45].mxu1  ;;  %v7373_v43 = vpop.f32.mrb[46].mxu0 }
 0x16b   : > { %v7460_v44 = vadd.f32 %v7459_v42, %v7458_v37  ;;  %v7461_v45 = vpop.f32.mrb[46].mxu1  ;;  %v7374_v46 = vpop.f32.mrb[47].mxu0 }
 0x16c   : > { %v1451_v47 = vadd.f32 %v7372_v41, %v9235_v5  ;;  %v7375_v50 = vadd.f32 %v7374_v46, %v7373_v43  ;;  %v7462_v51 = vpop.f32.mrb[47].mxu1  ;;  %v9280_v52 = vpack.c.bf16 %v1607_v40, %v1606_v39  ;;  %v8384_v40 = vld [vmem:[%s11835_s3 + $0x24] ss:$16 sps:$4 sm:$0xff]   ;;  %v8387_v41 = vld [vmem:[%s11835_s3 + $0x2c] ss:$16 sps:$4 sm:$0xff]  }
 0x16d   : > { %v7463_v54 = vadd.f32 %v7462_v51, %v7461_v45  ;;  %v8385_v45 = vld [vmem:[%s11835_s3 + $0x28] ss:$16 sps:$4 sm:$0xff]   ;;  %v8393_v51 = vld [vmem:[%s11835_s3 + $0x4c] ss:$16 sps:$4 sm:$0xff]  }
 0x16e   : > { %v1580_v55 = vadd.f32 %v7460_v44, %v1451_v47  ;;  %v1454_v56 = vadd.f32 %v7375_v50, %v9235_v5  ;;  %v8382_v44 = vld [vmem:[%s11835_s3 + $0x20] ss:$16 sps:$4 sm:$0xff]   ;;  %v8390_v50 = vld [vmem:[%s11835_s3 + $0x44] ss:$16 sps:$4 sm:$0xff]  }
 0x170   : > { %v1583_v57 = vadd.f32 %v7463_v54, %v1454_v56  ;;  %v7480_v58 = vpop.f32.mrb[48].mxu0  ;;  %v1608_v62 = vmax.f32 %v1580_v55, 0.0 }
 0x171   : > { %v7568_v59 = vpop.f32.mrb[48].mxu1  ;;  %v7481_v61 = vpop.f32.mrb[49].mxu0 }
 0x172   : > { %v1609_v63 = vmax.f32 %v1583_v57, 0.0  ;;  %v7482_v1 = vadd.f32 %v7481_v61, %v7480_v58  ;;  %v7569_v2 = vpop.f32.mrb[49].mxu1  ;;  %v7483_v3 = vpop.f32.mrb[50].mxu0 }
 0x173   : > { %v7570_v4 = vadd.f32 %v7569_v2, %v7568_v59  ;;  %v7571_v6 = vpop.f32.mrb[50].mxu1  ;;  %v7484_v9 = vpop.f32.mrb[51].mxu0 }
 0x174   : > { %v2208_v10 = vadd.f32 %v7482_v1, %v9286_v60  ;;  %v7485_v5 = vadd.f32 %v7484_v9, %v7483_v3  ;;  %v7572_v12 = vpop.f32.mrb[51].mxu1  ;;  %v9289_v13 = vpack.c.bf16 %v1609_v63, %v1608_v62  ;;  %v8388_v9 = vld [vmem:[%s11835_s3 + $0x40] ss:$16 sps:$4 sm:$0xff]  }
 0x175   : > { %v7573_v14 = vadd.f32 %v7572_v12, %v7571_v6  ;;  %v8396_v12 = vld [vmem:[%s11835_s3 + $0x64] ss:$16 sps:$4 sm:$0xff]  }
 0x176   : > { %v2337_v15 = vadd.f32 %v7570_v4, %v2208_v10  ;;  %v2211_v16 = vadd.f32 %v7485_v5, %v9286_v60  ;;  %v8391_v10 = vld [vmem:[%s11835_s3 + $0x48] ss:$16 sps:$4 sm:$0xff]  }
 0x178   : > { %v2340_v17 = vadd.f32 %v7573_v14, %v2211_v16  ;;  %v7486_v18 = vpop.f32.mrb[52].mxu0  ;;  %v2431_v21 = vmax.f32 %v2337_v15, 0.0  ;;  %v8399_v14 = vld [vmem:[%s11835_s3 + $0x6c] ss:$16 sps:$4 sm:$0xff]  }
 0x179   : > { %v7574_v19 = vpop.f32.mrb[52].mxu1  ;;  %v7487_v20 = vpop.f32.mrb[53].mxu0 }
 0x17a   : > { %v2432_v22 = vmax.f32 %v2340_v17, 0.0  ;;  %v7488_v23 = vadd.f32 %v7487_v20, %v7486_v18  ;;  %v7575_v24 = vpop.f32.mrb[53].mxu1  ;;  %v7489_v25 = vpop.f32.mrb[54].mxu0  ;;  %v8397_v20 = vld [vmem:[%s11835_s3 + $0x68] ss:$16 sps:$4 sm:$0xff]  }
 0x17b   : > { %v7576_v26 = vadd.f32 %v7575_v24, %v7574_v19  ;;  %v7577_v28 = vpop.f32.mrb[54].mxu1  ;;  %v7490_v30 = vpop.f32.mrb[55].mxu0  ;;  %v8394_v19 = vld [vmem:[%s11835_s3 + $0x60] ss:$16 sps:$4 sm:$0xff]   ;;  %v8405_v24 = vld [vmem:[%s11835_s3 + $0x8c] ss:$16 sps:$4 sm:$0xff]  }
 0x17c   : > { %v2455_v35 = vpack.c.bf16 %v2432_v22, %v2431_v21  ;;  %v2216_v36 = vadd.f32 %v7488_v23, %v9286_v60  ;;  %v7491_v37 = vadd.f32 %v7490_v30, %v7489_v25  ;;  %v7578_v38 = vpop.f32.mrb[55].mxu1  ;;  %v8402_v23 = vld [vmem:[%s11835_s3 + $0x84] ss:$16 sps:$4 sm:$0xff]  }
 0x17d   : > { %v7579_v39 = vadd.f32 %v7578_v38, %v7577_v28 }
 0x17e   : > { %v2345_v42 = vadd.f32 %v7576_v26, %v2216_v36  ;;  %v2219_v43 = vadd.f32 %v7491_v37, %v9286_v60  ;;  %2724 = vmatmul.mubr.bf16.vlgmr.msra.gmra.mrb[96].mxu0 %v2455_v35  ;;  %2877 = vmatmul.mubr.bf16.vlgmr.msra.gmra.mrb[96].mxu1 %v2455_v35 }
 0x17f   : > { %3158 = vmatpush1.bf16.msra.mxu0 %v8376_v32  ;;  %3311 = vmatpush1.bf16.msra.mxu1 %v8379_v34 }
 0x180   : > { %v2348_v46 = vadd.f32 %v7579_v39, %v2219_v43  ;;  %v7492_v47 = vpop.f32.mrb[56].mxu0  ;;  %2733 = vmatprep.mubr.bf16.mxu0 %v8688_v0  ;;  %2886 = vmatprep.mubr.bf16.mxu1 %v8688_v0  ;;  %v2433_v56 = vmax.f32 %v2345_v42, 0.0  ;;  %v8403_v42 = vld [vmem:[%s11835_s3 + $0x88] ss:$16 sps:$4 sm:$0xff]  }
 0x181   : > { %v7580_v54 = vpop.f32.mrb[56].mxu1  ;;  %v7493_v55 = vpop.f32.mrb[57].mxu0  ;;  %3159 = vmatprep.subr.bf16.mxu0 %v8384_v40  ;;  %3312 = vmatprep.subr.bf16.mxu1 %v8387_v41  ;;  %v8400_v41 = vld [vmem:[%s11835_s3 + $0x80] ss:$16 sps:$4 sm:$0xff]  }
 0x182   : > { %v2434_v57 = vmax.f32 %v2348_v46, 0.0  ;;  %v7494_v58 = vadd.f32 %v7493_v55, %v7492_v47  ;;  %v7581_v59 = vpop.f32.mrb[57].mxu1  ;;  %v7495_v61 = vpop.f32.mrb[58].mxu0  ;;  %v8409_v55 = vld [vmem:[%s11835_s3 + $0xa8] ss:$16 sps:$4 sm:$0xff]  }
 0x183   : > { %v7582_v62 = vadd.f32 %v7581_v59, %v7580_v54  ;;  %v7583_v63 = vpop.f32.mrb[58].mxu1  ;;  %v7496_v1 = vpop.f32.mrb[59].mxu0  ;;  %3160 = vmatpush1.bf16.msra.mxu0 %v8382_v44  ;;  %3313 = vmatpush1.bf16.msra.mxu1 %v8385_v45  ;;  %v8408_v44 = vld [vmem:[%s11835_s3 + $0xa4] ss:$16 sps:$4 sm:$0xff]   ;;  %v8411_v45 = vld [vmem:[%s11835_s3 + $0xac] ss:$16 sps:$4 sm:$0xff]  }
 0x184   : > { %v2224_v2 = vadd.f32 %v7494_v58, %v9286_v60  ;;  %v7497_v3 = vadd.f32 %v7496_v1, %v7495_v61  ;;  %v7584_v4 = vpop.f32.mrb[59].mxu1  ;;  %v2456_v6 = vpack.c.bf16 %v2434_v57, %v2433_v56  ;;  %3161 = vmatprep.subr.bf16.mxu0 %v8390_v50  ;;  %3314 = vmatprep.subr.bf16.mxu1 %v8393_v51  ;;  %v8406_v54 = vld [vmem:[%s11835_s3 + $0xa0] ss:$16 sps:$4 sm:$0xff]   ;;  %v8414_v58 = vld [vmem:[%s11835_s3 + $0xc4] ss:$16 sps:$4 sm:$0xff]  }
 0x185   : > { %v7585_v5 = vadd.f32 %v7584_v4, %v7583_v63  ;;  %v8417_v59 = vld [vmem:[%s11835_s3 + $0xcc] ss:$16 sps:$4 sm:$0xff]  }
 0x186   : > { %v2353_v15 = vadd.f32 %v7582_v62, %v2224_v2  ;;  %v2227_v16 = vadd.f32 %v7497_v3, %v9286_v60  ;;  %2734 = vmatmul.mubr.bf16.gmra.mrb[100].mxu0 %v2456_v6  ;;  %2887 = vmatmul.mubr.bf16.gmra.mrb[100].mxu1 %v2456_v6 }
 0x187   : > { %2743 = vmatprep.mubr.bf16.mxu0 %v8688_v0  ;;  %2896 = vmatprep.mubr.bf16.mxu1 %v8688_v0 }
 0x188   : > { %v2356_v17 = vadd.f32 %v7585_v5, %v2227_v16  ;;  %v7498_v18 = vpop.f32.mrb[60].mxu0  ;;  %3162 = vmatpush1.bf16.msra.mxu0 %v8388_v9  ;;  %3315 = vmatpush1.bf16.msra.mxu1 %v8391_v10  ;;  %v2435_v25 = vmax.f32 %v2353_v15, 0.0  ;;  %v8415_v15 = vld [vmem:[%s11835_s3 + $0xc8] ss:$16 sps:$4 sm:$0xff]  }
 0x189   : > { %v7586_v21 = vpop.f32.mrb[60].mxu1  ;;  %v7499_v22 = vpop.f32.mrb[61].mxu0  ;;  %3163 = vmatprep.subr.bf16.mxu0 %v8396_v12  ;;  %3316 = vmatprep.subr.bf16.mxu1 %v8399_v14  ;;  %v8412_v14 = vld [vmem:[%s11835_s3 + $0xc0] ss:$16 sps:$4 sm:$0xff]  }
 0x18a   : > { %v2436_v26 = vmax.f32 %v2356_v17, 0.0  ;;  %v7500_v28 = vadd.f32 %v7499_v22, %v7498_v18  ;;  %v7587_v30 = vpop.f32.mrb[61].mxu1  ;;  %v7501_v32 = vpop.f32.mrb[62].mxu0  ;;  %v8420_v17 = vld [vmem:[%s11835_s3 + $0xe4] ss:$16 sps:$4 sm:$0xff]  }
 0x18b   : > { %v7588_v34 = vadd.f32 %v7587_v30, %v7586_v21  ;;  %v7589_v35 = vpop.f32.mrb[62].mxu1  ;;  %v7502_v36 = vpop.f32.mrb[63].mxu0  ;;  %v8423_v18 = vld [vmem:[%s11835_s3 + $0xec] ss:$16 sps:$4 sm:$0xff]  }
 0x18c   : > { %v2232_v37 = vadd.f32 %v7500_v28, %v9286_v60  ;;  %v7503_v38 = vadd.f32 %v7502_v36, %v7501_v32  ;;  %v7590_v39 = vpop.f32.mrb[63].mxu1  ;;  %v2457_v40 = vpack.c.bf16 %v2436_v26, %v2435_v25  ;;  %3164 = vmatpush1.bf16.msra.mxu0 %v8394_v19  ;;  %3317 = vmatpush1.bf16.msra.mxu1 %v8397_v20 }
 0x18d   : > { %v7591_v43 = vadd.f32 %v7590_v39, %v7589_v35  ;;  %3165 = vmatprep.subr.bf16.mxu0 %v8402_v23  ;;  %3318 = vmatprep.subr.bf16.mxu1 %v8405_v24  ;;  %v8418_v23 = vld [vmem:[%s11835_s3 + $0xe0] ss:$16 sps:$4 sm:$0xff]   ;;  %v8421_v24 = vld [vmem:[%s11835_s3 + $0xe8] ss:$16 sps:$4 sm:$0xff]   ;;  %s769_s3 = scalar_lea.vmem %s11734_s13, %s12054_s30 }
 0x18e   : > { %v2361_v46 = vadd.f32 %v7588_v34, %v2232_v37  ;;  %v2235_v47 = vadd.f32 %v7503_v38, %v9286_v60  ;;  %2744 = vmatmul.mubr.bf16.gmra.mrb[104].mxu0 %v2457_v40  ;;  %2897 = vmatmul.mubr.bf16.gmra.mrb[104].mxu1 %v2457_v40 }
 0x18f   : > { %2753 = vmatprep.mubr.bf16.mxu0 %v8688_v0  ;;  %2906 = vmatprep.mubr.bf16.mxu1 %v8688_v0 }
 0x190   : > { %v2364_v50 = vadd.f32 %v7591_v43, %v2235_v47  ;;  %v7504_v51 = vpop.f32.mrb[64].mxu0  ;;  %3166 = vmatpush1.bf16.msra.mxu0 %v8400_v41  ;;  %3319 = vmatpush1.bf16.msra.mxu1 %v8403_v42  ;;  %v2437_v61 = vmax.f32 %v2361_v46, 0.0 }
 0x191   : > { %v7592_v56 = vpop.f32.mrb[64].mxu1  ;;  %v7505_v57 = vpop.f32.mrb[65].mxu0  ;;  %3167 = vmatprep.subr.bf16.mxu0 %v8408_v44  ;;  %3320 = vmatprep.subr.bf16.mxu1 %v8411_v45 }
 0x192   : > { %v2438_v62 = vmax.f32 %v2364_v50, 0.0  ;;  %v7506_v63 = vadd.f32 %v7505_v57, %v7504_v51  ;;  %v7593_v1 = vpop.f32.mrb[65].mxu1  ;;  %v7507_v2 = vpop.f32.mrb[66].mxu0 }
 0x193   : > { %v7594_v3 = vadd.f32 %v7593_v1, %v7592_v56  ;;  %v7595_v4 = vpop.f32.mrb[66].mxu1  ;;  %v7508_v6 = vpop.f32.mrb[67].mxu0 }
 0x194   : > { %v2240_v9 = vadd.f32 %v7506_v63, %v9286_v60  ;;  %v7509_v10 = vadd.f32 %v7508_v6, %v7507_v2  ;;  %v7596_v5 = vpop.f32.mrb[67].mxu1  ;;  %v2458_v12 = vpack.c.bf16 %v2438_v62, %v2437_v61  ;;  %3168 = vmatpush1.bf16.msra.mxu0 %v8406_v54  ;;  %3321 = vmatpush1.bf16.msra.mxu1 %v8409_v55 }
 0x195   : > { %v7597_v16 = vadd.f32 %v7596_v5, %v7595_v4  ;;  %3169 = vmatprep.subr.bf16.mxu0 %v8414_v58  ;;  %3322 = vmatprep.subr.bf16.mxu1 %v8417_v59 }
 0x196   : > { %v2369_v19 = vadd.f32 %v7594_v3, %v2240_v9  ;;  %v2243_v20 = vadd.f32 %v7509_v10, %v9286_v60  ;;  %2754 = vmatmul.mubr.bf16.gmra.mrb[108].mxu0 %v2458_v12  ;;  %2907 = vmatmul.mubr.bf16.gmra.mrb[108].mxu1 %v2458_v12 }
 0x197   : > { %2763 = vmatprep.mubr.bf16.mxu0 %v8688_v0  ;;  %2916 = vmatprep.mubr.bf16.mxu1 %v8688_v0 }
 0x198   : > { %v2372_v21 = vadd.f32 %v7597_v16, %v2243_v20  ;;  %v7510_v22 = vpop.f32.mrb[68].mxu0  ;;  %3170 = vmatpush1.bf16.msra.mxu0 %v8412_v14  ;;  %3323 = vmatpush1.bf16.msra.mxu1 %v8415_v15  ;;  %v2439_v28 = vmax.f32 %v2369_v19, 0.0 }
 0x199   : > { %v7598_v25 = vpop.f32.mrb[68].mxu1  ;;  %v7511_v26 = vpop.f32.mrb[69].mxu0  ;;  %3171 = vmatprep.subr.bf16.mxu0 %v8420_v17  ;;  %3324 = vmatprep.subr.bf16.mxu1 %v8423_v18 }
 0x19a   : > { %v2440_v30 = vmax.f32 %v2372_v21, 0.0  ;;  %v7512_v32 = vadd.f32 %v7511_v26, %v7510_v22  ;;  %v7599_v34 = vpop.f32.mrb[69].mxu1  ;;  %v7513_v35 = vpop.f32.mrb[70].mxu0 }
 0x19b   : > { %v7600_v36 = vadd.f32 %v7599_v34, %v7598_v25  ;;  %v7601_v37 = vpop.f32.mrb[70].mxu1  ;;  %v7514_v38 = vpop.f32.mrb[71].mxu0 }
 0x19c   : > { %v2248_v39 = vadd.f32 %v7512_v32, %v9286_v60  ;;  %v7515_v40 = vadd.f32 %v7514_v38, %v7513_v35  ;;  %v7602_v41 = vpop.f32.mrb[71].mxu1  ;;  %v2459_v42 = vpack.c.bf16 %v2440_v30, %v2439_v28  ;;  %3172 = vmatpush1.bf16.msra.mxu0 %v8418_v23  ;;  %3325 = vmatpush1.bf16.msra.mxu1 %v8421_v24 }
 0x19d   : > { %v7603_v43 = vadd.f32 %v7602_v41, %v7601_v37 }
 0x19e   : > { %v2377_v44 = vadd.f32 %v7600_v36, %v2248_v39  ;;  %v2251_v45 = vadd.f32 %v7515_v40, %v9286_v60  ;;  %2764 = vmatmul.mubr.bf16.gmra.mrb[112].mxu0 %v2459_v42  ;;  %2917 = vmatmul.mubr.bf16.gmra.mrb[112].mxu1 %v2459_v42 }
 0x19f   : > { %2773 = vmatprep.mubr.bf16.mxu0 %v8688_v0  ;;  %2926 = vmatprep.mubr.bf16.mxu1 %v8688_v0 }
 0x1a0   : > { %v2380_v46 = vadd.f32 %v7603_v43, %v2251_v45  ;;  %v7516_v47 = vpop.f32.mrb[72].mxu0  ;;  %v2441_v54 = vmax.f32 %v2377_v44, 0.0 }
 0x1a1   : > { %v7604_v50 = vpop.f32.mrb[72].mxu1  ;;  %v7517_v51 = vpop.f32.mrb[73].mxu0 }
 0x1a2   : > { %v2442_v55 = vmax.f32 %v2380_v46, 0.0  ;;  %v7518_v56 = vadd.f32 %v7517_v51, %v7516_v47  ;;  %v7605_v57 = vpop.f32.mrb[73].mxu1  ;;  %v7519_v58 = vpop.f32.mrb[74].mxu0 }
 0x1a3   : > { %v7606_v59 = vadd.f32 %v7605_v57, %v7604_v50  ;;  %v7607_v61 = vpop.f32.mrb[74].mxu1  ;;  %v7520_v62 = vpop.f32.mrb[75].mxu0  ;;  %v8424_v57 = vld [vmem:[%s11729_s8 + $0x40] sm:$0xff]  }
 0x1a4   : > { %v2256_v63 = vadd.f32 %v7518_v56, %v9286_v60  ;;  %v7521_v1 = vadd.f32 %v7520_v62, %v7519_v58  ;;  %v7608_v2 = vpop.f32.mrb[75].mxu1  ;;  %v2460_v3 = vpack.c.bf16 %v2442_v55, %v2441_v54  ;;  %v8426_v58 = vld [vmem:[%s11729_s8 + $0xc0] sm:$0xff]   ;;  %7640 = vmatprep.subr.bf16.mxu0 %v8424_v57 }
 0x1a5   : > { %v7609_v4 = vadd.f32 %v7608_v2, %v7607_v61  ;;  %7728 = vmatprep.subr.bf16.mxu1 %v8426_v58 }
 0x1a6   : > { %v2385_v6 = vadd.f32 %v7606_v59, %v2256_v63  ;;  %v2259_v9 = vadd.f32 %v7521_v1, %v9286_v60  ;;  %2774 = vmatmul.mubr.bf16.gmra.mrb[116].mxu0 %v2460_v3  ;;  %2927 = vmatmul.mubr.bf16.gmra.mrb[116].mxu1 %v2460_v3 }
 0x1a7   : > { %2783 = vmatprep.mubr.bf16.mxu0 %v8688_v0  ;;  %2936 = vmatprep.mubr.bf16.mxu1 %v8688_v0 }
 0x1a8   : > { %v2388_v10 = vadd.f32 %v7609_v4, %v2259_v9  ;;  %v7522_v5 = vpop.f32.mrb[76].mxu0  ;;  %v2443_v15 = vmax.f32 %v2385_v6, 0.0 }
 0x1a9   : > { %v7610_v12 = vpop.f32.mrb[76].mxu1  ;;  %v7523_v14 = vpop.f32.mrb[77].mxu0 }
 0x1aa   : > { %v2444_v16 = vmax.f32 %v2388_v10, 0.0  ;;  %v7524_v17 = vadd.f32 %v7523_v14, %v7522_v5  ;;  %v7611_v18 = vpop.f32.mrb[77].mxu1  ;;  %v7525_v19 = vpop.f32.mrb[78].mxu0 }
 0x1ab   : > { %v7612_v20 = vadd.f32 %v7611_v18, %v7610_v12  ;;  %v7613_v21 = vpop.f32.mrb[78].mxu1  ;;  %v7526_v22 = vpop.f32.mrb[79].mxu0 }
 0x1ac   : > { %v2264_v23 = vadd.f32 %v7524_v17, %v9286_v60  ;;  %v7527_v24 = vadd.f32 %v7526_v22, %v7525_v19  ;;  %v7614_v25 = vpop.f32.mrb[79].mxu1  ;;  %v2461_v26 = vpack.c.bf16 %v2444_v16, %v2443_v15 }
 0x1ad   : > { %v7615_v28 = vadd.f32 %v7614_v25, %v7613_v21 }
 0x1ae   : > { %v2393_v30 = vadd.f32 %v7612_v20, %v2264_v23  ;;  %v2267_v32 = vadd.f32 %v7527_v24, %v9286_v60  ;;  %2784 = vmatmul.mubr.bf16.gmra.mrb[120].mxu0 %v2461_v26  ;;  %2937 = vmatmul.mubr.bf16.gmra.mrb[120].mxu1 %v2461_v26 }
 0x1af   : > { %2793 = vmatprep.mubr.bf16.mxu0 %v8688_v0  ;;  %2946 = vmatprep.mubr.bf16.mxu1 %v8688_v0 }
 0x1b0   : > { %v2396_v34 = vadd.f32 %v7615_v28, %v2267_v32  ;;  %v7528_v35 = vpop.f32.mrb[80].mxu0  ;;  %v2445_v38 = vmax.f32 %v2393_v30, 0.0 }
 0x1b1   : > { %v7616_v36 = vpop.f32.mrb[80].mxu1  ;;  %v7529_v37 = vpop.f32.mrb[81].mxu0 }
 0x1b2   : > { %v2446_v39 = vmax.f32 %v2396_v34, 0.0  ;;  %v7530_v40 = vadd.f32 %v7529_v37, %v7528_v35  ;;  %v7617_v41 = vpop.f32.mrb[81].mxu1  ;;  %v7531_v42 = vpop.f32.mrb[82].mxu0 }
 0x1b3   : > { %v7618_v43 = vadd.f32 %v7617_v41, %v7616_v36  ;;  %v7619_v44 = vpop.f32.mrb[82].mxu1  ;;  %v7532_v45 = vpop.f32.mrb[83].mxu0 }
 0x1b4   : > { %v2272_v46 = vadd.f32 %v7530_v40, %v9286_v60  ;;  %v7533_v47 = vadd.f32 %v7532_v45, %v7531_v42  ;;  %v7620_v50 = vpop.f32.mrb[83].mxu1  ;;  %v2462_v51 = vpack.c.bf16 %v2446_v39, %v2445_v38 }
 0x1b5   : > { %v7621_v54 = vadd.f32 %v7620_v50, %v7619_v44 }
 0x1b6   : > { %v2401_v55 = vadd.f32 %v7618_v43, %v2272_v46  ;;  %v2275_v56 = vadd.f32 %v7533_v47, %v9286_v60  ;;  %2794 = vmatmul.mubr.bf16.gmra.mrb[124].mxu0 %v2462_v51  ;;  %2947 = vmatmul.mubr.bf16.gmra.mrb[124].mxu1 %v2462_v51 }
 0x1b7   : > { %2803 = vmatprep.mubr.bf16.mxu0 %v8688_v0  ;;  %2956 = vmatprep.mubr.bf16.mxu1 %v8688_v0 }
 0x1b8   : > { %v2404_v59 = vadd.f32 %v7621_v54, %v2275_v56  ;;  %v7534_v61 = vpop.f32.mrb[84].mxu0  ;;  %v2447_v1 = vmax.f32 %v2401_v55, 0.0 }
 0x1b9   : > { %v7622_v62 = vpop.f32.mrb[84].mxu1  ;;  %v7535_v63 = vpop.f32.mrb[85].mxu0 }
 0x1ba   : > { %v2448_v2 = vmax.f32 %v2404_v59, 0.0  ;;  %v7536_v3 = vadd.f32 %v7535_v63, %v7534_v61  ;;  %v7623_v4 = vpop.f32.mrb[85].mxu1  ;;  %v7537_v6 = vpop.f32.mrb[86].mxu0 }
 0x1bb   : > { %v7624_v9 = vadd.f32 %v7623_v4, %v7622_v62  ;;  %v7625_v10 = vpop.f32.mrb[86].mxu1  ;;  %v7538_v5 = vpop.f32.mrb[87].mxu0 }
 0x1bc   : > { %v2280_v12 = vadd.f32 %v7536_v3, %v9286_v60  ;;  %v7539_v14 = vadd.f32 %v7538_v5, %v7537_v6  ;;  %v7626_v15 = vpop.f32.mrb[87].mxu1  ;;  %v2463_v16 = vpack.c.bf16 %v2448_v2, %v2447_v1  ;;  %v8427_v5 = vld [vmem:[%s11729_s8 + $0x80] sm:$0xff]  }
 0x1bd   : > { %v7627_v17 = vadd.f32 %v7626_v15, %v7625_v10  ;;  %v8429_v15 = vld [vmem:[%s11729_s8 + $0x8] sm:$0xff]  }
 0x1be   : > { %v2409_v18 = vadd.f32 %v7624_v9, %v2280_v12  ;;  %v2283_v19 = vadd.f32 %v7539_v14, %v9286_v60  ;;  %2804 = vmatmul.mubr.bf16.gmra.mrb[128].mxu0 %v2463_v16  ;;  %2957 = vmatmul.mubr.bf16.gmra.mrb[128].mxu1 %v2463_v16  ;;  %v8428_v12 = vld [vmem:[%s11729_s8 + $0x48] sm:$0xff]  }
 0x1bf   : > { %2813 = vmatprep.mubr.bf16.mxu0 %v8688_v0  ;;  %2966 = vmatprep.mubr.bf16.mxu1 %v8688_v0  ;;  %v8430_v14 = vld [vmem:[%s11729_s8 + $0xc8] sm:$0xff]  }
 0x1c0   : > { %v2412_v20 = vadd.f32 %v7627_v17, %v2283_v19  ;;  %v7540_v21 = vpop.f32.mrb[88].mxu0  ;;  %v2449_v24 = vmax.f32 %v2409_v18, 0.0  ;;  %v8431_v16 = vld [vmem:[%s11729_s8 + $0x88] sm:$0xff]   ;;  %v8434_v17 = vld [vmem:[%s11729_s8 + $0xd0] sm:$0xff]  }
 0x1c1   : > { %v7628_v22 = vpop.f32.mrb[88].mxu1  ;;  %v7541_v23 = vpop.f32.mrb[89].mxu0  ;;  %v8433_v18 = vld [vmem:[%s11729_s8 + $0x10] sm:$0xff]  }
 0x1c2   : > { %v2450_v25 = vmax.f32 %v2412_v20, 0.0  ;;  %v7542_v26 = vadd.f32 %v7541_v23, %v7540_v21  ;;  %v7629_v28 = vpop.f32.mrb[89].mxu1  ;;  %v7543_v30 = vpop.f32.mrb[90].mxu0  ;;  %v8435_v19 = vld [vmem:[%s11729_s8 + $0x90] sm:$0xff]   ;;  %v8436_v20 = vld [vmem:[%s11729_s8 + $0x58] sm:$0xff]  }
 0x1c3   : > { %v7630_v32 = vadd.f32 %v7629_v28, %v7628_v22  ;;  %v7631_v34 = vpop.f32.mrb[90].mxu1  ;;  %v7544_v35 = vpop.f32.mrb[91].mxu0  ;;  %v8438_v21 = vld [vmem:[%s11729_s8 + $0xd8] sm:$0xff]   ;;  %v8444_v28 = vld [vmem:[%s11729_s8 + $0x68] sm:$0xff]  }
 0x1c4   : > { %v2288_v36 = vadd.f32 %v7542_v26, %v9286_v60  ;;  %v7545_v37 = vadd.f32 %v7544_v35, %v7543_v30  ;;  %v7632_v38 = vpop.f32.mrb[91].mxu1  ;;  %v2464_v39 = vpack.c.bf16 %v2450_v25, %v2449_v24  ;;  %v8437_v22 = vld [vmem:[%s11729_s8 + $0x18] sm:$0xff]   ;;  %v8442_v24 = vld [vmem:[%s11729_s8 + $0xe0] sm:$0xff]   ;;  %v8446_v30 = vld [vmem:[%s11729_s8 + $0xe8] sm:$0xff]  }
 0x1c5   : > { %v7633_v40 = vadd.f32 %v7632_v38, %v7631_v34  ;;  %v8439_v23 = vld [vmem:[%s11729_s8 + $0x98] sm:$0xff]   ;;  %v8441_v25 = vld [vmem:[%s11729_s8 + $0x20] sm:$0xff]   ;;  %v8447_v34 = vld [vmem:[%s11729_s8 + $0xa8] sm:$0xff]  }
 0x1c6   : > { %v2417_v41 = vadd.f32 %v7630_v32, %v2288_v36  ;;  %v2291_v42 = vadd.f32 %v7545_v37, %v9286_v60  ;;  %2814 = vmatmul.mubr.bf16.gmra.mrb[132].mxu0 %v2464_v39  ;;  %2967 = vmatmul.mubr.bf16.gmra.mrb[132].mxu1 %v2464_v39  ;;  %v8443_v26 = vld [vmem:[%s11729_s8 + $0xa0] sm:$0xff]   ;;  %v8445_v32 = vld [vmem:[%s11729_s8 + $0x28] sm:$0xff]   ;;  %v8450_v35 = vld [vmem:[%s11729_s8 + $0xf0] sm:$0xff]  }
 0x1c7   : > { %2823 = vmatprep.mubr.bf16.mxu0 %v8688_v0  ;;  %2976 = vmatprep.mubr.bf16.mxu1 %v8688_v0  ;;  %v8449_v36 = vld [vmem:[%s11729_s8 + $0x30] sm:$0xff]   ;;  %v8452_v38 = vld [vmem:[%s11729_s8 + $0x78] sm:$0xff]   ;;  %v4757_v39 = vld [vmem:[%s11736_s15 + $0x20] sm:$0xff] }
 0x1c8   : > { %v2420_v43 = vadd.f32 %v7633_v40, %v2291_v42  ;;  %v7546_v44 = vpop.f32.mrb[92].mxu0  ;;  %v2451_v47 = vmax.f32 %v2417_v41, 0.0  ;;  %v8451_v37 = vld [vmem:[%s11729_s8 + $0xb0] sm:$0xff]   ;;  %v4756_v40 = vld [vmem:[%s11736_s15 + $0x18] sm:$0xff]  ;;  %v4758_v41 = vld [vmem:[%s11736_s15 + $0x28] sm:$0xff] }
 0x1c9   : > { %v7634_v45 = vpop.f32.mrb[92].mxu1  ;;  %v7547_v46 = vpop.f32.mrb[93].mxu0  ;;  %v4924_v42 = vld [vmem:[%s11737_s16 + $0x18] sm:$0xff] }
 0x1ca   : > { %v2452_v50 = vmax.f32 %v2420_v43, 0.0  ;;  %v7548_v51 = vadd.f32 %v7547_v46, %v7546_v44  ;;  %v7635_v54 = vpop.f32.mrb[93].mxu1  ;;  %v7549_v55 = vpop.f32.mrb[94].mxu0  ;;  %v4925_v43 = vld [vmem:[%s11737_s16 + $0x20] sm:$0xff]  ;;  %v4926_v44 = vld [vmem:[%s11737_s16 + $0x28] sm:$0xff]  ;;  %v4927_v46 = vld [vmem:[%s11737_s16 + $0x30] sm:$0xff] }
 0x1cb   : > { %v7636_v56 = vadd.f32 %v7635_v54, %v7634_v45  ;;  %v7637_v57 = vpop.f32.mrb[94].mxu1  ;;  %v7550_v58 = vpop.f32.mrb[95].mxu0  ;;  %v4759_v45 = vld [vmem:[%s11736_s15 + $0x30] sm:$0xff]  ;;  %v4929_v54 = vld [vmem:[%s11737_s16 + $0x40] sm:$0xff] }
 0x1cc   : > { %v2296_v59 = vadd.f32 %v7548_v51, %v9286_v60  ;;  %v7551_v61 = vadd.f32 %v7550_v58, %v7549_v55  ;;  %v7638_v62 = vpop.f32.mrb[95].mxu1  ;;  %v2465_v63 = vpack.c.bf16 %v2452_v50, %v2451_v47  ;;  %v4760_v47 = vld [vmem:[%s11736_s15 + $0x38] sm:$0xff]  ;;  %v4762_v50 = vld [vmem:[%s11736_s15 + $0x48] sm:$0xff]  ;;  %v4761_v55 = vld [vmem:[%s11736_s15 + $0x40] sm:$0xff] }
 0x1cd   : > { %v7639_v1 = vadd.f32 %v7638_v62, %v7637_v57  ;;  %v4928_v51 = vld [vmem:[%s11737_s16 + $0x38] sm:$0xff]  ;;  %v4930_v57 = vld [vmem:[%s11737_s16 + $0x48] sm:$0xff]  ;;  %v3465_v62 = vlaneseq }
 0x1ce   : > { %v2425_v2 = vadd.f32 %v7636_v56, %v2296_v59  ;;  %v2299_v3 = vadd.f32 %v7551_v61, %v9286_v60  ;;  %2824 = vmatmul.mubr.bf16.gmra.mrb[136].mxu0 %v2465_v63  ;;  %2977 = vmatmul.mubr.bf16.gmra.mrb[136].mxu1 %v2465_v63  ;;  %v8425_v60 = vld [vmem:[%s11729_s8] sm:$0xff]   ;;  %v4764_v56 = vld [vmem:[%s11736_s15 + $0x58] sm:$0xff]  ;;  %v4931_v59 = vld [vmem:[%s11737_s16 + $0x50] sm:$0xff] }
 0x1cf   : > { %2833 = vmatprep.mubr.bf16.mxu0 %v8688_v0  ;;  %2986 = vmatprep.mubr.bf16.mxu1 %v8688_v0  ;;  %v8458_v58 = vld [vmem:[%s11738_s17 + $0x4] ss:$8 sps:$4 sm:$0xff]   ;;  %v4763_v61 = vld [vmem:[%s11736_s15 + $0x50] sm:$0xff] }
 0x1d0   : > { %v2428_v4 = vadd.f32 %v7639_v1, %v2299_v3  ;;  %v2453_v6 = vmax.f32 %v2425_v2, 0.0  ;;  %v4766_v63 = vld [vmem:[%s11736_s15 + $0x68] sm:$0xff]  ;;  %v4932_v1 = vld [vmem:[%s11737_s16 + $0x58] sm:$0xff]  ;;  %v3466_v2 = vshrl.u32 %v3465_v62, 7  ;;  %v9656_v3 = vld [vmem:[%s11740_s19] sm:$0xff]  }
 0x1d2   : > { %v2454_v9 = vmax.f32 %v2428_v4, 0.0  ;;  %v4933_v4 = vld [vmem:[%s11737_s16 + $0x60] sm:$0xff] }
 0x1d4   : > { %v2466_v10 = vpack.c.bf16 %v2454_v9, %v2453_v6  ;;  %v4765_v6 = vld [vmem:[%s11736_s15 + $0x60] sm:$0xff]  ;;  %v9670_v9 = vsub.s32 0, %v3466_v2 }
 0x1d6   : > { %2834 = vmatmul.mubr.bf16.gmra.mrb[140].mxu0 %v2466_v10  ;;  %2987 = vmatmul.mubr.bf16.gmra.mrb[140].mxu1 %v2466_v10  ;;  %11838 = vst [vmem:[#allocation2_spill] sm:$0xff] %v9670_v9  ;;  %v3475_v10 = vsub.s32 2, %v3466_v2 }
 0x1d7   : > { %3189 = vmatprep.mubr.bf16.mxu0 %v8688_v0  ;;  %3342 = vmatprep.mubr.bf16.mxu1 %v8688_v0 }
 0x1de   : > { %3190 = vmatmul.mubr.bf16.vlgmr.msra.gmra.mrb[96].mxu0 %v9239_v31  ;;  %3343 = vmatmul.mubr.bf16.vlgmr.msra.gmra.mrb[96].mxu1 %v9239_v31  ;;  %v8432_v31 = vld [vmem:[%s11729_s8 + $0x50] sm:$0xff]  }
 0x1df   : > { %3199 = vmatprep.mubr.bf16.mxu0 %v8688_v0  ;;  %3352 = vmatprep.mubr.bf16.mxu1 %v8688_v0 }
 0x1e0   : > { %7641 = vmatpush3.bf16.msra.mxu0 %v8425_v60  ;;  %7729 = vmatpush3.bf16.msra.mxu1 %v8427_v5  ;;  %v4768_v60 = vld [vmem:[%s11736_s15 + $0x78] sm:$0xff]  ;;  %v4934_v5 = vld [vmem:[%s11737_s16 + $0x68] sm:$0xff] }
 0x1e1   : > { %7642 = vmatprep.subr.bf16.mxu0 %v8428_v12  ;;  %7730 = vmatprep.subr.bf16.mxu1 %v8430_v14  ;;  %v4935_v12 = vld [vmem:[%s11737_s16 + $0x70] sm:$0xff] }
 0x1e2   : > { %v4767_v14 = vld [vmem:[%s11736_s15 + $0x70] sm:$0xff] }
 0x1e4   : > { %7643 = vmatpush3.bf16.msra.mxu0 %v8429_v15  ;;  %7731 = vmatpush3.bf16.msra.mxu1 %v8431_v16  ;;  %v3463_v15 = vld [vmem:[%s11839_s1] sm:$0xf]  ;;  %v9687_v16 = vsub.s32 1, %v3466_v2  ;;  %s8689_s1 = smov 64  }
 0x1e5   : > { %7644 = vmatprep.subr.bf16.mxu0 %v8432_v31  ;;  %7732 = vmatprep.subr.bf16.mxu1 %v8434_v17  ;;  %v3479_v31 = vsub.s32 3, %v3466_v2  ;;  %v4770_v17 = vld [vmem:[%s11736_s15 + $0x88] sm:$0xff] }
 0x1e6   : > { %3200 = vmatmul.mubr.bf16.gmra.mrb[100].mxu0 %v9244_v53  ;;  %3353 = vmatmul.mubr.bf16.gmra.mrb[100].mxu1 %v9244_v53  ;;  %v8440_v53 = vld [vmem:[%s11729_s8 + $0x60] sm:$0xff]   ;;  %11840 = vst [vmem:[#allocation3_spill] sm:$0xff] %v9687_v16 }
 0x1e7   : > { %3209 = vmatprep.mubr.bf16.mxu0 %v8688_v0  ;;  %3362 = vmatprep.mubr.bf16.mxu1 %v8688_v0 }
 0x1e8   : > { %7645 = vmatpush3.bf16.msra.mxu0 %v8433_v18  ;;  %7733 = vmatpush3.bf16.msra.mxu1 %v8435_v19  ;;  %v4936_v18 = vld [vmem:[%s11737_s16 + $0x78] sm:$0xff]  ;;  %v9696_v19 = vrot.slane %v3463_v15, %v9670_v9 }
 0x1e9   : > { %7646 = vmatprep.subr.bf16.mxu0 %v8436_v20  ;;  %7734 = vmatprep.subr.bf16.mxu1 %v8438_v21  ;;  %v9698_v20 = vrot.slane %v3463_v15, %v3475_v10  ;;  %v9701_v21 = vrot.slane %v3463_v15, %v9687_v16 }
 0x1ec   : > { %7647 = vmatpush3.bf16.msra.mxu0 %v8437_v22  ;;  %7735 = vmatpush3.bf16.msra.mxu1 %v8439_v23  ;;  %v9703_v22 = vrot.slane %v3463_v15, %v3479_v31  ;;  %v4938_v23 = vld [vmem:[%s11737_s16 + $0x88] sm:$0xff]  ;;  %v8459_v31 = vld [vmem:[%s11738_s17 + $0x10] ss:$8 sps:$4 sm:$0xff]  }
 0x1ed   : > { %7648 = vmatprep.subr.bf16.mxu0 %v8440_v53  ;;  %7736 = vmatprep.subr.bf16.mxu1 %v8442_v24  ;;  %v4769_v53 = vld [vmem:[%s11736_s15 + $0x80] sm:$0xff] }
 0x1ee   : > { %3210 = vmatmul.mubr.bf16.gmra.mrb[104].mxu0 %v9248_v11  ;;  %3363 = vmatmul.mubr.bf16.gmra.mrb[104].mxu1 %v9248_v11  ;;  %v8448_v11 = vld [vmem:[%s11729_s8 + $0x70] sm:$0xff]  }
 0x1ef   : > { %3219 = vmatprep.mubr.bf16.mxu0 %v8688_v0  ;;  %3372 = vmatprep.mubr.bf16.mxu1 %v8688_v0 }
 0x1f0   : > { %7649 = vmatpush3.bf16.msra.mxu0 %v8441_v25  ;;  %7737 = vmatpush3.bf16.msra.mxu1 %v8443_v26 }
 0x1f1   : > { %7650 = vmatprep.subr.bf16.mxu0 %v8444_v28  ;;  %7738 = vmatprep.subr.bf16.mxu1 %v8446_v30 }
 0x1f4   : > { %7651 = vmatpush3.bf16.msra.mxu0 %v8445_v32  ;;  %7739 = vmatpush3.bf16.msra.mxu1 %v8447_v34 }
 0x1f5   : > { %7652 = vmatprep.subr.bf16.mxu0 %v8448_v11  ;;  %7740 = vmatprep.subr.bf16.mxu1 %v8450_v35 }
 0x1f6   : > { %3220 = vmatmul.mubr.bf16.gmra.mrb[108].mxu0 %v9253_v33  ;;  %3373 = vmatmul.mubr.bf16.gmra.mrb[108].mxu1 %v9253_v33  ;;  %v8453_v33 = vld [vmem:[%s11729_s8 + $0x38] sm:$0xff]  }
 0x1f7   : > { %3229 = vmatprep.mubr.bf16.mxu0 %v8688_v0  ;;  %3382 = vmatprep.mubr.bf16.mxu1 %v8688_v0 }
 0x1f8   : > { %7653 = vmatpush3.bf16.msra.mxu0 %v8449_v36  ;;  %7741 = vmatpush3.bf16.msra.mxu1 %v8451_v37 }
 0x1f9   : > { %7654 = vmatprep.subr.bf16.mxu0 %v8452_v38 }
 0x1fc   : > { %7655 = vmatpush3.bf16.msra.mxu0 %v8453_v33 }
 0x1fd   : > { %4710 = vmatprep.subr.bf16.mxu0 %v8458_v58 }
 0x1fe   : > { %3230 = vmatmul.mubr.bf16.gmra.mrb[112].mxu0 %v9256_v49  ;;  %3383 = vmatmul.mubr.bf16.gmra.mrb[112].mxu1 %v9256_v49  ;;  %v8454_v49 = vld [vmem:[%s11729_s8 + $0xf8] sm:$0xff]  }
 0x1ff   : > { %3239 = vmatprep.mubr.bf16.mxu0 %v8688_v0  ;;  %3392 = vmatprep.mubr.bf16.mxu1 %v8688_v0 }
 0x200   : > { %7742 = vmatprep.subr.bf16.mxu1 %v8454_v49 }
 0x206   : > { %3240 = vmatmul.mubr.bf16.gmra.mrb[116].mxu0 %v9260_v7  ;;  %3393 = vmatmul.mubr.bf16.gmra.mrb[116].mxu1 %v9260_v7  ;;  %v8455_v7 = vld [vmem:[%s11729_s8 + $0xb8] sm:$0xff]  }
 0x207   : > { %3249 = vmatprep.mubr.bf16.mxu0 %v8688_v0  ;;  %3402 = vmatprep.mubr.bf16.mxu1 %v8688_v0 }
 0x208   : > { %7743 = vmatpush3.bf16.msra.mxu1 %v8455_v7  ;;  %v4772_v7 = vld [vmem:[%s11736_s15 + $0x98] sm:$0xff] }
 0x209   : > { %7964 = vmatprep.subr.bf16.mxu1 %v9656_v3 }
 0x20e   : > { %3250 = vmatmul.mubr.bf16.gmra.mrb[120].mxu0 %v9264_v27  ;;  %3403 = vmatmul.mubr.bf16.gmra.mrb[120].mxu1 %v9264_v27  ;;  %v4753_v27 = vld [vmem:[%s11736_s15] sm:$0xff] }
 0x20f   : > { %3259 = vmatprep.mubr.bf16.mxu0 %v8688_v0  ;;  %3412 = vmatprep.mubr.bf16.mxu1 %v8688_v0 }
 0x210   : > { %4779 = vperm.xlu1 %8118, %v4753_v27   ;;  %v4937_v27 = vld [vmem:[%s11737_s16 + $0x80] sm:$0xff] }
 0x216   : > { %3260 = vmatmul.mubr.bf16.gmra.mrb[124].mxu0 %v9268_v48  ;;  %3413 = vmatmul.mubr.bf16.gmra.mrb[124].mxu1 %v9268_v48  ;;  %v4921_v48 = vld [vmem:[%s11737_s16] sm:$0xff] }
 0x217   : > { %3269 = vmatprep.mubr.bf16.mxu0 %v8688_v0  ;;  %3422 = vmatprep.mubr.bf16.mxu1 %v8688_v0 }
 0x218   : > { %4947 = vperm.xlu1 %8118, %v4921_v48  }
 0x21e   : > { %3270 = vmatmul.mubr.bf16.gmra.mrb[128].mxu0 %v9272_v8  ;;  %3423 = vmatmul.mubr.bf16.gmra.mrb[128].mxu1 %v9272_v8  ;;  %v4922_v8 = vld [vmem:[%s11737_s16 + $0x8] sm:$0xff] }
 0x21f   : > { %3279 = vmatprep.mubr.bf16.mxu0 %v8688_v0  ;;  %3432 = vmatprep.mubr.bf16.mxu1 %v8688_v0 }
 0x220   : > { %4952 = vperm.xlu1 %8118, %v4922_v8  }
 0x226   : > { %3280 = vmatmul.mubr.bf16.gmra.mrb[132].mxu0 %v9276_v29  ;;  %3433 = vmatmul.mubr.bf16.gmra.mrb[132].mxu1 %v9276_v29  ;;  %v4755_v29 = vld [vmem:[%s11736_s15 + $0x10] sm:$0xff] }
 0x227   : > { %3289 = vmatprep.mubr.bf16.mxu0 %v8688_v0  ;;  %3442 = vmatprep.mubr.bf16.mxu1 %v8688_v0 }
 0x228   : > { %4789 = vperm.xlu1 %8118, %v4755_v29  }
 0x22e   : > { %3290 = vmatmul.mubr.bf16.gmra.mrb[136].mxu0 %v9280_v52  ;;  %3443 = vmatmul.mubr.bf16.gmra.mrb[136].mxu1 %v9280_v52  ;;  %v4923_v52 = vld [vmem:[%s11737_s16 + $0x10] sm:$0xff] }
 0x22f   : > { %3299 = vmatprep.mubr.bf16.mxu0 %v8688_v0  ;;  %3452 = vmatprep.mubr.bf16.mxu1 %v8688_v0 }
 0x230   : > { %4957 = vperm.xlu1 %8118, %v4923_v52  }
 0x234   : > { %4799 = vperm.xlu1 %8118, %v4757_v39  }
 0x236   : > { %3300 = vmatmul.mubr.bf16.gmra.mrb[140].mxu0 %v9289_v13  ;;  %3453 = vmatmul.mubr.bf16.gmra.mrb[140].mxu1 %v9289_v13  ;;  %v4754_v13 = vld [vmem:[%s11736_s15 + $0x8] sm:$0xff] }
 0x237   : > { %4784 = vperm.xlu0 %8119, %v4754_v13  }
 0x238   : > { %4804 = vperm.xlu1 %8118, %v4758_v41  }
 0x23b   : > { %4794 = vperm.xlu0 %8119, %v4756_v40  }
 0x23c   : > { %4967 = vperm.xlu1 %8118, %v4925_v43  }
 0x23f   : > { %4962 = vperm.xlu0 %8119, %v4924_v42  }
 0x240   : > { %4809 = vperm.xlu1 %8118, %v4759_v45  }
 0x243   : > { %4972 = vperm.xlu0 %8119, %v4926_v44  }
 0x244   : > { %4814 = vperm.xlu1 %8118, %v4760_v47  }
 0x247   : > { %4977 = vperm.xlu0 %8119, %v4927_v46  }
 0x248   : > { %4982 = vperm.xlu1 %8118, %v4928_v51  }
 0x24b   : > { %4824 = vperm.xlu0 %8119, %v4762_v50  }
 0x24c   : > { %4819 = vperm.xlu1 %8118, %v4761_v55  }
 0x24f   : > { %4987 = vperm.xlu0 %8119, %v4929_v54   ;;  %v8456_v54 = vld [vmem:[%s11738_s17] ss:$8 sps:$4 sm:$0xff]  }
 0x250   : > { %4992 = vperm.xlu1 %8118, %v4930_v57  }
 0x253   : > { %4834 = vperm.xlu0 %8119, %v4764_v56  }
 0x254   : > { %4829 = vperm.xlu1 %8118, %v4763_v61   ;;  %v4940_v61 = vld [vmem:[%s11737_s16 + $0x98] sm:$0xff] }
 0x257   : > { %4997 = vperm.xlu0 %8119, %v4931_v59   ;;  %v8461_v59 = vld [vmem:[%s11738_s17 + $0x14] ss:$8 sps:$4 sm:$0xff]  }
 0x258   : > { %5002 = vperm.xlu1 %8118, %v4932_v1  }
 0x25b   : > { %4844 = vperm.xlu0 %8119, %v4766_v63  }
 0x25c   : > { %4839 = vperm.xlu1 %8118, %v4765_v6  }
 0x25f   : > { %5007 = vperm.xlu0 %8119, %v4933_v4   ;;  %v4771_v4 = vld [vmem:[%s11736_s15 + $0x90] sm:$0xff] }
 0x260   : > { %5012 = vperm.xlu1 %8118, %v4934_v5  }
 0x263   : > { %4854 = vperm.xlu0 %8119, %v4768_v60  }
 0x264   : > { %4849 = vperm.xlu1 %8118, %v4767_v14  }
 0x267   : > { %5017 = vperm.xlu0 %8119, %v4935_v12   ;;  %v8469_v12 = vld [vmem:[%s11740_s19 + $0x8] sm:$0xff]  }
 0x268   : > { %5022 = vperm.xlu1 %8118, %v4936_v18  }
 0x26b   : > { %4864 = vperm.xlu0 %8119, %v4770_v17  }
 0x26c   : > { %4859 = vperm.xlu1 %8118, %v4769_v53  }
 0x26f   : > { %5032 = vperm.xlu0 %8119, %v4938_v23  }
 0x270   : > { %5027 = vperm.xlu1 %8118, %v4937_v27  }
 0x273   : > { %4874 = vperm.xlu0 %8119, %v4772_v7  }
 0x274   : > { %4869 = vperm.xlu1 %8118, %v4771_v4  }
 0x277   : > { %5042 = vperm.xlu0 %8119, %v4940_v61  }
 0x2b1   : > { %v3191_v24 = vpop.f32.mrb[96].mxu0  ;;  %v3344_v25 = vpop.f32.mrb[96].mxu1 }
 0x2b2   : > { %v3485_v26 = vadd.f32 %v9696_v19, %v3191_v24  ;;  %v3487_v28 = vadd.f32 %v9698_v20, %v3344_v25  ;;  %v3193_v30 = vpop.f32.mrb[97].mxu0  ;;  %v3346_v32 = vpop.f32.mrb[97].mxu1  ;;  %v8464_v24 = vld [vmem:[%s11738_s17 + $0x24] ss:$8 sps:$4 sm:$0xff]  }
 0x2b3   : > { %v3486_v34 = vadd.f32 %v9701_v21, %v3193_v30  ;;  %v3488_v11 = vadd.f32 %v9703_v22, %v3346_v32  ;;  %v3195_v35 = vpop.f32.mrb[98].mxu0  ;;  %v3348_v36 = vpop.f32.mrb[98].mxu1  ;;  %v4939_v32 = vld [vmem:[%s11737_s16 + $0x90] sm:$0xff] }
 0x2b4   : > { %v3489_v37 = vadd.f32 %v9696_v19, %v3195_v35  ;;  %v3491_v38 = vadd.f32 %v9698_v20, %v3348_v36  ;;  %v3197_v33 = vpop.f32.mrb[99].mxu0  ;;  %v3350_v49 = vpop.f32.mrb[99].mxu1  ;;  %v3581_v29 = vmax.f32 %v3485_v26, 0.0  ;;  %v3583_v52 = vmax.f32 %v3487_v28, 0.0  ;;  %5037 = vperm.xlu1 %8118, %v4939_v32  }
 0x2b5   : > { %v3490_v48 = vadd.f32 %v9701_v21, %v3197_v33  ;;  %v3492_v8 = vadd.f32 %v9703_v22, %v3350_v49  ;;  %v3582_v40 = vmax.f32 %v3486_v34, 0.0  ;;  %v3584_v41 = vmax.f32 %v3488_v11, 0.0  ;;  %v8462_v33 = vld [vmem:[%s11738_s17 + $0x20] ss:$8 sps:$4 sm:$0xff]  }
 0x2b6   : > { %v3585_v13 = vmax.f32 %v3489_v37, 0.0  ;;  %v3587_v39 = vmax.f32 %v3491_v38, 0.0 }
 0x2b7   : > { %v3586_v42 = vmax.f32 %v3490_v48, 0.0  ;;  %v3588_v43 = vmax.f32 %v3492_v8, 0.0 }
 0x2b8   : > { %v3677_v44 = vpack.c.bf16 %v3585_v13, %v3581_v29  ;;  %v3679_v45 = vpack.c.bf16 %v3587_v39, %v3583_v52  ;;  %v4773_v39 = vld [vmem:[%s11736_s15 + $0xa0] sm:$0xff] }
 0x2b9   : > { %v3678_v46 = vpack.c.bf16 %v3586_v42, %v3582_v40  ;;  %v3680_v47 = vpack.c.bf16 %v3588_v43, %v3584_v41  ;;  %v3201_v50 = vpop.f32.mrb[100].mxu0  ;;  %v3354_v51 = vpop.f32.mrb[100].mxu1  ;;  %v8470_v40 = vld [vmem:[%s11740_s19 + $0x10] sm:$0xff]   ;;  %4879 = vperm.xlu1 %8118, %v4773_v39  }
 0x2ba   : > { %v3493_v55 = vadd.f32 %v9696_v19, %v3201_v50  ;;  %v3495_v56 = vadd.f32 %v9698_v20, %v3354_v51  ;;  %v3203_v57 = vpop.f32.mrb[101].mxu0  ;;  %v3356_v58 = vpop.f32.mrb[101].mxu1 }
 0x2bb   : > { %v3494_v62 = vadd.f32 %v9701_v21, %v3203_v57  ;;  %v3496_v63 = vadd.f32 %v9703_v22, %v3356_v58  ;;  %v3205_v1 = vpop.f32.mrb[102].mxu0  ;;  %v3358_v2 = vpop.f32.mrb[102].mxu1  ;;  %4020 = vmatprep.mubr.bf16.mxu0 %v3678_v46  ;;  %4149 = vmatprep.mubr.bf16.mxu1 %v3680_v47  ;;  %v8465_v47 = vld [vmem:[%s11738_s17 + $0x30] ss:$8 sps:$4 sm:$0xff]  }
 0x2bc   : > { %v3497_v6 = vadd.f32 %v9696_v19, %v3205_v1  ;;  %v3499_v10 = vadd.f32 %v9698_v20, %v3358_v2  ;;  %v3207_v60 = vpop.f32.mrb[103].mxu0  ;;  %v3360_v5 = vpop.f32.mrb[103].mxu1  ;;  %4021 = vmatmul.mubr.bf16.vlgmr.msra.gmra.mrb[144].mxu0 %v3677_v44  ;;  %4150 = vmatmul.mubr.bf16.vlgmr.msra.gmra.mrb[144].mxu1 %v3679_v45  ;;  %v3589_v17 = vmax.f32 %v3493_v55, 0.0  ;;  %v3591_v18 = vmax.f32 %v3495_v56, 0.0  ;;  %v8471_v56 = vld [vmem:[%s11740_s19 + $0x18] sm:$0xff]  }
 0x2bd   : > { %v3498_v14 = vadd.f32 %v9701_v21, %v3207_v60  ;;  %v3500_v15 = vadd.f32 %v9703_v22, %v3360_v5  ;;  %4711 = vmatpush1.bf16.msra.mxu0 %v8456_v54  ;;  %v3590_v25 = vmax.f32 %v3494_v62, 0.0  ;;  %v3592_v26 = vmax.f32 %v3496_v63, 0.0  ;;  %7965 = vmatpush3.bf16.msra.mxu1 %v9656_v3  ;;  %v8467_v3 = vld [vmem:[%s11738_s17 + $0x34] ss:$8 sps:$4 sm:$0xff]   ;;  %v4941_v62 = vld [vmem:[%s11737_s16 + $0xa0] sm:$0xff] }
 0x2be   : > { %v3593_v23 = vmax.f32 %v3497_v6, 0.0  ;;  %v3595_v53 = vmax.f32 %v3499_v10, 0.0  ;;  %4712 = vmatprep.subr.bf16.mxu0 %v8461_v59  ;;  %7966 = vmatprep.subr.bf16.mxu1 %v8469_v12 }
 0x2bf   : > { %v3594_v28 = vmax.f32 %v3498_v14, 0.0  ;;  %v3596_v30 = vmax.f32 %v3500_v15, 0.0  ;;  %5047 = vperm.xlu1 %8118, %v4941_v62  }
 0x2c0   : > { %v3681_v34 = vpack.c.bf16 %v3593_v23, %v3589_v17  ;;  %v3683_v11 = vpack.c.bf16 %v3595_v53, %v3591_v18 }
 0x2c1   : > { %v3682_v35 = vpack.c.bf16 %v3594_v28, %v3590_v25  ;;  %v3684_v36 = vpack.c.bf16 %v3596_v30, %v3592_v26  ;;  %v3211_v37 = vpop.f32.mrb[104].mxu0  ;;  %v3364_v38 = vpop.f32.mrb[104].mxu1  ;;  %4713 = vmatpush1.bf16.msra.mxu0 %v8459_v31  ;;  %7967 = vmatpush3.bf16.msra.mxu1 %v8469_v12 }
 0x2c2   : > { %v3501_v49 = vadd.f32 %v9696_v19, %v3211_v37  ;;  %v3503_v7 = vadd.f32 %v9698_v20, %v3364_v38  ;;  %v3213_v27 = vpop.f32.mrb[105].mxu0  ;;  %v3366_v48 = vpop.f32.mrb[105].mxu1  ;;  %4714 = vmatprep.subr.bf16.mxu0 %v8464_v24  ;;  %7968 = vmatprep.subr.bf16.mxu1 %v8470_v40 }
 0x2c3   : > { %v3502_v8 = vadd.f32 %v9701_v21, %v3213_v27  ;;  %v3504_v29 = vadd.f32 %v9703_v22, %v3366_v48  ;;  %v3215_v52 = vpop.f32.mrb[106].mxu0  ;;  %v3368_v13 = vpop.f32.mrb[106].mxu1  ;;  %4028 = vmatprep.mubr.bf16.mxu0 %v3682_v35  ;;  %4157 = vmatprep.mubr.bf16.mxu1 %v3684_v36 }
 0x2c4   : > { %v3505_v41 = vadd.f32 %v9696_v19, %v3215_v52  ;;  %v3507_v42 = vadd.f32 %v9698_v20, %v3368_v13  ;;  %v3217_v43 = vpop.f32.mrb[107].mxu0  ;;  %v3370_v44 = vpop.f32.mrb[107].mxu1  ;;  %4029 = vmatmul.mubr.bf16.gmra.mrb[148].mxu0 %v3681_v34  ;;  %4158 = vmatmul.mubr.bf16.gmra.mrb[148].mxu1 %v3683_v11  ;;  %v3597_v50 = vmax.f32 %v3501_v49, 0.0  ;;  %v3599_v51 = vmax.f32 %v3503_v7, 0.0 }
 0x2c5   : > { %v3506_v45 = vadd.f32 %v9701_v21, %v3217_v43  ;;  %v3508_v46 = vadd.f32 %v9703_v22, %v3370_v44  ;;  %4715 = vmatpush1.bf16.msra.mxu0 %v8462_v33  ;;  %v3598_v57 = vmax.f32 %v3502_v8, 0.0  ;;  %v3600_v58 = vmax.f32 %v3504_v29, 0.0  ;;  %7969 = vmatpush3.bf16.msra.mxu1 %v8470_v40 }
 0x2c6   : > { %v3601_v54 = vmax.f32 %v3505_v41, 0.0  ;;  %v3603_v55 = vmax.f32 %v3507_v42, 0.0  ;;  %4716 = vmatprep.subr.bf16.mxu0 %v8467_v3  ;;  %7970 = vmatprep.subr.bf16.mxu1 %v8471_v56 }
 0x2c7   : > { %v3602_v59 = vmax.f32 %v3506_v45, 0.0  ;;  %v3604_v61 = vmax.f32 %v3508_v46, 0.0 }
 0x2c8   : > { %v3685_v63 = vpack.c.bf16 %v3601_v54, %v3597_v50  ;;  %v3687_v1 = vpack.c.bf16 %v3603_v55, %v3599_v51 }
 0x2c9   : > { %v3686_v2 = vpack.c.bf16 %v3602_v59, %v3598_v57  ;;  %v3688_v4 = vpack.c.bf16 %v3604_v61, %v3600_v58  ;;  %v3221_v6 = vpop.f32.mrb[108].mxu0  ;;  %v3374_v10 = vpop.f32.mrb[108].mxu1  ;;  %4717 = vmatpush1.bf16.msra.mxu0 %v8465_v47  ;;  %7971 = vmatpush3.bf16.msra.mxu1 %v8471_v56 }
 0x2ca   : > { %v3509_v60 = vadd.f32 %v9696_v19, %v3221_v6  ;;  %v3511_v5 = vadd.f32 %v9698_v20, %v3374_v10  ;;  %v3223_v12 = vpop.f32.mrb[109].mxu0  ;;  %v3376_v14 = vpop.f32.mrb[109].mxu1 }
 0x2cb   : > { %v3510_v15 = vadd.f32 %v9701_v21, %v3223_v12  ;;  %v3512_v31 = vadd.f32 %v9703_v22, %v3376_v14  ;;  %v3225_v17 = vpop.f32.mrb[110].mxu0  ;;  %v3378_v18 = vpop.f32.mrb[110].mxu1  ;;  %4036 = vmatprep.mubr.bf16.mxu0 %v3686_v2  ;;  %4165 = vmatprep.mubr.bf16.mxu1 %v3688_v4 }
 0x2cc   : > { %v3513_v23 = vadd.f32 %v9696_v19, %v3225_v17  ;;  %v3515_v53 = vadd.f32 %v9698_v20, %v3378_v18  ;;  %v3227_v24 = vpop.f32.mrb[111].mxu0  ;;  %v3380_v25 = vpop.f32.mrb[111].mxu1  ;;  %4037 = vmatmul.mubr.bf16.gmra.mrb[152].mxu0 %v3685_v63  ;;  %4166 = vmatmul.mubr.bf16.gmra.mrb[152].mxu1 %v3687_v1  ;;  %v3605_v30 = vmax.f32 %v3509_v60, 0.0  ;;  %v3607_v32 = vmax.f32 %v3511_v5, 0.0 }
 0x2cd   : > { %v3514_v26 = vadd.f32 %v9701_v21, %v3227_v24  ;;  %v3516_v28 = vadd.f32 %v9703_v22, %v3380_v25  ;;  %v3606_v35 = vmax.f32 %v3510_v15, 0.0  ;;  %v3608_v36 = vmax.f32 %v3512_v31, 0.0 }
 0x2ce   : > { %v3609_v34 = vmax.f32 %v3513_v23, 0.0  ;;  %v3611_v11 = vmax.f32 %v3515_v53, 0.0 }
 0x2cf   : > { %v3610_v37 = vmax.f32 %v3514_v26, 0.0  ;;  %v3612_v38 = vmax.f32 %v3516_v28, 0.0 }
 0x2d0   : > { %v3689_v33 = vpack.c.bf16 %v3609_v34, %v3605_v30  ;;  %v3691_v49 = vpack.c.bf16 %v3611_v11, %v3607_v32 }
 0x2d1   : > { %v3690_v7 = vpack.c.bf16 %v3610_v37, %v3606_v35  ;;  %v3692_v27 = vpack.c.bf16 %v3612_v38, %v3608_v36  ;;  %v3231_v48 = vpop.f32.mrb[112].mxu0  ;;  %v3384_v3 = vpop.f32.mrb[112].mxu1 }
 0x2d2   : > { %v3517_v8 = vadd.f32 %v9696_v19, %v3231_v48  ;;  %v3519_v29 = vadd.f32 %v9698_v20, %v3384_v3  ;;  %v3233_v52 = vpop.f32.mrb[113].mxu0  ;;  %v3386_v13 = vpop.f32.mrb[113].mxu1 }
 0x2d3   : > { %v3518_v39 = vadd.f32 %v9701_v21, %v3233_v52  ;;  %v3520_v40 = vadd.f32 %v9703_v22, %v3386_v13  ;;  %v3235_v41 = vpop.f32.mrb[114].mxu0  ;;  %v3388_v42 = vpop.f32.mrb[114].mxu1  ;;  %4044 = vmatprep.mubr.bf16.mxu0 %v3690_v7  ;;  %4173 = vmatprep.mubr.bf16.mxu1 %v3692_v27 }
 0x2d4   : > { %v3521_v43 = vadd.f32 %v9696_v19, %v3235_v41  ;;  %v3523_v44 = vadd.f32 %v9698_v20, %v3388_v42  ;;  %v3237_v45 = vpop.f32.mrb[115].mxu0  ;;  %v3390_v46 = vpop.f32.mrb[115].mxu1  ;;  %4045 = vmatmul.mubr.bf16.gmra.mrb[156].mxu0 %v3689_v33  ;;  %4174 = vmatmul.mubr.bf16.gmra.mrb[156].mxu1 %v3691_v49  ;;  %v3613_v51 = vmax.f32 %v3517_v8, 0.0  ;;  %v3615_v54 = vmax.f32 %v3519_v29, 0.0 }
 0x2d5   : > { %v3522_v47 = vadd.f32 %v9701_v21, %v3237_v45  ;;  %v3524_v50 = vadd.f32 %v9703_v22, %v3390_v46  ;;  %v3614_v57 = vmax.f32 %v3518_v39, 0.0  ;;  %v3616_v58 = vmax.f32 %v3520_v40, 0.0 }
 0x2d6   : > { %v3617_v55 = vmax.f32 %v3521_v43, 0.0  ;;  %v3619_v56 = vmax.f32 %v3523_v44, 0.0 }
 0x2d7   : > { %v3618_v59 = vmax.f32 %v3522_v47, 0.0  ;;  %v3620_v61 = vmax.f32 %v3524_v50, 0.0 }
 0x2d8   : > { %v3693_v62 = vpack.c.bf16 %v3617_v55, %v3613_v51  ;;  %v3695_v63 = vpack.c.bf16 %v3619_v56, %v3615_v54 }
 0x2d9   : > { %v3694_v1 = vpack.c.bf16 %v3618_v59, %v3614_v57  ;;  %v3696_v2 = vpack.c.bf16 %v3620_v61, %v3616_v58  ;;  %v3241_v4 = vpop.f32.mrb[116].mxu0  ;;  %v3394_v6 = vpop.f32.mrb[116].mxu1 }
 0x2da   : > { %v3525_v10 = vadd.f32 %v9696_v19, %v3241_v4  ;;  %v3527_v60 = vadd.f32 %v9698_v20, %v3394_v6  ;;  %v3243_v5 = vpop.f32.mrb[117].mxu0  ;;  %v3396_v12 = vpop.f32.mrb[117].mxu1 }
 0x2db   : > { %v3526_v14 = vadd.f32 %v9701_v21, %v3243_v5  ;;  %v3528_v15 = vadd.f32 %v9703_v22, %v3396_v12  ;;  %v3245_v31 = vpop.f32.mrb[118].mxu0  ;;  %v3398_v17 = vpop.f32.mrb[118].mxu1  ;;  %4052 = vmatprep.mubr.bf16.mxu0 %v3694_v1  ;;  %4181 = vmatprep.mubr.bf16.mxu1 %v3696_v2 }
 0x2dc   : > { %v3529_v18 = vadd.f32 %v9696_v19, %v3245_v31  ;;  %v3531_v23 = vadd.f32 %v9698_v20, %v3398_v17  ;;  %v3247_v53 = vpop.f32.mrb[119].mxu0  ;;  %v3400_v24 = vpop.f32.mrb[119].mxu1  ;;  %4053 = vmatmul.mubr.bf16.gmra.mrb[160].mxu0 %v3693_v62  ;;  %4182 = vmatmul.mubr.bf16.gmra.mrb[160].mxu1 %v3695_v63  ;;  %v3621_v28 = vmax.f32 %v3525_v10, 0.0  ;;  %v3623_v30 = vmax.f32 %v3527_v60, 0.0 }
 0x2dd   : > { %v3530_v25 = vadd.f32 %v9701_v21, %v3247_v53  ;;  %v3532_v26 = vadd.f32 %v9703_v22, %v3400_v24  ;;  %v3622_v11 = vmax.f32 %v3526_v14, 0.0  ;;  %v3624_v35 = vmax.f32 %v3528_v15, 0.0 }
 0x2de   : > { %v3625_v32 = vmax.f32 %v3529_v18, 0.0  ;;  %v3627_v34 = vmax.f32 %v3531_v23, 0.0 }
 0x2df   : > { %v3626_v36 = vmax.f32 %v3530_v25, 0.0  ;;  %v3628_v37 = vmax.f32 %v3532_v26, 0.0 }
 0x2e0   : > { %v3697_v38 = vpack.c.bf16 %v3625_v32, %v3621_v28  ;;  %v3699_v33 = vpack.c.bf16 %v3627_v34, %v3623_v30 }
 0x2e1   : > { %v3698_v49 = vpack.c.bf16 %v3626_v36, %v3622_v11  ;;  %v3700_v7 = vpack.c.bf16 %v3628_v37, %v3624_v35  ;;  %v3251_v27 = vpop.f32.mrb[120].mxu0  ;;  %v3404_v48 = vpop.f32.mrb[120].mxu1 }
 0x2e2   : > { %v3533_v3 = vadd.f32 %v9696_v19, %v3251_v27  ;;  %v3535_v8 = vadd.f32 %v9698_v20, %v3404_v48  ;;  %v3253_v29 = vpop.f32.mrb[121].mxu0  ;;  %v3406_v52 = vpop.f32.mrb[121].mxu1 }
 0x2e3   : > { %v3534_v13 = vadd.f32 %v9701_v21, %v3253_v29  ;;  %v3536_v39 = vadd.f32 %v9703_v22, %v3406_v52  ;;  %v3255_v40 = vpop.f32.mrb[122].mxu0  ;;  %v3408_v41 = vpop.f32.mrb[122].mxu1  ;;  %4060 = vmatprep.mubr.bf16.mxu0 %v3698_v49  ;;  %4189 = vmatprep.mubr.bf16.mxu1 %v3700_v7 }
 0x2e4   : > { %v3537_v42 = vadd.f32 %v9696_v19, %v3255_v40  ;;  %v3539_v43 = vadd.f32 %v9698_v20, %v3408_v41  ;;  %v3257_v44 = vpop.f32.mrb[123].mxu0  ;;  %v3410_v45 = vpop.f32.mrb[123].mxu1  ;;  %4061 = vmatmul.mubr.bf16.gmra.mrb[164].mxu0 %v3697_v38  ;;  %4190 = vmatmul.mubr.bf16.gmra.mrb[164].mxu1 %v3699_v33  ;;  %v3629_v50 = vmax.f32 %v3533_v3, 0.0  ;;  %v3631_v51 = vmax.f32 %v3535_v8, 0.0 }
 0x2e5   : > { %v3538_v46 = vadd.f32 %v9701_v21, %v3257_v44  ;;  %v3540_v47 = vadd.f32 %v9703_v22, %v3410_v45  ;;  %v3630_v56 = vmax.f32 %v3534_v13, 0.0  ;;  %v3632_v57 = vmax.f32 %v3536_v39, 0.0 }
 0x2e6   : > { %v3633_v54 = vmax.f32 %v3537_v42, 0.0  ;;  %v3635_v55 = vmax.f32 %v3539_v43, 0.0 }
 0x2e7   : > { %v3634_v58 = vmax.f32 %v3538_v46, 0.0  ;;  %v3636_v59 = vmax.f32 %v3540_v47, 0.0 }
 0x2e8   : > { %v3701_v61 = vpack.c.bf16 %v3633_v54, %v3629_v50  ;;  %v3703_v62 = vpack.c.bf16 %v3635_v55, %v3631_v51 }
 0x2e9   : > { %v3702_v63 = vpack.c.bf16 %v3634_v58, %v3630_v56  ;;  %v3704_v1 = vpack.c.bf16 %v3636_v59, %v3632_v57  ;;  %v3261_v2 = vpop.f32.mrb[124].mxu0  ;;  %v3414_v4 = vpop.f32.mrb[124].mxu1 }
 0x2ea   : > { %v3541_v6 = vadd.f32 %v9696_v19, %v3261_v2  ;;  %v3543_v10 = vadd.f32 %v9698_v20, %v3414_v4  ;;  %v3263_v60 = vpop.f32.mrb[125].mxu0  ;;  %v3416_v5 = vpop.f32.mrb[125].mxu1 }
 0x2eb   : > { %v3542_v12 = vadd.f32 %v9701_v21, %v3263_v60  ;;  %v3544_v14 = vadd.f32 %v9703_v22, %v3416_v5  ;;  %v3265_v15 = vpop.f32.mrb[126].mxu0  ;;  %v3418_v31 = vpop.f32.mrb[126].mxu1  ;;  %4068 = vmatprep.mubr.bf16.mxu0 %v3702_v63  ;;  %4197 = vmatprep.mubr.bf16.mxu1 %v3704_v1 }
 0x2ec   : > { %v3545_v17 = vadd.f32 %v9696_v19, %v3265_v15  ;;  %v3547_v18 = vadd.f32 %v9698_v20, %v3418_v31  ;;  %v3267_v23 = vpop.f32.mrb[127].mxu0  ;;  %v3420_v53 = vpop.f32.mrb[127].mxu1  ;;  %4069 = vmatmul.mubr.bf16.gmra.mrb[168].mxu0 %v3701_v61  ;;  %4198 = vmatmul.mubr.bf16.gmra.mrb[168].mxu1 %v3703_v62  ;;  %v3637_v26 = vmax.f32 %v3541_v6, 0.0  ;;  %v3639_v28 = vmax.f32 %v3543_v10, 0.0 }
 0x2ed   : > { %v3546_v24 = vadd.f32 %v9701_v21, %v3267_v23  ;;  %v3548_v25 = vadd.f32 %v9703_v22, %v3420_v53  ;;  %v3638_v34 = vmax.f32 %v3542_v12, 0.0  ;;  %v3640_v11 = vmax.f32 %v3544_v14, 0.0 }
 0x2ee   : > { %v3641_v30 = vmax.f32 %v3545_v17, 0.0  ;;  %v3643_v32 = vmax.f32 %v3547_v18, 0.0 }
 0x2ef   : > { %v3642_v35 = vmax.f32 %v3546_v24, 0.0  ;;  %v3644_v36 = vmax.f32 %v3548_v25, 0.0 }
 0x2f0   : > { %v3705_v37 = vpack.c.bf16 %v3641_v30, %v3637_v26  ;;  %v3707_v38 = vpack.c.bf16 %v3643_v32, %v3639_v28 }
 0x2f1   : > { %v3706_v33 = vpack.c.bf16 %v3642_v35, %v3638_v34  ;;  %v3708_v49 = vpack.c.bf16 %v3644_v36, %v3640_v11  ;;  %v3271_v7 = vpop.f32.mrb[128].mxu0  ;;  %v3424_v27 = vpop.f32.mrb[128].mxu1 }
 0x2f2   : > { %v3549_v48 = vadd.f32 %v9696_v19, %v3271_v7  ;;  %v3551_v3 = vadd.f32 %v9698_v20, %v3424_v27  ;;  %v3273_v8 = vpop.f32.mrb[129].mxu0  ;;  %v3426_v29 = vpop.f32.mrb[129].mxu1 }
 0x2f3   : > { %v3550_v52 = vadd.f32 %v9701_v21, %v3273_v8  ;;  %v3552_v13 = vadd.f32 %v9703_v22, %v3426_v29  ;;  %v3275_v39 = vpop.f32.mrb[130].mxu0  ;;  %v3428_v40 = vpop.f32.mrb[130].mxu1  ;;  %4076 = vmatprep.mubr.bf16.mxu0 %v3706_v33  ;;  %4205 = vmatprep.mubr.bf16.mxu1 %v3708_v49 }
 0x2f4   : > { %v3553_v41 = vadd.f32 %v9696_v19, %v3275_v39  ;;  %v3555_v42 = vadd.f32 %v9698_v20, %v3428_v40  ;;  %v3277_v43 = vpop.f32.mrb[131].mxu0  ;;  %v3430_v44 = vpop.f32.mrb[131].mxu1  ;;  %4077 = vmatmul.mubr.bf16.gmra.mrb[172].mxu0 %v3705_v37  ;;  %4206 = vmatmul.mubr.bf16.gmra.mrb[172].mxu1 %v3707_v38  ;;  %v3645_v47 = vmax.f32 %v3549_v48, 0.0  ;;  %v3647_v50 = vmax.f32 %v3551_v3, 0.0 }
 0x2f5   : > { %v3554_v45 = vadd.f32 %v9701_v21, %v3277_v43  ;;  %v3556_v46 = vadd.f32 %v9703_v22, %v3430_v44  ;;  %v3646_v55 = vmax.f32 %v3550_v52, 0.0  ;;  %v3648_v56 = vmax.f32 %v3552_v13, 0.0 }
 0x2f6   : > { %v3649_v51 = vmax.f32 %v3553_v41, 0.0  ;;  %v3651_v54 = vmax.f32 %v3555_v42, 0.0 }
 0x2f7   : > { %v3650_v57 = vmax.f32 %v3554_v45, 0.0  ;;  %v3652_v58 = vmax.f32 %v3556_v46, 0.0 }
 0x2f8   : > { %v3709_v59 = vpack.c.bf16 %v3649_v51, %v3645_v47  ;;  %v3711_v61 = vpack.c.bf16 %v3651_v54, %v3647_v50 }
 0x2f9   : > { %v3710_v62 = vpack.c.bf16 %v3650_v57, %v3646_v55  ;;  %v3712_v63 = vpack.c.bf16 %v3652_v58, %v3648_v56  ;;  %v3281_v1 = vpop.f32.mrb[132].mxu0  ;;  %v3434_v2 = vpop.f32.mrb[132].mxu1 }
 0x2fa   : > { %v3557_v4 = vadd.f32 %v9696_v19, %v3281_v1  ;;  %v3559_v6 = vadd.f32 %v9698_v20, %v3434_v2  ;;  %v3283_v10 = vpop.f32.mrb[133].mxu0  ;;  %v3436_v60 = vpop.f32.mrb[133].mxu1 }
 0x2fb   : > { %v3558_v5 = vadd.f32 %v9701_v21, %v3283_v10  ;;  %v3560_v12 = vadd.f32 %v9703_v22, %v3436_v60  ;;  %v3285_v14 = vpop.f32.mrb[134].mxu0  ;;  %v3438_v15 = vpop.f32.mrb[134].mxu1  ;;  %4084 = vmatprep.mubr.bf16.mxu0 %v3710_v62  ;;  %4213 = vmatprep.mubr.bf16.mxu1 %v3712_v63 }
 0x2fc   : > { %v3561_v31 = vadd.f32 %v9696_v19, %v3285_v14  ;;  %v3563_v17 = vadd.f32 %v9698_v20, %v3438_v15  ;;  %v3287_v18 = vpop.f32.mrb[135].mxu0  ;;  %v3440_v23 = vpop.f32.mrb[135].mxu1  ;;  %4085 = vmatmul.mubr.bf16.gmra.mrb[176].mxu0 %v3709_v59  ;;  %4214 = vmatmul.mubr.bf16.gmra.mrb[176].mxu1 %v3711_v61  ;;  %v3653_v25 = vmax.f32 %v3557_v4, 0.0  ;;  %v3655_v26 = vmax.f32 %v3559_v6, 0.0 }
 0x2fd   : > { %v3562_v53 = vadd.f32 %v9701_v21, %v3287_v18  ;;  %v3564_v24 = vadd.f32 %v9703_v22, %v3440_v23  ;;  %v3654_v32 = vmax.f32 %v3558_v5, 0.0  ;;  %v3656_v34 = vmax.f32 %v3560_v12, 0.0 }
 0x2fe   : > { %v3657_v28 = vmax.f32 %v3561_v31, 0.0  ;;  %v3659_v30 = vmax.f32 %v3563_v17, 0.0 }
 0x2ff   : > { %v3658_v11 = vmax.f32 %v3562_v53, 0.0  ;;  %v3660_v35 = vmax.f32 %v3564_v24, 0.0 }
 0x300   : > { %v3713_v36 = vpack.c.bf16 %v3657_v28, %v3653_v25  ;;  %v3715_v37 = vpack.c.bf16 %v3659_v30, %v3655_v26 }
 0x301   : > { %v3714_v38 = vpack.c.bf16 %v3658_v11, %v3654_v32  ;;  %v3716_v33 = vpack.c.bf16 %v3660_v35, %v3656_v34  ;;  %v3291_v49 = vpop.f32.mrb[136].mxu0  ;;  %v3444_v7 = vpop.f32.mrb[136].mxu1 }
 0x302   : > { %v3565_v27 = vadd.f32 %v9696_v19, %v3291_v49  ;;  %v3567_v48 = vadd.f32 %v9698_v20, %v3444_v7  ;;  %v3293_v3 = vpop.f32.mrb[137].mxu0  ;;  %v3446_v8 = vpop.f32.mrb[137].mxu1  ;;  %v8477_v49 = vld [vmem:[%s9664_s28 + $0x28] sm:$0xff]   ;;  %v8478_v7 = vld [vmem:[%s9664_s28 + $0x30] sm:$0xff]  }
 0x303   : > { %v3566_v29 = vadd.f32 %v9701_v21, %v3293_v3  ;;  %v3568_v52 = vadd.f32 %v9703_v22, %v3446_v8  ;;  %v3295_v13 = vpop.f32.mrb[138].mxu0  ;;  %v3448_v39 = vpop.f32.mrb[138].mxu1  ;;  %4092 = vmatprep.mubr.bf16.mxu0 %v3714_v38  ;;  %4221 = vmatprep.mubr.bf16.mxu1 %v3716_v33  ;;  %v8474_v38 = vld [vmem:[%s9664_s28 + $0x10] sm:$0xff]   ;;  %v8476_v33 = vld [vmem:[%s9664_s28 + $0x20] sm:$0xff]   ;;  %v8481_v3 = vld [vmem:[%s9664_s28 + $0x48] sm:$0xff]  }
 0x304   : > { %v3569_v40 = vadd.f32 %v9696_v19, %v3295_v13  ;;  %v3571_v41 = vadd.f32 %v9698_v20, %v3448_v39  ;;  %v3297_v42 = vpop.f32.mrb[139].mxu0  ;;  %v3450_v43 = vpop.f32.mrb[139].mxu1  ;;  %4093 = vmatmul.mubr.bf16.gmra.mrb[180].mxu0 %v3713_v36  ;;  %4222 = vmatmul.mubr.bf16.gmra.mrb[180].mxu1 %v3715_v37  ;;  %v3661_v46 = vmax.f32 %v3565_v27, 0.0  ;;  %v3663_v47 = vmax.f32 %v3567_v48, 0.0  ;;  %v8472_v37 = vld [vmem:[%s9664_s28] sm:$0xff]   ;;  %v8479_v27 = vld [vmem:[%s9664_s28 + $0x38] sm:$0xff]  }
 0x305   : > { %v3570_v44 = vadd.f32 %v9701_v21, %v3297_v42  ;;  %v3572_v45 = vadd.f32 %v9703_v22, %v3450_v43  ;;  %v3662_v54 = vmax.f32 %v3566_v29, 0.0  ;;  %v3664_v55 = vmax.f32 %v3568_v52, 0.0  ;;  %v8480_v48 = vld [vmem:[%s9664_s28 + $0x40] sm:$0xff]   ;;  %v8482_v8 = vld [vmem:[%s9664_s28 + $0x50] sm:$0xff]   ;;  %v8483_v29 = vld [vmem:[%s9664_s28 + $0x58] sm:$0xff]  }
 0x306   : > { %v3665_v50 = vmax.f32 %v3569_v40, 0.0  ;;  %v3667_v51 = vmax.f32 %v3571_v41, 0.0  ;;  %v8484_v52 = vld [vmem:[%s9664_s28 + $0x60] sm:$0xff]   ;;  %v8485_v13 = vld [vmem:[%s9664_s28 + $0x68] sm:$0xff]   ;;  %v8486_v39 = vld [vmem:[%s9664_s28 + $0x70] sm:$0xff]   ;;  %v9897_v41 = vpop.permute.xlu1 %4779 }
 0x307   : > { %v3666_v56 = vmax.f32 %v3570_v44, 0.0  ;;  %v3668_v57 = vmax.f32 %v3572_v45, 0.0  ;;  %v8487_v40 = vld [vmem:[%s9664_s28 + $0x78] sm:$0xff]   ;;  %11841 = vst [vmem:[#allocation4_spill] sm:$0xff] %v9897_v41 }
 0x308   : > { %v3717_v58 = vpack.c.bf16 %v3665_v50, %v3661_v46  ;;  %v3719_v59 = vpack.c.bf16 %v3667_v51, %v3663_v47  ;;  %v9906_v46 = vld [vmem:[%s11730_s9] ss:$0 sm:$0xff] }
 0x309   : > { %v3718_v61 = vpack.c.bf16 %v3666_v56, %v3662_v54  ;;  %v3720_v62 = vpack.c.bf16 %v3668_v57, %v3664_v55  ;;  %v3301_v63 = vpop.f32.mrb[140].mxu0  ;;  %v3454_v1 = vpop.f32.mrb[140].mxu1 }
 0x30a   : > { %v3573_v2 = vadd.f32 %v9696_v19, %v3301_v63  ;;  %v3575_v4 = vadd.f32 %v9698_v20, %v3454_v1  ;;  %v3303_v6 = vpop.f32.mrb[141].mxu0  ;;  %v3456_v10 = vpop.f32.mrb[141].mxu1 }
 0x30b   : > { %v3574_v60 = vadd.f32 %v9701_v21, %v3303_v6  ;;  %v3576_v5 = vadd.f32 %v9703_v22, %v3456_v10  ;;  %v3305_v12 = vpop.f32.mrb[142].mxu0  ;;  %v3458_v14 = vpop.f32.mrb[142].mxu1  ;;  %4100 = vmatprep.mubr.bf16.mxu0 %v3718_v61  ;;  %4229 = vmatprep.mubr.bf16.mxu1 %v3720_v62 }
 0x30c   : > { %v3577_v15 = vadd.f32 %v9696_v19, %v3305_v12  ;;  %v3579_v31 = vadd.f32 %v9698_v20, %v3458_v14  ;;  %v3307_v17 = vpop.f32.mrb[143].mxu0  ;;  %v3460_v18 = vpop.f32.mrb[143].mxu1  ;;  %4101 = vmatmul.mubr.bf16.gmra.mrb[184].mxu0 %v3717_v58  ;;  %4230 = vmatmul.mubr.bf16.gmra.mrb[184].mxu1 %v3719_v59  ;;  %v3669_v24 = vmax.f32 %v3573_v2, 0.0  ;;  %v3671_v25 = vmax.f32 %v3575_v4, 0.0 }
 0x30d   : > { %v3578_v23 = vadd.f32 %v9701_v21, %v3307_v17  ;;  %v3580_v53 = vadd.f32 %v9703_v22, %v3460_v18  ;;  %v3670_v30 = vmax.f32 %v3574_v60, 0.0  ;;  %v3672_v32 = vmax.f32 %v3576_v5, 0.0  ;;  %v8473_v21 = vld [vmem:[%s9664_s28 + $0x8] sm:$0xff]   ;;  %v4646_v22 = vld [vmem:[%s769_s3] sm:$0x1]  ;;  %v9899_v42 = vpop.permute.xlu1 %4947 }
 0x30e   : > { %v3673_v26 = vmax.f32 %v3577_v15, 0.0  ;;  %v3675_v28 = vmax.f32 %v3579_v31, 0.0  ;;  %11842 = vst [vmem:[#allocation5_spill] sm:$0xff] %v9899_v42 }
 0x30f   : > { %v3674_v19 = vmax.f32 %v3578_v23, 0.0  ;;  %v3676_v34 = vmax.f32 %v3580_v53, 0.0 }
 0x310   : > { %v3721_v20 = vpack.c.bf16 %v3673_v26, %v3669_v24  ;;  %v3723_v11 = vpack.c.bf16 %v3675_v28, %v3671_v25 }
 0x311   : > { %v3722_v35 = vpack.c.bf16 %v3674_v19, %v3670_v30  ;;  %v3724_v36 = vpack.c.bf16 %v3676_v34, %v3672_v32  ;;  %v9901_v43 = vpop.permute.xlu1 %4952 }
 0x312   : > { %11843 = vst [vmem:[#allocation6_spill] sm:$0xff] %v9901_v43 }
 0x313   : > { %4108 = vmatprep.mubr.bf16.mxu0 %v3722_v35  ;;  %4237 = vmatprep.mubr.bf16.mxu1 %v3724_v36 }
 0x314   : > { %4109 = vmatmul.mubr.bf16.gmra.mrb[188].mxu0 %v3721_v20  ;;  %4238 = vmatmul.mubr.bf16.gmra.mrb[188].mxu1 %v3723_v11 }
 0x315   : > { %4742 = vmatprep.mubr.bf16.mxu0 %v8688_v0  ;;  %7972 = vmatprep.mubr.msk.bf16.mxu1 %vm4246_vm0, %v8472_v37  ;;  %v8475_v0 = vld [vmem:[%s9664_s28 + $0x18] sm:$0xff]   ;;  %v9912_v2 = vpop.permute.xlu1 %4789 }
 0x316   : > { %11844 = vst [vmem:[#allocation7_spill] sm:$0xff] %v9912_v2 }
 0x319   : > { %v9924_v32 = vpop.permute.xlu1 %4957 }
 0x31a   : > { %11845 = vst [vmem:[#allocation8_spill] sm:$0xff] %v9924_v32 }
 0x31c   : > { %7233 = vmatmul.mubr.msk.bf16.vlgmr.msra.gmra.mrb[192].mxu0 %vm4246_vm0, %v4646_v22  ;;  %7973 = vmatmul.mubr.msk.bf16.vlgmr.msra.gmra.mrb[192].mxu1 %vm4246_vm0, %v8473_v21 }
 0x31d   : > { %7976 = vmatprep.mubr.msk.bf16.mxu1 %vm4246_vm0, %v8474_v38 }
 0x324   : > { %7977 = vmatmul.mubr.msk.bf16.gmra.mrb[196].mxu1 %vm4246_vm0, %v8475_v0 }
 0x325   : > { %7980 = vmatprep.mubr.msk.bf16.mxu1 %vm4246_vm0, %v8476_v33 }
 0x32c   : > { %7981 = vmatmul.mubr.msk.bf16.gmra.mrb[200].mxu1 %vm4246_vm0, %v8477_v49 }
 0x32d   : > { %7984 = vmatprep.mubr.msk.bf16.mxu1 %vm4246_vm0, %v8478_v7 }
 0x334   : > { %7985 = vmatmul.mubr.msk.bf16.gmra.mrb[204].mxu1 %vm4246_vm0, %v8479_v27 }
 0x335   : > { %7988 = vmatprep.mubr.msk.bf16.mxu1 %vm4246_vm0, %v8480_v48 }
 0x33c   : > { %7989 = vmatmul.mubr.msk.bf16.gmra.mrb[208].mxu1 %vm4246_vm0, %v8481_v3 }
 0x33d   : > { %7992 = vmatprep.mubr.msk.bf16.mxu1 %vm4246_vm0, %v8482_v8 }
 0x344   : > { %7993 = vmatmul.mubr.msk.bf16.gmra.mrb[212].mxu1 %vm4246_vm0, %v8483_v29  ;;  %v9936_v29 = vpop.permute.xlu1 %4799 }
 0x345   : > { %7996 = vmatprep.mubr.msk.bf16.mxu1 %vm4246_vm0, %v8484_v52  ;;  %11846 = vst [vmem:[#allocation9_spill] sm:$0xff] %v9936_v29 }
 0x34c   : > { %7997 = vmatmul.mubr.msk.bf16.gmra.mrb[216].mxu1 %vm4246_vm0, %v8485_v13 }
 0x34d   : > { %8000 = vmatprep.mubr.msk.bf16.mxu1 %vm4246_vm0, %v8486_v39 }
 0x354   : > { %8001 = vmatmul.mubr.msk.bf16.gmra.mrb[220].mxu1 %vm4246_vm0, %v8487_v40 }
 0x38f   : > { %v7656_v44 = vpop.f32.mrb[144].mxu0  ;;  %v7744_v45 = vpop.f32.mrb[144].mxu1 }
 0x390   : > { %v7657_v47 = vpop.f32.mrb[145].mxu0  ;;  %v7745_v50 = vpop.f32.mrb[145].mxu1 }
 0x391   : > { %v7658_v51 = vadd.f32 %v7657_v47, %v7656_v44  ;;  %v7746_v54 = vadd.f32 %v7745_v50, %v7744_v45  ;;  %v7659_v55 = vpop.f32.mrb[146].mxu0  ;;  %v7747_v56 = vpop.f32.mrb[146].mxu1 }
 0x392   : > { %v7660_v57 = vpop.f32.mrb[147].mxu0  ;;  %v7748_v58 = vpop.f32.mrb[147].mxu1 }
 0x393   : > { %v4023_v59 = vadd.f32 %v7658_v51, %v9906_v46  ;;  %v7661_v61 = vadd.f32 %v7660_v57, %v7659_v55  ;;  %v7749_v62 = vadd.f32 %v7748_v58, %v7747_v56 }
 0x395   : > { %v4026_v63 = vadd.f32 %v7661_v61, %v9906_v46  ;;  %v9910_v1 = vadd.f32 %v7746_v54, %v4023_v59 }
 0x397   : > { %v7662_v4 = vpop.f32.mrb[148].mxu0  ;;  %v7750_v6 = vpop.f32.mrb[148].mxu1  ;;  %v4247_v10 = vsel %vm4246_vm0, %v9910_v1, 0.0  ;;  %v9916_v60 = vadd.f32 %v7749_v62, %v4026_v63 }
 0x398   : > { %v7663_v5 = vpop.f32.mrb[149].mxu0  ;;  %v7751_v12 = vpop.f32.mrb[149].mxu1  ;;  %4248 = vadd.xlane.f32.xlu0 %v4247_v10 }
 0x399   : > { %v7664_v14 = vadd.f32 %v7663_v5, %v7662_v4  ;;  %v7752_v15 = vadd.f32 %v7751_v12, %v7750_v6  ;;  %v7665_v31 = vpop.f32.mrb[150].mxu0  ;;  %v7753_v17 = vpop.f32.mrb[150].mxu1  ;;  %v4250_v26 = vsel %vm4246_vm0, %v9916_v60, 0.0  ;;  %v4774_v12 = vld [vmem:[%s11736_s15 + $0xa8] sm:$0xff] }
 0x39a   : > { %v7666_v18 = vpop.f32.mrb[151].mxu0  ;;  %v7754_v23 = vpop.f32.mrb[151].mxu1 }
 0x39b   : > { %v4031_v53 = vadd.f32 %v7664_v14, %v9906_v46  ;;  %v7667_v24 = vadd.f32 %v7666_v18, %v7665_v31  ;;  %v7755_v25 = vadd.f32 %v7754_v23, %v7753_v17  ;;  %v9946_v63 = vpop.permute.xlu0 %4784  ;;  %v9948_v4 = vpop.permute.xlu1 %4804 }
 0x39c   : > { %4251 = vadd.xlane.f32.xlu0 %v4250_v26  ;;  %11847 = vst [vmem:[#allocation10_spill] sm:$0xff] %v9946_v63  ;;  %11848 = vst [vmem:[#allocation11_spill] sm:$0xff] %v9948_v4 }
 0x39d   : > { %v4034_v28 = vadd.f32 %v7667_v24, %v9906_v46  ;;  %v9922_v30 = vadd.f32 %v7752_v15, %v4031_v53 }
 0x39f   : > { %v7668_v19 = vpop.f32.mrb[152].mxu0  ;;  %v7756_v34 = vpop.f32.mrb[152].mxu1  ;;  %v4253_v20 = vsel %vm4246_vm0, %v9922_v30, 0.0  ;;  %v9928_v11 = vadd.f32 %v7755_v25, %v4034_v28 }
 0x3a0   : > { %v7669_v35 = vpop.f32.mrb[153].mxu0  ;;  %v7757_v36 = vpop.f32.mrb[153].mxu1  ;;  %4254 = vadd.xlane.f32.xlu1 %v4253_v20 }
 0x3a1   : > { %v7670_v37 = vadd.f32 %v7669_v35, %v7668_v19  ;;  %v7758_v21 = vadd.f32 %v7757_v36, %v7756_v34  ;;  %v7671_v22 = vpop.f32.mrb[154].mxu0  ;;  %v7759_v38 = vpop.f32.mrb[154].mxu1  ;;  %v4256_v48 = vsel %vm4246_vm0, %v9928_v11, 0.0 }
 0x3a2   : > { %v7672_v0 = vpop.f32.mrb[155].mxu0  ;;  %v7760_v33 = vpop.f32.mrb[155].mxu1 }
 0x3a3   : > { %v4039_v49 = vadd.f32 %v7670_v37, %v9906_v46  ;;  %v7673_v7 = vadd.f32 %v7672_v0, %v7671_v22  ;;  %v7761_v27 = vadd.f32 %v7760_v33, %v7759_v38  ;;  %v9961_v35 = vpop.permute.xlu0 %4794  ;;  %v9963_v36 = vpop.permute.xlu1 %4967 }
 0x3a4   : > { %4257 = vadd.xlane.f32.xlu1 %v4256_v48  ;;  %11849 = vst [vmem:[#allocation12_spill] sm:$0xff] %v9961_v35  ;;  %11850 = vst [vmem:[#allocation13_spill] sm:$0xff] %v9963_v36 }
 0x3a5   : > { %v4042_v3 = vadd.f32 %v7673_v7, %v9906_v46  ;;  %v9934_v8 = vadd.f32 %v7758_v21, %v4039_v49 }
 0x3a7   : > { %v7674_v52 = vpop.f32.mrb[156].mxu0  ;;  %v7762_v13 = vpop.f32.mrb[156].mxu1  ;;  %v9938_v39 = vadd.f32 %v7761_v27, %v4042_v3 }
 0x3a8   : > { %v7675_v40 = vpop.f32.mrb[157].mxu0  ;;  %v7763_v44 = vpop.f32.mrb[157].mxu1 }
 0x3a9   : > { %v7676_v45 = vadd.f32 %v7675_v40, %v7674_v52  ;;  %v7764_v47 = vadd.f32 %v7763_v44, %v7762_v13  ;;  %v7677_v50 = vpop.f32.mrb[158].mxu0  ;;  %v7765_v51 = vpop.f32.mrb[158].mxu1  ;;  %v4262_v54 = vsel %vm4246_vm0, %v9938_v39, 0.0 }
 0x3aa   : > { %v7678_v55 = vpop.f32.mrb[159].mxu0  ;;  %v7766_v56 = vpop.f32.mrb[159].mxu1  ;;  %4263 = vadd.xlane.f32.xlu1 %v4262_v54 }
 0x3ab   : > { %v4047_v57 = vadd.f32 %v7676_v45, %v9906_v46  ;;  %v7679_v58 = vadd.f32 %v7678_v55, %v7677_v50  ;;  %v7767_v59 = vadd.f32 %v7766_v56, %v7765_v51  ;;  %v9973_v50 = vpop.permute.xlu0 %4962  ;;  %v9975_v51 = vpop.permute.xlu1 %4809 }
 0x3ac   : > { %11851 = vst [vmem:[#allocation14_spill] sm:$0xff] %v9973_v50  ;;  %11852 = vst [vmem:[#allocation15_spill] sm:$0xff] %v9975_v51 }
 0x3ad   : > { %v4050_v61 = vadd.f32 %v7679_v58, %v9906_v46  ;;  %v9944_v62 = vadd.f32 %v7764_v47, %v4047_v57 }
 0x3af   : > { %v7680_v6 = vpop.f32.mrb[160].mxu0  ;;  %v7768_v10 = vpop.f32.mrb[160].mxu1  ;;  %v9950_v5 = vadd.f32 %v7767_v59, %v4050_v61 }
 0x3b0   : > { %v7681_v14 = vpop.f32.mrb[161].mxu0  ;;  %v7769_v15 = vpop.f32.mrb[161].mxu1 }
 0x3b1   : > { %v7682_v31 = vadd.f32 %v7681_v14, %v7680_v6  ;;  %v7770_v17 = vadd.f32 %v7769_v15, %v7768_v10  ;;  %v7683_v18 = vpop.f32.mrb[162].mxu0  ;;  %v7771_v23 = vpop.f32.mrb[162].mxu1  ;;  %v4268_v53 = vsel %vm4246_vm0, %v9950_v5, 0.0 }
 0x3b2   : > { %v7684_v24 = vpop.f32.mrb[163].mxu0  ;;  %v7772_v25 = vpop.f32.mrb[163].mxu1  ;;  %4269 = vadd.xlane.f32.xlu1 %v4268_v53  ;;  %4884 = vperm.xlu0 %8119, %v4774_v12  }
 0x3b3   : > { %v4055_v26 = vadd.f32 %v7682_v31, %v9906_v46  ;;  %v7685_v28 = vadd.f32 %v7684_v24, %v7683_v18  ;;  %v7773_v19 = vadd.f32 %v7772_v25, %v7771_v23  ;;  %v9985_v24 = vpop.permute.xlu0 %4972  ;;  %v9987_v25 = vpop.permute.xlu1 %4814 }
 0x3b4   : > { %11853 = vst [vmem:[#allocation16_spill] sm:$0xff] %v9985_v24  ;;  %11854 = vst [vmem:[#allocation17_spill] sm:$0xff] %v9987_v25 }
 0x3b5   : > { %v4058_v34 = vadd.f32 %v7685_v28, %v9906_v46  ;;  %v9959_v20 = vadd.f32 %v7770_v17, %v4055_v26 }
 0x3b7   : > { %v7686_v37 = vpop.f32.mrb[164].mxu0  ;;  %v7774_v21 = vpop.f32.mrb[164].mxu1  ;;  %v9965_v22 = vadd.f32 %v7773_v19, %v4058_v34 }
 0x3b8   : > { %v7687_v38 = vpop.f32.mrb[165].mxu0  ;;  %v7775_v0 = vpop.f32.mrb[165].mxu1 }
 0x3b9   : > { %v7688_v33 = vadd.f32 %v7687_v38, %v7686_v37  ;;  %v7776_v49 = vadd.f32 %v7775_v0, %v7774_v21  ;;  %v7689_v7 = vpop.f32.mrb[166].mxu0  ;;  %v7777_v27 = vpop.f32.mrb[166].mxu1  ;;  %v4274_v48 = vsel %vm4246_vm0, %v9965_v22, 0.0 }
 0x3ba   : > { %v7690_v3 = vpop.f32.mrb[167].mxu0  ;;  %v7778_v52 = vpop.f32.mrb[167].mxu1  ;;  %4275 = vadd.xlane.f32.xlu1 %v4274_v48 }
 0x3bb   : > { %v4063_v13 = vadd.f32 %v7688_v33, %v9906_v46  ;;  %v7691_v40 = vadd.f32 %v7690_v3, %v7689_v7  ;;  %v7779_v44 = vadd.f32 %v7778_v52, %v7777_v27 }
 0x3bd   : > { %v4066_v45 = vadd.f32 %v7691_v40, %v9906_v46  ;;  %v9971_v47 = vadd.f32 %v7776_v49, %v4063_v13 }
 0x3bf   : > { %v7692_v54 = vpop.f32.mrb[168].mxu0  ;;  %v7780_v55 = vpop.f32.mrb[168].mxu1  ;;  %v9977_v56 = vadd.f32 %v7779_v44, %v4066_v45 }
 0x3c0   : > { %v7693_v57 = vpop.f32.mrb[169].mxu0  ;;  %v7781_v58 = vpop.f32.mrb[169].mxu1 }
 0x3c1   : > { %v7694_v59 = vadd.f32 %v7693_v57, %v7692_v54  ;;  %v7782_v61 = vadd.f32 %v7781_v58, %v7780_v55  ;;  %v7695_v6 = vpop.f32.mrb[170].mxu0  ;;  %v7783_v10 = vpop.f32.mrb[170].mxu1  ;;  %v4280_v12 = vsel %vm4246_vm0, %v9977_v56, 0.0 }
 0x3c2   : > { %v7696_v14 = vpop.f32.mrb[171].mxu0  ;;  %v7784_v15 = vpop.f32.mrb[171].mxu1  ;;  %4281 = vadd.xlane.f32.xlu1 %v4280_v12 }
 0x3c3   : > { %v4071_v31 = vadd.f32 %v7694_v59, %v9906_v46  ;;  %v7697_v17 = vadd.f32 %v7696_v14, %v7695_v6  ;;  %v7785_v18 = vadd.f32 %v7784_v15, %v7783_v10  ;;  %v9997_v44 = vpop.permute.xlu0 %4977  ;;  %v9999_v45 = vpop.permute.xlu1 %4982 }
 0x3c4   : > { %11855 = vst [vmem:[#allocation18_spill] sm:$0xff] %v9997_v44  ;;  %11856 = vst [vmem:[#allocation19_spill] sm:$0xff] %v9999_v45 }
 0x3c5   : > { %v4074_v23 = vadd.f32 %v7697_v17, %v9906_v46  ;;  %v9983_v53 = vadd.f32 %v7782_v61, %v4071_v31  ;;  %v4259_v61 = vsel %vm4246_vm0, %v9934_v8, 0.0 }
 0x3c7   : > { %v7698_v26 = vpop.f32.mrb[172].mxu0  ;;  %v7786_v28 = vpop.f32.mrb[172].mxu1  ;;  %v9989_v19 = vadd.f32 %v7785_v18, %v4074_v23 }
 0x3c8   : > { %v7699_v34 = vpop.f32.mrb[173].mxu0  ;;  %v7787_v37 = vpop.f32.mrb[173].mxu1 }
 0x3c9   : > { %v7700_v21 = vadd.f32 %v7699_v34, %v7698_v26  ;;  %v7788_v38 = vadd.f32 %v7787_v37, %v7786_v28  ;;  %v7701_v0 = vpop.f32.mrb[174].mxu0  ;;  %v7789_v33 = vpop.f32.mrb[174].mxu1  ;;  %v4286_v49 = vsel %vm4246_vm0, %v9989_v19, 0.0  ;;  %v4265_v28 = vsel %vm4246_vm0, %v9944_v62, 0.0 }
 0x3ca   : > { %v7702_v7 = vpop.f32.mrb[175].mxu0  ;;  %v7790_v27 = vpop.f32.mrb[175].mxu1  ;;  %4287 = vadd.xlane.f32.xlu1 %v4286_v49 }
 0x3cb   : > { %v4079_v48 = vadd.f32 %v7700_v21, %v9906_v46  ;;  %v7703_v3 = vadd.f32 %v7702_v7, %v7701_v0  ;;  %v7791_v52 = vadd.f32 %v7790_v27, %v7789_v33  ;;  %v10013_v21 = vpop.permute.xlu0 %4824 }
 0x3cc   : > { %11857 = vst [vmem:[#allocation20_spill] sm:$0xff] %v10013_v21 }
 0x3cd   : > { %v4082_v13 = vadd.f32 %v7703_v3, %v9906_v46  ;;  %v9995_v40 = vadd.f32 %v7788_v38, %v4079_v48  ;;  %v10015_v38 = vpop.permute.xlu1 %4819  ;;  %v4271_v3 = vsel %vm4246_vm0, %v9959_v20, 0.0 }
 0x3ce   : > { %11858 = vst [vmem:[#allocation21_spill] sm:$0xff] %v10015_v38 }
 0x3cf   : > { %v7704_v54 = vpop.f32.mrb[176].mxu0  ;;  %v7792_v55 = vpop.f32.mrb[176].mxu1  ;;  %v10001_v57 = vadd.f32 %v7791_v52, %v4082_v13 }
 0x3d0   : > { %v7705_v58 = vpop.f32.mrb[177].mxu0  ;;  %v7793_v59 = vpop.f32.mrb[177].mxu1 }
 0x3d1   : > { %v7706_v6 = vadd.f32 %v7705_v58, %v7704_v54  ;;  %v7794_v10 = vadd.f32 %v7793_v59, %v7792_v55  ;;  %v7707_v12 = vpop.f32.mrb[178].mxu0  ;;  %v7795_v14 = vpop.f32.mrb[178].mxu1  ;;  %4260 = vadd.xlane.f32.xlu0 %v4259_v61  ;;  %v4292_v15 = vsel %vm4246_vm0, %v10001_v57, 0.0 }
 0x3d2   : > { %v7708_v31 = vpop.f32.mrb[179].mxu0  ;;  %v7796_v17 = vpop.f32.mrb[179].mxu1  ;;  %4293 = vadd.xlane.f32.xlu1 %v4292_v15 }
 0x3d3   : > { %v4087_v18 = vadd.f32 %v7706_v6, %v9906_v46  ;;  %v7709_v23 = vadd.f32 %v7708_v31, %v7707_v12  ;;  %v7797_v26 = vadd.f32 %v7796_v17, %v7795_v14  ;;  %v4277_v14 = vsel %vm4246_vm0, %v9971_v47, 0.0  ;;  %v10031_v17 = vpop.permute.xlu0 %4987 }
 0x3d4   : > { %11859 = vst [vmem:[#allocation22_spill] sm:$0xff] %v10031_v17 }
 0x3d5   : > { %v4090_v34 = vadd.f32 %v7709_v23, %v9906_v46  ;;  %4266 = vadd.xlane.f32.xlu0 %v4265_v28  ;;  %v10011_v37 = vadd.f32 %v7794_v10, %v4087_v18  ;;  %v10033_v18 = vpop.permute.xlu1 %4992 }
 0x3d6   : > { %11860 = vst [vmem:[#allocation23_spill] sm:$0xff] %v10033_v18 }
 0x3d7   : > { %v7710_v0 = vpop.f32.mrb[180].mxu0  ;;  %v7798_v33 = vpop.f32.mrb[180].mxu1  ;;  %v4295_v49 = vsel %vm4246_vm0, %v10011_v37, 0.0  ;;  %v10019_v7 = vadd.f32 %v7797_v26, %v4090_v34 }
 0x3d8   : > { %v7711_v27 = vpop.f32.mrb[181].mxu0  ;;  %v7799_v48 = vpop.f32.mrb[181].mxu1  ;;  %4296 = vadd.xlane.f32.xlu1 %v4295_v49  ;;  %v4283_v49 = vsel %vm4246_vm0, %v9983_v53, 0.0 }
 0x3d9   : > { %v7712_v52 = vadd.f32 %v7711_v27, %v7710_v0  ;;  %v7800_v13 = vadd.f32 %v7799_v48, %v7798_v33  ;;  %v7713_v54 = vpop.f32.mrb[182].mxu0  ;;  %v7801_v55 = vpop.f32.mrb[182].mxu1  ;;  %4272 = vadd.xlane.f32.xlu0 %v4271_v3  ;;  %v4298_v12 = vsel %vm4246_vm0, %v10019_v7, 0.0 }
 0x3da   : > { %v7714_v58 = vpop.f32.mrb[183].mxu0  ;;  %v7802_v59 = vpop.f32.mrb[183].mxu1 }
 0x3db   : > { %v4095_v61 = vadd.f32 %v7712_v52, %v9906_v46  ;;  %v7715_v6 = vadd.f32 %v7714_v58, %v7713_v54  ;;  %v7803_v10 = vadd.f32 %v7802_v59, %v7801_v55 }
 0x3dc   : > { %4299 = vadd.xlane.f32.xlu1 %v4298_v12 }
 0x3dd   : > { %v4098_v15 = vadd.f32 %v7715_v6, %v9906_v46  ;;  %4278 = vadd.xlane.f32.xlu0 %v4277_v14  ;;  %v10029_v31 = vadd.f32 %v7800_v13, %v4095_v61  ;;  %v4289_v6 = vsel %vm4246_vm0, %v9995_v40, 0.0  ;;  %v10049_v14 = vpop.permute.xlu0 %4834 }
 0x3de   : > { %11861 = vst [vmem:[#allocation24_spill] sm:$0xff] %v10049_v14 }
 0x3df   : > { %v7716_v23 = vpop.f32.mrb[184].mxu0  ;;  %v7804_v26 = vpop.f32.mrb[184].mxu1  ;;  %v4301_v28 = vsel %vm4246_vm0, %v10029_v31, 0.0  ;;  %v10037_v34 = vadd.f32 %v7803_v10, %v4098_v15 }
 0x3e0   : > { %v7717_v0 = vpop.f32.mrb[185].mxu0  ;;  %v7805_v33 = vpop.f32.mrb[185].mxu1  ;;  %4302 = vadd.xlane.f32.xlu1 %v4301_v28 }
 0x3e1   : > { %v7718_v27 = vadd.f32 %v7717_v0, %v7716_v23  ;;  %v7806_v48 = vadd.f32 %v7805_v33, %v7804_v26  ;;  %v7719_v3 = vpop.f32.mrb[186].mxu0  ;;  %v7807_v52 = vpop.f32.mrb[186].mxu1  ;;  %4284 = vadd.xlane.f32.xlu0 %v4283_v49  ;;  %v4304_v61 = vsel %vm4246_vm0, %v10037_v34, 0.0 }
 0x3e2   : > { %v7720_v13 = vpop.f32.mrb[187].mxu0  ;;  %v7808_v54 = vpop.f32.mrb[187].mxu1 }
 0x3e3   : > { %v4103_v55 = vadd.f32 %v7718_v27, %v9906_v46  ;;  %v7721_v58 = vadd.f32 %v7720_v13, %v7719_v3  ;;  %v7809_v59 = vadd.f32 %v7808_v54, %v7807_v52  ;;  %v10051_v15 = vpop.permute.xlu1 %4829 }
 0x3e4   : > { %4305 = vadd.xlane.f32.xlu1 %v4304_v61  ;;  %11862 = vst [vmem:[#allocation25_spill] sm:$0xff] %v10051_v15 }
 0x3e5   : > { %v4106_v10 = vadd.f32 %v7721_v58, %v9906_v46  ;;  %4290 = vadd.xlane.f32.xlu0 %v4289_v6  ;;  %v10047_v12 = vadd.f32 %v7806_v48, %v4103_v55 }
 0x3e7   : > { %v7722_v23 = vpop.f32.mrb[188].mxu0  ;;  %v7810_v26 = vpop.f32.mrb[188].mxu1  ;;  %v4307_v28 = vsel %vm4246_vm0, %v10047_v12, 0.0  ;;  %v10055_v0 = vadd.f32 %v7809_v59, %v4106_v10  ;;  %v10063_v59 = vld [vmem:[%s11739_s18] sm:$0x3] }
 0x3e8   : > { %v7723_v33 = vpop.f32.mrb[189].mxu0  ;;  %v7811_v49 = vpop.f32.mrb[189].mxu1  ;;  %11863 = vst [vmem:[#allocation26_spill] sm:$0xff] %v10063_v59 }
 0x3e9   : > { %v7724_v27 = vadd.f32 %v7723_v33, %v7722_v23  ;;  %v7812_v3 = vadd.f32 %v7811_v49, %v7810_v26  ;;  %v7813_v52 = vpop.f32.mrb[190].mxu1  ;;  %4308 = vadd.xlane.f32.xlu0 %v4307_v28  ;;  %v7725_v13 = vpop.f32.mrb[190].mxu0  ;;  %v4310_v48 = vsel %vm4246_vm0, %v10055_v0, 0.0 }
 0x3ea   : > { %v7814_v54 = vpop.f32.mrb[191].mxu1  ;;  %4311 = vadd.xlane.f32.xlu1 %v4310_v48  ;;  %v7726_v55 = vpop.f32.mrb[191].mxu0 }
 0x3eb   : > { %v4111_v58 = vadd.f32 %v7724_v27, %v9906_v46  ;;  %v7815_v61 = vadd.f32 %v7814_v54, %v7813_v52  ;;  %v7727_v6 = vadd.f32 %v7726_v55, %v7725_v13  ;;  %v10065_v10 = vpop.permute.xlu1 %5002  ;;  %v10070_v28 = vpop.permute.xlu0 %4997  ;;  %v4700_v27 = vrot.slane %v10063_v59, %v9670_v9 }
 0x3ec   : > { %11864 = vst [vmem:[#allocation27_spill] sm:$0xff] %v10065_v10  ;;  %11865 = vst [vmem:[#allocation28_spill] sm:$0xff] %v10070_v28 }
 0x3ed   : > { %v4114_v23 = vadd.f32 %v7727_v6, %v9906_v46  ;;  %v10068_v26 = vadd.f32 %v7812_v3, %v4111_v58 }
 0x3ef   : > { %v4313_v33 = vsel %vm4246_vm0, %v10068_v26, 0.0  ;;  %v10074_v49 = vadd.f32 %v7815_v61, %v4114_v23  ;;  %v4744_v52 = vpop.f32.mrb[192].mxu0  ;;  %v10078_v13 = vpop.f32.mrb[192].mxu1 }
 0x3f0   : > { %4314 = vadd.xlane.f32.xlu1 %v4313_v33  ;;  %v10080_v48 = vpop.f32.mrb[193].mxu0  ;;  %v10082_v54 = vpop.f32.mrb[193].mxu1  ;;  %v4745_v23 = vadd.f32 %v4744_v52, %v4700_v27 }
 0x3f1   : > { %11866 = vst [vmem:[#allocation29_spill] sm:$0xff] %v10080_v48  ;;  %v4748_v46 = vpop.f32.mrb[194].mxu0  ;;  %v10084_v3 = vpop.f32.mrb[194].mxu1  ;;  %v4316_v61 = vsel %vm4246_vm0, %v10074_v49, 0.0 }
 0x3f2   : > { %v4749_v55 = vpop.f32.mrb[195].mxu0  ;;  %v10086_v58 = vpop.f32.mrb[195].mxu1  ;;  %v4751_v33 = vmax.f32 %v4745_v23, 0.0 }
 0x3f3   : > { %v10088_v6 = vpop.permute.xlu1 %4839  ;;  %v10092_v28 = vpop.permute.xlu0 %4844 }
 0x3f4   : > { %11867 = vst [vmem:[#allocation30_spill] sm:$0xff] %v10088_v6  ;;  %4317 = vadd.xlane.f32.xlu1 %v4316_v61  ;;  %11868 = vst [vmem:[#allocation31_spill] sm:$0xff] %v10092_v28  ;;  %v10105_v6 = vrot.slane %v4751_v33, %v9670_v9 }
 0x3f6   : > { %11870 = vst [vmem:[#allocation33_spill] sm:$0xff] %v10105_v6 }
 0x3f7   : > { %v10094_v15 = vpop.f32.mrb[196].mxu1  ;;  %v10098_v46 = vpop.permute.xlu1 %5012 }
 0x3f8   : > { %v10096_v10 = vpop.f32.mrb[197].mxu1  ;;  %11869 = vst [vmem:[#allocation32_spill] sm:$0xff] %v10098_v46  ;;  %v10107_v38 = vpop.permute.xlu0 %5007 }
 0x3f9   : > { %v10100_v17 = vpop.f32.mrb[198].mxu1  ;;  %11871 = vst [vmem:[#allocation34_spill] sm:$0xff] %v10107_v38 }
 0x3fa   : > { %v10102_v55 = vpop.f32.mrb[199].mxu1 }
 0x3fb   : > { %v10109_v27 = vpop.permute.xlu1 %4849 }
 0x3fc   : > { %11872 = vst [vmem:[#allocation35_spill] sm:$0xff] %v10109_v27  ;;  %v10121_v28 = vpop.permute.xlu0 %4854 }
 0x3fd   : > { %11873 = vst [vmem:[#allocation36_spill] sm:$0xff] %v10121_v28 }
 0x3ff   : > { %5558 = vrot.lane.b32.xlu0 %v10105_v6, %s8689_s1  ;;  %v10113_v52 = vpop.f32.mrb[200].mxu1  ;;  %v10123_v33 = vpop.permute.xlu1 %5022 }
 0x400   : > { %v10115_v61 = vpop.f32.mrb[201].mxu1  ;;  %11874 = vst [vmem:[#allocation37_spill] sm:$0xff] %v10123_v33  ;;  %v10129_v27 = vpop.permute.xlu0 %5017 }
 0x401   : > { %v10117_v23 = vpop.f32.mrb[202].mxu1  ;;  %11875 = vst [vmem:[#allocation38_spill] sm:$0xff] %v10129_v27 }
 0x402   : > { %v10119_v46 = vpop.f32.mrb[203].mxu1 }
 0x403   : > { %v10135_v24 = vpop.permute.xlu1 %4859 }
 0x404   : > { %11876 = vst [vmem:[#allocation39_spill] sm:$0xff] %v10135_v24  ;;  %v10137_v4 = vpop.permute.xlu0 %4864 }
 0x405   : > { %11877 = vst [vmem:[#allocation40_spill] sm:$0xff] %v10137_v4 }
 0x407   : > { %v10125_v44 = vpop.f32.mrb[204].mxu1  ;;  %v10143_v28 = vpop.permute.xlu1 %5027 }
 0x408   : > { %v10127_v38 = vpop.f32.mrb[205].mxu1  ;;  %11878 = vst [vmem:[#allocation41_spill] sm:$0xff] %v10143_v28  ;;  %v10149_v21 = vpop.permute.xlu0 %5032 }
 0x409   : > { %v10131_v51 = vpop.f32.mrb[206].mxu1  ;;  %11879 = vst [vmem:[#allocation42_spill] sm:$0xff] %v10149_v21 }
 0x40a   : > { %v10133_v14 = vpop.f32.mrb[207].mxu1 }
 0x40b   : > { %v10151_v27 = vpop.permute.xlu1 %4869 }
 0x40c   : > { %11880 = vst [vmem:[#allocation43_spill] sm:$0xff] %v10151_v27  ;;  %v10161_v50 = vpop.permute.xlu0 %4874 }
 0x40d   : > { %11881 = vst [vmem:[#allocation44_spill] sm:$0xff] %v10161_v50 }
 0x40f   : > { %v10139_v36 = vpop.f32.mrb[208].mxu1  ;;  %v10163_v35 = vpop.permute.xlu1 %5037 }
 0x410   : > { %v10141_v29 = vpop.f32.mrb[209].mxu1  ;;  %11882 = vst [vmem:[#allocation45_spill] sm:$0xff] %v10163_v35  ;;  %v10169_v2 = vpop.permute.xlu0 %5042 }
 0x411   : > { %v10145_v33 = vpop.f32.mrb[210].mxu1  ;;  %11883 = vst [vmem:[#allocation46_spill] sm:$0xff] %v10169_v2 }
 0x412   : > { %v10147_v18 = vpop.f32.mrb[211].mxu1 }
 0x413   : > { %v10175_v6 = vpop.permute.xlu1 %4879 }
 0x414   : > { %11884 = vst [vmem:[#allocation47_spill] sm:$0xff] %v10175_v6 }
 0x417   : > { %v10153_v45 = vpop.f32.mrb[212].mxu1  ;;  %v10180_v50 = vpop.permute.xlu1 %5047 }
 0x418   : > { %v10155_v25 = vpop.f32.mrb[213].mxu1  ;;  %11886 = vst [vmem:[#allocation49_spill] sm:$0xff] %v10180_v50 }
 0x419   : > { %v10157_v24 = vpop.f32.mrb[214].mxu1 }
 0x41a   : > { %v10159_v4 = vpop.f32.mrb[215].mxu1 }
 0x41f   : > { %v10165_v28 = vpop.f32.mrb[216].mxu1 }
 0x420   : > { %v10167_v32 = vpop.f32.mrb[217].mxu1 }
 0x421   : > { %v10171_v21 = vpop.f32.mrb[218].mxu1 }
 0x422   : > { %v10173_v27 = vpop.f32.mrb[219].mxu1 }
 0x425   : > { %v4249_v43 = vpop.xlane.xlu0 %4248 }
 0x426   : > { %v4320_v63 = vmul.f32 0.015625, %v4249_v43 }
 0x428   : > { %v10178_v42 = vsub.f32 %v9910_v1, %v4320_v63  ;;  %v10190_v1 = vpop.f32.mrb[220].mxu1 }
 0x429   : > { %v4252_v35 = vpop.xlane.xlu0 %4251  ;;  %v10196_v50 = vpop.f32.mrb[221].mxu1 }
 0x42a   : > { %11885 = vst [vmem:[#allocation48_spill] sm:$0xff] %v10178_v42  ;;  %v4321_v41 = vmul.f32 0.015625, %v4252_v35  ;;  %v4368_v9 = vmul.f32 %v10178_v42, %v10178_v42 }
 0x42c   : > { %v10185_v2 = vsub.f32 %v9916_v60, %v4321_v41  ;;  %v4392_v48 = vsel %vm4246_vm0, %v4368_v9, 0.0  ;;  %v10200_v60 = vpop.f32.mrb[222].mxu1 }
 0x42d   : > { %v4255_v59 = vpop.xlane.xlu1 %4254  ;;  %4393 = vadd.xlane.f32.xlu1 %v4392_v48 }
 0x42e   : > { %11887 = vst [vmem:[#allocation50_spill] sm:$0xff] %v10185_v2  ;;  %v4322_v6 = vmul.f32 0.015625, %v4255_v59  ;;  %v4369_v43 = vmul.f32 %v10185_v2, %v10185_v2  ;;  %v10202_v59 = vpop.f32.mrb[223].mxu1 }
 0x430   : > { %v10193_v63 = vsub.f32 %v9922_v30, %v4322_v6  ;;  %v4395_v35 = vsel %vm4246_vm0, %v4369_v43, 0.0 }
 0x431   : > { %v4258_v42 = vpop.xlane.xlu1 %4257  ;;  %4396 = vadd.xlane.f32.xlu1 %v4395_v35 }
 0x432   : > { %11888 = vst [vmem:[#allocation51_spill] sm:$0xff] %v10193_v63  ;;  %v4323_v41 = vmul.f32 0.015625, %v4258_v42  ;;  %v4370_v9 = vmul.f32 %v10193_v63, %v10193_v63 }
 0x434   : > { %v10205_v48 = vsub.f32 %v9928_v11, %v4323_v41  ;;  %v4398_v30 = vsel %vm4246_vm0, %v4370_v9, 0.0 }
 0x435   : > { %4399 = vadd.xlane.f32.xlu1 %v4398_v30 }
 0x436   : > { %v4371_v6 = vmul.f32 %v10205_v48, %v10205_v48 }
 0x437   : > { %v4264_v42 = vpop.xlane.xlu1 %4263 }
 0x438   : > { %v4401_v43 = vsel %vm4246_vm0, %v4371_v6, 0.0 }
 0x439   : > { %4402 = vadd.xlane.f32.xlu1 %v4401_v43 }
 0x43f   : > { %v4270_v35 = vpop.xlane.xlu1 %4269 }
 0x440   : > { %v4327_v2 = vmul.f32 0.015625, %v4270_v35 }
 0x442   : > { %v10212_v63 = vsub.f32 %v9950_v5, %v4327_v2 }
 0x444   : > { %11889 = vst [vmem:[#allocation52_spill] sm:$0xff] %v10212_v63  ;;  %v4375_v16 = vmul.f32 %v10212_v63, %v10212_v63 }
 0x446   : > { %v4413_v11 = vsel %vm4246_vm0, %v4375_v16, 0.0 }
 0x447   : > { %v4276_v41 = vpop.xlane.xlu1 %4275  ;;  %4414 = vadd.xlane.f32.xlu0 %v4413_v11 }
 0x448   : > { %v4329_v9 = vmul.f32 0.015625, %v4276_v41 }
 0x44a   : > { %v10218_v30 = vsub.f32 %v9965_v22, %v4329_v9  ;;  %v10229_v9 = vpop.permute.xlu0 %4884 }
 0x44b   : > { %11892 = vst [vmem:[#allocation55_spill] sm:$0xff] %v10229_v9 }
 0x44c   : > { %11890 = vst [vmem:[#allocation53_spill] sm:$0xff] %v10218_v30  ;;  %v4377_v6 = vmul.f32 %v10218_v30, %v10218_v30 }
 0x44e   : > { %v4419_v43 = vsel %vm4246_vm0, %v4377_v6, 0.0 }
 0x44f   : > { %v4282_v35 = vpop.xlane.xlu1 %4281  ;;  %4420 = vadd.xlane.f32.xlu0 %v4419_v43  ;;  %v4325_v43 = vmul.f32 0.015625, %v4264_v42 }
 0x450   : > { %v4331_v2 = vmul.f32 0.015625, %v4282_v35 }
 0x452   : > { %v10224_v5 = vsub.f32 %v9977_v56, %v4331_v2 }
 0x454   : > { %11891 = vst [vmem:[#allocation54_spill] sm:$0xff] %v10224_v5  ;;  %v4379_v16 = vmul.f32 %v10224_v5, %v10224_v5 }
 0x456   : > { %v4425_v11 = vsel %vm4246_vm0, %v4379_v16, 0.0  ;;  %v10238_v16 = vsub.f32 %v9938_v39, %v4325_v43 }
 0x457   : > { %v4288_v41 = vpop.xlane.xlu1 %4287  ;;  %4426 = vadd.xlane.f32.xlu0 %v4425_v11 }
 0x458   : > { %v4333_v22 = vmul.f32 0.015625, %v4288_v41 }
 0x45a   : > { %v10232_v30 = vsub.f32 %v9989_v19, %v4333_v22 }
 0x45c   : > { %v4381_v6 = vmul.f32 %v10232_v30, %v10232_v30 }
 0x45e   : > { %v4261_v35 = vpop.xlane.xlu0 %4260  ;;  %v4431_v56 = vsel %vm4246_vm0, %v4381_v6, 0.0 }
 0x45f   : > { %v4324_v2 = vmul.f32 0.015625, %v4261_v35  ;;  %v4294_v63 = vpop.xlane.xlu1 %4293  ;;  %4432 = vadd.xlane.f32.xlu0 %v4431_v56 }
 0x460   : > { %v4335_v5 = vmul.f32 0.015625, %v4294_v63 }
 0x461   : > { %v10241_v11 = vsub.f32 %v9934_v8, %v4324_v2  ;;  %v4373_v8 = vmul.f32 %v10238_v16, %v10238_v16 }
 0x462   : > { %v10244_v19 = vsub.f32 %v10001_v57, %v4335_v5  ;;  %v4267_v41 = vpop.xlane.xlu0 %4266 }
 0x463   : > { %v4326_v22 = vmul.f32 0.015625, %v4267_v41  ;;  %v4372_v42 = vmul.f32 %v10241_v11, %v10241_v11  ;;  %v4407_v41 = vsel %vm4246_vm0, %v4373_v8, 0.0 }
 0x464   : > { %11893 = vst [vmem:[#allocation56_spill] sm:$0xff] %v10244_v19  ;;  %v4383_v6 = vmul.f32 %v10244_v19, %v10244_v19 }
 0x465   : > { %v10251_v35 = vsub.f32 %v9944_v62, %v4326_v22  ;;  %v4297_v63 = vpop.xlane.xlu1 %4296  ;;  %v4404_v39 = vsel %vm4246_vm0, %v4372_v42, 0.0 }
 0x466   : > { %v4273_v43 = vpop.xlane.xlu0 %4272  ;;  %4405 = vadd.xlane.f32.xlu1 %v4404_v39  ;;  %v4437_v57 = vsel %vm4246_vm0, %v4383_v6, 0.0 }
 0x467   : > { %v4328_v5 = vmul.f32 0.015625, %v4273_v43  ;;  %4438 = vadd.xlane.f32.xlu0 %v4437_v57  ;;  %v4374_v62 = vmul.f32 %v10251_v35, %v10251_v35 }
 0x469   : > { %v10258_v56 = vsub.f32 %v9959_v20, %v4328_v5  ;;  %v4300_v2 = vpop.xlane.xlu1 %4299  ;;  %v4410_v20 = vsel %vm4246_vm0, %v4374_v62, 0.0  ;;  %v10277_v5 = vld [vmem:[%s11741_s20] ss:$0 sm:$0xff] }
 0x46a   : > { %v4337_v22 = vmul.f32 0.015625, %v4300_v2  ;;  %v4279_v42 = vpop.xlane.xlu0 %4278  ;;  %4408 = vadd.xlane.f32.xlu1 %v4407_v41 }
 0x46b   : > { %v4330_v9 = vmul.f32 0.015625, %v4279_v42  ;;  %v4376_v43 = vmul.f32 %v10258_v56, %v10258_v56  ;;  %v10292_v42 = vadd.f32 %v10277_v5, %v10082_v54  ;;  %v10308_v54 = vadd.f32 %v10277_v5, %v10147_v18 }
 0x46c   : > { %v10264_v19 = vsub.f32 %v10019_v7, %v4337_v22 }
 0x46d   : > { %v10267_v6 = vsub.f32 %v9971_v47, %v4330_v9  ;;  %v4303_v39 = vpop.xlane.xlu1 %4302  ;;  %v10282_v9 = vadd.f32 %v10078_v13, %v10277_v5  ;;  %v4416_v62 = vsel %vm4246_vm0, %v4376_v43, 0.0  ;;  %11896 = vst [vmem:[#allocation59_spill] sm:$0xff] %v10292_v42  ;;  %v10304_v43 = vadd.f32 %v10277_v5, %v10141_v29  ;;  %11900 = vst [vmem:[#allocation63_spill] sm:$0xff] %v10308_v54 }
 0x46e   : > { %11894 = vst [vmem:[#allocation57_spill] sm:$0xff] %v10264_v19  ;;  %v4285_v8 = vpop.xlane.xlu0 %4284  ;;  %4411 = vadd.xlane.f32.xlu1 %v4410_v20  ;;  %v4385_v57 = vmul.f32 %v10264_v19, %v10264_v19  ;;  %v10296_v20 = vadd.f32 %v10084_v3, %v10277_v5  ;;  %v5525_v29 = vmax.f32 %v10292_v42, 0.0 }
 0x46f   : > { %v4332_v7 = vmul.f32 0.015625, %v4285_v8  ;;  %11895 = vst [vmem:[#allocation58_spill] sm:$0xff] %v10282_v9  ;;  %v4378_v22 = vmul.f32 %v10267_v6, %v10267_v6  ;;  %11899 = vst [vmem:[#allocation62_spill] sm:$0xff] %v10304_v43 }
 0x470   : > { %v4443_v47 = vsel %vm4246_vm0, %v4385_v57, 0.0  ;;  %11897 = vst [vmem:[#allocation60_spill] sm:$0xff] %v10296_v20 }
 0x471   : > { %v10285_v2 = vsub.f32 %v9983_v53, %v4332_v7  ;;  %v4306_v41 = vpop.xlane.xlu1 %4305  ;;  %4444 = vadd.xlane.f32.xlu0 %v4443_v47  ;;  %v10300_v53 = vadd.f32 %v10277_v5, %v10086_v58  ;;  %v4336_v7 = vmul.f32 0.015625, %v4297_v63  ;;  %v5527_v47 = vmax.f32 %v10282_v9, 0.0 }
 0x472   : > { %v4339_v13 = vmul.f32 0.015625, %v4306_v41  ;;  %v4291_v8 = vpop.xlane.xlu0 %4290  ;;  %4417 = vadd.xlane.f32.xlu1 %v4416_v62  ;;  %v4422_v58 = vsel %vm4246_vm0, %v4378_v22, 0.0  ;;  %v10326_v63 = vadd.f32 %v10139_v36, %v10277_v5  ;;  %v5541_v22 = vmax.f32 %v10304_v43, 0.0 }
 0x473   : > { %11898 = vst [vmem:[#allocation61_spill] sm:$0xff] %v10300_v53  ;;  %v4334_v57 = vmul.f32 0.015625, %v4291_v8  ;;  %v4380_v62 = vmul.f32 %v10285_v2, %v10285_v2  ;;  %v5528_v8 = vmax.f32 %v10296_v20, 0.0  ;;  %v5542_v20 = vmax.f32 %v10308_v54, 0.0 }
 0x474   : > { %v10311_v3 = vsub.f32 %v10037_v34, %v4339_v13  ;;  %11902 = vst [vmem:[#allocation65_spill] sm:$0xff] %v10326_v63  ;;  %v10341_v36 = vadd.f32 %v10277_v5, %v10155_v25  ;;  %v10345_v43 = vadd.f32 %v10277_v5, %v10096_v10  ;;  %v5543_v25 = vmax.f32 %v10326_v63, 0.0 }
 0x475   : > { %v10315_v41 = vsub.f32 %v9995_v40, %v4334_v57  ;;  %v5526_v40 = vmax.f32 %v10300_v53, 0.0  ;;  %v10332_v57 = vadd.f32 %v10145_v33, %v10277_v5  ;;  %v4338_v53 = vmul.f32 0.015625, %v4303_v39 }
 0x476   : > { %11901 = vst [vmem:[#allocation64_spill] sm:$0xff] %v10311_v3  ;;  %v4309_v18 = vpop.xlane.xlu0 %4308  ;;  %4423 = vadd.xlane.f32.xlu1 %v4422_v58  ;;  %v4387_v34 = vmul.f32 %v10311_v3, %v10311_v3  ;;  %v10336_v58 = vsub.f32 %v10011_v37, %v4336_v7  ;;  %v4428_v33 = vsel %vm4246_vm0, %v4380_v62, 0.0  ;;  %v10352_v37 = vadd.f32 %v10277_v5, %v10102_v55 }
 0x477   : > { %v4312_v13 = vpop.xlane.xlu1 %4311  ;;  %11903 = vst [vmem:[#allocation66_spill] sm:$0xff] %v10332_v57  ;;  %v4382_v54 = vmul.f32 %v10315_v41, %v10315_v41  ;;  %v10362_v10 = vadd.f32 %v10277_v5, %v10159_v4  ;;  %v10375_v4 = vsub.f32 %v10029_v31, %v4338_v53  ;;  %v5529_v19 = vmax.f32 %v10345_v43, 0.0 }
 0x478   : > { %v4341_v9 = vmul.f32 0.015625, %v4312_v13  ;;  %v4449_v42 = vsel %vm4246_vm0, %v4387_v34, 0.0  ;;  %v10385_v31 = vadd.f32 %v10153_v45, %v10277_v5 }
 0x479   : > { %4450 = vadd.xlane.f32.xlu0 %v4449_v42  ;;  %v5544_v42 = vmax.f32 %v10332_v57, 0.0  ;;  %v4340_v57 = vmul.f32 0.015625, %v4309_v18  ;;  %v10391_v18 = vadd.f32 %v10157_v24, %v10277_v5  ;;  %v4386_v45 = vmul.f32 %v10375_v4, %v10375_v4 }
 0x47a   : > { %v10355_v7 = vsub.f32 %v10055_v0, %v4341_v9  ;;  %4429 = vadd.xlane.f32.xlu1 %v4428_v33  ;;  %v10358_v39 = vpop.permute.xlu0 %5558  ;;  %v4384_v9 = vmul.f32 %v10336_v58, %v10336_v58  ;;  %v5545_v33 = vmax.f32 %v10341_v36, 0.0 }
 0x47b   : > { %v5577_v62 = vadd.f32 %v10358_v39, %v5541_v22  ;;  %v5578_v34 = vadd.f32 %v10358_v39, %v5542_v20  ;;  %v5561_v55 = vadd.f32 %v10358_v39, %v5525_v29  ;;  %v5562_v13 = vadd.f32 %v10358_v39, %v5526_v40 }
 0x47c   : > { %11904 = vst [vmem:[#allocation67_spill] sm:$0xff] %v10355_v7  ;;  %v4389_v0 = vmul.f32 %v10355_v7, %v10355_v7  ;;  %v4434_v22 = vsel %vm4246_vm0, %v4382_v54, 0.0  ;;  %v5546_v7 = vmax.f32 %v10362_v10, 0.0  ;;  %v5579_v3 = vadd.f32 %v10358_v39, %v5543_v25 }
 0x47d   : > { %v5653_v63 = vpack.c.bf16 %v5578_v34, %v5577_v62  ;;  %v5645_v29 = vpack.c.bf16 %v5562_v13, %v5561_v55  ;;  %v5580_v53 = vadd.f32 %v10358_v39, %v5544_v42  ;;  %v5563_v40 = vadd.f32 %v10358_v39, %v5527_v47 }
 0x47e   : > { %4435 = vadd.xlane.f32.xlu1 %v4434_v22  ;;  %v4455_v20 = vsel %vm4246_vm0, %v4389_v0, 0.0  ;;  %v5564_v25 = vadd.f32 %v10358_v39, %v5528_v8  ;;  %v10396_v62 = vsub.f32 %v10047_v12, %v4340_v57  ;;  %v5530_v34 = vmax.f32 %v10352_v37, 0.0 }
 0x47f   : > { %4456 = vadd.xlane.f32.xlu0 %v4455_v20  ;;  %8100 = vmatprep.subr.msk.bf16.mxu0 %vm4246_vm0, %v5653_v63  ;;  %v5710_v54 = vsel %vm4246_vm0, %v5645_v29, 0  ;;  %v4440_v63 = vsel %vm4246_vm0, %v4384_v9, 0.0  ;;  %v5654_v42 = vpack.c.bf16 %v5580_v53, %v5579_v3  ;;  %v5581_v24 = vadd.f32 %v10358_v39, %v5545_v33 }
 0x480   : > { %7837 = vmatpush3.bf16.xpose.msra.mxu0 %v5710_v54  ;;  %v5582_v55 = vadd.f32 %v10358_v39, %v5546_v7  ;;  %v5646_v47 = vpack.c.bf16 %v5564_v25, %v5563_v40  ;;  %v10407_v12 = vadd.f32 %v10094_v15, %v10277_v5  ;;  %v10411_v8 = vadd.f32 %v10100_v17, %v10277_v5 }
 0x481   : > { %8101 = vmatprep.subr.msk.bf16.mxu0 %vm4246_vm0, %v5654_v42  ;;  %v4446_v3 = vsel %vm4246_vm0, %v4386_v45, 0.0  ;;  %v4388_v57 = vmul.f32 %v10396_v62, %v10396_v62  ;;  %v5547_v0 = vmax.f32 %v10385_v31, 0.0  ;;  %v5548_v7 = vmax.f32 %v10391_v18, 0.0 }
 0x482   : > { %4441 = vadd.xlane.f32.xlu1 %v4440_v63  ;;  %v5655_v9 = vpack.c.bf16 %v5582_v55, %v5581_v24  ;;  %v5713_v13 = vsel %vm4246_vm0, %v5646_v47, 0  ;;  %v5565_v15 = vadd.f32 %v10358_v39, %v5529_v19  ;;  %v5566_v33 = vadd.f32 %v10358_v39, %v5530_v34 }
 0x483   : > { %v5531_v17 = vmax.f32 %v10407_v12, 0.0  ;;  %v4452_v22 = vsel %vm4246_vm0, %v4388_v57, 0.0  ;;  %v10425_v20 = vadd.f32 %v10277_v5, %v10167_v32  ;;  %v10429_v29 = vadd.f32 %v10277_v5, %v10173_v27 }
 0x484   : > { %v5532_v53 = vmax.f32 %v10411_v8, 0.0  ;;  %v5583_v19 = vadd.f32 %v10358_v39, %v5547_v0  ;;  %v5584_v54 = vadd.f32 %v10358_v39, %v5548_v7  ;;  %v5647_v40 = vpack.c.bf16 %v5566_v33, %v5565_v15 }
 0x485   : > { %v10437_v25 = vadd.f32 %v10277_v5, %v10115_v61  ;;  %v10441_v32 = vadd.f32 %v10277_v5, %v10119_v46  ;;  %v5549_v27 = vmax.f32 %v10425_v20, 0.0  ;;  %v5550_v63 = vmax.f32 %v10429_v29, 0.0 }
 0x486   : > { %4447 = vadd.xlane.f32.xlu1 %v4446_v3  ;;  %v5656_v45 = vpack.c.bf16 %v5584_v54, %v5583_v19  ;;  %v5716_v42 = vsel %vm4246_vm0, %v5647_v40, 0  ;;  %v5567_v34 = vadd.f32 %v10358_v39, %v5531_v17  ;;  %v5568_v24 = vadd.f32 %v10358_v39, %v5532_v53  ;;  %v4942_v3 = vld [vmem:[%s11737_s16 + $0xa8] sm:$0xff] }
 0x487   : > { %v5533_v55 = vmax.f32 %v10437_v25, 0.0  ;;  %v10451_v61 = vadd.f32 %v10165_v28, %v10277_v5  ;;  %v10455_v46 = vadd.f32 %v10171_v21, %v10277_v5  ;;  %v5534_v47 = vmax.f32 %v10441_v32, 0.0 }
 0x488   : > { %7839 = vmatpush3.bf16.xpose.msra.mxu0 %v5713_v13  ;;  %v5585_v57 = vadd.f32 %v10358_v39, %v5549_v27  ;;  %v5586_v0 = vadd.f32 %v10358_v39, %v5550_v63  ;;  %v5648_v7 = vpack.c.bf16 %v5568_v24, %v5567_v34  ;;  %v10466_v28 = vadd.f32 %v10113_v52, %v10277_v5  ;;  %v4775_v52 = vld [vmem:[%s11736_s15 + $0xb0] sm:$0xff]  ;;  %v4315_v34 = vpop.xlane.xlu1 %4314 }
 0x489   : > { %8102 = vmatprep.subr.msk.bf16.mxu0 %vm4246_vm0, %v5655_v9  ;;  %v10470_v21 = vadd.f32 %v10117_v23, %v10277_v5  ;;  %v5551_v9 = vmax.f32 %v10451_v61, 0.0  ;;  %v5552_v13 = vmax.f32 %v10455_v46, 0.0  ;;  %v5569_v17 = vadd.f32 %v10358_v39, %v5533_v55 }
 0x48a   : > { %4453 = vadd.xlane.f32.xlu1 %v4452_v22  ;;  %v5657_v15 = vpack.c.bf16 %v5586_v0, %v5585_v57  ;;  %v5719_v33 = vsel %vm4246_vm0, %v5648_v7, 0  ;;  %v5570_v22 = vadd.f32 %v10358_v39, %v5534_v47  ;;  %v5535_v53 = vmax.f32 %v10466_v28, 0.0 }
 0x48b   : > { %v10483_v23 = vadd.f32 %v10277_v5, %v10196_v50  ;;  %v10487_v19 = vadd.f32 %v10277_v5, %v10202_v59  ;;  %v5536_v54 = vmax.f32 %v10470_v21, 0.0  ;;  %v5587_v40 = vadd.f32 %v10358_v39, %v5551_v9 }
 0x48c   : > { %v5588_v27 = vadd.f32 %v10358_v39, %v5552_v13  ;;  %v5649_v63 = vpack.c.bf16 %v5570_v22, %v5569_v17  ;;  %v10499_v50 = vadd.f32 %v10277_v5, %v10133_v14  ;;  %v5571_v47 = vadd.f32 %v10358_v39, %v5535_v53 }
 0x48d   : > { %v5553_v59 = vmax.f32 %v10483_v23, 0.0  ;;  %v10513_v14 = vadd.f32 %v10200_v60, %v10277_v5 }
 0x48e   : > { %v5658_v24 = vpack.c.bf16 %v5588_v27, %v5587_v40  ;;  %v5722_v55 = vsel %vm4246_vm0, %v5649_v63, 0  ;;  %v5538_v0 = vmax.f32 %v10499_v50, 0.0 }
 0x48f   : > { %11905 = vst [vmem:[#allocation68_spill] sm:$0xff] %v10513_v14  ;;  %v5589_v7 = vadd.f32 %v10358_v39, %v5553_v59  ;;  %v5556_v17 = vmax.f32 %v10513_v14, 0.0 }
 0x490   : > { %7841 = vmatpush3.bf16.xpose.msra.mxu0 %v5716_v42  ;;  %v5554_v42 = vmax.f32 %v10487_v19, 0.0 }
 0x491   : > { %8103 = vmatprep.subr.msk.bf16.mxu0 %vm4246_vm0, %v5656_v45  ;;  %v10495_v45 = vadd.f32 %v10277_v5, %v10127_v38  ;;  %v10509_v38 = vadd.f32 %v10190_v1, %v10277_v5  ;;  %v10525_v1 = vadd.f32 %v10131_v51, %v10277_v5 }
 0x492   : > { %v5590_v9 = vadd.f32 %v10358_v39, %v5554_v42 }
 0x493   : > { %v5537_v57 = vmax.f32 %v10495_v45, 0.0  ;;  %v5555_v60 = vmax.f32 %v10509_v38, 0.0 }
 0x494   : > { %v5659_v22 = vpack.c.bf16 %v5590_v9, %v5589_v7 }
 0x495   : > { %5052 = vperm.xlu0 %8119, %v4942_v3   ;;  %v5572_v3 = vadd.f32 %v10358_v39, %v5536_v54  ;;  %v5573_v53 = vadd.f32 %v10358_v39, %v5537_v57  ;;  %v5574_v54 = vadd.f32 %v10358_v39, %v5538_v0  ;;  %v5591_v51 = vadd.f32 %v10358_v39, %v5555_v60 }
 0x496   : > { %v4342_v57 = vmul.f32 0.015625, %v4315_v34 }
 0x497   : > { %v5650_v13 = vpack.c.bf16 %v5572_v3, %v5571_v47  ;;  %v5651_v63 = vpack.c.bf16 %v5574_v54, %v5573_v53 }
 0x498   : > { %7843 = vmatpush3.bf16.xpose.msra.mxu0 %v5719_v33  ;;  %v10521_v33 = vadd.f32 %v10125_v44, %v10277_v5  ;;  %v5540_v44 = vmax.f32 %v10525_v1, 0.0  ;;  %v5592_v5 = vadd.f32 %v10358_v39, %v5556_v17 }
 0x499   : > { %8104 = vmatprep.subr.msk.bf16.mxu0 %vm4246_vm0, %v5657_v15  ;;  %v4318_v15 = vpop.xlane.xlu1 %4317 }
 0x49a   : > { %v4343_v40 = vmul.f32 0.015625, %v4318_v15  ;;  %v5539_v27 = vmax.f32 %v10521_v33, 0.0  ;;  %v5660_v42 = vpack.c.bf16 %v5592_v5, %v5591_v51  ;;  %v5576_v47 = vadd.f32 %v10358_v39, %v5540_v44 }
 0x49b   : > { %4889 = vperm.xlu1 %8118, %v4775_v52   ;;  %v5725_v52 = vsel %vm4246_vm0, %v5650_v13, 0 }
 0x49c   : > { %v10538_v59 = vsub.f32 %v10074_v49, %v4343_v40  ;;  %v10548_v49 = vsub.f32 %v10068_v26, %v4342_v57  ;;  %v11906_v40 = vld [vmem:[#allocation3_spill] sm:$0xff]  ;;  %v11909_v57 = vld [vmem:[#allocation48_spill] sm:$0xff] }
 0x49e   : > { %v4391_v3 = vmul.f32 %v10538_v59, %v10538_v59 }
 0x4a0   : > { %7845 = vmatpush3.bf16.xpose.msra.mxu0 %v5722_v55  ;;  %v5575_v55 = vadd.f32 %v10358_v39, %v5539_v27  ;;  %v4461_v7 = vsel %vm4246_vm0, %v4391_v3, 0.0  ;;  %v4390_v39 = vmul.f32 %v10548_v49, %v10548_v49  ;;  %v11907_v27 = vld [vmem:[#allocation26_spill] sm:$0xff] }
 0x4a1   : > { %8105 = vmatprep.subr.msk.bf16.mxu0 %vm4246_vm0, %v5658_v24  ;;  %v5728_v24 = vsel %vm4246_vm0, %v5651_v63, 0  ;;  %v4704_v44 = vrot.slane %v11907_v27, %v11906_v40  ;;  %v4776_v63 = vld [vmem:[%s11736_s15 + $0xb8] sm:$0xff] }
 0x4a2   : > { %v5652_v0 = vpack.c.bf16 %v5576_v47, %v5575_v55  ;;  %v4458_v34 = vsel %vm4246_vm0, %v4390_v39, 0.0  ;;  %v11908_v47 = vld [vmem:[#allocation29_spill] sm:$0xff] }
 0x4a3   : > { %v4747_v3 = vadd.f32 %v11908_v47, %v4704_v44  ;;  %v11913_v44 = vld [vmem:[#allocation51_spill] sm:$0xff] }
 0x4a4   : > { %v5731_v9 = vsel %vm4246_vm0, %v5652_v0, 0 }
 0x4a8   : > { %7847 = vmatpush3.bf16.xpose.msra.mxu0 %v5725_v52 }
 0x4a9   : > { %8106 = vmatprep.subr.msk.bf16.mxu0 %vm4246_vm0, %v5659_v22 }
 0x4b0   : > { %7849 = vmatpush3.bf16.xpose.msra.mxu0 %v5728_v24  ;;  %v10562_v24 = vld [vmem:[%s11731_s10] ss:$0 sm:$0xff] }
 0x4b1   : > { %8107 = vmatprep.subr.msk.bf16.mxu0 %vm4246_vm0, %v5660_v42 }
 0x4b4   : > { %4462 = vadd.xlane.f32.xlu0 %v4461_v7  ;;  %v4944_v7 = vld [vmem:[%s11737_s16 + $0xb8] sm:$0xff] }
 0x4b8   : > { %7851 = vmatpush3.bf16.xpose.msra.mxu0 %v5731_v9  ;;  %v10572_v9 = vld [vmem:[%s11732_s11] ss:$0 sm:$0xff] }
 0x4ba   : > { %v4394_v13 = vpop.xlane.xlu1 %4393 }
 0x4bb   : > { %v4464_v15 = vmul.f32 0.015625, %v4394_v13 }
 0x4bd   : > { %v4488_v60 = vadd.f32 1e-05, %v4464_v15  ;;  %v4943_v15 = vld [vmem:[%s11737_s16 + $0xb0] sm:$0xff] }
 0x4be   : > { %v4397_v17 = vpop.xlane.xlu1 %4396 }
 0x4bf   : > { %8488 = vrsqrt.f32 %v4488_v60  ;;  %v4465_v22 = vmul.f32 0.015625, %v4397_v17  ;;  %4459 = vadd.xlane.f32.xlu1 %v4458_v34  ;;  %v4752_v60 = vmax.f32 %v4747_v3, 0.0  ;;  %v11910_v17 = vld [vmem:[#allocation50_spill] sm:$0xff]  ;;  %v11916_v3 = vld [vmem:[#allocation5_spill] sm:$0xff] }
 0x4c1   : > { %v4489_v52 = vadd.f32 1e-05, %v4465_v22 }
 0x4c2   : > { %v4400_v53 = vpop.xlane.xlu1 %4399 }
 0x4c3   : > { %8490 = vrsqrt.f32 %v4489_v52  ;;  %v4466_v26 = vmul.f32 0.015625, %v4400_v53 }
 0x4c5   : > { %v4490_v54 = vadd.f32 1e-05, %v4466_v26 }
 0x4c6   : > { %v4403_v51 = vpop.xlane.xlu1 %4402 }
 0x4c7   : > { %8492 = vrsqrt.f32 %v4490_v54  ;;  %v4467_v5 = vmul.f32 0.015625, %v4403_v51  ;;  %v11912_v54 = vld [vmem:[#allocation2_spill] sm:$0xff] }
 0x4c8   : > { %v5596_v27 = vrot.slane %v4752_v60, %v11912_v54 }
 0x4c9   : > { %v8489_v42 = vpop.eup %8488  ;;  %v4491_v55 = vadd.f32 1e-05, %v4467_v5 }
 0x4ca   : > { %v4536_v0 = vmul.f32 %v8489_v42, %v11909_v57  ;;  %4894 = vperm.xlu0 %8119, %v4776_v63   ;;  %v11915_v63 = vld [vmem:[#allocation4_spill] sm:$0xff] }
 0x4cb   : > { %8494 = vrsqrt.f32 %v4491_v55 }
 0x4cc   : > { %v4567_v13 = vmul.f32 %v10562_v24, %v4536_v0 }
 0x4cd   : > { %v8491_v39 = vpop.eup %8490 }
 0x4ce   : > { %v4537_v34 = vmul.f32 %v8491_v39, %v11910_v17  ;;  %5062 = vperm.xlu0 %8119, %v4944_v7   ;;  %v10580_v22 = vadd.f32 %v10572_v9, %v4567_v13  ;;  %v11917_v13 = vld [vmem:[#allocation10_spill] sm:$0xff] }
 0x4d0   : > { %11911 = vst [vmem:[#allocation3_spill] sm:$0xff] %v10580_v22  ;;  %v4568_v52 = vmul.f32 %v10562_v24, %v4537_v34  ;;  %5057 = vperm.xlu1 %8118, %v4943_v15   ;;  %v11775_v53 = vmax.f32 %v10580_v22, 0.0 }
 0x4d1   : > { %v8493_v26 = vpop.eup %8492 }
 0x4d2   : > { %v4538_v51 = vmul.f32 %v8493_v26, %v11913_v44  ;;  %v10587_v5 = vadd.f32 %v10572_v9, %v4568_v52  ;;  %v4897_v42 = vmul.f32 %v11915_v63, %v11775_v53  ;;  %v11919_v52 = vld [vmem:[#allocation6_spill] sm:$0xff] }
 0x4d4   : > { %11914 = vst [vmem:[#allocation26_spill] sm:$0xff] %v10587_v5  ;;  %v4569_v55 = vmul.f32 %v10562_v24, %v4538_v51  ;;  %5598 = vrot.lane.b32.xlu1 %v5596_v27, %s8689_s1  ;;  %v11776_v47 = vmax.f32 %v10587_v5, 0.0  ;;  %v5065_v57 = vadd.f32 %v11916_v3, %v4897_v42  ;;  %v4415_v34 = vpop.xlane.xlu0 %4414  ;;  %v11920_v51 = vld [vmem:[#allocation33_spill] sm:$0xff]  ;;  %v11922_v42 = vld [vmem:[#allocation7_spill] sm:$0xff]  ;;  %v11925_v5 = vld [vmem:[#allocation14_spill] sm:$0xff] }
 0x4d5   : > { %v8495_v0 = vpop.eup %8494 }
 0x4d6   : > { %v4539_v7 = vmul.f32 %v8495_v0, %v10205_v48  ;;  %v4898_v39 = vmul.f32 %v11917_v13, %v11776_v47  ;;  %v5089_v15 = vmax.f32 %v5065_v57, 0.0  ;;  %v10601_v60 = vadd.f32 %v10572_v9, %v4569_v55  ;;  %v11923_v13 = vld [vmem:[#allocation8_spill] sm:$0xff] }
 0x4d7   : > { %v4471_v57 = vmul.f32 0.015625, %v4415_v34 }
 0x4d8   : > { %11918 = vst [vmem:[#allocation29_spill] sm:$0xff] %v10601_v60  ;;  %v4570_v17 = vmul.f32 %v10562_v24, %v4539_v7  ;;  %v5066_v26 = vadd.f32 %v11919_v52, %v4898_v39  ;;  %v11780_v27 = vmax.f32 %v10601_v60, 0.0  ;;  %v5117_v63 = vadd.f32 %v11920_v51, %v5089_v15  ;;  %v11924_v15 = vld [vmem:[#allocation12_spill] sm:$0xff] }
 0x4d9   : > { %v4495_v47 = vadd.f32 1e-05, %v4471_v57 }
 0x4da   : > { %v5090_v44 = vmax.f32 %v5066_v26, 0.0  ;;  %v10608_v48 = vadd.f32 %v10572_v9, %v4570_v17  ;;  %v4899_v3 = vmul.f32 %v11922_v42, %v11780_v27  ;;  %v5141_v52 = vmul.f32 0.125, %v5117_v63 }
 0x4db   : > { %8496 = vrsqrt.f32 %v4495_v47 }
 0x4dc   : > { %11921 = vst [vmem:[#allocation48_spill] sm:$0xff] %v10608_v48  ;;  %v4421_v55 = vpop.xlane.xlu0 %4420  ;;  %v5118_v0 = vadd.f32 %v11920_v51, %v5090_v44  ;;  %v11781_v7 = vmax.f32 %v10608_v48, 0.0  ;;  %v5067_v39 = vadd.f32 %v11923_v13, %v4899_v3 }
 0x4dd   : > { %v4473_v22 = vmul.f32 0.015625, %v4421_v55  ;;  %v11926_v55 = vld [vmem:[#allocation52_spill] sm:$0xff] }
 0x4de   : > { %v5142_v53 = vmul.f32 0.125, %v5118_v0  ;;  %v4900_v26 = vmul.f32 %v11924_v15, %v11781_v7  ;;  %v5091_v17 = vmax.f32 %v5067_v39, 0.0  ;;  %v11927_v15 = vld [vmem:[#allocation53_spill] sm:$0xff] }
 0x4df   : > { %v4497_v27 = vadd.f32 1e-05, %v4473_v22 }
 0x4e0   : > { %v5633_v60 = vpack.c.bf16 %v5142_v53, %v5141_v52  ;;  %v5068_v42 = vadd.f32 %v11925_v5, %v4900_v26  ;;  %v5119_v44 = vadd.f32 %v11920_v51, %v5091_v17 }
 0x4e1   : > { %8498 = vrsqrt.f32 %v4497_v27 }
 0x4e2   : > { %7852 = vmatprep.mubr.msk.bf16.mxu0 %vm4246_vm0, %v5633_v60  ;;  %v5092_v34 = vmax.f32 %v5068_v42, 0.0  ;;  %v5143_v3 = vmul.f32 0.125, %v5119_v44 }
 0x4e3   : > { %7853 = vmatmul.mubr.msk.bf16.vlgmr.msra.gmra.mrb[196].mxu0 %vm4246_vm0, %v5633_v60 }
 0x4e4   : > { %v5120_v63 = vadd.f32 %v11920_v51, %v5092_v34  ;;  %v4427_v57 = vpop.xlane.xlu0 %4426 }
 0x4e5   : > { %v8497_v53 = vpop.eup %8496  ;;  %v4475_v5 = vmul.f32 0.015625, %v4427_v57 }
 0x4e6   : > { %v5144_v0 = vmul.f32 0.125, %v5120_v63  ;;  %v4543_v39 = vmul.f32 %v8497_v53, %v11926_v55 }
 0x4e7   : > { %v4499_v47 = vadd.f32 1e-05, %v4475_v5 }
 0x4e8   : > { %v5634_v13 = vpack.c.bf16 %v5144_v0, %v5143_v3  ;;  %v4574_v60 = vmul.f32 %v10562_v24, %v4543_v39 }
 0x4e9   : > { %8500 = vrsqrt.f32 %v4499_v47 }
 0x4ea   : > { %7854 = vmatprep.mubr.msk.bf16.mxu0 %vm4246_vm0, %v5634_v13  ;;  %v10631_v0 = vadd.f32 %v10572_v9, %v4574_v60  ;;  %v11930_v60 = vld [vmem:[#allocation17_spill] sm:$0xff] }
 0x4eb   : > { %7855 = vmatmul.mubr.msk.bf16.gmra.mrb[200].mxu0 %vm4246_vm0, %v5634_v13  ;;  %v8499_v52 = vpop.eup %8498 }
 0x4ec   : > { %v4545_v26 = vmul.f32 %v8499_v52, %v11927_v15  ;;  %v4433_v17 = vpop.xlane.xlu0 %4432  ;;  %11928 = vst [vmem:[#allocation50_spill] sm:$0xff] %v10631_v0  ;;  %v11782_v55 = vmax.f32 %v10631_v0, 0.0 }
 0x4ed   : > { %v4477_v34 = vmul.f32 0.015625, %v4433_v17 }
 0x4ee   : > { %v4576_v63 = vmul.f32 %v10562_v24, %v4545_v26  ;;  %v4904_v17 = vmul.f32 %v11930_v60, %v11782_v55 }
 0x4ef   : > { %v4501_v57 = vadd.f32 1e-05, %v4477_v34 }
 0x4f0   : > { %v10635_v39 = vadd.f32 %v10572_v9, %v4576_v63 }
 0x4f2   : > { %11929 = vst [vmem:[#allocation2_spill] sm:$0xff] %v10635_v39 }
 0x4f3   : > { %v4406_v22 = vpop.xlane.xlu1 %4405 }
 0x4f4   : > { %v4468_v42 = vmul.f32 0.015625, %v4406_v22  ;;  %v4439_v52 = vpop.xlane.xlu0 %4438  ;;  %v8501_v22 = vpop.eup %8500 }
 0x4f6   : > { %v4492_v27 = vadd.f32 1e-05, %v4468_v42  ;;  %v11785_v42 = vmax.f32 %v10635_v39, 0.0 }
 0x4f7   : > { %v4409_v44 = vpop.xlane.xlu1 %4408 }
 0x4f8   : > { %8502 = vrsqrt.f32 %v4492_v27  ;;  %v4469_v3 = vmul.f32 0.015625, %v4409_v44  ;;  %v4479_v27 = vmul.f32 0.015625, %v4439_v52  ;;  %v11931_v44 = vld [vmem:[#allocation54_spill] sm:$0xff] }
 0x4fa   : > { %v4493_v13 = vadd.f32 1e-05, %v4469_v3  ;;  %v4547_v3 = vmul.f32 %v8501_v22, %v11931_v44  ;;  %v4503_v55 = vadd.f32 1e-05, %v4479_v27 }
 0x4fb   : > { %v4412_v53 = vpop.xlane.xlu1 %4411 }
 0x4fc   : > { %8504 = vrsqrt.f32 %v4493_v13  ;;  %v4470_v5 = vmul.f32 0.015625, %v4412_v53  ;;  %v4578_v52 = vmul.f32 %v10562_v24, %v4547_v3 }
 0x4fd   : > { %8506 = vrsqrt.f32 %v4501_v57  ;;  %v11932_v57 = vld [vmem:[#allocation19_spill] sm:$0xff] }
 0x4fe   : > { %v4494_v47 = vadd.f32 1e-05, %v4470_v5  ;;  %v5072_v7 = vadd.f32 %v11932_v57, %v4904_v17 }
 0x4ff   : > { %v4418_v15 = vpop.xlane.xlu1 %4417 }
 0x500   : > { %8508 = vrsqrt.f32 %v4494_v47  ;;  %v4472_v26 = vmul.f32 0.015625, %v4418_v15  ;;  %v11933_v47 = vld [vmem:[#allocation20_spill] sm:$0xff]  ;;  %v5096_v44 = vmax.f32 %v5072_v7, 0.0  ;;  %v11938_v7 = vld [vmem:[#allocation9_spill] sm:$0xff] }
 0x501   : > { %v4906_v15 = vmul.f32 %v11933_v47, %v11785_v42 }
 0x502   : > { %v8503_v34 = vpop.eup %8502  ;;  %v4496_v13 = vadd.f32 1e-05, %v4472_v26 }
 0x503   : > { %v4540_v63 = vmul.f32 %v8503_v34, %v10241_v11  ;;  %v4424_v53 = vpop.xlane.xlu1 %4423  ;;  %v4445_v34 = vpop.xlane.xlu0 %4444 }
 0x504   : > { %8510 = vrsqrt.f32 %v4496_v13  ;;  %v4474_v5 = vmul.f32 0.015625, %v4424_v53  ;;  %v11935_v13 = vld [vmem:[#allocation23_spill] sm:$0xff]  ;;  %v4481_v47 = vmul.f32 0.015625, %v4445_v34  ;;  %v11939_v34 = vld [vmem:[#allocation13_spill] sm:$0xff] }
 0x505   : > { %v4571_v60 = vmul.f32 %v10562_v24, %v4540_v63  ;;  %v5074_v53 = vadd.f32 %v11935_v13, %v4906_v15 }
 0x506   : > { %v8505_v0 = vpop.eup %8504  ;;  %v4498_v48 = vadd.f32 1e-05, %v4474_v5  ;;  %v4505_v39 = vadd.f32 1e-05, %v4481_v47 }
 0x507   : > { %v4541_v22 = vmul.f32 %v8505_v0, %v10238_v16  ;;  %v4430_v26 = vpop.xlane.xlu1 %4429  ;;  %v10651_v11 = vadd.f32 %v10572_v9, %v4571_v60  ;;  %v8507_v57 = vpop.eup %8506  ;;  %v10657_v16 = vadd.f32 %v10572_v9, %v4578_v52 }
 0x508   : > { %8512 = vrsqrt.f32 %v4498_v48  ;;  %v4476_v17 = vmul.f32 0.015625, %v4430_v26  ;;  %v5098_v26 = vmax.f32 %v5074_v53, 0.0  ;;  %v4451_v47 = vpop.xlane.xlu0 %4450 }
 0x509   : > { %11934 = vst [vmem:[#allocation51_spill] sm:$0xff] %v10651_v11  ;;  %8514 = vrsqrt.f32 %v4503_v55  ;;  %v4572_v27 = vmul.f32 %v10562_v24, %v4541_v22  ;;  %v11787_v63 = vmax.f32 %v10651_v11, 0.0  ;;  %11936 = vst [vmem:[#allocation4_spill] sm:$0xff] %v10657_v16  ;;  %v5124_v22 = vadd.f32 %v11920_v51, %v5096_v44  ;;  %v11940_v44 = vld [vmem:[#allocation11_spill] sm:$0xff] }
 0x50a   : > { %v8509_v3 = vpop.eup %8508  ;;  %v4500_v5 = vadd.f32 1e-05, %v4476_v17  ;;  %v4549_v17 = vmul.f32 %v8507_v57, %v10232_v30  ;;  %v11790_v42 = vmax.f32 %v10657_v16, 0.0 }
 0x50b   : > { %v4542_v0 = vmul.f32 %v8509_v3, %v10251_v35  ;;  %v4436_v60 = vpop.xlane.xlu1 %4435  ;;  %v10661_v48 = vadd.f32 %v10572_v9, %v4572_v27  ;;  %v4901_v55 = vmul.f32 %v11938_v7, %v11787_v63 }
 0x50c   : > { %8516 = vrsqrt.f32 %v4500_v5  ;;  %v4478_v15 = vmul.f32 0.015625, %v4436_v60 }
 0x50d   : > { %11937 = vst [vmem:[#allocation5_spill] sm:$0xff] %v10661_v48  ;;  %v4573_v52 = vmul.f32 %v10562_v24, %v4542_v0  ;;  %v11788_v35 = vmax.f32 %v10661_v48, 0.0  ;;  %v5069_v13 = vadd.f32 %v11939_v34, %v4901_v55  ;;  %v10679_v0 = vmul.f32 0.125, %v5124_v22  ;;  %v11942_v34 = vld [vmem:[#allocation16_spill] sm:$0xff] }
 0x50e   : > { %v8511_v3 = vpop.eup %8510  ;;  %v4502_v27 = vadd.f32 1e-05, %v4478_v15  ;;  %v4580_v55 = vmul.f32 %v10562_v24, %v4549_v17  ;;  %v11943_v22 = vld [vmem:[#allocation24_spill] sm:$0xff] }
 0x50f   : > { %v4544_v7 = vmul.f32 %v8511_v3, %v10258_v56  ;;  %v4442_v5 = vpop.xlane.xlu1 %4441  ;;  %v4902_v53 = vmul.f32 %v11940_v44, %v11788_v35  ;;  %v5093_v60 = vmax.f32 %v5069_v13, 0.0  ;;  %v10677_v57 = vadd.f32 %v10572_v9, %v4573_v52 }
 0x510   : > { %8518 = vrsqrt.f32 %v4502_v27  ;;  %v4480_v30 = vmul.f32 0.015625, %v4442_v5  ;;  %v10685_v3 = vadd.f32 %v11920_v51, %v5098_v26  ;;  %v4908_v52 = vmul.f32 %v11943_v22, %v11790_v42 }
 0x511   : > { %11941 = vst [vmem:[#allocation10_spill] sm:$0xff] %v10677_v57  ;;  %v4575_v15 = vmul.f32 %v10562_v24, %v4544_v7  ;;  %v5070_v56 = vadd.f32 %v11942_v34, %v4902_v53  ;;  %v5121_v13 = vadd.f32 %v11920_v51, %v5093_v60  ;;  %v11793_v27 = vmax.f32 %v10677_v57, 0.0  ;;  %v11944_v60 = vld [vmem:[#allocation15_spill] sm:$0xff] }
 0x512   : > { %v8513_v63 = vpop.eup %8512  ;;  %v4504_v44 = vadd.f32 1e-05, %v4480_v30  ;;  %8520 = vrsqrt.f32 %v4505_v39  ;;  %v4483_v26 = vmul.f32 0.015625, %v4451_v47 }
 0x513   : > { %v8515_v5 = vpop.eup %8514  ;;  %v4546_v17 = vmul.f32 %v8513_v63, %v10267_v6  ;;  %v4448_v7 = vpop.xlane.xlu1 %4447  ;;  %v5094_v35 = vmax.f32 %v5070_v56, 0.0  ;;  %v10694_v53 = vadd.f32 %v10572_v9, %v4575_v15  ;;  %v4903_v34 = vmul.f32 %v11944_v60, %v11793_v27  ;;  %v11946_v56 = vld [vmem:[#allocation56_spill] sm:$0xff] }
 0x514   : > { %8522 = vrsqrt.f32 %v4504_v44  ;;  %v4482_v30 = vmul.f32 0.015625, %v4448_v7  ;;  %v10703_v6 = vadd.f32 %v10572_v9, %v4580_v55  ;;  %v4551_v15 = vmul.f32 %v8515_v5, %v11946_v56  ;;  %v11947_v44 = vld [vmem:[#allocation18_spill] sm:$0xff] }
 0x515   : > { %v4577_v16 = vmul.f32 %v10562_v24, %v4546_v17  ;;  %v5122_v22 = vadd.f32 %v11920_v51, %v5094_v35  ;;  %v11805_v39 = vmax.f32 %v10694_v53, 0.0  ;;  %v5145_v47 = vmul.f32 0.125, %v5121_v13  ;;  %v11948_v17 = vld [vmem:[#allocation21_spill] sm:$0xff]  ;;  %v4457_v13 = vpop.xlane.xlu0 %4456 }
 0x516   : > { %11945 = vst [vmem:[#allocation6_spill] sm:$0xff] %v10703_v6  ;;  %v8517_v63 = vpop.eup %8516  ;;  %v4506_v42 = vadd.f32 1e-05, %v4482_v30  ;;  %v5071_v7 = vadd.f32 %v11947_v44, %v4903_v34  ;;  %v4507_v55 = vadd.f32 1e-05, %v4483_v26  ;;  %v11950_v34 = vld [vmem:[#allocation22_spill] sm:$0xff] }
 0x517   : > { %v4548_v57 = vmul.f32 %v8517_v63, %v10285_v2  ;;  %v4454_v11 = vpop.xlane.xlu1 %4453  ;;  %v5146_v60 = vmul.f32 0.125, %v5122_v22  ;;  %v4905_v35 = vmul.f32 %v11948_v17, %v11805_v39  ;;  %v10712_v27 = vadd.f32 %v10572_v9, %v4577_v16  ;;  %v11951_v17 = vld [vmem:[#allocation27_spill] sm:$0xff] }
 0x518   : > { %8524 = vrsqrt.f32 %v4506_v42  ;;  %v4484_v48 = vmul.f32 0.015625, %v4454_v11  ;;  %v5095_v14 = vmax.f32 %v5071_v7, 0.0  ;;  %v4582_v63 = vmul.f32 %v10562_v24, %v4551_v15 }
 0x519   : > { %11949 = vst [vmem:[#allocation33_spill] sm:$0xff] %v10712_v27  ;;  %v4579_v5 = vmul.f32 %v10562_v24, %v4548_v57  ;;  %v5635_v30 = vpack.c.bf16 %v5146_v60, %v5145_v47  ;;  %v5073_v56 = vadd.f32 %v11950_v34, %v4905_v35  ;;  %v11800_v2 = vmax.f32 %v10712_v27, 0.0  ;;  %v11952_v57 = vld [vmem:[#allocation25_spill] sm:$0xff]  ;;  %v11954_v34 = vld [vmem:[#allocation28_spill] sm:$0xff] }
 0x51a   : > { %v8519_v22 = vpop.eup %8518  ;;  %v5123_v44 = vadd.f32 %v11920_v51, %v5095_v14  ;;  %v5076_v16 = vadd.f32 %v11951_v17, %v4908_v52  ;;  %v11797_v26 = vmax.f32 %v10703_v6, 0.0  ;;  %8526 = vrsqrt.f32 %v4507_v55 }
 0x51b   : > { %v4550_v42 = vmul.f32 %v8519_v22, %v10315_v41  ;;  %7856 = vmatprep.mubr.msk.bf16.mxu0 %vm4246_vm0, %v5635_v30  ;;  %v5097_v11 = vmax.f32 %v5073_v56, 0.0  ;;  %v4907_v47 = vmul.f32 %v11952_v57, %v11800_v2  ;;  %v10727_v7 = vadd.f32 %v10572_v9, %v4579_v5 }
 0x51c   : > { %v4485_v15 = vmul.f32 0.015625, %v4457_v13  ;;  %v4508_v60 = vadd.f32 1e-05, %v4484_v48  ;;  %7857 = vmatmul.mubr.msk.bf16.gmra.mrb[204].mxu0 %vm4246_vm0, %v5635_v30  ;;  %v5147_v14 = vmul.f32 0.125, %v5123_v44  ;;  %v8521_v52 = vpop.eup %8520  ;;  %v11955_v48 = vld [vmem:[#allocation30_spill] sm:$0xff] }
 0x51d   : > { %11953 = vst [vmem:[#allocation7_spill] sm:$0xff] %v10727_v7  ;;  %v4581_v35 = vmul.f32 %v10562_v24, %v4550_v42  ;;  %v5125_v41 = vadd.f32 %v11920_v51, %v5097_v11  ;;  %v5075_v56 = vadd.f32 %v11954_v34, %v4907_v47  ;;  %v11796_v22 = vmax.f32 %v10727_v7, 0.0  ;;  %v11956_v11 = vld [vmem:[#allocation31_spill] sm:$0xff] }
 0x51e   : > { %v8523_v17 = vpop.eup %8522  ;;  %v5636_v57 = vpack.c.bf16 %v10679_v0, %v5147_v14  ;;  %v4509_v44 = vadd.f32 1e-05, %v4485_v15  ;;  %v5150_v42 = vmul.f32 0.125, %v10685_v3  ;;  %v4910_v47 = vmul.f32 %v11956_v11, %v11797_v26  ;;  %v11958_v0 = vld [vmem:[#allocation57_spill] sm:$0xff] }
 0x51f   : > { %v4552_v5 = vmul.f32 %v8523_v17, %v10336_v58  ;;  %v5149_v55 = vmul.f32 0.125, %v5125_v41  ;;  %v5099_v13 = vmax.f32 %v5075_v56, 0.0  ;;  %v4909_v30 = vmul.f32 %v11955_v48, %v11796_v22  ;;  %v11960_v48 = vld [vmem:[#allocation34_spill] sm:$0xff] }
 0x520   : > { %7858 = vmatprep.mubr.msk.bf16.mxu0 %vm4246_vm0, %v5636_v57  ;;  %v10745_v34 = vadd.f32 %v10572_v9, %v4581_v35  ;;  %v4553_v58 = vmul.f32 %v8521_v52, %v11958_v0  ;;  %8528 = vrsqrt.f32 %v4508_v60  ;;  %v5100_v14 = vmax.f32 %v5076_v16, 0.0  ;;  %v11961_v35 = vld [vmem:[#allocation32_spill] sm:$0xff] }
 0x521   : > { %v10749_v41 = vadd.f32 %v10572_v9, %v4582_v63  ;;  %v4583_v15 = vmul.f32 %v10562_v24, %v4552_v5  ;;  %v5637_v17 = vpack.c.bf16 %v5150_v42, %v5149_v55  ;;  %v5127_v3 = vadd.f32 %v11920_v51, %v5099_v13  ;;  %v11964_v0 = vld [vmem:[#allocation64_spill] sm:$0xff] }
 0x522   : > { %11957 = vst [vmem:[#allocation8_spill] sm:$0xff] %v10745_v34  ;;  %v8525_v56 = vpop.eup %8524  ;;  %v5077_v22 = vadd.f32 %v11960_v48, %v4909_v30  ;;  %v11799_v11 = vmax.f32 %v10745_v34, 0.0  ;;  %8530 = vrsqrt.f32 %v4509_v44  ;;  %v5078_v52 = vadd.f32 %v11961_v35, %v4910_v47  ;;  %v11962_v44 = vld [vmem:[#allocation35_spill] sm:$0xff] }
 0x523   : > { %11959 = vst [vmem:[#allocation12_spill] sm:$0xff] %v10749_v41  ;;  %v4584_v16 = vmul.f32 %v10562_v24, %v4553_v58  ;;  %v5128_v63 = vadd.f32 %v11920_v51, %v5100_v14  ;;  %v11798_v60 = vmax.f32 %v10749_v41, 0.0  ;;  %v4554_v55 = vmul.f32 %v8525_v56, %v10375_v4  ;;  %v11965_v14 = vld [vmem:[#allocation36_spill] sm:$0xff] }
 0x524   : > { %7859 = vmatmul.mubr.msk.bf16.gmra.mrb[208].mxu0 %vm4246_vm0, %v5636_v57  ;;  %v8527_v5 = vpop.eup %8526  ;;  %v5151_v13 = vmul.f32 0.125, %v5127_v3  ;;  %v5101_v30 = vmax.f32 %v5077_v22, 0.0  ;;  %v4911_v42 = vmul.f32 %v11962_v44, %v11799_v11  ;;  %v10766_v57 = vadd.f32 %v10572_v9, %v4583_v15  ;;  %v11967_v44 = vld [vmem:[#allocation38_spill] sm:$0xff] }
 0x525   : > { %7860 = vmatprep.mubr.msk.bf16.mxu0 %vm4246_vm0, %v5637_v17  ;;  %v5102_v47 = vmax.f32 %v5078_v52, 0.0  ;;  %v4555_v58 = vmul.f32 %v8527_v5, %v11964_v0  ;;  %v5152_v48 = vmul.f32 0.125, %v5128_v63  ;;  %v4912_v35 = vmul.f32 %v11965_v14, %v11798_v60 }
 0x526   : > { %11963 = vst [vmem:[#allocation14_spill] sm:$0xff] %v10766_v57  ;;  %v10773_v26 = vadd.f32 %v10572_v9, %v4584_v16  ;;  %v4585_v4 = vmul.f32 %v10562_v24, %v4554_v55  ;;  %v5129_v3 = vadd.f32 %v11920_v51, %v5101_v30  ;;  %v5079_v15 = vadd.f32 %v11967_v44, %v4911_v42  ;;  %v11968_v16 = vld [vmem:[#allocation37_spill] sm:$0xff]  ;;  %v11969_v42 = vld [vmem:[#allocation39_spill] sm:$0xff] }
 0x527   : > { %v5638_v56 = vpack.c.bf16 %v5152_v48, %v5151_v13  ;;  %v11804_v52 = vmax.f32 %v10766_v57, 0.0  ;;  %v5130_v63 = vadd.f32 %v11920_v51, %v5102_v47  ;;  %v4586_v5 = vmul.f32 %v10562_v24, %v4555_v58  ;;  %v11971_v58 = vld [vmem:[#allocation67_spill] sm:$0xff] }
 0x528   : > { %11966 = vst [vmem:[#allocation52_spill] sm:$0xff] %v10773_v26  ;;  %v5080_v0 = vadd.f32 %v11968_v16, %v4912_v35  ;;  %v11801_v55 = vmax.f32 %v10773_v26, 0.0  ;;  %v5153_v30 = vmul.f32 0.125, %v5129_v3  ;;  %v5103_v48 = vmax.f32 %v5079_v15, 0.0  ;;  %v11972_v35 = vld [vmem:[#allocation40_spill] sm:$0xff]  ;;  %v11974_v15 = vld [vmem:[#allocation41_spill] sm:$0xff] }
 0x529   : > { %v4913_v44 = vmul.f32 %v11969_v42, %v11804_v52  ;;  %v5154_v47 = vmul.f32 0.125, %v5130_v63  ;;  %v10797_v2 = vadd.f32 %v10572_v9, %v4586_v5 }
 0x52a   : > { %v8529_v22 = vpop.eup %8528  ;;  %v5104_v11 = vmax.f32 %v5080_v0, 0.0  ;;  %v4914_v16 = vmul.f32 %v11972_v35, %v11801_v55  ;;  %v5131_v3 = vadd.f32 %v11920_v51, %v5103_v48  ;;  %v11976_v48 = vld [vmem:[#allocation43_spill] sm:$0xff] }
 0x52b   : > { %v4556_v13 = vmul.f32 %v8529_v22, %v10396_v62  ;;  %11973 = vst [vmem:[#allocation17_spill] sm:$0xff] %v10797_v2  ;;  %v5639_v22 = vpack.c.bf16 %v5154_v47, %v5153_v30  ;;  %v5081_v42 = vadd.f32 %v11974_v15, %v4913_v44 }
 0x52c   : > { %7861 = vmatmul.mubr.msk.bf16.gmra.mrb[212].mxu0 %vm4246_vm0, %v5637_v17  ;;  %v8531_v14 = vpop.eup %8530  ;;  %v10790_v17 = vadd.f32 %v10572_v9, %v4585_v4  ;;  %v5132_v0 = vadd.f32 %v11920_v51, %v5104_v11  ;;  %v11979_v11 = vld [vmem:[#allocation44_spill] sm:$0xff] }
 0x52d   : > { %7862 = vmatprep.mubr.msk.bf16.mxu0 %vm4246_vm0, %v5638_v56  ;;  %v4557_v60 = vmul.f32 %v8531_v14, %v11971_v58  ;;  %v4587_v62 = vmul.f32 %v10562_v24, %v4556_v13  ;;  %v11975_v14 = vld [vmem:[#allocation42_spill] sm:$0xff]  ;;  %v11803_v58 = vmax.f32 %v10797_v2, 0.0  ;;  %v5155_v13 = vmul.f32 0.125, %v5131_v3 }
 0x52e   : > { %11970 = vst [vmem:[#allocation53_spill] sm:$0xff] %v10790_v17  ;;  %v11802_v4 = vmax.f32 %v10790_v17, 0.0  ;;  %v5082_v5 = vadd.f32 %v11975_v14, %v4914_v16  ;;  %v5105_v30 = vmax.f32 %v5081_v42, 0.0  ;;  %v11980_v42 = vld [vmem:[#allocation45_spill] sm:$0xff] }
 0x52f   : > { %v4588_v63 = vmul.f32 %v10562_v24, %v4557_v60  ;;  %v10813_v47 = vadd.f32 %v10572_v9, %v4587_v62  ;;  %v5156_v60 = vmul.f32 0.125, %v5132_v0  ;;  %v4916_v16 = vmul.f32 %v11979_v11, %v11803_v58  ;;  %v11981_v0 = vld [vmem:[#allocation46_spill] sm:$0xff] }
 0x530   : > { %v4915_v44 = vmul.f32 %v11976_v48, %v11802_v4  ;;  %v5106_v35 = vmax.f32 %v5082_v5, 0.0  ;;  %v5133_v3 = vadd.f32 %v11920_v51, %v5105_v30  ;;  %v5053_v48 = vpop.permute.xlu0 %5052 }
 0x531   : > { %11977 = vst [vmem:[#allocation54_spill] sm:$0xff] %v10813_v47  ;;  %v5640_v15 = vpack.c.bf16 %v5156_v60, %v5155_v13  ;;  %v11811_v55 = vmax.f32 %v10813_v47, 0.0  ;;  %v5084_v5 = vadd.f32 %v11981_v0, %v4916_v16  ;;  %v11982_v13 = vld [vmem:[#allocation47_spill] sm:$0xff] }
 0x532   : > { %v5083_v14 = vadd.f32 %v11980_v42, %v4915_v44  ;;  %v5157_v4 = vmul.f32 0.125, %v5133_v3  ;;  %v11983_v44 = vld [vmem:[#allocation55_spill] sm:$0xff] }
 0x533   : > { %v4917_v30 = vmul.f32 %v11982_v13, %v11811_v55  ;;  %v5108_v58 = vmax.f32 %v5084_v5, 0.0 }
 0x534   : > { %7863 = vmatmul.mubr.msk.bf16.gmra.mrb[216].mxu0 %vm4246_vm0, %v5638_v56  ;;  %v10816_v56 = vadd.f32 %v10572_v9, %v4588_v63  ;;  %v5134_v63 = vadd.f32 %v11920_v51, %v5106_v35  ;;  %v5107_v11 = vmax.f32 %v5083_v14, 0.0  ;;  %v11984_v35 = vld [vmem:[#allocation49_spill] sm:$0xff] }
 0x535   : > { %7864 = vmatprep.mubr.msk.bf16.mxu0 %vm4246_vm0, %v5639_v22  ;;  %v5085_v17 = vadd.f32 %v11984_v35, %v4917_v30  ;;  %v5136_v14 = vadd.f32 %v11920_v51, %v5108_v58 }
 0x536   : > { %11978 = vst [vmem:[#allocation19_spill] sm:$0xff] %v10816_v56  ;;  %v11810_v62 = vmax.f32 %v10816_v56, 0.0  ;;  %v5158_v42 = vmul.f32 0.125, %v5134_v63  ;;  %v5135_v2 = vadd.f32 %v11920_v51, %v5107_v11 }
 0x537   : > { %v5109_v13 = vmax.f32 %v5085_v17, 0.0  ;;  %v5160_v5 = vmul.f32 0.125, %v5136_v14 }
 0x538   : > { %v4918_v60 = vmul.f32 %v11983_v44, %v11810_v62  ;;  %v5641_v39 = vpack.c.bf16 %v5158_v42, %v5157_v4  ;;  %v5159_v0 = vmul.f32 0.125, %v5135_v2  ;;  %v10840_v44 = vpop.permute.xlu1 %4889 }
 0x539   : > { %v5137_v11 = vadd.f32 %v11920_v51, %v5109_v13 }
 0x53a   : > { %v5086_v3 = vadd.f32 %v5053_v48, %v4918_v60  ;;  %v5642_v4 = vpack.c.bf16 %v5160_v5, %v5159_v0  ;;  %v11987_v0 = vld [vmem:[#allocation63_spill] sm:$0xff]  ;;  %v11989_v5 = vld [vmem:[#allocation61_spill] sm:$0xff] }
 0x53b   : > { %v5161_v58 = vmul.f32 0.125, %v5137_v11 }
 0x53c   : > { %7865 = vmatmul.mubr.msk.bf16.gmra.mrb[220].mxu0 %vm4246_vm0, %v5639_v22  ;;  %v5110_v63 = vmax.f32 %v5086_v3, 0.0  ;;  %v11986_v3 = vld [vmem:[#allocation62_spill] sm:$0xff] }
 0x53d   : > { %7866 = vmatprep.mubr.msk.bf16.mxu0 %vm4246_vm0, %v5640_v15 }
 0x541   : > { %v4463_v22 = vpop.xlane.xlu0 %4462 }
 0x542   : > { %v4487_v52 = vmul.f32 0.015625, %v4463_v22 }
 0x544   : > { %v4511_v16 = vadd.f32 1e-05, %v4487_v52  ;;  %7867 = vmatmul.mubr.msk.bf16.gmra.mrb[224].mxu0 %vm4246_vm0, %v5640_v15  ;;  %v5138_v15 = vadd.f32 %v11920_v51, %v5110_v63 }
 0x545   : > { %7868 = vmatprep.mubr.msk.bf16.mxu0 %vm4246_vm0, %v5641_v39 }
 0x546   : > { %8532 = vrsqrt.f32 %v4511_v16  ;;  %v5162_v17 = vmul.f32 0.125, %v5138_v15 }
 0x548   : > { %v5643_v35 = vpack.c.bf16 %v5162_v17, %v5161_v58  ;;  %v11992_v17 = vld [vmem:[#allocation58_spill] sm:$0xff] }
 0x54c   : > { %7869 = vmatmul.mubr.msk.bf16.gmra.mrb[228].mxu0 %vm4246_vm0, %v5641_v39  ;;  %v4460_v52 = vpop.xlane.xlu1 %4459 }
 0x54d   : > { %v4486_v48 = vmul.f32 0.015625, %v4460_v52  ;;  %7870 = vmatprep.mubr.msk.bf16.mxu0 %vm4246_vm0, %v5642_v4  ;;  %v11990_v52 = vld [vmem:[#allocation65_spill] sm:$0xff] }
 0x54f   : > { %v4510_v30 = vadd.f32 1e-05, %v4486_v48  ;;  %v11991_v48 = vld [vmem:[#allocation66_spill] sm:$0xff] }
 0x550   : > { %v8533_v60 = vpop.eup %8532  ;;  %v5058_v2 = vpop.permute.xlu1 %5057 }
 0x551   : > { %v4559_v22 = vmul.f32 %v8533_v60, %v10538_v59  ;;  %8534 = vrsqrt.f32 %v4510_v30  ;;  %v11988_v59 = vld [vmem:[#allocation59_spill] sm:$0xff] }
 0x553   : > { %v4590_v42 = vmul.f32 %v10562_v24, %v4559_v22 }
 0x554   : > { %7871 = vmatmul.mubr.msk.bf16.gmra.mrb[232].mxu0 %vm4246_vm0, %v5642_v4  ;;  %v10849_v39 = vpop.permute.xlu1 %5598 }
 0x555   : > { %v10852_v16 = vadd.f32 %v10572_v9, %v4590_v42  ;;  %7872 = vmatprep.mubr.msk.bf16.mxu0 %vm4246_vm0, %v5643_v35  ;;  %v5617_v14 = vadd.f32 %v10849_v39, %v11986_v3  ;;  %v5618_v13 = vadd.f32 %v10849_v39, %v11987_v0  ;;  %v5601_v63 = vadd.f32 %v10849_v39, %v11988_v59  ;;  %v11993_v42 = vld [vmem:[#allocation60_spill] sm:$0xff]  ;;  %v4895_v0 = vpop.permute.xlu0 %4894 }
 0x556   : > { %v5602_v11 = vadd.f32 %v10849_v39, %v11989_v5  ;;  %v5619_v15 = vadd.f32 %v10849_v39, %v11990_v52  ;;  %v5620_v30 = vadd.f32 %v10849_v39, %v11991_v48  ;;  %v5603_v22 = vadd.f32 %v10849_v39, %v11992_v17 }
 0x557   : > { %11985 = vst [vmem:[#allocation20_spill] sm:$0xff] %v10852_v16  ;;  %v6230_v4 = vpack.c.bf16 %v5618_v13, %v5617_v14  ;;  %v11808_v58 = vmax.f32 %v10852_v16, 0.0  ;;  %v5604_v3 = vadd.f32 %v10849_v39, %v11993_v42  ;;  %v5621_v59 = vadd.f32 %v10849_v39, %v10341_v36 }
 0x558   : > { %v6222_v60 = vpack.c.bf16 %v5602_v11, %v5601_v63  ;;  %v6231_v13 = vpack.c.bf16 %v5620_v30, %v5619_v15  ;;  %v5622_v5 = vadd.f32 %v10849_v39, %v10362_v10  ;;  %v5605_v63 = vadd.f32 %v10849_v39, %v10345_v43 }
 0x559   : > { %6270 = vrot.lane.b32.xlu0 %v6230_v4, %s8689_s1  ;;  %v4920_v11 = vmul.f32 %v4895_v0, %v11808_v58  ;;  %v6223_v4 = vpack.c.bf16 %v5604_v3, %v5603_v22  ;;  %v5606_v15 = vadd.f32 %v10849_v39, %v10352_v37  ;;  %v5623_v43 = vadd.f32 %v10849_v39, %v10385_v31  ;;  %v5063_v10 = vpop.permute.xlu0 %5062 }
 0x55a   : > { %6254 = vrot.lane.b32.xlu1 %v6222_v60, %s8689_s1  ;;  %v6232_v48 = vpack.c.bf16 %v5622_v5, %v5621_v59  ;;  %v5608_v37 = vadd.f32 %v10849_v39, %v10411_v8  ;;  %v5609_v42 = vadd.f32 %v10849_v39, %v10437_v25  ;;  %v5610_v3 = vadd.f32 %v10849_v39, %v10441_v32 }
 0x55b   : > { %v8535_v14 = vpop.eup %8534  ;;  %v5088_v30 = vadd.f32 %v5063_v10, %v4920_v11  ;;  %v5612_v25 = vadd.f32 %v10849_v39, %v10470_v21  ;;  %v5613_v11 = vadd.f32 %v10849_v39, %v10495_v45 }
 0x55c   : > { %v4558_v52 = vmul.f32 %v8535_v14, %v10548_v49  ;;  %7873 = vmatmul.mubr.msk.bf16.gmra.mrb[236].mxu0 %vm4246_vm0, %v5643_v35  ;;  %v5624_v49 = vadd.f32 %v10849_v39, %v10391_v18  ;;  %v5607_v35 = vadd.f32 %v10849_v39, %v10407_v12  ;;  %v5625_v18 = vadd.f32 %v10849_v39, %v10425_v20 }
 0x55d   : > { %6272 = vrot.lane.b32.xlu0 %v6231_v13, %s8689_s1  ;;  %v5626_v12 = vadd.f32 %v10849_v39, %v10429_v29  ;;  %v5112_v8 = vmax.f32 %v5088_v30, 0.0  ;;  %v5627_v29 = vadd.f32 %v10849_v39, %v10451_v61  ;;  %v5628_v14 = vadd.f32 %v10849_v39, %v10455_v46 }
 0x55e   : > { %v4589_v36 = vmul.f32 %v10562_v24, %v4558_v52  ;;  %6256 = vrot.lane.b32.xlu1 %v6223_v4, %s8689_s1  ;;  %v6224_v24 = vpack.c.bf16 %v5606_v15, %v5605_v63  ;;  %v6233_v17 = vpack.c.bf16 %v5624_v49, %v5623_v43  ;;  %v6225_v22 = vpack.c.bf16 %v5608_v37, %v5607_v35 }
 0x55f   : > { %v6234_v20 = vpack.c.bf16 %v5626_v12, %v5625_v18  ;;  %v5140_v32 = vadd.f32 %v11920_v51, %v5112_v8  ;;  %v6226_v59 = vpack.c.bf16 %v5610_v3, %v5609_v42  ;;  %v6235_v61 = vpack.c.bf16 %v5628_v14, %v5627_v29 }
 0x560   : > { %v10898_v60 = vadd.f32 %v10572_v9, %v4589_v36  ;;  %v5629_v46 = vadd.f32 %v10849_v39, %v10483_v23  ;;  %v5614_v52 = vadd.f32 %v10849_v39, %v10499_v50 }
 0x561   : > { %6274 = vrot.lane.b32.xlu0 %v6232_v48, %s8689_s1  ;;  %v5164_v63 = vmul.f32 0.125, %v5140_v32 }
 0x562   : > { %11994 = vst [vmem:[#allocation23_spill] sm:$0xff] %v10898_v60  ;;  %v11809_v31 = vmax.f32 %v10898_v60, 0.0  ;;  %6258 = vrot.lane.b32.xlu1 %v6224_v24, %s8689_s1  ;;  %v6228_v23 = vpack.c.bf16 %v5614_v52, %v5613_v11 }
 0x564   : > { %v4919_v9 = vmul.f32 %v10840_v44, %v11809_v31  ;;  %v5611_v44 = vadd.f32 %v10849_v39, %v10466_v28  ;;  %v5630_v28 = vadd.f32 %v10849_v39, %v10487_v19  ;;  %v5661_v19 = vld [vmem:[%s11735_s14] sm:$0x3] }
 0x565   : > { %6276 = vrot.lane.b32.xlu0 %v6233_v17, %s8689_s1  ;;  %v10946_v45 = vrot.slane %v5661_v19, %v11912_v54  ;;  %v10949_v50 = vrot.slane %v5661_v19, %v11906_v40 }
 0x566   : > { %v5087_v0 = vadd.f32 %v5058_v2, %v4919_v9  ;;  %6260 = vrot.lane.b32.xlu1 %v6225_v22, %s8689_s1  ;;  %v6227_v5 = vpack.c.bf16 %v5612_v25, %v5611_v44  ;;  %v6236_v4 = vpack.c.bf16 %v5630_v28, %v5629_v46 }
 0x568   : > { %v5111_v13 = vmax.f32 %v5087_v0, 0.0 }
 0x569   : > { %6278 = vrot.lane.b32.xlu0 %v6234_v20, %s8689_s1 }
 0x56a   : > { %v5139_v2 = vadd.f32 %v11920_v51, %v5111_v13  ;;  %6262 = vrot.lane.b32.xlu1 %v6226_v59, %s8689_s1 }
 0x56c   : > { %v5163_v21 = vmul.f32 0.125, %v5139_v2 }
 0x56d   : > { %6280 = vrot.lane.b32.xlu0 %v6235_v61, %s8689_s1 }
 0x56e   : > { %v5644_v51 = vpack.c.bf16 %v5164_v63, %v5163_v21  ;;  %6264 = vrot.lane.b32.xlu1 %v6227_v5, %s8689_s1 }
 0x570   : > { %7874 = vmatprep.mubr.msk.bf16.mxu0 %vm4246_vm0, %v5644_v51 }
 0x571   : > { %7875 = vmatmul.mubr.msk.bf16.gmra.mrb[240].mxu0 %vm4246_vm0, %v5644_v51  ;;  %6282 = vrot.lane.b32.xlu0 %v6236_v4, %s8689_s1 }
 0x572   : > { %6266 = vrot.lane.b32.xlu1 %v6228_v23, %s8689_s1 }
 0x5b6   : > { %v5791_v15 = vpop.f32.mrb[196].mxu0 }
 0x5b7   : > { %v10952_v36 = vadd.f32 %v5791_v15, %v10946_v45  ;;  %v5793_v43 = vpop.f32.mrb[197].mxu0 }
 0x5b8   : > { %v10955_v10 = vadd.f32 %v5793_v43, %v10949_v50  ;;  %v5795_v48 = vpop.f32.mrb[198].mxu0 }
 0x5b9   : > { %v10958_v49 = vadd.f32 %v5795_v48, %v10946_v45  ;;  %v5797_v35 = vpop.f32.mrb[199].mxu0 }
 0x5ba   : > { %v10961_v37 = vadd.f32 %v5797_v35, %v10949_v50  ;;  %v5910_v40 = vmax.f32 %v10952_v36, %v10955_v10 }
 0x5bc   : > { %v5913_v54 = vmax.f32 %v10958_v49, %v10961_v37  ;;  %5911 = vmax.xlane.f32.xlu0 %v5910_v40 }
 0x5be   : > { %v5801_v30 = vpop.f32.mrb[200].mxu0  ;;  %5914 = vmax.xlane.f32.xlu1 %v5913_v54 }
 0x5bf   : > { %v10968_v24 = vadd.f32 %v5801_v30, %v10946_v45  ;;  %v5803_v18 = vpop.f32.mrb[201].mxu0 }
 0x5c0   : > { %v10971_v12 = vadd.f32 %v5803_v18, %v10949_v50  ;;  %v5805_v17 = vpop.f32.mrb[202].mxu0 }
 0x5c1   : > { %v10974_v22 = vadd.f32 %v5805_v17, %v10946_v45  ;;  %v5807_v8 = vpop.f32.mrb[203].mxu0 }
 0x5c2   : > { %v10977_v9 = vadd.f32 %v5807_v8, %v10949_v50  ;;  %v5916_v42 = vmax.f32 %v10968_v24, %v10971_v12 }
 0x5c4   : > { %v5919_v3 = vmax.f32 %v10974_v22, %v10977_v9  ;;  %5917 = vmax.xlane.f32.xlu0 %v5916_v42 }
 0x5c6   : > { %5920 = vmax.xlane.f32.xlu1 %v5919_v3 }
 0x5cb   : > { %v6271_v0 = vpop.permute.xlu0 %6270 }
 0x5cc   : > { %v6255_v20 = vpop.permute.xlu1 %6254  ;;  %7876 = vmatprep.subr.bf16.mxu1 %v6271_v0 }
 0x5cd   : > { %7877 = vmatpush3.bf16.msra.mxu1 %v6255_v20 }
 0x5cf   : > { %v6273_v29 = vpop.permute.xlu0 %6272 }
 0x5d0   : > { %v6257_v14 = vpop.permute.xlu1 %6256  ;;  %7878 = vmatprep.subr.bf16.mxu1 %v6273_v29 }
 0x5d1   : > { %7879 = vmatpush3.bf16.msra.mxu1 %v6257_v14 }
 0x5d3   : > { %v6275_v44 = vpop.permute.xlu0 %6274 }
 0x5d4   : > { %v6259_v25 = vpop.permute.xlu1 %6258  ;;  %7880 = vmatprep.subr.bf16.mxu1 %v6275_v44 }
 0x5d5   : > { %7881 = vmatpush3.bf16.msra.mxu1 %v6259_v25 }
 0x5d7   : > { %v6277_v32 = vpop.permute.xlu0 %6276 }
 0x5d8   : > { %v6261_v13 = vpop.permute.xlu1 %6260  ;;  %7882 = vmatprep.subr.bf16.mxu1 %v6277_v32 }
 0x5d9   : > { %7883 = vmatpush3.bf16.msra.mxu1 %v6261_v13 }
 0x5db   : > { %v6279_v59 = vpop.permute.xlu0 %6278 }
 0x5dc   : > { %v6263_v2 = vpop.permute.xlu1 %6262  ;;  %7884 = vmatprep.subr.bf16.mxu1 %v6279_v59  ;;  %v5615_v59 = vadd.f32 %v10849_v39, %v10521_v33 }
 0x5dd   : > { %7885 = vmatpush3.bf16.msra.mxu1 %v6263_v2  ;;  %v5616_v2 = vadd.f32 %v10849_v39, %v10525_v1 }
 0x5df   : > { %v6281_v61 = vpop.permute.xlu0 %6280 }
 0x5e0   : > { %v6265_v5 = vpop.permute.xlu1 %6264  ;;  %7886 = vmatprep.subr.bf16.mxu1 %v6281_v61  ;;  %v5631_v61 = vadd.f32 %v10849_v39, %v10509_v38 }
 0x5e1   : > { %7887 = vmatpush3.bf16.msra.mxu1 %v6265_v5  ;;  %v11995_v5 = vld [vmem:[#allocation68_spill] sm:$0xff] }
 0x5e3   : > { %v6283_v46 = vpop.permute.xlu0 %6282 }
 0x5e4   : > { %v6267_v28 = vpop.permute.xlu1 %6266  ;;  %7888 = vmatprep.subr.bf16.mxu1 %v6283_v46  ;;  %v5632_v46 = vadd.f32 %v10849_v39, %v11995_v5 }
 0x5e5   : > { %7889 = vmatpush3.bf16.msra.mxu1 %v6267_v28  ;;  %v6229_v28 = vpack.c.bf16 %v5616_v2, %v5615_v59 }
 0x5ef   : > { %v5811_v63 = vpop.f32.mrb[204].mxu0 }
 0x5f0   : > { %v10984_v21 = vadd.f32 %v5811_v63, %v10946_v45  ;;  %v5813_v11 = vpop.f32.mrb[205].mxu0 }
 0x5f1   : > { %v10987_v52 = vadd.f32 %v5813_v11, %v10949_v50  ;;  %v5815_v51 = vpop.f32.mrb[206].mxu0 }
 0x5f2   : > { %v10990_v4 = vadd.f32 %v5815_v51, %v10946_v45  ;;  %v5817_v23 = vpop.f32.mrb[207].mxu0 }
 0x5f3   : > { %v5922_v19 = vmax.f32 %v10984_v21, %v10987_v52  ;;  %v10995_v15 = vadd.f32 %v5817_v23, %v10949_v50  ;;  %v6237_v23 = vpack.c.bf16 %v5632_v46, %v5631_v61 }
 0x5f5   : > { %v5925_v43 = vmax.f32 %v10990_v4, %v10995_v15  ;;  %5923 = vmax.xlane.f32.xlu0 %v5922_v19 }
 0x5f7   : > { %v5821_v48 = vpop.f32.mrb[208].mxu0  ;;  %5926 = vmax.xlane.f32.xlu1 %v5925_v43 }
 0x5f8   : > { %v11000_v35 = vadd.f32 %v5821_v48, %v10946_v45  ;;  %v5823_v40 = vpop.f32.mrb[209].mxu0 }
 0x5f9   : > { %v11003_v54 = vadd.f32 %v5823_v40, %v10949_v50  ;;  %v5825_v30 = vpop.f32.mrb[210].mxu0 }
 0x5fa   : > { %v11006_v18 = vadd.f32 %v5825_v30, %v10946_v45  ;;  %v5827_v17 = vpop.f32.mrb[211].mxu0 }
 0x5fb   : > { %v5928_v8 = vmax.f32 %v11000_v35, %v11003_v54  ;;  %v11011_v42 = vadd.f32 %v5827_v17, %v10949_v50 }
 0x5fd   : > { %v5931_v3 = vmax.f32 %v11006_v18, %v11011_v42  ;;  %5929 = vmax.xlane.f32.xlu0 %v5928_v8 }
 0x5ff   : > { %v5831_v0 = vpop.f32.mrb[212].mxu0  ;;  %5932 = vmax.xlane.f32.xlu1 %v5931_v3 }
 0x600   : > { %v5833_v20 = vpop.f32.mrb[213].mxu0  ;;  %v11026_v2 = vadd.f32 %v5831_v0, %v10946_v45 }
 0x601   : > { %v5835_v29 = vpop.f32.mrb[214].mxu0  ;;  %v11029_v61 = vadd.f32 %v5833_v20, %v10949_v50 }
 0x602   : > { %v5837_v14 = vpop.f32.mrb[215].mxu0  ;;  %v11032_v5 = vadd.f32 %v5835_v29, %v10946_v45 }
 0x603   : > { %v11035_v46 = vadd.f32 %v5837_v14, %v10949_v50 }
 0x605   : > { %v5937_v20 = vmax.f32 %v11032_v5, %v11035_v46 }
 0x607   : > { %v5841_v44 = vpop.f32.mrb[216].mxu0 }
 0x608   : > { %v5843_v25 = vpop.f32.mrb[217].mxu0  ;;  %v11040_v58 = vadd.f32 %v5841_v44, %v10946_v45 }
 0x609   : > { %v5845_v32 = vpop.f32.mrb[218].mxu0  ;;  %v11043_v31 = vadd.f32 %v5843_v25, %v10949_v50 }
 0x60a   : > { %v5847_v13 = vpop.f32.mrb[219].mxu0  ;;  %v11056_v16 = vadd.f32 %v5845_v32, %v10946_v45 }
 0x60b   : > { %v5940_v44 = vmax.f32 %v11040_v58, %v11043_v31  ;;  %v11059_v25 = vadd.f32 %v5847_v13, %v10949_v50 }
 0x60f   : > { %v5851_v63 = vpop.f32.mrb[220].mxu0 }
 0x610   : > { %v5853_v11 = vpop.f32.mrb[221].mxu0  ;;  %6268 = vrot.lane.b32.xlu1 %v6229_v28, %s8689_s1  ;;  %v11048_v29 = vadd.f32 %v5851_v63, %v10946_v45 }
 0x611   : > { %v5855_v51 = vpop.f32.mrb[222].mxu0  ;;  %v11051_v14 = vadd.f32 %v5853_v11, %v10949_v50 }
 0x612   : > { %v5857_v19 = vpop.f32.mrb[223].mxu0  ;;  %v11072_v32 = vadd.f32 %v5855_v51, %v10946_v45 }
 0x613   : > { %6284 = vrot.lane.b32.xlu0 %v6237_v23, %s8689_s1  ;;  %v5934_v23 = vmax.f32 %v11026_v2, %v11029_v61  ;;  %v5946_v60 = vmax.f32 %v11048_v29, %v11051_v14  ;;  %v11075_v13 = vadd.f32 %v5857_v19, %v10949_v50  ;;  %s6963_s1 = sshll.u32 %s12052_s27, 3 }
 0x614   : > { %s11577_s0 = scalar_lea.vmem %s11744_s23, %s6963_s1 }
 0x617   : > { %v5861_v33 = vpop.f32.mrb[224].mxu0 }
 0x618   : > { %v5863_v43 = vpop.f32.mrb[225].mxu0  ;;  %v11064_v63 = vadd.f32 %v5861_v33, %v10946_v45 }
 0x619   : > { %v5865_v48 = vpop.f32.mrb[226].mxu0  ;;  %v11067_v11 = vadd.f32 %v5863_v43, %v10949_v50 }
 0x61a   : > { %v5867_v1 = vpop.f32.mrb[227].mxu0  ;;  %v11088_v51 = vadd.f32 %v5865_v48, %v10946_v45 }
 0x61b   : > { %v11091_v19 = vadd.f32 %v5867_v1, %v10949_v50 }
 0x61f   : > { %v5871_v40 = vpop.f32.mrb[228].mxu0 }
 0x620   : > { %v5873_v30 = vpop.f32.mrb[229].mxu0  ;;  %v11080_v33 = vadd.f32 %v5871_v40, %v10946_v45 }
 0x621   : > { %v5875_v38 = vpop.f32.mrb[230].mxu0  ;;  %v11083_v43 = vadd.f32 %v5873_v30, %v10949_v50 }
 0x622   : > { %v5877_v17 = vpop.f32.mrb[231].mxu0  ;;  %v11104_v48 = vadd.f32 %v5875_v38, %v10946_v45 }
 0x623   : > { %v11107_v1 = vadd.f32 %v5877_v17, %v10949_v50 }
 0x627   : > { %v5881_v8 = vpop.f32.mrb[232].mxu0 }
 0x628   : > { %v5883_v39 = vpop.f32.mrb[233].mxu0  ;;  %v11096_v40 = vadd.f32 %v5881_v8, %v10946_v45 }
 0x629   : > { %v5885_v3 = vpop.f32.mrb[234].mxu0  ;;  %v11099_v30 = vadd.f32 %v5883_v39, %v10949_v50 }
 0x62a   : > { %v5887_v59 = vpop.f32.mrb[235].mxu0  ;;  %v11120_v38 = vadd.f32 %v5885_v3, %v10946_v45 }
 0x62b   : > { %v11123_v17 = vadd.f32 %v5887_v59, %v10949_v50 }
 0x62f   : > { %v5891_v28 = vpop.f32.mrb[236].mxu0 }
 0x630   : > { %v5893_v0 = vpop.f32.mrb[237].mxu0  ;;  %v11112_v8 = vadd.f32 %v5891_v28, %v10946_v45 }
 0x631   : > { %v5895_v62 = vpop.f32.mrb[238].mxu0  ;;  %v11115_v39 = vadd.f32 %v5893_v0, %v10949_v50 }
 0x632   : > { %v5897_v55 = vpop.f32.mrb[239].mxu0  ;;  %5935 = vmax.xlane.f32.xlu0 %v5934_v23  ;;  %v5943_v23 = vmax.f32 %v11056_v16, %v11059_v25  ;;  %v11134_v3 = vadd.f32 %v5895_v62, %v10946_v45 }
 0x633   : > { %v5970_v28 = vmax.f32 %v11112_v8, %v11115_v39  ;;  %v11137_v59 = vadd.f32 %v5897_v55, %v10949_v50 }
 0x634   : > { %5938 = vmax.xlane.f32.xlu1 %v5937_v20  ;;  %v5952_v20 = vmax.f32 %v11064_v63, %v11067_v11 }
 0x635   : > { %v5973_v62 = vmax.f32 %v11134_v3, %v11137_v59 }
 0x636   : > { %5941 = vmax.xlane.f32.xlu0 %v5940_v44  ;;  %v5949_v44 = vmax.f32 %v11072_v32, %v11075_v13 }
 0x638   : > { %5947 = vmax.xlane.f32.xlu1 %v5946_v60  ;;  %v5958_v60 = vmax.f32 %v11080_v33, %v11083_v43 }
 0x63a   : > { %5944 = vmax.xlane.f32.xlu0 %v5943_v23  ;;  %v5955_v23 = vmax.f32 %v11088_v51, %v11091_v19 }
 0x63c   : > { %5953 = vmax.xlane.f32.xlu1 %v5952_v20  ;;  %v5964_v20 = vmax.f32 %v11096_v40, %v11099_v30 }
 0x63e   : > { %5950 = vmax.xlane.f32.xlu0 %v5949_v44  ;;  %v5961_v44 = vmax.f32 %v11104_v48, %v11107_v1 }
 0x640   : > { %5959 = vmax.xlane.f32.xlu1 %v5958_v60 }
 0x642   : > { %5956 = vmax.xlane.f32.xlu0 %v5955_v23 }
 0x644   : > { %v5901_v60 = vpop.f32.mrb[240].mxu0  ;;  %5965 = vmax.xlane.f32.xlu1 %v5964_v20  ;;  %v5967_v20 = vmax.f32 %v11120_v38, %v11123_v17 }
 0x645   : > { %v5903_v56 = vpop.f32.mrb[241].mxu0  ;;  %v11128_v47 = vadd.f32 %v5901_v60, %v10946_v45 }
 0x646   : > { %v11131_v0 = vadd.f32 %v5903_v56, %v10949_v50  ;;  %v5905_v23 = vpop.f32.mrb[242].mxu0  ;;  %5962 = vmax.xlane.f32.xlu0 %v5961_v44 }
 0x647   : > { %v5907_v26 = vpop.f32.mrb[243].mxu0  ;;  %v11148_v55 = vadd.f32 %v5905_v23, %v10946_v45 }
 0x648   : > { %5971 = vmax.xlane.f32.xlu1 %v5970_v28  ;;  %v5976_v60 = vmax.f32 %v11128_v47, %v11131_v0  ;;  %v11151_v44 = vadd.f32 %v5907_v26, %v10949_v50 }
 0x649   : > { %v5912_v57 = vpop.xlane.xlu0 %5911 }
 0x64a   : > { %v5982_v56 = vsub.f32 %v10952_v36, %v5912_v57  ;;  %v5983_v41 = vsub.f32 %v10955_v10, %v5912_v57  ;;  %5968 = vmax.xlane.f32.xlu0 %v5967_v20  ;;  %v5979_v45 = vmax.f32 %v11148_v55, %v11151_v44 }
 0x64b   : > { %v5915_v34 = vpop.xlane.xlu1 %5914 }
 0x64c   : > { %v6030_v28 = vmul.f32 1.442695, %v5982_v56  ;;  %v6032_v6 = vmul.f32 1.442695, %v5983_v41  ;;  %v5984_v7 = vsub.f32 %v10958_v49, %v5915_v34  ;;  %v5985_v27 = vsub.f32 %v10961_v37, %v5915_v34  ;;  %5977 = vmax.xlane.f32.xlu1 %v5976_v60 }
 0x64e   : > { %8536 = vpow2.f32 %v6030_v28  ;;  %v6034_v57 = vmul.f32 1.442695, %v5984_v7  ;;  %v6036_v36 = vmul.f32 1.442695, %v5985_v27  ;;  %5974 = vmax.xlane.f32.xlu0 %v5973_v62  ;;  %v6481_v62 = vld [vmem:[%s11742_s21 + $0x10] sm:$0xff] }
 0x64f   : > { %8538 = vpow2.f32 %v6032_v6 }
 0x650   : > { %8540 = vpow2.f32 %v6034_v57 }
 0x651   : > { %8542 = vpow2.f32 %v6036_v36  ;;  %v5918_v26 = vpop.xlane.xlu0 %5917 }
 0x652   : > { %v5986_v50 = vsub.f32 %v10968_v24, %v5918_v26  ;;  %v5987_v41 = vsub.f32 %v10971_v12, %v5918_v26  ;;  %5980 = vmax.xlane.f32.xlu0 %v5979_v45  ;;  %v6479_v12 = vld [vmem:[%s11742_s21] sm:$0xff]  ;;  %v6482_v45 = vld [vmem:[%s11742_s21 + $0x18] sm:$0xff] }
 0x653   : > { %v5921_v10 = vpop.xlane.xlu1 %5920 }
 0x654   : > { %v6038_v49 = vmul.f32 1.442695, %v5986_v50  ;;  %v6040_v34 = vmul.f32 1.442695, %v5987_v41  ;;  %v5988_v37 = vsub.f32 %v10974_v22, %v5921_v10  ;;  %v5989_v27 = vsub.f32 %v10977_v9, %v5921_v10  ;;  %v6480_v10 = vld [vmem:[%s11742_s21 + $0x8] sm:$0xff] }
 0x656   : > { %8544 = vpow2.f32 %v6038_v49  ;;  %v6042_v6 = vmul.f32 1.442695, %v5988_v37  ;;  %v6044_v7 = vmul.f32 1.442695, %v5989_v27  ;;  %v6484_v49 = vld [vmem:[%s11742_s21 + $0x28] sm:$0xff]  ;;  %v6486_v37 = vld [vmem:[%s11742_s21 + $0x38] sm:$0xff] }
 0x657   : > { %8546 = vpow2.f32 %v6040_v34  ;;  %v6483_v34 = vld [vmem:[%s11742_s21 + $0x20] sm:$0xff]  ;;  %v6485_v27 = vld [vmem:[%s11742_s21 + $0x30] sm:$0xff] }
 0x658   : > { %v11161_v23 = vpop.eup %8536  ;;  %8548 = vpow2.f32 %v6042_v6  ;;  %v6488_v6 = vld [vmem:[%s11742_s21 + $0x48] sm:$0xff] }
 0x659   : > { %v8539_v20 = vpop.eup %8538  ;;  %8550 = vpow2.f32 %v6044_v7  ;;  %v6487_v7 = vld [vmem:[%s11742_s21 + $0x40] sm:$0xff] }
 0x65a   : > { %v11163_v24 = vpop.eup %8540  ;;  %v11169_v60 = vadd.f32 %v8539_v20, %v11161_v23 }
 0x65b   : > { %v8543_v22 = vpop.eup %8542 }
 0x65c   : > { %v6199_v9 = vpack.c.bf16 %v8543_v22, %v8539_v20  ;;  %v11172_v56 = vadd.f32 %v8543_v22, %v11163_v24  ;;  %v6490_v20 = vld [vmem:[%s11742_s21 + $0x58] sm:$0xff]  ;;  %v6492_v22 = vld [vmem:[%s11742_s21 + $0x68] sm:$0xff] }
 0x65d   : > { %6505 = vperm.xlu1 %8118, %v6479_v12   ;;  %v6489_v12 = vld [vmem:[%s11742_s21 + $0x50] sm:$0xff] }
 0x65e   : > { %6334 = vmatprep.mubr.bf16.mxu1 %v6199_v9  ;;  %v6491_v9 = vld [vmem:[%s11742_s21 + $0x60] sm:$0xff] }
 0x660   : > { %v11177_v28 = vpop.eup %8544 }
 0x661   : > { %v11179_v57 = vpop.eup %8546  ;;  %6515 = vperm.xlu1 %8118, %v6481_v62   ;;  %v6494_v62 = vld [vmem:[%s11742_s21 + $0x78] sm:$0xff] }
 0x662   : > { %v11181_v36 = vpop.eup %8548  ;;  %v11188_v26 = vadd.f32 %v11179_v57, %v11177_v28 }
 0x663   : > { %v11190_v50 = vpop.eup %8550 }
 0x664   : > { %v11194_v41 = vadd.f32 %v11190_v50, %v11181_v36 }
 0x665   : > { %6520 = vperm.xlu1 %8118, %v6482_v45   ;;  %v6493_v45 = vld [vmem:[%s11742_s21 + $0x70] sm:$0xff] }
 0x668   : > { %6510 = vperm.xlu0 %8119, %v6480_v10   ;;  %v6496_v10 = vld [vmem:[%s11742_s21 + $0x88] sm:$0xff] }
 0x669   : > { %6530 = vperm.xlu1 %8118, %v6484_v49   ;;  %v6495_v49 = vld [vmem:[%s11742_s21 + $0x80] sm:$0xff] }
 0x66c   : > { %6525 = vperm.xlu0 %8119, %v6483_v34  }
 0x66d   : > { %6540 = vperm.xlu1 %8118, %v6486_v37   ;;  %v6498_v37 = vld [vmem:[%s11742_s21 + $0x98] sm:$0xff] }
 0x670   : > { %6535 = vperm.xlu0 %8119, %v6485_v27  }
 0x671   : > { %6550 = vperm.xlu1 %8118, %v6488_v6  }
 0x674   : > { %6545 = vperm.xlu0 %8119, %v6487_v7  }
 0x675   : > { %6560 = vperm.xlu1 %8118, %v6490_v20  }
 0x678   : > { %6555 = vperm.xlu0 %8119, %v6489_v12  }
 0x679   : > { %6570 = vperm.xlu1 %8118, %v6492_v22  }
 0x67c   : > { %6565 = vperm.xlu0 %8119, %v6491_v9  }
 0x67d   : > { %6580 = vperm.xlu1 %8118, %v6494_v62   ;;  %v6497_v62 = vld [vmem:[%s11742_s21 + $0x90] sm:$0xff] }
 0x680   : > { %6575 = vperm.xlu0 %8119, %v6493_v45   ;;  %v6500_v45 = vld [vmem:[%s11742_s21 + $0xa8] sm:$0xff] }
 0x681   : > { %6590 = vperm.xlu1 %8118, %v6496_v10   ;;  %v6502_v10 = vld [vmem:[%s11742_s21 + $0xb8] sm:$0xff] }
 0x682   : > { %v5924_v34 = vpop.xlane.xlu0 %5923 }
 0x683   : > { %v5990_v27 = vsub.f32 %v10984_v21, %v5924_v34  ;;  %v5991_v6 = vsub.f32 %v10987_v52, %v5924_v34 }
 0x684   : > { %6585 = vperm.xlu0 %8119, %v6495_v49   ;;  %v5927_v7 = vpop.xlane.xlu1 %5926 }
 0x685   : > { %v6046_v20 = vmul.f32 1.442695, %v5990_v27  ;;  %v6048_v12 = vmul.f32 1.442695, %v5991_v6  ;;  %v5992_v22 = vsub.f32 %v10990_v4, %v5927_v7  ;;  %v5993_v9 = vsub.f32 %v10995_v15, %v5927_v7  ;;  %6600 = vperm.xlu1 %8118, %v6498_v37   ;;  %v6499_v4 = vld [vmem:[%s11742_s21 + $0xa0] sm:$0xff] }
 0x687   : > { %8552 = vpow2.f32 %v6046_v20  ;;  %v6050_v21 = vmul.f32 1.442695, %v5992_v22  ;;  %v6052_v52 = vmul.f32 1.442695, %v5993_v9 }
 0x688   : > { %8554 = vpow2.f32 %v6048_v12  ;;  %6595 = vperm.xlu0 %8119, %v6497_v62   ;;  %v6501_v12 = vld [vmem:[%s11742_s21 + $0xb0] sm:$0xff] }
 0x689   : > { %8556 = vpow2.f32 %v6050_v21  ;;  %6610 = vperm.xlu1 %8118, %v6500_v45   ;;  %v6198_v21 = vpack.c.bf16 %v11163_v24, %v11161_v23  ;;  %v6652_v24 = vld [vmem:[%s11743_s22 + $0x28] sm:$0xff] }
 0x68a   : > { %8558 = vpow2.f32 %v6052_v52  ;;  %v5930_v15 = vpop.xlane.xlu0 %5929  ;;  %v6650_v52 = vld [vmem:[%s11743_s22 + $0x18] sm:$0xff] }
 0x68b   : > { %v5994_v49 = vsub.f32 %v11000_v35, %v5930_v15  ;;  %v5995_v34 = vsub.f32 %v11003_v54, %v5930_v15  ;;  %v6648_v35 = vld [vmem:[%s11743_s22 + $0x8] sm:$0xff]  ;;  %v6201_v15 = vpack.c.bf16 %v11190_v50, %v11179_v57  ;;  %v6651_v57 = vld [vmem:[%s11743_s22 + $0x20] sm:$0xff] }
 0x68c   : > { %6605 = vperm.xlu0 %8119, %v6499_v4   ;;  %v5933_v37 = vpop.xlane.xlu1 %5932 }
 0x68d   : > { %v6054_v27 = vmul.f32 1.442695, %v5994_v49  ;;  %v6056_v6 = vmul.f32 1.442695, %v5995_v34  ;;  %v5996_v7 = vsub.f32 %v11006_v18, %v5933_v37  ;;  %v5997_v20 = vsub.f32 %v11011_v42, %v5933_v37  ;;  %6620 = vperm.xlu1 %8118, %v6502_v10   ;;  %v6647_v42 = vld [vmem:[%s11743_s22] sm:$0xff]  ;;  %v6649_v34 = vld [vmem:[%s11743_s22 + $0x10] sm:$0xff] }
 0x68e   : > { %v6285_v22 = vpop.permute.xlu0 %6284 }
 0x68f   : > { %8560 = vpow2.f32 %v6054_v27  ;;  %v6058_v54 = vmul.f32 1.442695, %v5996_v7  ;;  %v6060_v9 = vmul.f32 1.442695, %v5997_v20  ;;  %7890 = vmatprep.subr.bf16.mxu1 %v6285_v22  ;;  %v6200_v27 = vpack.c.bf16 %v11181_v36, %v11177_v28  ;;  %v6656_v28 = vld [vmem:[%s11743_s22 + $0x48] sm:$0xff]  ;;  %v6655_v36 = vld [vmem:[%s11743_s22 + $0x40] sm:$0xff] }
 0x690   : > { %8562 = vpow2.f32 %v6056_v6  ;;  %6615 = vperm.xlu0 %8119, %v6501_v12   ;;  %v6269_v62 = vpop.permute.xlu1 %6268  ;;  %v6654_v6 = vld [vmem:[%s11743_s22 + $0x38] sm:$0xff] }
 0x691   : > { %v8553_v18 = vpop.eup %8552  ;;  %8564 = vpow2.f32 %v6058_v54  ;;  %6678 = vperm.xlu1 %8118, %v6648_v35   ;;  %7891 = vmatpush3.bf16.msra.mxu1 %v6269_v62  ;;  %v6653_v35 = vld [vmem:[%s11743_s22 + $0x30] sm:$0xff]  ;;  %v6658_v62 = vld [vmem:[%s11743_s22 + $0x58] sm:$0xff] }
 0x692   : > { %v8555_v45 = vpop.eup %8554  ;;  %8566 = vpow2.f32 %v6060_v9 }
 0x693   : > { %v8557_v4 = vpop.eup %8556  ;;  %v11280_v10 = vadd.f32 %v8555_v45, %v8553_v18 }
 0x694   : > { %v8559_v49 = vpop.eup %8558  ;;  %6673 = vperm.xlu0 %8119, %v6647_v42   ;;  %6335 = vmatmul.mubr.bf16.vlgmr.msra.gmra.mrb[224].mxu1 %v6198_v21  ;;  %v6202_v9 = vpack.c.bf16 %v8557_v4, %v8553_v18  ;;  %v6660_v21 = vld [vmem:[%s11743_s22 + $0x68] sm:$0xff]  ;;  %v6659_v18 = vld [vmem:[%s11743_s22 + $0x60] sm:$0xff] }
 0x695   : > { %6688 = vperm.xlu1 %8118, %v6650_v52   ;;  %6342 = vmatprep.mubr.bf16.mxu1 %v6201_v15  ;;  %v11285_v23 = vadd.f32 %v8559_v49, %v8557_v4  ;;  %v6203_v20 = vpack.c.bf16 %v8559_v49, %v8555_v45  ;;  %v6657_v45 = vld [vmem:[%s11743_s22 + $0x50] sm:$0xff]  ;;  %v6662_v4 = vld [vmem:[%s11743_s22 + $0x78] sm:$0xff]  ;;  %v6664_v49 = vld [vmem:[%s11743_s22 + $0x88] sm:$0xff] }
 0x696   : > { %v6661_v15 = vld [vmem:[%s11743_s22 + $0x70] sm:$0xff] }
 0x698   : > { %6683 = vperm.xlu0 %8119, %v6649_v34   ;;  %v6663_v34 = vld [vmem:[%s11743_s22 + $0x80] sm:$0xff] }
 0x699   : > { %v8561_v37 = vpop.eup %8560  ;;  %6698 = vperm.xlu1 %8118, %v6652_v24   ;;  %v6666_v24 = vld [vmem:[%s11743_s22 + $0x98] sm:$0xff] }
 0x69a   : > { %v8563_v50 = vpop.eup %8562 }
 0x69b   : > { %v8565_v7 = vpop.eup %8564  ;;  %v11298_v12 = vadd.f32 %v8563_v50, %v8561_v37 }
 0x69c   : > { %v8567_v22 = vpop.eup %8566  ;;  %6693 = vperm.xlu0 %8119, %v6651_v57   ;;  %6343 = vmatmul.mubr.bf16.gmra.mrb[228].mxu1 %v6200_v27  ;;  %v6204_v52 = vpack.c.bf16 %v8565_v7, %v8561_v37  ;;  %v6665_v37 = vld [vmem:[%s11743_s22 + $0x90] sm:$0xff]  ;;  %v6668_v57 = vld [vmem:[%s11743_s22 + $0xa8] sm:$0xff] }
 0x69d   : > { %6708 = vperm.xlu1 %8118, %v6654_v6   ;;  %6350 = vmatprep.mubr.bf16.mxu1 %v6203_v20  ;;  %v11303_v54 = vadd.f32 %v8567_v22, %v8565_v7  ;;  %v6205_v42 = vpack.c.bf16 %v8567_v22, %v8563_v50  ;;  %v6667_v50 = vld [vmem:[%s11743_s22 + $0xa0] sm:$0xff] }
 0x6a0   : > { %6703 = vperm.xlu0 %8119, %v6653_v35  }
 0x6a1   : > { %6718 = vperm.xlu1 %8118, %v6656_v28  }
 0x6a4   : > { %6713 = vperm.xlu0 %8119, %v6655_v36   ;;  %6351 = vmatmul.mubr.bf16.gmra.mrb[232].mxu1 %v6202_v9 }
 0x6a5   : > { %6728 = vperm.xlu1 %8118, %v6658_v62   ;;  %6358 = vmatprep.mubr.bf16.mxu1 %v6205_v42 }
 0x6a8   : > { %6723 = vperm.xlu0 %8119, %v6657_v45  }
 0x6a9   : > { %6738 = vperm.xlu1 %8118, %v6660_v21  }
 0x6ac   : > { %6733 = vperm.xlu0 %8119, %v6659_v18   ;;  %6359 = vmatmul.mubr.bf16.gmra.mrb[236].mxu1 %v6204_v52 }
 0x6ad   : > { %6748 = vperm.xlu1 %8118, %v6662_v4  }
 0x6b0   : > { %6743 = vperm.xlu0 %8119, %v6661_v15  }
 0x6b1   : > { %6758 = vperm.xlu1 %8118, %v6664_v49  }
 0x6b4   : > { %6753 = vperm.xlu0 %8119, %v6663_v34  }
 0x6b5   : > { %6768 = vperm.xlu1 %8118, %v6666_v24  }
 0x6b8   : > { %6763 = vperm.xlu0 %8119, %v6665_v37  }
 0x6b9   : > { %6778 = vperm.xlu1 %8118, %v6668_v57  }
 0x6bc   : > { %6773 = vperm.xlu0 %8119, %v6667_v50  }
 0x6bf   : > { %v5936_v27 = vpop.xlane.xlu0 %5935 }
 0x6c0   : > { %v5998_v6 = vsub.f32 %v11026_v2, %v5936_v27  ;;  %v5999_v7 = vsub.f32 %v11029_v61, %v5936_v27 }
 0x6c1   : > { %v5939_v20 = vpop.xlane.xlu1 %5938 }
 0x6c2   : > { %v6062_v22 = vmul.f32 1.442695, %v5998_v6  ;;  %v6000_v35 = vsub.f32 %v11032_v5, %v5939_v20  ;;  %v6001_v28 = vsub.f32 %v11035_v46, %v5939_v20  ;;  %v6064_v9 = vmul.f32 1.442695, %v5999_v7 }
 0x6c3   : > { %v5942_v36 = vpop.xlane.xlu0 %5941 }
 0x6c4   : > { %v6066_v62 = vmul.f32 1.442695, %v6000_v35  ;;  %v6068_v42 = vmul.f32 1.442695, %v6001_v28  ;;  %8568 = vpow2.f32 %v6062_v22  ;;  %v6003_v21 = vsub.f32 %v11043_v31, %v5942_v36 }
 0x6c5   : > { %v5948_v45 = vpop.xlane.xlu1 %5947  ;;  %v6002_v2 = vsub.f32 %v11040_v58, %v5942_v36 }
 0x6c6   : > { %8570 = vpow2.f32 %v6066_v62  ;;  %v6072_v46 = vmul.f32 1.442695, %v6003_v21  ;;  %v6007_v4 = vsub.f32 %v11051_v14, %v5948_v45  ;;  %v6006_v6 = vsub.f32 %v11048_v29, %v5948_v45 }
 0x6c7   : > { %8572 = vpow2.f32 %v6068_v42  ;;  %v5945_v18 = vpop.xlane.xlu0 %5944  ;;  %v6070_v24 = vmul.f32 1.442695, %v6002_v2 }
 0x6c8   : > { %8574 = vpow2.f32 %v6064_v9  ;;  %v6004_v61 = vsub.f32 %v11056_v16, %v5945_v18  ;;  %v6005_v5 = vsub.f32 %v11059_v25, %v5945_v18  ;;  %v6080_v57 = vmul.f32 1.442695, %v6007_v4 }
 0x6c9   : > { %v5954_v52 = vpop.xlane.xlu1 %5953  ;;  %v6078_v29 = vmul.f32 1.442695, %v6006_v6 }
 0x6ca   : > { %v6074_v15 = vmul.f32 1.442695, %v6004_v61  ;;  %v6076_v49 = vmul.f32 1.442695, %v6005_v5  ;;  %v6011_v22 = vsub.f32 %v11067_v11, %v5954_v52  ;;  %v6010_v61 = vsub.f32 %v11064_v63, %v5954_v52 }
 0x6cb   : > { %v5951_v34 = vpop.xlane.xlu0 %5950 }
 0x6cc   : > { %8576 = vpow2.f32 %v6076_v49  ;;  %v6009_v31 = vsub.f32 %v11075_v13, %v5951_v34  ;;  %v6008_v16 = vsub.f32 %v11072_v32, %v5951_v34  ;;  %v6086_v34 = vmul.f32 1.442695, %v6010_v61 }
 0x6cd   : > { %v11357_v37 = vpop.xlane.xlu1 %5959  ;;  %8578 = vpow2.f32 %v6072_v46 }
 0x6ce   : > { %v11359_v58 = vpop.eup %8568  ;;  %8580 = vpow2.f32 %v6074_v15  ;;  %v6084_v25 = vmul.f32 1.442695, %v6009_v31  ;;  %v6082_v35 = vmul.f32 1.442695, %v6008_v16 }
 0x6cf   : > { %v5957_v50 = vpop.xlane.xlu0 %5956  ;;  %8582 = vpow2.f32 %v6070_v24 }
 0x6d0   : > { %v11362_v27 = vpop.eup %8570  ;;  %8584 = vpow2.f32 %v6084_v25  ;;  %v6013_v13 = vsub.f32 %v11091_v19, %v5957_v50  ;;  %v6088_v19 = vmul.f32 1.442695, %v6011_v22  ;;  %v6012_v11 = vsub.f32 %v11088_v51, %v5957_v50 }
 0x6d1   : > { %v11364_v14 = vpop.eup %8572  ;;  %v11368_v7 = vpop.xlane.xlu1 %5965  ;;  %8586 = vpow2.f32 %v6080_v57  ;;  %v6206_v32 = vpack.c.bf16 %v11362_v27, %v11359_v58  ;;  %v6015_v51 = vsub.f32 %v11083_v43, %v11357_v37 }
 0x6d2   : > { %v11370_v20 = vpop.eup %8574  ;;  %v6092_v9 = vmul.f32 1.442695, %v6013_v13  ;;  %8588 = vpow2.f32 %v6082_v35  ;;  %v6090_v49 = vmul.f32 1.442695, %v6012_v11 }
 0x6d3   : > { %v5963_v28 = vpop.xlane.xlu0 %5962  ;;  %v6207_v36 = vpack.c.bf16 %v11364_v14, %v11370_v20  ;;  %v6096_v57 = vmul.f32 1.442695, %v6015_v51  ;;  %v6150_v11 = vadd.f32 %v11370_v20, %v11359_v58 }
 0x6d4   : > { %8590 = vpow2.f32 %v6092_v9  ;;  %v6017_v18 = vsub.f32 %v11107_v1, %v5963_v28  ;;  %v6018_v9 = vsub.f32 %v11096_v40, %v11368_v7 }
 0x6d5   : > { %6366 = vmatprep.mubr.bf16.mxu1 %v6207_v36  ;;  %v11377_v62 = vpop.xlane.xlu1 %5971  ;;  %8592 = vpow2.f32 %v6078_v29 }
 0x6d6   : > { %6367 = vmatmul.mubr.bf16.gmra.mrb[240].mxu1 %v6206_v32  ;;  %v11379_v42 = vpop.eup %8576  ;;  %8594 = vpow2.f32 %v6088_v19  ;;  %v6100_v63 = vmul.f32 1.442695, %v6017_v18  ;;  %v6022_v61 = vsub.f32 %v11112_v8, %v11377_v62 }
 0x6d7   : > { %v11382_v45 = vpop.xlane.xlu0 %5968  ;;  %v11384_v21 = vpop.eup %8578  ;;  %8596 = vpow2.f32 %v6090_v49 }
 0x6d8   : > { %v11387_v2 = vpop.eup %8580  ;;  %v6209_v5 = vpack.c.bf16 %v11379_v42, %v11384_v21  ;;  %8598 = vpow2.f32 %v6100_v63  ;;  %v6021_v16 = vsub.f32 %v11123_v17, %v11382_v45  ;;  %v6020_v35 = vsub.f32 %v11120_v38, %v11382_v45 }
 0x6d9   : > { %v11392_v46 = vpop.xlane.xlu1 %5977  ;;  %v11394_v4 = vpop.eup %8582  ;;  %8600 = vpow2.f32 %v6086_v34  ;;  %v6153_v38 = vadd.f32 %v11364_v14, %v11362_v27  ;;  %v6102_v14 = vmul.f32 1.442695, %v6018_v9  ;;  %v6110_v49 = vmul.f32 1.442695, %v6022_v61 }
 0x6da   : > { %v11398_v15 = vpop.eup %8584  ;;  %6374 = vmatprep.mubr.bf16.mxu1 %v6209_v5  ;;  %v6208_v52 = vpack.c.bf16 %v11387_v2, %v11394_v4  ;;  %8602 = vpow2.f32 %v6096_v57  ;;  %v6156_v20 = vadd.f32 %v11394_v4, %v11384_v21  ;;  %v6026_v8 = vsub.f32 %v11128_v47, %v11392_v46 }
 0x6db   : > { %6130 = vadd.xlane.f32.xlu0 %v11172_v56  ;;  %v11401_v1 = vpop.eup %8586  ;;  %v11405_v24 = vpop.xlane.xlu0 %5974  ;;  %v6016_v56 = vsub.f32 %v11104_v48, %v5963_v28  ;;  %v6019_v48 = vsub.f32 %v11099_v30, %v11368_v7  ;;  %v6027_v21 = vsub.f32 %v11131_v0, %v11392_v46 }
 0x6dc   : > { %v6211_v43 = vpack.c.bf16 %v11398_v15, %v11401_v1  ;;  %v11416_v25 = vpop.eup %8588  ;;  %v6025_v28 = vsub.f32 %v11137_v59, %v11405_v24  ;;  %v6106_v59 = vmul.f32 1.442695, %v6020_v35  ;;  %v6024_v40 = vsub.f32 %v11134_v3, %v11405_v24 }
 0x6dd   : > { %6127 = vadd.xlane.f32.xlu1 %v11169_v60  ;;  %v11410_v31 = vpop.permute.xlu1 %6505  ;;  %v6014_v60 = vsub.f32 %v11080_v33, %v11357_v37  ;;  %v6098_v13 = vmul.f32 1.442695, %v6016_v56  ;;  %v6108_v33 = vmul.f32 1.442695, %v6021_v16  ;;  %v6104_v32 = vmul.f32 1.442695, %v6019_v48 }
 0x6de   : > { %6375 = vmatmul.mubr.bf16.gmra.mrb[244].mxu1 %v6208_v52  ;;  %v11421_v50 = vpop.eup %8590  ;;  %v6114_v51 = vmul.f32 1.442695, %v6024_v40  ;;  %v6120_v0 = vmul.f32 1.442695, %v6027_v21 }
 0x6df   : > { %6382 = vmatprep.mubr.bf16.mxu1 %v6211_v43  ;;  %6136 = vadd.xlane.f32.xlu0 %v11194_v41  ;;  %v11427_v41 = vpop.eup %8592  ;;  %v11429_v17 = vpop.xlane.xlu0 %5980  ;;  %v6094_v37 = vmul.f32 1.442695, %v6014_v60  ;;  %8604 = vpow2.f32 %v6098_v13 }
 0x6e0   : > { %v11432_v22 = vpop.eup %8594  ;;  %8606 = vpow2.f32 %v6108_v33  ;;  %v6028_v3 = vsub.f32 %v11148_v55, %v11429_v17 }
 0x6e1   : > { %6133 = vadd.xlane.f32.xlu1 %v11188_v26  ;;  %v11425_v6 = vpop.permute.xlu1 %6515  ;;  %v6210_v26 = vpack.c.bf16 %v11416_v25, %v11427_v41  ;;  %v6213_v30 = vpack.c.bf16 %v11421_v50, %v11432_v22  ;;  %8608 = vpow2.f32 %v6094_v37 }
 0x6e2   : > { %8610 = vpow2.f32 %v6104_v32  ;;  %v6122_v52 = vmul.f32 1.442695, %v6028_v3  ;;  %v6670_v3 = vld [vmem:[%s11743_s22 + $0xb8] sm:$0xff] }
 0x6e3   : > { %6142 = vadd.xlane.f32.xlu0 %v11285_v23  ;;  %8612 = vpow2.f32 %v6106_v59 }
 0x6e5   : > { %6139 = vadd.xlane.f32.xlu1 %v11280_v10  ;;  %v11446_v36 = vpop.permute.xlu1 %6520  ;;  %v8597_v10 = vpop.eup %8596 }
 0x6e6   : > { %6383 = vmatmul.mubr.bf16.gmra.mrb[248].mxu1 %v6210_v26  ;;  %v11453_v29 = vpop.eup %8598  ;;  %v6171_v56 = vadd.f32 %v8597_v10, %v11421_v50 }
 0x6e7   : > { %6390 = vmatprep.mubr.bf16.mxu1 %v6213_v30  ;;  %v11441_v23 = vpop.permute.xlu0 %6510  ;;  %6148 = vadd.xlane.f32.xlu0 %v11303_v54  ;;  %v6023_v54 = vsub.f32 %v11115_v39, %v11377_v62  ;;  %v8601_v19 = vpop.eup %8600  ;;  %v6159_v39 = vadd.f32 %v11387_v2, %v11379_v42  ;;  %v6029_v42 = vsub.f32 %v11151_v44, %v11429_v17 }
 0x6e8   : > { %v8603_v45 = vpop.eup %8602  ;;  %v6212_v27 = vpack.c.bf16 %v8597_v10, %v8601_v19  ;;  %v6165_v62 = vadd.f32 %v11416_v25, %v11398_v15  ;;  %v6162_v44 = vadd.f32 %v11427_v41, %v11401_v1  ;;  %v6118_v15 = vmul.f32 1.442695, %v6026_v8 }
 0x6e9   : > { %6145 = vadd.xlane.f32.xlu1 %v11298_v12  ;;  %v6116_v12 = vmul.f32 1.442695, %v6025_v28  ;;  %v6215_v18 = vpack.c.bf16 %v11453_v29, %v8603_v45  ;;  %v6112_v5 = vmul.f32 1.442695, %v6023_v54  ;;  %v11468_v58 = vpop.permute.xlu1 %6530  ;;  %v8605_v2 = vpop.eup %8604  ;;  %v6124_v24 = vmul.f32 1.442695, %v6029_v42 }
 0x6ea   : > { %v8607_v55 = vpop.eup %8606  ;;  %v6168_v46 = vadd.f32 %v8601_v19, %v11432_v22  ;;  %v6177_v25 = vadd.f32 %v8605_v2, %v11453_v29 }
 0x6eb   : > { %6154 = vadd.xlane.f32.xlu0 %v6153_v38  ;;  %v11461_v7 = vpop.permute.xlu0 %6525  ;;  %8614 = vpow2.f32 %v6116_v12  ;;  %v8609_v63 = vpop.eup %8608 }
 0x6ec   : > { %8616 = vpow2.f32 %v6102_v14  ;;  %v8611_v34 = vpop.eup %8610  ;;  %v6214_v47 = vpack.c.bf16 %v8605_v2, %v8609_v63  ;;  %v6174_v41 = vadd.f32 %v8609_v63, %v8603_v45 }
 0x6ed   : > { %6151 = vadd.xlane.f32.xlu1 %v6150_v11  ;;  %8618 = vpow2.f32 %v6112_v5  ;;  %v11486_v43 = vpop.permute.xlu1 %6540  ;;  %v6217_v57 = vpack.c.bf16 %v8607_v55, %v8611_v34  ;;  %v8613_v16 = vpop.eup %8612 }
 0x6ee   : > { %6391 = vmatmul.mubr.bf16.gmra.mrb[252].mxu1 %v6212_v27  ;;  %8620 = vpow2.f32 %v6114_v51  ;;  %v6183_v22 = vadd.f32 %v8613_v16, %v8607_v55  ;;  %v6669_v51 = vld [vmem:[%s11743_s22 + $0xb0] sm:$0xff] }
 0x6ef   : > { %6398 = vmatprep.mubr.bf16.mxu1 %v6215_v18  ;;  %6160 = vadd.xlane.f32.xlu0 %v6159_v39  ;;  %v11482_v4 = vpop.permute.xlu0 %6535  ;;  %8622 = vpow2.f32 %v6110_v49 }
 0x6f0   : > { %8624 = vpow2.f32 %v6122_v52 }
 0x6f1   : > { %6157 = vadd.xlane.f32.xlu1 %v6156_v20  ;;  %8626 = vpow2.f32 %v6124_v24  ;;  %v11493_v48 = vpop.permute.xlu1 %6550 }
 0x6f2   : > { %8628 = vpow2.f32 %v6118_v15 }
 0x6f3   : > { %6166 = vadd.xlane.f32.xlu0 %v6165_v62  ;;  %v11490_v1 = vpop.permute.xlu0 %6545  ;;  %8630 = vpow2.f32 %v6120_v0 }
 0x6f5   : > { %6163 = vadd.xlane.f32.xlu1 %v6162_v44  ;;  %v8615_v60 = vpop.eup %8614  ;;  %v11497_v35 = vpop.permute.xlu1 %6560 }
 0x6f6   : > { %6399 = vmatmul.mubr.bf16.gmra.mrb[0].mxu1 %v6214_v47  ;;  %v8617_v50 = vpop.eup %8616 }
 0x6f7   : > { %6406 = vmatprep.mubr.bf16.mxu1 %v6217_v57  ;;  %6172 = vadd.xlane.f32.xlu0 %v6171_v56  ;;  %v8619_v13 = vpop.eup %8618  ;;  %v6216_v17 = vpack.c.bf16 %v8613_v16, %v8617_v50  ;;  %v11495_v37 = vpop.permute.xlu0 %6555  ;;  %v6180_v30 = vadd.f32 %v8617_v50, %v8611_v34 }
 0x6f8   : > { %v6219_v33 = vpack.c.bf16 %v8615_v60, %v8619_v13  ;;  %v8621_v26 = vpop.eup %8620 }
 0x6f9   : > { %6169 = vadd.xlane.f32.xlu1 %v6168_v46  ;;  %v8623_v32 = vpop.eup %8622  ;;  %v6189_v10 = vadd.f32 %v8621_v26, %v8615_v60  ;;  %v11501_v40 = vpop.permute.xlu1 %6570 }
 0x6fa   : > { %v8625_v28 = vpop.eup %8624  ;;  %v6186_v29 = vadd.f32 %v8623_v32, %v8619_v13  ;;  %v6218_v19 = vpack.c.bf16 %v8621_v26, %v8623_v32 }
 0x6fb   : > { %6178 = vadd.xlane.f32.xlu0 %v6177_v25  ;;  %v8627_v9 = vpop.eup %8626  ;;  %v11499_v59 = vpop.permute.xlu0 %6565 }
 0x6fc   : > { %v8629_v38 = vpop.eup %8628  ;;  %v6195_v45 = vadd.f32 %v8627_v9, %v8625_v28 }
 0x6fd   : > { %6175 = vadd.xlane.f32.xlu1 %v6174_v41  ;;  %v8631_v54 = vpop.eup %8630  ;;  %v6220_v14 = vpack.c.bf16 %v8625_v28, %v8629_v38  ;;  %v11505_v18 = vpop.permute.xlu1 %6580 }
 0x6fe   : > { %6407 = vmatmul.mubr.bf16.gmra.mrb[4].mxu1 %v6216_v17  ;;  %v6221_v11 = vpack.c.bf16 %v8627_v9, %v8631_v54  ;;  %v6192_v12 = vadd.f32 %v8631_v54, %v8629_v38 }
 0x6ff   : > { %6414 = vmatprep.mubr.bf16.mxu1 %v6219_v33  ;;  %6184 = vadd.xlane.f32.xlu0 %v6183_v22  ;;  %v11503_v27 = vpop.permute.xlu0 %6575 }
 0x701   : > { %6181 = vadd.xlane.f32.xlu1 %v6180_v30  ;;  %v11509_v61 = vpop.permute.xlu1 %6590 }
 0x703   : > { %6190 = vadd.xlane.f32.xlu0 %v6189_v10  ;;  %v11507_v39 = vpop.permute.xlu0 %6585 }
 0x705   : > { %6187 = vadd.xlane.f32.xlu1 %v6186_v29  ;;  %v11516_v20 = vpop.permute.xlu1 %6600 }
 0x706   : > { %6415 = vmatmul.mubr.bf16.gmra.mrb[8].mxu1 %v6218_v19 }
 0x707   : > { %6422 = vmatprep.mubr.bf16.mxu1 %v6221_v11  ;;  %6196 = vadd.xlane.f32.xlu0 %v6195_v45  ;;  %v11511_v5 = vpop.permute.xlu0 %6595 }
 0x709   : > { %6193 = vadd.xlane.f32.xlu1 %v6192_v12  ;;  %v11523_v2 = vpop.permute.xlu1 %6610 }
 0x70a   : > { %11996 = vst [vmem:[#allocation9_spill] sm:$0xff] %v11523_v2 }
 0x70b   : > { %v11521_v42 = vpop.permute.xlu0 %6605 }
 0x70d   : > { %v11527_v62 = vpop.permute.xlu1 %6620 }
 0x70e   : > { %6423 = vmatmul.mubr.bf16.gmra.mrb[12].mxu1 %v6220_v14  ;;  %11998 = vst [vmem:[#allocation11_spill] sm:$0xff] %v11527_v62 }
 0x70f   : > { %v11525_v8 = vpop.permute.xlu0 %6615 }
 0x710   : > { %11997 = vst [vmem:[#allocation13_spill] sm:$0xff] %v11525_v8 }
 0x711   : > { %v6679_v49 = vpop.permute.xlu1 %6678 }
 0x713   : > { %v11529_v55 = vpop.permute.xlu0 %6673 }
 0x715   : > { %v11533_v63 = vpop.permute.xlu1 %6688 }
 0x717   : > { %v11531_v21 = vpop.permute.xlu0 %6683 }
 0x719   : > { %v11537_v44 = vpop.permute.xlu1 %6698 }
 0x71a   : > { %6788 = vperm.xlu1 %8118, %v6670_v3  }
 0x71b   : > { %v11535_v52 = vpop.permute.xlu0 %6693 }
 0x71d   : > { %6783 = vperm.xlu0 %8119, %v6669_v51   ;;  %v11541_v47 = vpop.permute.xlu1 %6708 }
 0x71f   : > { %v11539_v34 = vpop.permute.xlu0 %6703 }
 0x721   : > { %v11545_v15 = vpop.permute.xlu1 %6718 }
 0x723   : > { %v11543_v24 = vpop.permute.xlu0 %6713 }
 0x725   : > { %v11549_v56 = vpop.permute.xlu1 %6728 }
 0x727   : > { %v11547_v57 = vpop.permute.xlu0 %6723 }
 0x729   : > { %v11553_v46 = vpop.permute.xlu1 %6738 }
 0x72b   : > { %v11551_v0 = vpop.permute.xlu0 %6733 }
 0x72d   : > { %v11557_v25 = vpop.permute.xlu1 %6748 }
 0x72f   : > { %v11555_v16 = vpop.permute.xlu0 %6743 }
 0x731   : > { %v11561_v50 = vpop.permute.xlu1 %6758 }
 0x733   : > { %v11559_v60 = vpop.permute.xlu0 %6753 }
 0x735   : > { %v11565_v13 = vpop.permute.xlu1 %6768 }
 0x737   : > { %v11563_v41 = vpop.permute.xlu0 %6763 }
 0x739   : > { %v11569_v33 = vpop.permute.xlu1 %6778 }
 0x73a   : > { %11999 = vst [vmem:[#allocation16_spill] sm:$0xff] %v11569_v33 }
 0x73b   : > { %v11567_v17 = vpop.permute.xlu0 %6773 }
 0x767   : > { %v7892_v22 = vpop.f32.mrb[224].mxu1 }
 0x768   : > { %v6131_v26 = vpop.xlane.xlu0 %6130  ;;  %v7893_v30 = vpop.f32.mrb[225].mxu1 }
 0x769   : > { %8632 = vrcp.f32 %v6131_v26  ;;  %v7894_v32 = vadd.f32 %v7893_v30, %v7892_v22  ;;  %v7895_v28 = vpop.f32.mrb[226].mxu1 }
 0x76a   : > { %v7896_v10 = vpop.f32.mrb[227].mxu1  ;;  %v6128_v9 = vpop.xlane.xlu1 %6127 }
 0x76b   : > { %v7897_v38 = vadd.f32 %v7896_v10, %v7895_v28  ;;  %8634 = vrcp.f32 %v6128_v9 }
 0x76c   : > { %v6137_v29 = vpop.xlane.xlu0 %6136 }
 0x76d   : > { %8636 = vrcp.f32 %v6137_v29 }
 0x76e   : > { %v6134_v54 = vpop.xlane.xlu1 %6133 }
 0x76f   : > { %8638 = vrcp.f32 %v6134_v54  ;;  %v7898_v19 = vpop.f32.mrb[228].mxu1 }
 0x770   : > { %v6143_v11 = vpop.xlane.xlu0 %6142  ;;  %v7899_v45 = vpop.f32.mrb[229].mxu1 }
 0x771   : > { %8640 = vrcp.f32 %v6143_v11  ;;  %v7900_v12 = vadd.f32 %v7899_v45, %v7898_v19  ;;  %v7901_v14 = vpop.f32.mrb[230].mxu1 }
 0x772   : > { %v7902_v3 = vpop.f32.mrb[231].mxu1  ;;  %v6140_v51 = vpop.xlane.xlu1 %6139 }
 0x773   : > { %v8633_v26 = vpop.eup %8632  ;;  %v7903_v22 = vadd.f32 %v7902_v3, %v7901_v14  ;;  %8642 = vrcp.f32 %v6140_v51 }
 0x774   : > { %v6456_v30 = vmul.f32 %v8633_v26, %v7897_v38  ;;  %v6149_v9 = vpop.xlane.xlu0 %6148 }
 0x775   : > { %v8635_v62 = vpop.eup %8634 }
 0x776   : > { %v6624_v28 = vmul.f32 %v11441_v23, %v6456_v30  ;;  %v6455_v10 = vmul.f32 %v8635_v62, %v7894_v32  ;;  %v6146_v29 = vpop.xlane.xlu1 %6145  ;;  %v12000_v32 = vld [vmem:[#allocation26_spill] sm:$0xff]  ;;  %v12002_v30 = vld [vmem:[#allocation3_spill] sm:$0xff] }
 0x777   : > { %v8637_v54 = vpop.eup %8636  ;;  %8644 = vrcp.f32 %v6146_v29  ;;  %v7904_v8 = vpop.f32.mrb[232].mxu1  ;;  %v12001_v38 = vmax.f32 %v12000_v32, 0.0 }
 0x778   : > { %v6792_v33 = vadd.f32 %v6679_v49, %v6624_v28  ;;  %v6623_v19 = vmul.f32 %v11410_v31, %v6455_v10  ;;  %v6458_v11 = vmul.f32 %v8637_v54, %v7903_v22  ;;  %v7905_v45 = vpop.f32.mrb[233].mxu1  ;;  %8646 = vrcp.f32 %v6149_v9 }
 0x779   : > { %v8639_v2 = vpop.eup %8638  ;;  %v7906_v23 = vadd.f32 %v7905_v45, %v7904_v8  ;;  %v7907_v62 = vpop.f32.mrb[234].mxu1  ;;  %v12003_v28 = vmax.f32 %v12002_v30, 0.0  ;;  %v12006_v45 = vld [vmem:[#allocation29_spill] sm:$0xff]  ;;  %v12010_v30 = vld [vmem:[#allocation51_spill] sm:$0xff] }
 0x77a   : > { %v6816_v14 = vadd.f32 %v6792_v33, %v12001_v38  ;;  %v6791_v49 = vadd.f32 %v11529_v55, %v6623_v19  ;;  %v6457_v3 = vmul.f32 %v8639_v2, %v7900_v12  ;;  %v6626_v31 = vmul.f32 %v11446_v36, %v6458_v11  ;;  %v7908_v51 = vpop.f32.mrb[235].mxu1  ;;  %v12004_v2 = vld [vmem:[#allocation48_spill] sm:$0xff] }
 0x77b   : > { %v8641_v26 = vpop.eup %8640  ;;  %v7909_v22 = vadd.f32 %v7908_v51, %v7907_v62  ;;  %v12005_v55 = vmax.f32 %v12004_v2, 0.0  ;;  %v12007_v62 = vmax.f32 %v12006_v45, 0.0 }
 0x77c   : > { %6840 = vst.msk [vmem:[%s11577_s0 + $0x8] sm:$0xff] %vm4246_vm0, %v6816_v14  ;;  %v6815_v10 = vadd.f32 %v6791_v49, %v12003_v28  ;;  %v6625_v8 = vmul.f32 %v11425_v6, %v6457_v3  ;;  %v6794_v9 = vadd.f32 %v11533_v63, %v6626_v31  ;;  %v12008_v31 = vld [vmem:[#allocation5_spill] sm:$0xff]  ;;  %v12011_v28 = vmax.f32 %v12010_v30, 0.0 }
 0x77d   : > { %v8643_v29 = vpop.eup %8642  ;;  %v6460_v33 = vmul.f32 %v8641_v26, %v7909_v22  ;;  %v12009_v51 = vmax.f32 %v12008_v31, 0.0 }
 0x77e   : > { %6839 = vst.msk [vmem:[%s11577_s0] sm:$0xff] %vm4246_vm0, %v6815_v10  ;;  %v6793_v36 = vadd.f32 %v11531_v21, %v6625_v8  ;;  %v6818_v12 = vadd.f32 %v6794_v9, %v12005_v55  ;;  %v6459_v54 = vmul.f32 %v8643_v29, %v7906_v23  ;;  %v12012_v29 = vld [vmem:[#allocation10_spill] sm:$0xff] }
 0x77f   : > { %v6628_v19 = vmul.f32 %v11468_v58, %v6460_v33  ;;  %v7910_v11 = vpop.f32.mrb[236].mxu1  ;;  %v12013_v33 = vmax.f32 %v12012_v29, 0.0  ;;  %v12014_v55 = vld [vmem:[#allocation50_spill] sm:$0xff] }
 0x780   : > { %v6817_v32 = vadd.f32 %v6793_v36, %v12007_v62  ;;  %6842 = vst.msk [vmem:[%s11577_s0 + $0x18] sm:$0xff] %vm4246_vm0, %v6818_v12  ;;  %v6627_v6 = vmul.f32 %v11461_v7, %v6459_v54  ;;  %v7911_v63 = vpop.f32.mrb[237].mxu1  ;;  %v12015_v12 = vmax.f32 %v12014_v55, 0.0 }
 0x781   : > { %v8645_v38 = vpop.eup %8644  ;;  %v6796_v21 = vadd.f32 %v11537_v44, %v6628_v19  ;;  %v7912_v14 = vadd.f32 %v7911_v63, %v7910_v11  ;;  %v7913_v49 = vpop.f32.mrb[238].mxu1 }
 0x782   : > { %6841 = vst.msk [vmem:[%s11577_s0 + $0x10] sm:$0xff] %vm4246_vm0, %v6817_v32  ;;  %v6795_v58 = vadd.f32 %v11535_v52, %v6627_v6  ;;  %v7914_v23 = vpop.f32.mrb[239].mxu1  ;;  %v8647_v3 = vpop.eup %8646 }
 0x783   : > { %v6820_v26 = vadd.f32 %v6796_v21, %v12009_v51  ;;  %v6461_v22 = vmul.f32 %v8645_v38, %v7912_v14  ;;  %v7915_v7 = vadd.f32 %v7914_v23, %v7913_v49  ;;  %v6155_v19 = vpop.xlane.xlu0 %6154 }
 0x784   : > { %v6819_v10 = vadd.f32 %v6795_v58, %v12011_v28 }
 0x785   : > { %6844 = vst.msk [vmem:[%s11577_s0 + $0x28] sm:$0xff] %vm4246_vm0, %v6820_v26  ;;  %v6629_v44 = vmul.f32 %v11482_v4, %v6461_v22  ;;  %v6462_v8 = vmul.f32 %v8647_v3, %v7915_v7  ;;  %v6152_v4 = vpop.xlane.xlu1 %6151  ;;  %v12016_v22 = vmax.f32 %v10694_v53, 0.0 }
 0x786   : > { %6843 = vst.msk [vmem:[%s11577_s0 + $0x20] sm:$0xff] %vm4246_vm0, %v6819_v10  ;;  %8648 = vrcp.f32 %v6152_v4  ;;  %v12019_v4 = vld [vmem:[#allocation33_spill] sm:$0xff] }
 0x787   : > { %v6797_v52 = vadd.f32 %v11539_v34, %v6629_v44  ;;  %v6630_v9 = vmul.f32 %v11486_v43, %v6462_v8  ;;  %8650 = vrcp.f32 %v6155_v19  ;;  %v6161_v34 = vpop.xlane.xlu0 %6160  ;;  %v12017_v8 = vld [vmem:[#allocation2_spill] sm:$0xff]  ;;  %v12020_v19 = vmax.f32 %v12019_v4, 0.0 }
 0x789   : > { %v6821_v36 = vadd.f32 %v6797_v52, %v12013_v33  ;;  %v6798_v2 = vadd.f32 %v11541_v47, %v6630_v9  ;;  %v6158_v11 = vpop.xlane.xlu1 %6157 }
 0x78a   : > { %8652 = vrcp.f32 %v6158_v11 }
 0x78b   : > { %6845 = vst.msk [vmem:[%s11577_s0 + $0x30] sm:$0xff] %vm4246_vm0, %v6821_v36  ;;  %v6822_v54 = vadd.f32 %v6798_v2, %v12015_v12  ;;  %8654 = vrcp.f32 %v6161_v34  ;;  %v6167_v23 = vpop.xlane.xlu0 %6166 }
 0x78d   : > { %6846 = vst.msk [vmem:[%s11577_s0 + $0x38] sm:$0xff] %vm4246_vm0, %v6822_v54  ;;  %v6164_v14 = vpop.xlane.xlu1 %6163 }
 0x78e   : > { %8656 = vrcp.f32 %v6164_v14 }
 0x78f   : > { %8658 = vrcp.f32 %v6167_v23  ;;  %v6173_v36 = vpop.xlane.xlu0 %6172 }
 0x790   : > { %v8649_v6 = vpop.eup %8648 }
 0x791   : > { %v8651_v21 = vpop.eup %8650  ;;  %v6170_v33 = vpop.xlane.xlu1 %6169 }
 0x792   : > { %8660 = vrcp.f32 %v6170_v33 }
 0x793   : > { %8662 = vrcp.f32 %v6173_v36  ;;  %v6179_v14 = vpop.xlane.xlu0 %6178 }
 0x794   : > { %v8653_v44 = vpop.eup %8652 }
 0x795   : > { %v8655_v29 = vpop.eup %8654 }
 0x7a9   : > { %v7916_v45 = vpop.f32.mrb[240].mxu1 }
 0x7aa   : > { %v7917_v43 = vpop.f32.mrb[241].mxu1 }
 0x7ab   : > { %v7918_v62 = vadd.f32 %v7917_v43, %v7916_v45  ;;  %v7919_v32 = vpop.f32.mrb[242].mxu1 }
 0x7ac   : > { %v7920_v47 = vpop.f32.mrb[243].mxu1 }
 0x7ad   : > { %v6463_v63 = vmul.f32 %v8649_v6, %v7918_v62  ;;  %v7921_v38 = vadd.f32 %v7920_v47, %v7919_v32  ;;  %v8657_v62 = vpop.eup %8656  ;;  %v12021_v32 = vld [vmem:[#allocation4_spill] sm:$0xff] }
 0x7af   : > { %v6631_v49 = vmul.f32 %v11490_v1, %v6463_v63  ;;  %v6464_v58 = vmul.f32 %v8651_v21, %v7921_v38  ;;  %v8659_v63 = vpop.eup %8658  ;;  %v6176_v38 = vpop.xlane.xlu1 %6175 }
 0x7b0   : > { %8664 = vrcp.f32 %v6176_v38 }
 0x7b1   : > { %v6799_v3 = vadd.f32 %v11543_v24, %v6631_v49  ;;  %v6632_v31 = vmul.f32 %v11493_v48, %v6464_v58  ;;  %v7922_v51 = vpop.f32.mrb[244].mxu1  ;;  %v12018_v24 = vmax.f32 %v12017_v8, 0.0  ;;  %8666 = vrcp.f32 %v6179_v14 }
 0x7b2   : > { %v7923_v26 = vpop.f32.mrb[245].mxu1 }
 0x7b3   : > { %v6823_v7 = vadd.f32 %v6799_v3, %v12016_v22  ;;  %v6800_v30 = vadd.f32 %v11545_v15, %v6632_v31  ;;  %v7924_v28 = vadd.f32 %v7923_v26, %v7922_v51  ;;  %v7925_v10 = vpop.f32.mrb[246].mxu1  ;;  %v12023_v31 = vld [vmem:[#allocation7_spill] sm:$0xff] }
 0x7b4   : > { %v7926_v1 = vpop.f32.mrb[247].mxu1  ;;  %v12024_v51 = vmax.f32 %v12023_v31, 0.0 }
 0x7b5   : > { %6847 = vst.msk [vmem:[%s11577_s0 + $0x40] sm:$0xff] %vm4246_vm0, %v6823_v7  ;;  %v6824_v52 = vadd.f32 %v6800_v30, %v12018_v24  ;;  %v6465_v48 = vmul.f32 %v8653_v44, %v7924_v28  ;;  %v7927_v9 = vadd.f32 %v7926_v1, %v7925_v10  ;;  %v8661_v28 = vpop.eup %8660  ;;  %v12025_v10 = vld [vmem:[#allocation6_spill] sm:$0xff]  ;;  %v6182_v24 = vpop.xlane.xlu1 %6181 }
 0x7b6   : > { %v8663_v8 = vpop.eup %8662  ;;  %8668 = vrcp.f32 %v6182_v24 }
 0x7b7   : > { %6848 = vst.msk [vmem:[%s11577_s0 + $0x48] sm:$0xff] %vm4246_vm0, %v6824_v52  ;;  %v6633_v53 = vmul.f32 %v11495_v37, %v6465_v48  ;;  %v6466_v15 = vmul.f32 %v8655_v29, %v7927_v9  ;;  %v6185_v48 = vpop.xlane.xlu0 %6184 }
 0x7b8   : > { %8670 = vrcp.f32 %v6185_v48 }
 0x7b9   : > { %v6801_v2 = vadd.f32 %v11547_v57, %v6633_v53  ;;  %v6634_v55 = vmul.f32 %v11497_v35, %v6466_v15  ;;  %v7928_v12 = vpop.f32.mrb[248].mxu1  ;;  %v12022_v57 = vmax.f32 %v12021_v32, 0.0  ;;  %v12027_v15 = vld [vmem:[#allocation8_spill] sm:$0xff] }
 0x7ba   : > { %v7929_v54 = vpop.f32.mrb[249].mxu1  ;;  %v12028_v36 = vmax.f32 %v12027_v15, 0.0  ;;  %v8665_v4 = vpop.eup %8664 }
 0x7bb   : > { %v6825_v11 = vadd.f32 %v6801_v2, %v12020_v19  ;;  %v6802_v34 = vadd.f32 %v11549_v56, %v6634_v55  ;;  %v7930_v45 = vadd.f32 %v7929_v54, %v7928_v12  ;;  %v7931_v43 = vpop.f32.mrb[250].mxu1  ;;  %v12029_v19 = vld [vmem:[#allocation12_spill] sm:$0xff] }
 0x7bc   : > { %v7932_v37 = vpop.f32.mrb[251].mxu1 }
 0x7bd   : > { %6849 = vst.msk [vmem:[%s11577_s0 + $0x50] sm:$0xff] %vm4246_vm0, %v6825_v11  ;;  %v6826_v6 = vadd.f32 %v6802_v34, %v12022_v57  ;;  %v6467_v35 = vmul.f32 %v8657_v62, %v7930_v45  ;;  %v7933_v47 = vadd.f32 %v7932_v37, %v7931_v43  ;;  %v8667_v45 = vpop.eup %8666  ;;  %v6188_v43 = vpop.xlane.xlu1 %6187 }
 0x7be   : > { %v6191_v37 = vpop.xlane.xlu0 %6190  ;;  %8672 = vrcp.f32 %v6188_v43 }
 0x7bf   : > { %6850 = vst.msk [vmem:[%s11577_s0 + $0x58] sm:$0xff] %vm4246_vm0, %v6826_v6  ;;  %v6635_v21 = vmul.f32 %v11499_v59, %v6467_v35  ;;  %v6468_v56 = vmul.f32 %v8659_v63, %v7933_v47  ;;  %v12031_v47 = vld [vmem:[#allocation14_spill] sm:$0xff]  ;;  %8674 = vrcp.f32 %v6191_v37 }
 0x7c0   : > { %v12032_v63 = vmax.f32 %v12031_v47, 0.0 }
 0x7c1   : > { %v6803_v49 = vadd.f32 %v11551_v0, %v6635_v21  ;;  %v6636_v58 = vmul.f32 %v11501_v40, %v6468_v56  ;;  %v7934_v23 = vpop.f32.mrb[252].mxu1  ;;  %v12026_v0 = vmax.f32 %v12025_v10, 0.0  ;;  %v12035_v10 = vld [vmem:[#allocation53_spill] sm:$0xff] }
 0x7c2   : > { %v7935_v3 = vpop.f32.mrb[253].mxu1 }
 0x7c3   : > { %v6827_v26 = vadd.f32 %v6803_v49, %v12024_v51  ;;  %v6804_v22 = vadd.f32 %v11553_v46, %v6636_v58  ;;  %v7936_v7 = vadd.f32 %v7935_v3, %v7934_v23  ;;  %v7937_v30 = vpop.f32.mrb[254].mxu1  ;;  %v8669_v49 = vpop.eup %8668  ;;  %v12033_v58 = vld [vmem:[#allocation52_spill] sm:$0xff] }
 0x7c4   : > { %v7938_v59 = vpop.f32.mrb[255].mxu1  ;;  %v8671_v31 = vpop.eup %8670 }
 0x7c5   : > { %6851 = vst.msk [vmem:[%s11577_s0 + $0x60] sm:$0xff] %vm4246_vm0, %v6827_v26  ;;  %v6828_v44 = vadd.f32 %v6804_v22, %v12026_v0  ;;  %v6469_v40 = vmul.f32 %v8661_v28, %v7936_v7  ;;  %v7939_v1 = vadd.f32 %v7938_v59, %v7937_v30  ;;  %v6194_v51 = vpop.xlane.xlu1 %6193  ;;  %v6197_v22 = vpop.xlane.xlu0 %6196  ;;  %v12036_v0 = vmax.f32 %v12035_v10, 0.0 }
 0x7c6   : > { %8676 = vrcp.f32 %v6194_v51 }
 0x7c7   : > { %6852 = vst.msk [vmem:[%s11577_s0 + $0x68] sm:$0xff] %vm4246_vm0, %v6828_v44  ;;  %v6637_v52 = vmul.f32 %v11503_v27, %v6469_v40  ;;  %v6470_v46 = vmul.f32 %v8663_v8, %v7939_v1  ;;  %8678 = vrcp.f32 %v6197_v22 }
 0x7c8   : > { %v8673_v24 = vpop.eup %8672 }
 0x7c9   : > { %v6805_v9 = vadd.f32 %v11555_v16, %v6637_v52  ;;  %v6638_v29 = vmul.f32 %v11505_v18, %v6470_v46  ;;  %v7940_v33 = vpop.f32.mrb[0].mxu1  ;;  %v12030_v16 = vmax.f32 %v12029_v19, 0.0  ;;  %v12037_v52 = vld [vmem:[#allocation17_spill] sm:$0xff] }
 0x7ca   : > { %v7941_v53 = vpop.f32.mrb[1].mxu1 }
 0x7cb   : > { %v6829_v2 = vadd.f32 %v6805_v9, %v12028_v36  ;;  %v6806_v55 = vadd.f32 %v11557_v25, %v6638_v29  ;;  %v7942_v12 = vadd.f32 %v7941_v53, %v7940_v33  ;;  %v7943_v54 = vpop.f32.mrb[2].mxu1  ;;  %v8675_v9 = vpop.eup %8674  ;;  %v12039_v53 = vld [vmem:[#allocation9_spill] sm:$0xff] }
 0x7cc   : > { %v7944_v27 = vpop.f32.mrb[3].mxu1 }
 0x7cd   : > { %6853 = vst.msk [vmem:[%s11577_s0 + $0x70] sm:$0xff] %vm4246_vm0, %v6829_v2  ;;  %v6830_v11 = vadd.f32 %v6806_v55, %v12030_v16  ;;  %v6471_v18 = vmul.f32 %v8665_v4, %v7942_v12  ;;  %v7945_v34 = vadd.f32 %v7944_v27, %v7943_v54  ;;  %v12040_v55 = vld [vmem:[#allocation54_spill] sm:$0xff]  ;;  %v12042_v4 = vld [vmem:[#allocation16_spill] sm:$0xff] }
 0x7ce   : > { %v12041_v12 = vmax.f32 %v12040_v55, 0.0 }
 0x7cf   : > { %6854 = vst.msk [vmem:[%s11577_s0 + $0x78] sm:$0xff] %vm4246_vm0, %v6830_v11  ;;  %v6639_v62 = vmul.f32 %v11507_v39, %v6471_v18  ;;  %v6472_v25 = vmul.f32 %v8667_v45, %v7945_v34 }
 0x7d0   : > { %v8677_v11 = vpop.eup %8676 }
 0x7d1   : > { %v6807_v32 = vadd.f32 %v11559_v60, %v6639_v62  ;;  %v6640_v57 = vmul.f32 %v11509_v61, %v6472_v25  ;;  %v7946_v6 = vpop.f32.mrb[4].mxu1  ;;  %v12034_v60 = vmax.f32 %v12033_v58, 0.0  ;;  %v8679_v62 = vpop.eup %8678  ;;  %v12045_v25 = vld [vmem:[#allocation13_spill] sm:$0xff] }
 0x7d2   : > { %v7947_v35 = vpop.f32.mrb[5].mxu1 }
 0x7d3   : > { %v6831_v38 = vadd.f32 %v6807_v32, %v12032_v63  ;;  %v6808_v21 = vadd.f32 %v11561_v50, %v6640_v57  ;;  %v7948_v56 = vadd.f32 %v7947_v35, %v7946_v6  ;;  %v7949_v14 = vpop.f32.mrb[6].mxu1  ;;  %v6784_v57 = vpop.permute.xlu0 %6783  ;;  %v12046_v35 = vld [vmem:[#allocation11_spill] sm:$0xff] }
 0x7d4   : > { %v7950_v39 = vpop.f32.mrb[7].mxu1  ;;  %v6789_v63 = vpop.permute.xlu1 %6788 }
 0x7d5   : > { %6855 = vst.msk [vmem:[%s11577_s0 + $0x80] sm:$0xff] %vm4246_vm0, %v6831_v38  ;;  %v6832_v23 = vadd.f32 %v6808_v21, %v12034_v60  ;;  %v6473_v61 = vmul.f32 %v8669_v49, %v7948_v56  ;;  %v7951_v3 = vadd.f32 %v7950_v39, %v7949_v14  ;;  %v12047_v38 = vld [vmem:[#allocation23_spill] sm:$0xff]  ;;  %v12049_v49 = vld [vmem:[#allocation20_spill] sm:$0xff] }
 0x7d6   : > { %v12048_v21 = vmax.f32 %v12047_v38, 0.0  ;;  %v12050_v39 = vmax.f32 %v12049_v49, 0.0 }
 0x7d7   : > { %6856 = vst.msk [vmem:[%s11577_s0 + $0x88] sm:$0xff] %vm4246_vm0, %v6832_v23  ;;  %v6641_v26 = vmul.f32 %v11511_v5, %v6473_v61  ;;  %v6474_v50 = vmul.f32 %v8671_v31, %v7951_v3 }
 0x7d9   : > { %v6809_v7 = vadd.f32 %v11563_v41, %v6641_v26  ;;  %v6642_v30 = vmul.f32 %v11516_v20, %v6474_v50  ;;  %v7952_v28 = vpop.f32.mrb[8].mxu1  ;;  %v12038_v41 = vmax.f32 %v12037_v52, 0.0 }
 0x7da   : > { %v7953_v59 = vpop.f32.mrb[9].mxu1 }
 0x7db   : > { %v6833_v44 = vadd.f32 %v6809_v7, %v12036_v0  ;;  %v6810_v40 = vadd.f32 %v11565_v13, %v6642_v30  ;;  %v7954_v1 = vadd.f32 %v7953_v59, %v7952_v28  ;;  %v7955_v8 = vpop.f32.mrb[10].mxu1 }
 0x7dc   : > { %v7956_v5 = vpop.f32.mrb[11].mxu1 }
 0x7dd   : > { %6857 = vst.msk [vmem:[%s11577_s0 + $0x90] sm:$0xff] %vm4246_vm0, %v6833_v44  ;;  %v6834_v46 = vadd.f32 %v6810_v40, %v12038_v41  ;;  %v6475_v20 = vmul.f32 %v8673_v24, %v7954_v1  ;;  %v7957_v48 = vadd.f32 %v7956_v5, %v7955_v8 }
 0x7df   : > { %6858 = vst.msk [vmem:[%s11577_s0 + $0x98] sm:$0xff] %vm4246_vm0, %v6834_v46  ;;  %v6643_v29 = vmul.f32 %v11521_v42, %v6475_v20  ;;  %v6476_v33 = vmul.f32 %v8675_v9, %v7957_v48  ;;  %v12043_v42 = vld [vmem:[#allocation19_spill] sm:$0xff] }
 0x7e0   : > { %v12044_v34 = vmax.f32 %v12043_v42, 0.0 }
 0x7e1   : > { %v6811_v13 = vadd.f32 %v11567_v17, %v6643_v29  ;;  %v6644_v15 = vmul.f32 %v12039_v53, %v6476_v33  ;;  %v7958_v36 = vpop.f32.mrb[12].mxu1 }
 0x7e2   : > { %v7959_v2 = vpop.f32.mrb[13].mxu1 }
 0x7e3   : > { %v6835_v54 = vadd.f32 %v6811_v13, %v12041_v12  ;;  %v6812_v27 = vadd.f32 %v12042_v4, %v6644_v15  ;;  %v7960_v19 = vadd.f32 %v7959_v2, %v7958_v36  ;;  %v7961_v16 = vpop.f32.mrb[14].mxu1 }
 0x7e4   : > { %v7962_v18 = vpop.f32.mrb[15].mxu1 }
 0x7e5   : > { %6859 = vst.msk [vmem:[%s11577_s0 + $0xa0] sm:$0xff] %vm4246_vm0, %v6835_v54  ;;  %v6836_v17 = vadd.f32 %v6812_v27, %v12044_v34  ;;  %v6477_v45 = vmul.f32 %v8677_v11, %v7960_v19  ;;  %v7963_v43 = vadd.f32 %v7962_v18, %v7961_v16 }
 0x7e7   : > { %6860 = vst.msk [vmem:[%s11577_s0 + $0xa8] sm:$0xff] %vm4246_vm0, %v6836_v17  ;;  %v6645_v37 = vmul.f32 %v12045_v25, %v6477_v45  ;;  %v6478_v32 = vmul.f32 %v8679_v62, %v7963_v43 }
 0x7e9   : > { %v6813_v6 = vadd.f32 %v6784_v57, %v6645_v37  ;;  %v6646_v47 = vmul.f32 %v12046_v35, %v6478_v32 }
 0x7eb   : > { %v6837_v56 = vadd.f32 %v6813_v6, %v12048_v21  ;;  %v6814_v14 = vadd.f32 %v6789_v63, %v6646_v47 }
 0x7ed   : > { %6861 = vst.msk [vmem:[%s11577_s0 + $0xb0] sm:$0xff] %vm4246_vm0, %v6837_v56  ;;  %v6838_v58 = vadd.f32 %v6814_v14, %v12050_v39 }
 0x7ef   : > { %6862 = vst.msk [vmem:[%s11577_s0 + $0xb8] sm:$0xff] %vm4246_vm0, %v6838_v58 }
 0x7f0 PF: > { %s33_s4 = sadd.s32 1, %s8686_s4  }
 0x7f1   : > { %p30_p5 = scmp.ge.s32.totalorder %s33_s4, 4  }
 0x7f3   :  { %32 = sbr.rel (!%p30_p5) target bundleno = 9 (0x9), region = 151 }

</bundles_post_ra>
